<compile_context>
chip_gen: v5e
topology: v5e:2x2
jax: 0.10.0
libtpu: 0.0.40
codegen_flags: <defaults>
</compile_context>

<pallas_src>
import functools

import numpy as np
import jax
import jax.numpy as jnp
from jax import lax
from jax.experimental import pallas as pl
from jax.experimental.pallas import tpu as pltpu


def _round_up(x, m):
    return ((x + m - 1) // m) * m


# ----------------------------------------------------------------------------
# Pallas kernel: fused KxK conv -> +bias(BN) -> (*col-mask) -> (+residual)
#                -> (relu), consuming/producing flattened "frame" layouts.
#
# Frame layout (pad_out=True outputs): rows = (ho + 3) * pitch, where the valid
# (ho, wo) output image sits at flat offset pitch+1 with zero borders, i.e. the
# buffer *is* the next 3x3/pad-1 conv's flattened padded input (pitch = wo + 2).
# ----------------------------------------------------------------------------
def _conv_frame_kernel(*refs, n_taps, tap_offsets, pitch, ho, row_blk,
                       pad_out, apply_relu, has_residual):
    i = 0
    x_ref = refs[i]; i += 1          # (1, R, Cin)      bf16 slab input
    w_ref = refs[i]; i += 1          # (T, Cin, tn)     bf16, BN scale folded
    b_ref = refs[i]; i += 1          # (1, tn)          f32 folded-BN bias
    m_ref = None
    if pad_out:
        m_ref = refs[i]; i += 1      # (ho*pitch, 1)    f32 column-validity mask
    res_ref = None
    if has_residual:
        res_ref = refs[i]; i += 1    # (1, R_res, tn)   bf16 residual frame
    o_ref = refs[i]                  # (1, out_rows, tn)

    tn = o_ref.shape[-1]
    out_rows = o_ref.shape[1]
    out_row0 = pitch + 1 if pad_out else 0
    res_row0 = pitch + 1             # residual frames always carry a 1-px border

    if pad_out:
        # top border: pad row 0 plus the first element of row 1
        o_ref[0, :out_row0, :] = jnp.zeros((out_row0, tn), o_ref.dtype)

    bias = b_ref[...].astype(jnp.float32)           # (1, tn)

    n_blocks = -(-ho // row_blk)
    for blk in range(n_blocks):
        r0 = blk * row_blk
        rows = min(row_blk, ho - r0) * pitch
        base = r0 * pitch

        # accumulator initialized with the bias (no zero-fill pass), one MXU
        # matmul per tap on a contiguous sublane-offset slab.
        off0 = base + tap_offsets[0]
        acc = bias + jnp.dot(x_ref[0, off0:off0 + rows, :], w_ref[0],
                             preferred_element_type=jnp.float32)
        for t in range(1, n_taps):
            off = base + tap_offsets[t]
            acc = acc + jnp.dot(x_ref[0, off:off + rows, :], w_ref[t],
                                preferred_element_type=jnp.float32)

        if pad_out:
            # zero the wrap/pad columns so the frame is a valid padded image
            acc = acc * m_ref[base:base + rows, :]
        if has_residual:
            acc = acc + res_ref[0, res_row0 + base:res_row0 + base + rows,
                                :].astype(jnp.float32)
        if apply_relu:
            acc = jnp.maximum(acc, 0.0)
        o_ref[0, out_row0 + base:out_row0 + base + rows, :] = acc.astype(o_ref.dtype)

    if pad_out:
        tail0 = out_row0 + ho * pitch
        o_ref[0, tail0:, :] = jnp.zeros((out_rows - tail0, tn), o_ref.dtype)


# ----------------------------------------------------------------------------
# Wrapper: one fused conv (+BN bias) (+residual) (+ReLU) over the frame layout.
# ----------------------------------------------------------------------------
def conv_frame(x_flat, w_taps, bias, *, tap_offsets, pitch, wo, ho, pad_out,
               apply_relu, residual=None, out_dtype=jnp.bfloat16, tn=None):
    N, R, Cin = x_flat.shape
    T, Cin_w, Cp = w_taps.shape
    assert Cin_w == Cin and Cp % 128 == 0 and T == len(tap_offsets)
    assert max(tap_offsets) + ho * pitch <= R, "input frame too short for taps"

    if tn is None:
        tn = 256 if Cp % 256 == 0 else 128
    tn = min(tn, Cp)
    n_cblk = Cp // tn
    # per-block f32 accumulator targeted at ~64 KiB of vregs
    row_blk = max(1, min(ho, (64 * 1024) // (pitch * tn * 4)))
    out_rows = (ho + 3) * pitch if pad_out else ho * pitch

    kernel = functools.partial(
        _conv_frame_kernel, n_taps=T,
        tap_offsets=tuple(int(t) for t in tap_offsets),
        pitch=pitch, ho=ho, row_blk=row_blk, pad_out=pad_out,
        apply_relu=apply_relu, has_residual=residual is not None)

    in_specs = [
        pl.BlockSpec((1, R, Cin), lambda n, c: (n, 0, 0)),      # image slab
        pl.BlockSpec((T, Cin, tn), lambda n, c: (0, 0, c)),     # weights
        pl.BlockSpec((1, tn), lambda n, c: (0, c)),             # bias
    ]
    args = [x_flat, w_taps, bias]
    if pad_out:
        colmask = jnp.asarray(
            np.tile((np.arange(pitch) < wo).astype(np.float32), ho)[:, None])
        in_specs.append(pl.BlockSpec((ho * pitch, 1), lambda n, c: (0, 0)))
        args.append(colmask)
    if residual is not None:
        assert residual.shape[1] >= pitch + 1 + ho * pitch
        assert residual.shape[2] == Cp
        in_specs.append(pl.BlockSpec((1, residual.shape[1], tn),
                                     lambda n, c: (n, 0, c)))
        args.append(residual)

    return pl.pallas_call(
        kernel,
        out_shape=jax.ShapeDtypeStruct((N, out_rows, Cp), out_dtype),
        grid_spec=pltpu.PrefetchScalarGridSpec(
            num_scalar_prefetch=0,
            grid=(N, n_cblk),
            in_specs=in_specs,
            out_specs=pl.BlockSpec((1, out_rows, tn), lambda n, c: (n, 0, c)),
        ),
        compiler_params=pltpu.CompilerParams(
            dimension_semantics=("parallel", "parallel"),
            vmem_limit_bytes=48 * 1024 * 1024),
    )(*args)


# ----------------------------------------------------------------------------
# Input preparation: channel pad, spatial pad, phase-decompose (stride>1),
# flatten to the slab layout, and compute per-tap static row offsets.
# ----------------------------------------------------------------------------
def _prepare_conv_input(x_nhwc, cin_pad, ksize, pad, stride, pitch):
    N, H, W, C = x_nhwc.shape
    K, p, s = ksize, pad, stride
    Ho = (H + 2 * p - K) // s + 1
    Wo = (W + 2 * p - K) // s + 1

    x = x_nhwc.astype(jnp.bfloat16)
    if cin_pad > C:
        x = jnp.pad(x, ((0, 0), (0, 0), (0, 0), (0, cin_pad - C)))
    if p:
        x = jnp.pad(x, ((0, 0), (p, p), (p, p), (0, 0)))

    # each tap (kh, kw) reads phase (kh%s, kw%s) at within-phase offset
    # (kh//s, kw//s); only phases actually used by a tap are materialized.
    tap_list = [((kh % s, kw % s), (kh // s, kw // s))
                for kh in range(K) for kw in range(K)]
    used = sorted({ph for ph, _ in tap_list})
    phase_index = {ph: i for i, ph in enumerate(used)}

    phases = [x[:, ph::s, pw::s, :] for (ph, pw) in used]
    nat_h = max(im.shape[1] for im in phases)
    nat_w = max(im.shape[2] for im in phases)
    assert pitch >= nat_w, "frame pitch too small for this conv"
    max_off = max(dh * pitch + dw for _, (dh, dw) in tap_list)
    hph = max(Ho + (max_off + pitch - 1) // pitch, nat_h)

    flat = []
    for im in phases:
        im = jnp.pad(im, ((0, 0), (0, hph - im.shape[1]),
                          (0, pitch - im.shape[2]), (0, 0)))
        flat.append(im.reshape(N, hph * pitch, cin_pad))
    x_flat = jnp.concatenate(flat, axis=1) if len(flat) > 1 else flat[0]

    tap_offsets = [phase_index[ph] * hph * pitch + dh * pitch + dw
                   for ph, (dh, dw) in tap_list]
    return x_flat, tap_offsets, Ho, Wo


# ----------------------------------------------------------------------------
# Eval-mode BN folding into weight columns + bias, with channel padding.
# ----------------------------------------------------------------------------
def fold_bn_into_weight(w_oihw, bn_params, cin_pad=None, cout_pad=None, eps=1e-5):
    gamma, beta, mean, var = bn_params
    scale = gamma / jnp.sqrt(var + eps)
    bias = beta - mean * scale
    cout, cin, kh, kw = w_oihw.shape
    w = jnp.transpose(w_oihw, (2, 3, 1, 0)).reshape(kh * kw, cin, cout)
    w = w * scale[None, None, :]
    cin_pad = cin if cin_pad is None else cin_pad
    cout_pad = cout if cout_pad is None else cout_pad
    w = jnp.pad(w, ((0, 0), (0, cin_pad - cin), (0, cout_pad - cout)))
    bias = jnp.pad(bias, (0, cout_pad - cout)).reshape(1, cout_pad)
    return w.astype(jnp.bfloat16), bias.astype(jnp.float32)


# ----------------------------------------------------------------------------
# BasicBlock forward (Pallas-backed)
# ----------------------------------------------------------------------------
def basic_block_forward(x_nchw, params, stride=1):
    N, Cin, H, W = x_nchw.shape
    planes = params["w1"].shape[0]
    Cp = _round_up(planes, 128)
    Cinp = _round_up(Cin, 128)

    x = jnp.transpose(x_nchw, (0, 2, 3, 1))                   # NHWC f32

    Ho = (H + 2 - 3) // stride + 1
    Wo = (W + 2 - 3) // stride + 1
    pitch = Wo + 2                                            # shared frame pitch

    # conv1 (3x3, stride s) + bn1 + relu -> zero-bordered frame for conv2
    x1_flat, taps1, ho1, wo1 = _prepare_conv_input(x, Cinp, 3, 1, stride, pitch)
    assert (ho1, wo1) == (Ho, Wo)
    w1, b1 = fold_bn_into_weight(params["w1"], params["bn1"],
                                 cin_pad=Cinp, cout_pad=Cp)
    out1_frame = conv_frame(x1_flat, w1, b1, tap_offsets=taps1, pitch=pitch,
                            wo=Wo, ho=Ho, pad_out=True, apply_relu=True)

    # shortcut branch -> same frame layout (read by conv2 at offset pitch+1)
    if stride != 1 or Cin != planes:
        xs_flat, taps_sc, _, _ = _prepare_conv_input(x, Cinp, 1, 0, stride, pitch)
        wsc, bsc = fold_bn_into_weight(params["w_sc"], params["bn_sc"],
                                       cin_pad=Cinp, cout_pad=Cp)
        res_frame = conv_frame(xs_flat, wsc, bsc, tap_offsets=taps_sc, pitch=pitch,
                               wo=Wo, ho=Ho, pad_out=True, apply_relu=False)
    else:
        # identity shortcut: conv1's padded input frame already holds x at the
        # (pitch+1)-shifted interior, so it doubles as the residual source.
        res_frame = x1_flat

    # conv2 (3x3, stride 1) + bn2 + residual + relu, fully fused in-kernel
    w2, b2 = fold_bn_into_weight(params["w2"], params["bn2"],
                                 cin_pad=Cp, cout_pad=Cp)
    taps2 = [kh * pitch + kw for kh in range(3) for kw in range(3)]
    out2 = conv_frame(out1_frame, w2, b2, tap_offsets=taps2, pitch=pitch,
                      wo=Wo, ho=Ho, pad_out=False, apply_relu=True,
                      residual=res_frame, out_dtype=jnp.float32)

    out = out2.reshape(N, Ho, pitch, Cp)[:, :, :Wo, :planes]
    return jnp.transpose(out, (0, 3, 1, 2))                   # NCHW f32


# ----------------------------------------------------------------------------
# Pure-JAX reference (for correctness check)
# ----------------------------------------------------------------------------
def ref_forward(x, params, stride):
    def conv(x, w, s, pad):
        return lax.conv_general_dilated(
            x, w, (s, s), [(pad, pad), (pad, pad)],
            dimension_numbers=("NCHW", "OIHW", "NCHW"))

    def bn(x, bn_params):
        g, b, m, v = bn_params
        sc = g / jnp.sqrt(v + 1e-5)
        return (x - m[None, :, None, None]) * sc[None, :, None, None] \
            + b[None, :, None, None]

    Cin = x.shape[1]
    planes = params["w1"].shape[0]
    out = jnp.maximum(bn(conv(x, params["w1"], stride, 1), params["bn1"]), 0.0)
    out = bn(conv(out, params["w2"], 1, 1), params["bn2"])
    if stride != 1 or Cin != planes:
        sc = bn(conv(x, params["w_sc"], stride, 0), params["bn_sc"])
    else:
        sc = x
    return jnp.maximum(out + sc, 0.0)


def make_bn_params(key, c):
    k1, k2, k3, k4 = jax.random.split(key, 4)
    gamma = 1.0 + 0.1 * jax.random.normal(k1, (c,), jnp.float32)
    beta = 0.1 * jax.random.normal(k2, (c,), jnp.float32)
    mean = 0.1 * jax.random.normal(k3, (c,), jnp.float32)
    var = 1.0 + 0.1 * jnp.abs(jax.random.normal(k4, (c,), jnp.float32))
    return (gamma, beta, mean, var)


def make_params(key, in_planes, planes):
    ks = jax.random.split(key, 6)
    return {
        "w1": 0.1 * jax.random.normal(ks[0], (planes, in_planes, 3, 3), jnp.float32),
        "w2": 0.1 * jax.random.normal(ks[1], (planes, planes, 3, 3), jnp.float32),
        "w_sc": 0.1 * jax.random.normal(ks[2], (planes, in_planes, 1, 1), jnp.float32),
        "bn1": make_bn_params(ks[3], planes),
        "bn2": make_bn_params(ks[4], planes),
        "bn_sc": make_bn_params(ks[5], planes),
    }


if __name__ == "__main__":
    key = jax.random.PRNGKey(0)
    fwd = jax.jit(basic_block_forward, static_argnames=("stride",))

    # (name, N, in_planes, planes, H, W, stride)
    configs = [
        ("proj_s1", 2, 4, 8, 16, 16, 1),    # channel-change projection shortcut
        ("identity", 2, 8, 8, 16, 16, 1),   # identity shortcut
        ("proj_s2", 2, 4, 8, 16, 16, 2),    # strided conv + projection shortcut
    ]
    for i, (name, N, cin, planes, H, W, stride) in enumerate(configs):
        k = jax.random.fold_in(key, i)
        kx, kp = jax.random.split(k)
        x = jax.random.normal(kx, (N, cin, H, W), jnp.float32)
        params = make_params(kp, cin, planes)

        out = jax.block_until_ready(fwd(x, params, stride=stride))
        ref = jax.block_until_ready(ref_forward(x, params, stride))
        assert out.shape == ref.shape, f"{name}: {out.shape} vs {ref.shape}"
        err = float(jnp.max(jnp.abs(out - ref)))
        # bf16 MXU operands + bf16 inter-kernel frames -> loose tolerance.
        assert jnp.allclose(out, ref, atol=1e-1, rtol=1e-1), \
            f"{name}: max abs err = {err}"

    print("KERNEL_OK")
</pallas_src>

<mosaic_0001>
module attributes {stable_mosaic.version = 11 : i64} {
  func.func @_conv_frame_kernel(%arg0: i32, %arg1: i32, %arg2: memref<1x288x128xbf16, #tpu.memory_space<vmem>>, %arg3: memref<1x128x128xbf16, #tpu.memory_space<vmem>>, %arg4: memref<1x128xf32, #tpu.memory_space<vmem>>, %arg5: memref<288x1xf32, #tpu.memory_space<vmem>>, %arg6: memref<1x342x128xbf16, #tpu.memory_space<vmem>>) attributes {dimension_semantics = [#tpu.dimension_semantics<parallel>, #tpu.dimension_semantics<parallel>], iteration_bounds = array<i64: 2, 1>, scalar_prefetch = 0 : i64, scratch_operands = 0 : i64, tpu.core_type = #tpu.core_type<tc>, window_params = [{transform_indices = @transform_0, window_bounds = array<i64: 1, 288, 128>}, {transform_indices = @transform_1, window_bounds = array<i64: 1, 128, 128>}, {transform_indices = @transform_2, window_bounds = array<i64: 1, 128>}, {pipeline_mode = #tpu.pipeline_mode<synchronous>, transform_indices = @transform_3, window_bounds = array<i64: 288, 1>}, {transform_indices = @transform_4, window_bounds = array<i64: 1, 342, 128>}]} {
    %cst = arith.constant 0.000000e+00 : bf16
    %0 = vector.broadcast %cst : bf16 to vector<19x128xbf16>
    %c0 = arith.constant 0 : index
    %c0_0 = arith.constant 0 : index
    %c0_1 = arith.constant 0 : index
    %1 = vector.load %arg6[%c0, %c0_0, %c0_1] : memref<1x342x128xbf16, #tpu.memory_space<vmem>>, vector<1x19x128xbf16>
    %2 = vector.shape_cast %1 : vector<1x19x128xbf16> to vector<19x128xbf16>
    %3 = vector.shape_cast %0 : vector<19x128xbf16> to vector<1x19x128xbf16>
    tpu.vector_store %arg6[%c0, %c0_0, %c0_1], %3 {strides = array<i32>} : memref<1x342x128xbf16, #tpu.memory_space<vmem>>, vector<1x19x128xbf16>,
    %c0_2 = arith.constant 0 : index
    %c0_3 = arith.constant 0 : index
    %4 = vector.load %arg4[%c0_2, %c0_3] : memref<1x128xf32, #tpu.memory_space<vmem>>, vector<1x128xf32>
    %c0_4 = arith.constant 0 : index
    %c0_5 = arith.constant 0 : index
    %c0_6 = arith.constant 0 : index
    %5 = vector.load %arg2[%c0_4, %c0_5, %c0_6] : memref<1x288x128xbf16, #tpu.memory_space<vmem>>, vector<1x126x128xbf16>
    %6 = vector.shape_cast %5 : vector<1x126x128xbf16> to vector<126x128xbf16>
    %c0_7 = arith.constant 0 : index
    %c0_8 = arith.constant 0 : index
    %c0_9 = arith.constant 0 : index
    %7 = vector.load %arg3[%c0_7, %c0_8, %c0_9] : memref<1x128x128xbf16, #tpu.memory_space<vmem>>, vector<1x128x128xbf16>
    %8 = vector.shape_cast %7 : vector<1x128x128xbf16> to vector<128x128xbf16>
    %cst_10 = arith.constant dense<0.000000e+00> : vector<126x128xf32>
    %9 = tpu.matmul %6, %8, %cst_10 {dimension_numbers = #tpu.dot_dimension_numbers<[1], [0], [0], [1], [0, 0, 1, 1], [], []>} : vector<126x128xbf16>, vector<128x128xbf16>, vector<126x128xf32> -> vector<126x128xf32>
    %10 = vector.broadcast %4 : vector<1x128xf32> to vector<126x128xf32>
    %11 = arith.addf %10, %9 : vector<126x128xf32>
    %c0_11 = arith.constant 0 : index
    %c0_12 = arith.constant 0 : index
    %12 = vector.load %arg5[%c0_11, %c0_12] : memref<288x1xf32, #tpu.memory_space<vmem>>, vector<126x1xf32>
    %13 = vector.broadcast %12 : vector<126x1xf32> to vector<126x128xf32>
    %14 = arith.mulf %11, %13 : vector<126x128xf32>
    %15 = arith.truncf %14 : vector<126x128xf32> to vector<126x128xbf16>
    %c0_13 = arith.constant 0 : index
    %c19 = arith.constant 19 : index
    %c0_14 = arith.constant 0 : index
    %16 = vector.load %arg6[%c0_13, %c19, %c0_14] : memref<1x342x128xbf16, #tpu.memory_space<vmem>>, vector<1x126x128xbf16>
    %17 = vector.shape_cast %16 : vector<1x126x128xbf16> to vector<126x128xbf16>
    %18 = vector.shape_cast %15 : vector<126x128xbf16> to vector<1x126x128xbf16>
    tpu.vector_store %arg6[%c0_13, %c19, %c0_14], %18 {strides = array<i32>} : memref<1x342x128xbf16, #tpu.memory_space<vmem>>, vector<1x126x128xbf16>,
    %c0_15 = arith.constant 0 : index
    %c126 = arith.constant 126 : index
    %c0_16 = arith.constant 0 : index
    %19 = vector.load %arg2[%c0_15, %c126, %c0_16] : memref<1x288x128xbf16, #tpu.memory_space<vmem>>, vector<1x126x128xbf16>
    %20 = vector.shape_cast %19 : vector<1x126x128xbf16> to vector<126x128xbf16>
    %c0_17 = arith.constant 0 : index
    %c0_18 = arith.constant 0 : index
    %c0_19 = arith.constant 0 : index
    %21 = vector.load %arg3[%c0_17, %c0_18, %c0_19] : memref<1x128x128xbf16, #tpu.memory_space<vmem>>, vector<1x128x128xbf16>
    %22 = vector.shape_cast %21 : vector<1x128x128xbf16> to vector<128x128xbf16>
    %cst_20 = arith.constant dense<0.000000e+00> : vector<126x128xf32>
    %23 = tpu.matmul %20, %22, %cst_20 {dimension_numbers = #tpu.dot_dimension_numbers<[1], [0], [0], [1], [0, 0, 1, 1], [], []>} : vector<126x128xbf16>, vector<128x128xbf16>, vector<126x128xf32> -> vector<126x128xf32>
    %24 = vector.broadcast %4 : vector<1x128xf32> to vector<126x128xf32>
    %25 = arith.addf %24, %23 : vector<126x128xf32>
    %c126_21 = arith.constant 126 : index
    %c0_22 = arith.constant 0 : index
    %26 = vector.load %arg5[%c126_21, %c0_22] : memref<288x1xf32, #tpu.memory_space<vmem>>, vector<126x1xf32>
    %27 = vector.broadcast %26 : vector<126x1xf32> to vector<126x128xf32>
    %28 = arith.mulf %25, %27 : vector<126x128xf32>
    %29 = arith.truncf %28 : vector<126x128xf32> to vector<126x128xbf16>
    %c0_23 = arith.constant 0 : index
    %c145 = arith.constant 145 : index
    %c0_24 = arith.constant 0 : index
    %30 = vector.load %arg6[%c0_23, %c145, %c0_24] : memref<1x342x128xbf16, #tpu.memory_space<vmem>>, vector<1x126x128xbf16>
    %31 = vector.shape_cast %30 : vector<1x126x128xbf16> to vector<126x128xbf16>
    %32 = vector.shape_cast %29 : vector<126x128xbf16> to vector<1x126x128xbf16>
    tpu.vector_store %arg6[%c0_23, %c145, %c0_24], %32 {strides = array<i32>} : memref<1x342x128xbf16, #tpu.memory_space<vmem>>, vector<1x126x128xbf16>,
    %c0_25 = arith.constant 0 : index
    %c252 = arith.constant 252 : index
    %c0_26 = arith.constant 0 : index
    %33 = vector.load %arg2[%c0_25, %c252, %c0_26] : memref<1x288x128xbf16, #tpu.memory_space<vmem>>, vector<1x36x128xbf16>
    %34 = vector.shape_cast %33 : vector<1x36x128xbf16> to vector<36x128xbf16>
    %c0_27 = arith.constant 0 : index
    %c0_28 = arith.constant 0 : index
    %c0_29 = arith.constant 0 : index
    %35 = vector.load %arg3[%c0_27, %c0_28, %c0_29] : memref<1x128x128xbf16, #tpu.memory_space<vmem>>, vector<1x128x128xbf16>
    %36 = vector.shape_cast %35 : vector<1x128x128xbf16> to vector<128x128xbf16>
    %cst_30 = arith.constant dense<0.000000e+00> : vector<36x128xf32>
    %37 = tpu.matmul %34, %36, %cst_30 {dimension_numbers = #tpu.dot_dimension_numbers<[1], [0], [0], [1], [0, 0, 1, 1], [], []>} : vector<36x128xbf16>, vector<128x128xbf16>, vector<36x128xf32> -> vector<36x128xf32>
    %38 = vector.broadcast %4 : vector<1x128xf32> to vector<36x128xf32>
    %39 = arith.addf %38, %37 : vector<36x128xf32>
    %c252_31 = arith.constant 252 : index
    %c0_32 = arith.constant 0 : index
    %40 = vector.load %arg5[%c252_31, %c0_32] : memref<288x1xf32, #tpu.memory_space<vmem>>, vector<36x1xf32>
    %41 = vector.broadcast %40 : vector<36x1xf32> to vector<36x128xf32>
    %42 = arith.mulf %39, %41 : vector<36x128xf32>
    %43 = arith.truncf %42 : vector<36x128xf32> to vector<36x128xbf16>
    %c0_33 = arith.constant 0 : index
    %c271 = arith.constant 271 : index
    %c0_34 = arith.constant 0 : index
    %44 = vector.load %arg6[%c0_33, %c271, %c0_34] : memref<1x342x128xbf16, #tpu.memory_space<vmem>>, vector<1x36x128xbf16>
    %45 = vector.shape_cast %44 : vector<1x36x128xbf16> to vector<36x128xbf16>
    %46 = vector.shape_cast %43 : vector<36x128xbf16> to vector<1x36x128xbf16>
    tpu.vector_store %arg6[%c0_33, %c271, %c0_34], %46 {strides = array<i32>} : memref<1x342x128xbf16, #tpu.memory_space<vmem>>, vector<1x36x128xbf16>,
    %cst_35 = arith.constant 0.000000e+00 : bf16
    %47 = vector.broadcast %cst_35 : bf16 to vector<35x128xbf16>
    %c0_36 = arith.constant 0 : index
    %c307 = arith.constant 307 : index
    %c0_37 = arith.constant 0 : index
    %48 = vector.load %arg6[%c0_36, %c307, %c0_37] : memref<1x342x128xbf16, #tpu.memory_space<vmem>>, vector<1x35x128xbf16>
    %49 = vector.shape_cast %48 : vector<1x35x128xbf16> to vector<35x128xbf16>
    %50 = vector.shape_cast %47 : vector<35x128xbf16> to vector<1x35x128xbf16>
    tpu.vector_store %arg6[%c0_36, %c307, %c0_37], %50 {strides = array<i32>} : memref<1x342x128xbf16, #tpu.memory_space<vmem>>, vector<1x35x128xbf16>,
    return
  }
  func.func @transform_0(%arg0: i32, %arg1: i32) -> (i32, i32, i32) {
    %c0_i32 = arith.constant 0 : i32
    %c0_i32_0 = arith.constant 0 : i32
    %c0_i32_1 = arith.constant 0 : i32
    return %arg0, %c0_i32, %c0_i32_0 : i32, i32, i32
  }
  func.func @transform_1(%arg0: i32, %arg1: i32) -> (i32, i32, i32) {
    %c0_i32 = arith.constant 0 : i32
    %c0_i32_0 = arith.constant 0 : i32
    %c0_i32_1 = arith.constant 0 : i32
    return %c0_i32, %c0_i32_0, %arg1 : i32, i32, i32
  }
  func.func @transform_2(%arg0: i32, %arg1: i32) -> (i32, i32) {
    %c0_i32 = arith.constant 0 : i32
    %c0_i32_0 = arith.constant 0 : i32
    return %c0_i32, %arg1 : i32, i32
  }
  func.func @transform_3(%arg0: i32, %arg1: i32) -> (i32, i32) {
    %c0_i32 = arith.constant 0 : i32
    %c0_i32_0 = arith.constant 0 : i32
    %c0_i32_1 = arith.constant 0 : i32
    return %c0_i32, %c0_i32_0 : i32, i32
  }
  func.func @transform_4(%arg0: i32, %arg1: i32) -> (i32, i32, i32) {
    %c0_i32 = arith.constant 0 : i32
    %c0_i32_0 = arith.constant 0 : i32
    return %arg0, %c0_i32, %arg1 : i32, i32, i32
  }
}

module attributes {stable_mosaic.version = 11 : i64} {
  func.func @_conv_frame_kernel(%arg0: i32, %arg1: i32, %arg2: memref<1x342x128xbf16, #tpu.memory_space<vmem>>, %arg3: memref<9x128x128xbf16, #tpu.memory_space<vmem>>, %arg4: memref<1x128xf32, #tpu.memory_space<vmem>>, %arg5: memref<288x1xf32, #tpu.memory_space<vmem>>, %arg6: memref<1x342x128xbf16, #tpu.memory_space<vmem>>) attributes {dimension_semantics = [#tpu.dimension_semantics<parallel>, #tpu.dimension_semantics<parallel>], iteration_bounds = array<i64: 2, 1>, scalar_prefetch = 0 : i64, scratch_operands = 0 : i64, tpu.core_type = #tpu.core_type<tc>, window_params = [{transform_indices = @transform_0, window_bounds = array<i64: 1, 342, 128>}, {transform_indices = @transform_1, window_bounds = array<i64: 9, 128, 128>}, {transform_indices = @transform_2, window_bounds = array<i64: 1, 128>}, {pipeline_mode = #tpu.pipeline_mode<synchronous>, transform_indices = @transform_3, window_bounds = array<i64: 288, 1>}, {transform_indices = @transform_4, window_bounds = array<i64: 1, 342, 128>}]} {
    %cst = arith.constant 0.000000e+00 : bf16
    %0 = vector.broadcast %cst : bf16 to vector<19x128xbf16>
    %c0 = arith.constant 0 : index
    %c0_0 = arith.constant 0 : index
    %c0_1 = arith.constant 0 : index
    %1 = vector.load %arg6[%c0, %c0_0, %c0_1] : memref<1x342x128xbf16, #tpu.memory_space<vmem>>, vector<1x19x128xbf16>
    %2 = vector.shape_cast %1 : vector<1x19x128xbf16> to vector<19x128xbf16>
    %3 = vector.shape_cast %0 : vector<19x128xbf16> to vector<1x19x128xbf16>
    tpu.vector_store %arg6[%c0, %c0_0, %c0_1], %3 {strides = array<i32>} : memref<1x342x128xbf16, #tpu.memory_space<vmem>>, vector<1x19x128xbf16>,
    %c0_2 = arith.constant 0 : index
    %c0_3 = arith.constant 0 : index
    %4 = vector.load %arg4[%c0_2, %c0_3] : memref<1x128xf32, #tpu.memory_space<vmem>>, vector<1x128xf32>
    %c0_4 = arith.constant 0 : index
    %c0_5 = arith.constant 0 : index
    %c0_6 = arith.constant 0 : index
    %5 = vector.load %arg2[%c0_4, %c0_5, %c0_6] : memref<1x342x128xbf16, #tpu.memory_space<vmem>>, vector<1x126x128xbf16>
    %6 = vector.shape_cast %5 : vector<1x126x128xbf16> to vector<126x128xbf16>
    %c0_7 = arith.constant 0 : index
    %c0_8 = arith.constant 0 : index
    %c0_9 = arith.constant 0 : index
    %7 = vector.load %arg3[%c0_7, %c0_8, %c0_9] : memref<9x128x128xbf16, #tpu.memory_space<vmem>>, vector<1x128x128xbf16>
    %8 = vector.shape_cast %7 : vector<1x128x128xbf16> to vector<128x128xbf16>
    %cst_10 = arith.constant dense<0.000000e+00> : vector<126x128xf32>
    %9 = tpu.matmul %6, %8, %cst_10 {dimension_numbers = #tpu.dot_dimension_numbers<[1], [0], [0], [1], [0, 0, 1, 1], [], []>} : vector<126x128xbf16>, vector<128x128xbf16>, vector<126x128xf32> -> vector<126x128xf32>
    %10 = vector.broadcast %4 : vector<1x128xf32> to vector<126x128xf32>
    %11 = arith.addf %10, %9 : vector<126x128xf32>
    %c0_11 = arith.constant 0 : index
    %c1 = arith.constant 1 : index
    %c0_12 = arith.constant 0 : index
    %12 = vector.load %arg2[%c0_11, %c1, %c0_12] : memref<1x342x128xbf16, #tpu.memory_space<vmem>>, vector<1x126x128xbf16>
    %13 = vector.shape_cast %12 : vector<1x126x128xbf16> to vector<126x128xbf16>
    %c1_13 = arith.constant 1 : index
    %c0_14 = arith.constant 0 : index
    %c0_15 = arith.constant 0 : index
    %14 = vector.load %arg3[%c1_13, %c0_14, %c0_15] : memref<9x128x128xbf16, #tpu.memory_space<vmem>>, vector<1x128x128xbf16>
    %15 = vector.shape_cast %14 : vector<1x128x128xbf16> to vector<128x128xbf16>
    %cst_16 = arith.constant dense<0.000000e+00> : vector<126x128xf32>
    %16 = tpu.matmul %13, %15, %cst_16 {dimension_numbers = #tpu.dot_dimension_numbers<[1], [0], [0], [1], [0, 0, 1, 1], [], []>} : vector<126x128xbf16>, vector<128x128xbf16>, vector<126x128xf32> -> vector<126x128xf32>
    %17 = arith.addf %11, %16 : vector<126x128xf32>
    %c0_17 = arith.constant 0 : index
    %c2 = arith.constant 2 : index
    %c0_18 = arith.constant 0 : index
    %18 = vector.load %arg2[%c0_17, %c2, %c0_18] : memref<1x342x128xbf16, #tpu.memory_space<vmem>>, vector<1x126x128xbf16>
    %19 = vector.shape_cast %18 : vector<1x126x128xbf16> to vector<126x128xbf16>
    %c2_19 = arith.constant 2 : index
    %c0_20 = arith.constant 0 : index
    %c0_21 = arith.constant 0 : index
    %20 = vector.load %arg3[%c2_19, %c0_20, %c0_21] : memref<9x128x128xbf16, #tpu.memory_space<vmem>>, vector<1x128x128xbf16>
    %21 = vector.shape_cast %20 : vector<1x128x128xbf16> to vector<128x128xbf16>
    %cst_22 = arith.constant dense<0.000000e+00> : vector<126x128xf32>
    %22 = tpu.matmul %19, %21, %cst_22 {dimension_numbers = #tpu.dot_dimension_numbers<[1], [0], [0], [1], [0, 0, 1, 1], [], []>} : vector<126x128xbf16>, vector<128x128xbf16>, vector<126x128xf32> -> vector<126x128xf32>
    %23 = arith.addf %17, %22 : vector<126x128xf32>
    %c0_23 = arith.constant 0 : index
    %c18 = arith.constant 18 : index
    %c0_24 = arith.constant 0 : index
    %24 = vector.load %arg2[%c0_23, %c18, %c0_24] : memref<1x342x128xbf16, #tpu.memory_space<vmem>>, vector<1x126x128xbf16>
    %25 = vector.shape_cast %24 : vector<1x126x128xbf16> to vector<126x128xbf16>
    %c3 = arith.constant 3 : index
    %c0_25 = arith.constant 0 : index
    %c0_26 = arith.constant 0 : index
    %26 = vector.load %arg3[%c3, %c0_25, %c0_26] : memref<9x128x128xbf16, #tpu.memory_space<vmem>>, vector<1x128x128xbf16>
    %27 = vector.shape_cast %26 : vector<1x128x128xbf16> to vector<128x128xbf16>
    %cst_27 = arith.constant dense<0.000000e+00> : vector<126x128xf32>
    %28 = tpu.matmul %25, %27, %cst_27 {dimension_numbers = #tpu.dot_dimension_numbers<[1], [0], [0], [1], [0, 0, 1, 1], [], []>} : vector<126x128xbf16>, vector<128x128xbf16>, vector<126x128xf32> -> vector<126x128xf32>
    %29 = arith.addf %23, %28 : vector<126x128xf32>
    %c0_28 = arith.constant 0 : index
    %c19 = arith.constant 19 : index
    %c0_29 = arith.constant 0 : index
    %30 = vector.load %arg2[%c0_28, %c19, %c0_29] : memref<1x342x128xbf16, #tpu.memory_space<vmem>>, vector<1x126x128xbf16>
    %31 = vector.shape_cast %30 : vector<1x126x128xbf16> to vector<126x128xbf16>
    %c4 = arith.constant 4 : index
    %c0_30 = arith.constant 0 : index
    %c0_31 = arith.constant 0 : index
    %32 = vector.load %arg3[%c4, %c0_30, %c0_31] : memref<9x128x128xbf16, #tpu.memory_space<vmem>>, vector<1x128x128xbf16>
    %33 = vector.shape_cast %32 : vector<1x128x128xbf16> to vector<128x128xbf16>
    %cst_32 = arith.constant dense<0.000000e+00> : vector<126x128xf32>
    %34 = tpu.matmul %31, %33, %cst_32 {dimension_numbers = #tpu.dot_dimension_numbers<[1], [0], [0], [1], [0, 0, 1, 1], [], []>} : vector<126x128xbf16>, vector<128x128xbf16>, vector<126x128xf32> -> vector<126x128xf32>
    %35 = arith.addf %29, %34 : vector<126x128xf32>
    %c0_33 = arith.constant 0 : index
    %c20 = arith.constant 20 : index
    %c0_34 = arith.constant 0 : index
    %36 = vector.load %arg2[%c0_33, %c20, %c0_34] : memref<1x342x128xbf16, #tpu.memory_space<vmem>>, vector<1x126x128xbf16>
    %37 = vector.shape_cast %36 : vector<1x126x128xbf16> to vector<126x128xbf16>
    %c5 = arith.constant 5 : index
    %c0_35 = arith.constant 0 : index
    %c0_36 = arith.constant 0 : index
    %38 = vector.load %arg3[%c5, %c0_35, %c0_36] : memref<9x128x128xbf16, #tpu.memory_space<vmem>>, vector<1x128x128xbf16>
    %39 = vector.shape_cast %38 : vector<1x128x128xbf16> to vector<128x128xbf16>
    %cst_37 = arith.constant dense<0.000000e+00> : vector<126x128xf32>
    %40 = tpu.matmul %37, %39, %cst_37 {dimension_numbers = #tpu.dot_dimension_numbers<[1], [0], [0], [1], [0, 0, 1, 1], [], []>} : vector<126x128xbf16>, vector<128x128xbf16>, vector<126x128xf32> -> vector<126x128xf32>
    %41 = arith.addf %35, %40 : vector<126x128xf32>
    %c0_38 = arith.constant 0 : index
    %c36 = arith.constant 36 : index
    %c0_39 = arith.constant 0 : index
    %42 = vector.load %arg2[%c0_38, %c36, %c0_39] : memref<1x342x128xbf16, #tpu.memory_space<vmem>>, vector<1x126x128xbf16>
    %43 = vector.shape_cast %42 : vector<1x126x128xbf16> to vector<126x128xbf16>
    %c6 = arith.constant 6 : index
    %c0_40 = arith.constant 0 : index
    %c0_41 = arith.constant 0 : index
    %44 = vector.load %arg3[%c6, %c0_40, %c0_41] : memref<9x128x128xbf16, #tpu.memory_space<vmem>>, vector<1x128x128xbf16>
    %45 = vector.shape_cast %44 : vector<1x128x128xbf16> to vector<128x128xbf16>
    %cst_42 = arith.constant dense<0.000000e+00> : vector<126x128xf32>
    %46 = tpu.matmul %43, %45, %cst_42 {dimension_numbers = #tpu.dot_dimension_numbers<[1], [0], [0], [1], [0, 0, 1, 1], [], []>} : vector<126x128xbf16>, vector<128x128xbf16>, vector<126x128xf32> -> vector<126x128xf32>
    %47 = arith.addf %41, %46 : vector<126x128xf32>
    %c0_43 = arith.constant 0 : index
    %c37 = arith.constant 37 : index
    %c0_44 = arith.constant 0 : index
    %48 = vector.load %arg2[%c0_43, %c37, %c0_44] : memref<1x342x128xbf16, #tpu.memory_space<vmem>>, vector<1x126x128xbf16>
    %49 = vector.shape_cast %48 : vector<1x126x128xbf16> to vector<126x128xbf16>
    %c7 = arith.constant 7 : index
    %c0_45 = arith.constant 0 : index
    %c0_46 = arith.constant 0 : index
    %50 = vector.load %arg3[%c7, %c0_45, %c0_46] : memref<9x128x128xbf16, #tpu.memory_space<vmem>>, vector<1x128x128xbf16>
    %51 = vector.shape_cast %50 : vector<1x128x128xbf16> to vector<128x128xbf16>
    %cst_47 = arith.constant dense<0.000000e+00> : vector<126x128xf32>
    %52 = tpu.matmul %49, %51, %cst_47 {dimension_numbers = #tpu.dot_dimension_numbers<[1], [0], [0], [1], [0, 0, 1, 1], [], []>} : vector<126x128xbf16>, vector<128x128xbf16>, vector<126x128xf32> -> vector<126x128xf32>
    %53 = arith.addf %47, %52 : vector<126x128xf32>
    %c0_48 = arith.constant 0 : index
    %c38 = arith.constant 38 : index
    %c0_49 = arith.constant 0 : index
    %54 = vector.load %arg2[%c0_48, %c38, %c0_49] : memref<1x342x128xbf16, #tpu.memory_space<vmem>>, vector<1x126x128xbf16>
    %55 = vector.shape_cast %54 : vector<1x126x128xbf16> to vector<126x128xbf16>
    %c8 = arith.constant 8 : index
    %c0_50 = arith.constant 0 : index
    %c0_51 = arith.constant 0 : index
    %56 = vector.load %arg3[%c8, %c0_50, %c0_51] : memref<9x128x128xbf16, #tpu.memory_space<vmem>>, vector<1x128x128xbf16>
    %57 = vector.shape_cast %56 : vector<1x128x128xbf16> to vector<128x128xbf16>
    %cst_52 = arith.constant dense<0.000000e+00> : vector<126x128xf32>
    %58 = tpu.matmul %55, %57, %cst_52 {dimension_numbers = #tpu.dot_dimension_numbers<[1], [0], [0], [1], [0, 0, 1, 1], [], []>} : vector<126x128xbf16>, vector<128x128xbf16>, vector<126x128xf32> -> vector<126x128xf32>
    %59 = arith.addf %53, %58 : vector<126x128xf32>
    %c0_53 = arith.constant 0 : index
    %c0_54 = arith.constant 0 : index
    %60 = vector.load %arg5[%c0_53, %c0_54] : memref<288x1xf32, #tpu.memory_space<vmem>>, vector<126x1xf32>
    %61 = vector.broadcast %60 : vector<126x1xf32> to vector<126x128xf32>
    %62 = arith.mulf %59, %61 : vector<126x128xf32>
    %cst_55 = arith.constant 0.000000e+00 : f32
    %63 = vector.broadcast %cst_55 : f32 to vector<126x128xf32>
    %64 = arith.maximumf %62, %63 : vector<126x128xf32>
    %65 = arith.truncf %64 : vector<126x128xf32> to vector<126x128xbf16>
    %c0_56 = arith.constant 0 : index
    %c19_57 = arith.constant 19 : index
    %c0_58 = arith.constant 0 : index
    %66 = vector.load %arg6[%c0_56, %c19_57, %c0_58] : memref<1x342x128xbf16, #tpu.memory_space<vmem>>, vector<1x126x128xbf16>
    %67 = vector.shape_cast %66 : vector<1x126x128xbf16> to vector<126x128xbf16>
    %68 = vector.shape_cast %65 : vector<126x128xbf16> to vector<1x126x128xbf16>
    tpu.vector_store %arg6[%c0_56, %c19_57, %c0_58], %68 {strides = array<i32>} : memref<1x342x128xbf16, #tpu.memory_space<vmem>>, vector<1x126x128xbf16>,
    %c0_59 = arith.constant 0 : index
    %c126 = arith.constant 126 : index
    %c0_60 = arith.constant 0 : index
    %69 = vector.load %arg2[%c0_59, %c126, %c0_60] : memref<1x342x128xbf16, #tpu.memory_space<vmem>>, vector<1x126x128xbf16>
    %70 = vector.shape_cast %69 : vector<1x126x128xbf16> to vector<126x128xbf16>
    %c0_61 = arith.constant 0 : index
    %c0_62 = arith.constant 0 : index
    %c0_63 = arith.constant 0 : index
    %71 = vector.load %arg3[%c0_61, %c0_62, %c0_63] : memref<9x128x128xbf16, #tpu.memory_space<vmem>>, vector<1x128x128xbf16>
    %72 = vector.shape_cast %71 : vector<1x128x128xbf16> to vector<128x128xbf16>
    %cst_64 = arith.constant dense<0.000000e+00> : vector<126x128xf32>
    %73 = tpu.matmul %70, %72, %cst_64 {dimension_numbers = #tpu.dot_dimension_numbers<[1], [0], [0], [1], [0, 0, 1, 1], [], []>} : vector<126x128xbf16>, vector<128x128xbf16>, vector<126x128xf32> -> vector<126x128xf32>
    %74 = vector.broadcast %4 : vector<1x128xf32> to vector<126x128xf32>
    %75 = arith.addf %74, %73 : vector<126x128xf32>
    %c0_65 = arith.constant 0 : index
    %c127 = arith.constant 127 : index
    %c0_66 = arith.constant 0 : index
    %76 = vector.load %arg2[%c0_65, %c127, %c0_66] : memref<1x342x128xbf16, #tpu.memory_space<vmem>>, vector<1x126x128xbf16>
    %77 = vector.shape_cast %76 : vector<1x126x128xbf16> to vector<126x128xbf16>
    %c1_67 = arith.constant 1 : index
    %c0_68 = arith.constant 0 : index
    %c0_69 = arith.constant 0 : index
    %78 = vector.load %arg3[%c1_67, %c0_68, %c0_69] : memref<9x128x128xbf16, #tpu.memory_space<vmem>>, vector<1x128x128xbf16>
    %79 = vector.shape_cast %78 : vector<1x128x128xbf16> to vector<128x128xbf16>
    %cst_70 = arith.constant dense<0.000000e+00> : vector<126x128xf32>
    %80 = tpu.matmul %77, %79, %cst_70 {dimension_numbers = #tpu.dot_dimension_numbers<[1], [0], [0], [1], [0, 0, 1, 1], [], []>} : vector<126x128xbf16>, vector<128x128xbf16>, vector<126x128xf32> -> vector<126x128xf32>
    %81 = arith.addf %75, %80 : vector<126x128xf32>
    %c0_71 = arith.constant 0 : index
    %c128 = arith.constant 128 : index
    %c0_72 = arith.constant 0 : index
    %82 = vector.load %arg2[%c0_71, %c128, %c0_72] : memref<1x342x128xbf16, #tpu.memory_space<vmem>>, vector<1x126x128xbf16>
    %83 = vector.shape_cast %82 : vector<1x126x128xbf16> to vector<126x128xbf16>
    %c2_73 = arith.constant 2 : index
    %c0_74 = arith.constant 0 : index
    %c0_75 = arith.constant 0 : index
    %84 = vector.load %arg3[%c2_73, %c0_74, %c0_75] : memref<9x128x128xbf16, #tpu.memory_space<vmem>>, vector<1x128x128xbf16>
    %85 = vector.shape_cast %84 : vector<1x128x128xbf16> to vector<128x128xbf16>
    %cst_76 = arith.constant dense<0.000000e+00> : vector<126x128xf32>
    %86 = tpu.matmul %83, %85, %cst_76 {dimension_numbers = #tpu.dot_dimension_numbers<[1], [0], [0], [1], [0, 0, 1, 1], [], []>} : vector<126x128xbf16>, vector<128x128xbf16>, vector<126x128xf32> -> vector<126x128xf32>
    %87 = arith.addf %81, %86 : vector<126x128xf32>
    %c0_77 = arith.constant 0 : index
    %c144 = arith.constant 144 : index
    %c0_78 = arith.constant 0 : index
    %88 = vector.load %arg2[%c0_77, %c144, %c0_78] : memref<1x342x128xbf16, #tpu.memory_space<vmem>>, vector<1x126x128xbf16>
    %89 = vector.shape_cast %88 : vector<1x126x128xbf16> to vector<126x128xbf16>
    %c3_79 = arith.constant 3 : index
    %c0_80 = arith.constant 0 : index
    %c0_81 = arith.constant 0 : index
    %90 = vector.load %arg3[%c3_79, %c0_80, %c0_81] : memref<9x128x128xbf16, #tpu.memory_space<vmem>>, vector<1x128x128xbf16>
    %91 = vector.shape_cast %90 : vector<1x128x128xbf16> to vector<128x128xbf16>
    %cst_82 = arith.constant dense<0.000000e+00> : vector<126x128xf32>
    %92 = tpu.matmul %89, %91, %cst_82 {dimension_numbers = #tpu.dot_dimension_numbers<[1], [0], [0], [1], [0, 0, 1, 1], [], []>} : vector<126x128xbf16>, vector<128x128xbf16>, vector<126x128xf32> -> vector<126x128xf32>
    %93 = arith.addf %87, %92 : vector<126x128xf32>
    %c0_83 = arith.constant 0 : index
    %c145 = arith.constant 145 : index
    %c0_84 = arith.constant 0 : index
    %94 = vector.load %arg2[%c0_83, %c145, %c0_84] : memref<1x342x128xbf16, #tpu.memory_space<vmem>>, vector<1x126x128xbf16>
    %95 = vector.shape_cast %94 : vector<1x126x128xbf16> to vector<126x128xbf16>
    %c4_85 = arith.constant 4 : index
    %c0_86 = arith.constant 0 : index
    %c0_87 = arith.constant 0 : index
    %96 = vector.load %arg3[%c4_85, %c0_86, %c0_87] : memref<9x128x128xbf16, #tpu.memory_space<vmem>>, vector<1x128x128xbf16>
    %97 = vector.shape_cast %96 : vector<1x128x128xbf16> to vector<128x128xbf16>
    %cst_88 = arith.constant dense<0.000000e+00> : vector<126x128xf32>
    %98 = tpu.matmul %95, %97, %cst_88 {dimension_numbers = #tpu.dot_dimension_numbers<[1], [0], [0], [1], [0, 0, 1, 1], [], []>} : vector<126x128xbf16>, vector<128x128xbf16>, vector<126x128xf32> -> vector<126x128xf32>
    %99 = arith.addf %93, %98 : vector<126x128xf32>
    %c0_89 = arith.constant 0 : index
    %c146 = arith.constant 146 : index
    %c0_90 = arith.constant 0 : index
    %100 = vector.load %arg2[%c0_89, %c146, %c0_90] : memref<1x342x128xbf16, #tpu.memory_space<vmem>>, vector<1x126x128xbf16>
    %101 = vector.shape_cast %100 : vector<1x126x128xbf16> to vector<126x128xbf16>
    %c5_91 = arith.constant 5 : index
    %c0_92 = arith.constant 0 : index
    %c0_93 = arith.constant 0 : index
    %102 = vector.load %arg3[%c5_91, %c0_92, %c0_93] : memref<9x128x128xbf16, #tpu.memory_space<vmem>>, vector<1x128x128xbf16>
    %103 = vector.shape_cast %102 : vector<1x128x128xbf16> to vector<128x128xbf16>
    %cst_94 = arith.constant dense<0.000000e+00> : vector<126x128xf32>
    %104 = tpu.matmul %101, %103, %cst_94 {dimension_numbers = #tpu.dot_dimension_numbers<[1], [0], [0], [1], [0, 0, 1, 1], [], []>} : vector<126x128xbf16>, vector<128x128xbf16>, vector<126x128xf32> -> vector<126x128xf32>
    %105 = arith.addf %99, %104 : vector<126x128xf32>
    %c0_95 = arith.constant 0 : index
    %c162 = arith.constant 162 : index
    %c0_96 = arith.constant 0 : index
    %106 = vector.load %arg2[%c0_95, %c162, %c0_96] : memref<1x342x128xbf16, #tpu.memory_space<vmem>>, vector<1x126x128xbf16>
    %107 = vector.shape_cast %106 : vector<1x126x128xbf16> to vector<126x128xbf16>
    %c6_97 = arith.constant 6 : index
    %c0_98 = arith.constant 0 : index
    %c0_99 = arith.constant 0 : index
    %108 = vector.load %arg3[%c6_97, %c0_98, %c0_99] : memref<9x128x128xbf16, #tpu.memory_space<vmem>>, vector<1x128x128xbf16>
    %109 = vector.shape_cast %108 : vector<1x128x128xbf16> to vector<128x128xbf16>
    %cst_100 = arith.constant dense<0.000000e+00> : vector<126x128xf32>
    %110 = tpu.matmul %107, %109, %cst_100 {dimension_numbers = #tpu.dot_dimension_numbers<[1], [0], [0], [1], [0, 0, 1, 1], [], []>} : vector<126x128xbf16>, vector<128x128xbf16>, vector<126x128xf32> -> vector<126x128xf32>
    %111 = arith.addf %105, %110 : vector<126x128xf32>
    %c0_101 = arith.constant 0 : index
    %c163 = arith.constant 163 : index
    %c0_102 = arith.constant 0 : index
    %112 = vector.load %arg2[%c0_101, %c163, %c0_102] : memref<1x342x128xbf16, #tpu.memory_space<vmem>>, vector<1x126x128xbf16>
    %113 = vector.shape_cast %112 : vector<1x126x128xbf16> to vector<126x128xbf16>
    %c7_103 = arith.constant 7 : index
    %c0_104 = arith.constant 0 : index
    %c0_105 = arith.constant 0 : index
    %114 = vector.load %arg3[%c7_103, %c0_104, %c0_105] : memref<9x128x128xbf16, #tpu.memory_space<vmem>>, vector<1x128x128xbf16>
    %115 = vector.shape_cast %114 : vector<1x128x128xbf16> to vector<128x128xbf16>
    %cst_106 = arith.constant dense<0.000000e+00> : vector<126x128xf32>
    %116 = tpu.matmul %113, %115, %cst_106 {dimension_numbers = #tpu.dot_dimension_numbers<[1], [0], [0], [1], [0, 0, 1, 1], [], []>} : vector<126x128xbf16>, vector<128x128xbf16>, vector<126x128xf32> -> vector<126x128xf32>
    %117 = arith.addf %111, %116 : vector<126x128xf32>
    %c0_107 = arith.constant 0 : index
    %c164 = arith.constant 164 : index
    %c0_108 = arith.constant 0 : index
    %118 = vector.load %arg2[%c0_107, %c164, %c0_108] : memref<1x342x128xbf16, #tpu.memory_space<vmem>>, vector<1x126x128xbf16>
    %119 = vector.shape_cast %118 : vector<1x126x128xbf16> to vector<126x128xbf16>
    %c8_109 = arith.constant 8 : index
    %c0_110 = arith.constant 0 : index
    %c0_111 = arith.constant 0 : index
    %120 = vector.load %arg3[%c8_109, %c0_110, %c0_111] : memref<9x128x128xbf16, #tpu.memory_space<vmem>>, vector<1x128x128xbf16>
    %121 = vector.shape_cast %120 : vector<1x128x128xbf16> to vector<128x128xbf16>
    %cst_112 = arith.constant dense<0.000000e+00> : vector<126x128xf32>
    %122 = tpu.matmul %119, %121, %cst_112 {dimension_numbers = #tpu.dot_dimension_numbers<[1], [0], [0], [1], [0, 0, 1, 1], [], []>} : vector<126x128xbf16>, vector<128x128xbf16>, vector<126x128xf32> -> vector<126x128xf32>
    %123 = arith.addf %117, %122 : vector<126x128xf32>
    %c126_113 = arith.constant 126 : index
    %c0_114 = arith.constant 0 : index
    %124 = vector.load %arg5[%c126_113, %c0_114] : memref<288x1xf32, #tpu.memory_space<vmem>>, vector<126x1xf32>
    %125 = vector.broadcast %124 : vector<126x1xf32> to vector<126x128xf32>
    %126 = arith.mulf %123, %125 : vector<126x128xf32>
    %cst_115 = arith.constant 0.000000e+00 : f32
    %127 = vector.broadcast %cst_115 : f32 to vector<126x128xf32>
    %128 = arith.maximumf %126, %127 : vector<126x128xf32>
    %129 = arith.truncf %128 : vector<126x128xf32> to vector<126x128xbf16>
    %c0_116 = arith.constant 0 : index
    %c145_117 = arith.constant 145 : index
    %c0_118 = arith.constant 0 : index
    %130 = vector.load %arg6[%c0_116, %c145_117, %c0_118] : memref<1x342x128xbf16, #tpu.memory_space<vmem>>, vector<1x126x128xbf16>
    %131 = vector.shape_cast %130 : vector<1x126x128xbf16> to vector<126x128xbf16>
    %132 = vector.shape_cast %129 : vector<126x128xbf16> to vector<1x126x128xbf16>
    tpu.vector_store %arg6[%c0_116, %c145_117, %c0_118], %132 {strides = array<i32>} : memref<1x342x128xbf16, #tpu.memory_space<vmem>>, vector<1x126x128xbf16>,
    %c0_119 = arith.constant 0 : index
    %c252 = arith.constant 252 : index
    %c0_120 = arith.constant 0 : index
    %133 = vector.load %arg2[%c0_119, %c252, %c0_120] : memref<1x342x128xbf16, #tpu.memory_space<vmem>>, vector<1x36x128xbf16>
    %134 = vector.shape_cast %133 : vector<1x36x128xbf16> to vector<36x128xbf16>
    %c0_121 = arith.constant 0 : index
    %c0_122 = arith.constant 0 : index
    %c0_123 = arith.constant 0 : index
    %135 = vector.load %arg3[%c0_121, %c0_122, %c0_123] : memref<9x128x128xbf16, #tpu.memory_space<vmem>>, vector<1x128x128xbf16>
    %136 = vector.shape_cast %135 : vector<1x128x128xbf16> to vector<128x128xbf16>
    %cst_124 = arith.constant dense<0.000000e+00> : vector<36x128xf32>
    %137 = tpu.matmul %134, %136, %cst_124 {dimension_numbers = #tpu.dot_dimension_numbers<[1], [0], [0], [1], [0, 0, 1, 1], [], []>} : vector<36x128xbf16>, vector<128x128xbf16>, vector<36x128xf32> -> vector<36x128xf32>
    %138 = vector.broadcast %4 : vector<1x128xf32> to vector<36x128xf32>
    %139 = arith.addf %138, %137 : vector<36x128xf32>
    %c0_125 = arith.constant 0 : index
    %c253 = arith.constant 253 : index
    %c0_126 = arith.constant 0 : index
    %140 = vector.load %arg2[%c0_125, %c253, %c0_126] : memref<1x342x128xbf16, #tpu.memory_space<vmem>>, vector<1x36x128xbf16>
    %141 = vector.shape_cast %140 : vector<1x36x128xbf16> to vector<36x128xbf16>
    %c1_127 = arith.constant 1 : index
    %c0_128 = arith.constant 0 : index
    %c0_129 = arith.constant 0 : index
    %142 = vector.load %arg3[%c1_127, %c0_128, %c0_129] : memref<9x128x128xbf16, #tpu.memory_space<vmem>>, vector<1x128x128xbf16>
    %143 = vector.shape_cast %142 : vector<1x128x128xbf16> to vector<128x128xbf16>
    %cst_130 = arith.constant dense<0.000000e+00> : vector<36x128xf32>
    %144 = tpu.matmul %141, %143, %cst_130 {dimension_numbers = #tpu.dot_dimension_numbers<[1], [0], [0], [1], [0, 0, 1, 1], [], []>} : vector<36x128xbf16>, vector<128x128xbf16>, vector<36x128xf32> -> vector<36x128xf32>
    %145 = arith.addf %139, %144 : vector<36x128xf32>
    %c0_131 = arith.constant 0 : index
    %c254 = arith.constant 254 : index
    %c0_132 = arith.constant 0 : index
    %146 = vector.load %arg2[%c0_131, %c254, %c0_132] : memref<1x342x128xbf16, #tpu.memory_space<vmem>>, vector<1x36x128xbf16>
    %147 = vector.shape_cast %146 : vector<1x36x128xbf16> to vector<36x128xbf16>
    %c2_133 = arith.constant 2 : index
    %c0_134 = arith.constant 0 : index
    %c0_135 = arith.constant 0 : index
    %148 = vector.load %arg3[%c2_133, %c0_134, %c0_135] : memref<9x128x128xbf16, #tpu.memory_space<vmem>>, vector<1x128x128xbf16>
    %149 = vector.shape_cast %148 : vector<1x128x128xbf16> to vector<128x128xbf16>
    %cst_136 = arith.constant dense<0.000000e+00> : vector<36x128xf32>
    %150 = tpu.matmul %147, %149, %cst_136 {dimension_numbers = #tpu.dot_dimension_numbers<[1], [0], [0], [1], [0, 0, 1, 1], [], []>} : vector<36x128xbf16>, vector<128x128xbf16>, vector<36x128xf32> -> vector<36x128xf32>
    %151 = arith.addf %145, %150 : vector<36x128xf32>
    %c0_137 = arith.constant 0 : index
    %c270 = arith.constant 270 : index
    %c0_138 = arith.constant 0 : index
    %152 = vector.load %arg2[%c0_137, %c270, %c0_138] : memref<1x342x128xbf16, #tpu.memory_space<vmem>>, vector<1x36x128xbf16>
    %153 = vector.shape_cast %152 : vector<1x36x128xbf16> to vector<36x128xbf16>
    %c3_139 = arith.constant 3 : index
    %c0_140 = arith.constant 0 : index
    %c0_141 = arith.constant 0 : index
    %154 = vector.load %arg3[%c3_139, %c0_140, %c0_141] : memref<9x128x128xbf16, #tpu.memory_space<vmem>>, vector<1x128x128xbf16>
    %155 = vector.shape_cast %154 : vector<1x128x128xbf16> to vector<128x128xbf16>
    %cst_142 = arith.constant dense<0.000000e+00> : vector<36x128xf32>
    %156 = tpu.matmul %153, %155, %cst_142 {dimension_numbers = #tpu.dot_dimension_numbers<[1], [0], [0], [1], [0, 0, 1, 1], [], []>} : vector<36x128xbf16>, vector<128x128xbf16>, vector<36x128xf32> -> vector<36x128xf32>
    %157 = arith.addf %151, %156 : vector<36x128xf32>
    %c0_143 = arith.constant 0 : index
    %c271 = arith.constant 271 : index
    %c0_144 = arith.constant 0 : index
    %158 = vector.load %arg2[%c0_143, %c271, %c0_144] : memref<1x342x128xbf16, #tpu.memory_space<vmem>>, vector<1x36x128xbf16>
    %159 = vector.shape_cast %158 : vector<1x36x128xbf16> to vector<36x128xbf16>
    %c4_145 = arith.constant 4 : index
    %c0_146 = arith.constant 0 : index
    %c0_147 = arith.constant 0 : index
    %160 = vector.load %arg3[%c4_145, %c0_146, %c0_147] : memref<9x128x128xbf16, #tpu.memory_space<vmem>>, vector<1x128x128xbf16>
    %161 = vector.shape_cast %160 : vector<1x128x128xbf16> to vector<128x128xbf16>
    %cst_148 = arith.constant dense<0.000000e+00> : vector<36x128xf32>
    %162 = tpu.matmul %159, %161, %cst_148 {dimension_numbers = #tpu.dot_dimension_numbers<[1], [0], [0], [1], [0, 0, 1, 1], [], []>} : vector<36x128xbf16>, vector<128x128xbf16>, vector<36x128xf32> -> vector<36x128xf32>
    %163 = arith.addf %157, %162 : vector<36x128xf32>
    %c0_149 = arith.constant 0 : index
    %c272 = arith.constant 272 : index
    %c0_150 = arith.constant 0 : index
    %164 = vector.load %arg2[%c0_149, %c272, %c0_150] : memref<1x342x128xbf16, #tpu.memory_space<vmem>>, vector<1x36x128xbf16>
    %165 = vector.shape_cast %164 : vector<1x36x128xbf16> to vector<36x128xbf16>
    %c5_151 = arith.constant 5 : index
    %c0_152 = arith.constant 0 : index
    %c0_153 = arith.constant 0 : index
    %166 = vector.load %arg3[%c5_151, %c0_152, %c0_153] : memref<9x128x128xbf16, #tpu.memory_space<vmem>>, vector<1x128x128xbf16>
    %167 = vector.shape_cast %166 : vector<1x128x128xbf16> to vector<128x128xbf16>
    %cst_154 = arith.constant dense<0.000000e+00> : vector<36x128xf32>
    %168 = tpu.matmul %165, %167, %cst_154 {dimension_numbers = #tpu.dot_dimension_numbers<[1], [0], [0], [1], [0, 0, 1, 1], [], []>} : vector<36x128xbf16>, vector<128x128xbf16>, vector<36x128xf32> -> vector<36x128xf32>
    %169 = arith.addf %163, %168 : vector<36x128xf32>
    %c0_155 = arith.constant 0 : index
    %c288 = arith.constant 288 : index
    %c0_156 = arith.constant 0 : index
    %170 = vector.load %arg2[%c0_155, %c288, %c0_156] : memref<1x342x128xbf16, #tpu.memory_space<vmem>>, vector<1x36x128xbf16>
    %171 = vector.shape_cast %170 : vector<1x36x128xbf16> to vector<36x128xbf16>
    %c6_157 = arith.constant 6 : index
    %c0_158 = arith.constant 0 : index
    %c0_159 = arith.constant 0 : index
    %172 = vector.load %arg3[%c6_157, %c0_158, %c0_159] : memref<9x128x128xbf16, #tpu.memory_space<vmem>>, vector<1x128x128xbf16>
    %173 = vector.shape_cast %172 : vector<1x128x128xbf16> to vector<128x128xbf16>
    %cst_160 = arith.constant dense<0.000000e+00> : vector<36x128xf32>
    %174 = tpu.matmul %171, %173, %cst_160 {dimension_numbers = #tpu.dot_dimension_numbers<[1], [0], [0], [1], [0, 0, 1, 1], [], []>} : vector<36x128xbf16>, vector<128x128xbf16>, vector<36x128xf32> -> vector<36x128xf32>
    %175 = arith.addf %169, %174 : vector<36x128xf32>
    %c0_161 = arith.constant 0 : index
    %c289 = arith.constant 289 : index
    %c0_162 = arith.constant 0 : index
    %176 = vector.load %arg2[%c0_161, %c289, %c0_162] : memref<1x342x128xbf16, #tpu.memory_space<vmem>>, vector<1x36x128xbf16>
    %177 = vector.shape_cast %176 : vector<1x36x128xbf16> to vector<36x128xbf16>
    %c7_163 = arith.constant 7 : index
    %c0_164 = arith.constant 0 : index
    %c0_165 = arith.constant 0 : index
    %178 = vector.load %arg3[%c7_163, %c0_164, %c0_165] : memref<9x128x128xbf16, #tpu.memory_space<vmem>>, vector<1x128x128xbf16>
    %179 = vector.shape_cast %178 : vector<1x128x128xbf16> to vector<128x128xbf16>
    %cst_166 = arith.constant dense<0.000000e+00> : vector<36x128xf32>
    %180 = tpu.matmul %177, %179, %cst_166 {dimension_numbers = #tpu.dot_dimension_numbers<[1], [0], [0], [1], [0, 0, 1, 1], [], []>} : vector<36x128xbf16>, vector<128x128xbf16>, vector<36x128xf32> -> vector<36x128xf32>
    %181 = arith.addf %175, %180 : vector<36x128xf32>
    %c0_167 = arith.constant 0 : index
    %c290 = arith.constant 290 : index
    %c0_168 = arith.constant 0 : index
    %182 = vector.load %arg2[%c0_167, %c290, %c0_168] : memref<1x342x128xbf16, #tpu.memory_space<vmem>>, vector<1x36x128xbf16>
    %183 = vector.shape_cast %182 : vector<1x36x128xbf16> to vector<36x128xbf16>
    %c8_169 = arith.constant 8 : index
    %c0_170 = arith.constant 0 : index
    %c0_171 = arith.constant 0 : index
    %184 = vector.load %arg3[%c8_169, %c0_170, %c0_171] : memref<9x128x128xbf16, #tpu.memory_space<vmem>>, vector<1x128x128xbf16>
    %185 = vector.shape_cast %184 : vector<1x128x128xbf16> to vector<128x128xbf16>
    %cst_172 = arith.constant dense<0.000000e+00> : vector<36x128xf32>
    %186 = tpu.matmul %183, %185, %cst_172 {dimension_numbers = #tpu.dot_dimension_numbers<[1], [0], [0], [1], [0, 0, 1, 1], [], []>} : vector<36x128xbf16>, vector<128x128xbf16>, vector<36x128xf32> -> vector<36x128xf32>
    %187 = arith.addf %181, %186 : vector<36x128xf32>
    %c252_173 = arith.constant 252 : index
    %c0_174 = arith.constant 0 : index
    %188 = vector.load %arg5[%c252_173, %c0_174] : memref<288x1xf32, #tpu.memory_space<vmem>>, vector<36x1xf32>
    %189 = vector.broadcast %188 : vector<36x1xf32> to vector<36x128xf32>
    %190 = arith.mulf %187, %189 : vector<36x128xf32>
    %cst_175 = arith.constant 0.000000e+00 : f32
    %191 = vector.broadcast %cst_175 : f32 to vector<36x128xf32>
    %192 = arith.maximumf %190, %191 : vector<36x128xf32>
    %193 = arith.truncf %192 : vector<36x128xf32> to vector<36x128xbf16>
    %c0_176 = arith.constant 0 : index
    %c271_177 = arith.constant 271 : index
    %c0_178 = arith.constant 0 : index
    %194 = vector.load %arg6[%c0_176, %c271_177, %c0_178] : memref<1x342x128xbf16, #tpu.memory_space<vmem>>, vector<1x36x128xbf16>
    %195 = vector.shape_cast %194 : vector<1x36x128xbf16> to vector<36x128xbf16>
    %196 = vector.shape_cast %193 : vector<36x128xbf16> to vector<1x36x128xbf16>
    tpu.vector_store %arg6[%c0_176, %c271_177, %c0_178], %196 {strides = array<i32>} : memref<1x342x128xbf16, #tpu.memory_space<vmem>>, vector<1x36x128xbf16>,
    %cst_179 = arith.constant 0.000000e+00 : bf16
    %197 = vector.broadcast %cst_179 : bf16 to vector<35x128xbf16>
    %c0_180 = arith.constant 0 : index
    %c307 = arith.constant 307 : index
    %c0_181 = arith.constant 0 : index
    %198 = vector.load %arg6[%c0_180, %c307, %c0_181] : memref<1x342x128xbf16, #tpu.memory_space<vmem>>, vector<1x35x128xbf16>
    %199 = vector.shape_cast %198 : vector<1x35x128xbf16> to vector<35x128xbf16>
    %200 = vector.shape_cast %197 : vector<35x128xbf16> to vector<1x35x128xbf16>
    tpu.vector_store %arg6[%c0_180, %c307, %c0_181], %200 {strides = array<i32>} : memref<1x342x128xbf16, #tpu.memory_space<vmem>>, vector<1x35x128xbf16>,
    return
  }
  func.func @transform_0(%arg0: i32, %arg1: i32) -> (i32, i32, i32) {
    %c0_i32 = arith.constant 0 : i32
    %c0_i32_0 = arith.constant 0 : i32
    %c0_i32_1 = arith.constant 0 : i32
    return %arg0, %c0_i32, %c0_i32_0 : i32, i32, i32
  }
  func.func @transform_1(%arg0: i32, %arg1: i32) -> (i32, i32, i32) {
    %c0_i32 = arith.constant 0 : i32
    %c0_i32_0 = arith.constant 0 : i32
    %c0_i32_1 = arith.constant 0 : i32
    return %c0_i32, %c0_i32_0, %arg1 : i32, i32, i32
  }
  func.func @transform_2(%arg0: i32, %arg1: i32) -> (i32, i32) {
    %c0_i32 = arith.constant 0 : i32
    %c0_i32_0 = arith.constant 0 : i32
    return %c0_i32, %arg1 : i32, i32
  }
  func.func @transform_3(%arg0: i32, %arg1: i32) -> (i32, i32) {
    %c0_i32 = arith.constant 0 : i32
    %c0_i32_0 = arith.constant 0 : i32
    %c0_i32_1 = arith.constant 0 : i32
    return %c0_i32, %c0_i32_0 : i32, i32
  }
  func.func @transform_4(%arg0: i32, %arg1: i32) -> (i32, i32, i32) {
    %c0_i32 = arith.constant 0 : i32
    %c0_i32_0 = arith.constant 0 : i32
    return %arg0, %c0_i32, %arg1 : i32, i32, i32
  }
}

module attributes {stable_mosaic.version = 11 : i64} {
  func.func @_conv_frame_kernel(%arg0: i32, %arg1: i32, %arg2: memref<1x342x128xbf16, #tpu.memory_space<vmem>>, %arg3: memref<9x128x128xbf16, #tpu.memory_space<vmem>>, %arg4: memref<1x128xf32, #tpu.memory_space<vmem>>, %arg5: memref<1x342x128xbf16, #tpu.memory_space<vmem>>, %arg6: memref<1x288x128xf32, #tpu.memory_space<vmem>>) attributes {dimension_semantics = [#tpu.dimension_semantics<parallel>, #tpu.dimension_semantics<parallel>], iteration_bounds = array<i64: 2, 1>, scalar_prefetch = 0 : i64, scratch_operands = 0 : i64, tpu.core_type = #tpu.core_type<tc>, window_params = [{transform_indices = @transform_0, window_bounds = array<i64: 1, 342, 128>}, {transform_indices = @transform_1, window_bounds = array<i64: 9, 128, 128>}, {transform_indices = @transform_2, window_bounds = array<i64: 1, 128>}, {transform_indices = @transform_3, window_bounds = array<i64: 1, 342, 128>}, {transform_indices = @transform_4, window_bounds = array<i64: 1, 288, 128>}]} {
    %c0 = arith.constant 0 : index
    %c0_0 = arith.constant 0 : index
    %0 = vector.load %arg4[%c0, %c0_0] : memref<1x128xf32, #tpu.memory_space<vmem>>, vector<1x128xf32>
    %c0_1 = arith.constant 0 : index
    %c0_2 = arith.constant 0 : index
    %c0_3 = arith.constant 0 : index
    %1 = vector.load %arg2[%c0_1, %c0_2, %c0_3] : memref<1x342x128xbf16, #tpu.memory_space<vmem>>, vector<1x126x128xbf16>
    %2 = vector.shape_cast %1 : vector<1x126x128xbf16> to vector<126x128xbf16>
    %c0_4 = arith.constant 0 : index
    %c0_5 = arith.constant 0 : index
    %c0_6 = arith.constant 0 : index
    %3 = vector.load %arg3[%c0_4, %c0_5, %c0_6] : memref<9x128x128xbf16, #tpu.memory_space<vmem>>, vector<1x128x128xbf16>
    %4 = vector.shape_cast %3 : vector<1x128x128xbf16> to vector<128x128xbf16>
    %cst = arith.constant dense<0.000000e+00> : vector<126x128xf32>
    %5 = tpu.matmul %2, %4, %cst {dimension_numbers = #tpu.dot_dimension_numbers<[1], [0], [0], [1], [0, 0, 1, 1], [], []>} : vector<126x128xbf16>, vector<128x128xbf16>, vector<126x128xf32> -> vector<126x128xf32>
    %6 = vector.broadcast %0 : vector<1x128xf32> to vector<126x128xf32>
    %7 = arith.addf %6, %5 : vector<126x128xf32>
    %c0_7 = arith.constant 0 : index
    %c1 = arith.constant 1 : index
    %c0_8 = arith.constant 0 : index
    %8 = vector.load %arg2[%c0_7, %c1, %c0_8] : memref<1x342x128xbf16, #tpu.memory_space<vmem>>, vector<1x126x128xbf16>
    %9 = vector.shape_cast %8 : vector<1x126x128xbf16> to vector<126x128xbf16>
    %c1_9 = arith.constant 1 : index
    %c0_10 = arith.constant 0 : index
    %c0_11 = arith.constant 0 : index
    %10 = vector.load %arg3[%c1_9, %c0_10, %c0_11] : memref<9x128x128xbf16, #tpu.memory_space<vmem>>, vector<1x128x128xbf16>
    %11 = vector.shape_cast %10 : vector<1x128x128xbf16> to vector<128x128xbf16>
    %cst_12 = arith.constant dense<0.000000e+00> : vector<126x128xf32>
    %12 = tpu.matmul %9, %11, %cst_12 {dimension_numbers = #tpu.dot_dimension_numbers<[1], [0], [0], [1], [0, 0, 1, 1], [], []>} : vector<126x128xbf16>, vector<128x128xbf16>, vector<126x128xf32> -> vector<126x128xf32>
    %13 = arith.addf %7, %12 : vector<126x128xf32>
    %c0_13 = arith.constant 0 : index
    %c2 = arith.constant 2 : index
    %c0_14 = arith.constant 0 : index
    %14 = vector.load %arg2[%c0_13, %c2, %c0_14] : memref<1x342x128xbf16, #tpu.memory_space<vmem>>, vector<1x126x128xbf16>
    %15 = vector.shape_cast %14 : vector<1x126x128xbf16> to vector<126x128xbf16>
    %c2_15 = arith.constant 2 : index
    %c0_16 = arith.constant 0 : index
    %c0_17 = arith.constant 0 : index
    %16 = vector.load %arg3[%c2_15, %c0_16, %c0_17] : memref<9x128x128xbf16, #tpu.memory_space<vmem>>, vector<1x128x128xbf16>
    %17 = vector.shape_cast %16 : vector<1x128x128xbf16> to vector<128x128xbf16>
    %cst_18 = arith.constant dense<0.000000e+00> : vector<126x128xf32>
    %18 = tpu.matmul %15, %17, %cst_18 {dimension_numbers = #tpu.dot_dimension_numbers<[1], [0], [0], [1], [0, 0, 1, 1], [], []>} : vector<126x128xbf16>, vector<128x128xbf16>, vector<126x128xf32> -> vector<126x128xf32>
    %19 = arith.addf %13, %18 : vector<126x128xf32>
    %c0_19 = arith.constant 0 : index
    %c18 = arith.constant 18 : index
    %c0_20 = arith.constant 0 : index
    %20 = vector.load %arg2[%c0_19, %c18, %c0_20] : memref<1x342x128xbf16, #tpu.memory_space<vmem>>, vector<1x126x128xbf16>
    %21 = vector.shape_cast %20 : vector<1x126x128xbf16> to vector<126x128xbf16>
    %c3 = arith.constant 3 : index
    %c0_21 = arith.constant 0 : index
    %c0_22 = arith.constant 0 : index
    %22 = vector.load %arg3[%c3, %c0_21, %c0_22] : memref<9x128x128xbf16, #tpu.memory_space<vmem>>, vector<1x128x128xbf16>
    %23 = vector.shape_cast %22 : vector<1x128x128xbf16> to vector<128x128xbf16>
    %cst_23 = arith.constant dense<0.000000e+00> : vector<126x128xf32>
    %24 = tpu.matmul %21, %23, %cst_23 {dimension_numbers = #tpu.dot_dimension_numbers<[1], [0], [0], [1], [0, 0, 1, 1], [], []>} : vector<126x128xbf16>, vector<128x128xbf16>, vector<126x128xf32> -> vector<126x128xf32>
    %25 = arith.addf %19, %24 : vector<126x128xf32>
    %c0_24 = arith.constant 0 : index
    %c19 = arith.constant 19 : index
    %c0_25 = arith.constant 0 : index
    %26 = vector.load %arg2[%c0_24, %c19, %c0_25] : memref<1x342x128xbf16, #tpu.memory_space<vmem>>, vector<1x126x128xbf16>
    %27 = vector.shape_cast %26 : vector<1x126x128xbf16> to vector<126x128xbf16>
    %c4 = arith.constant 4 : index
    %c0_26 = arith.constant 0 : index
    %c0_27 = arith.constant 0 : index
    %28 = vector.load %arg3[%c4, %c0_26, %c0_27] : memref<9x128x128xbf16, #tpu.memory_space<vmem>>, vector<1x128x128xbf16>
    %29 = vector.shape_cast %28 : vector<1x128x128xbf16> to vector<128x128xbf16>
    %cst_28 = arith.constant dense<0.000000e+00> : vector<126x128xf32>
    %30 = tpu.matmul %27, %29, %cst_28 {dimension_numbers = #tpu.dot_dimension_numbers<[1], [0], [0], [1], [0, 0, 1, 1], [], []>} : vector<126x128xbf16>, vector<128x128xbf16>, vector<126x128xf32> -> vector<126x128xf32>
    %31 = arith.addf %25, %30 : vector<126x128xf32>
    %c0_29 = arith.constant 0 : index
    %c20 = arith.constant 20 : index
    %c0_30 = arith.constant 0 : index
    %32 = vector.load %arg2[%c0_29, %c20, %c0_30] : memref<1x342x128xbf16, #tpu.memory_space<vmem>>, vector<1x126x128xbf16>
    %33 = vector.shape_cast %32 : vector<1x126x128xbf16> to vector<126x128xbf16>
    %c5 = arith.constant 5 : index
    %c0_31 = arith.constant 0 : index
    %c0_32 = arith.constant 0 : index
    %34 = vector.load %arg3[%c5, %c0_31, %c0_32] : memref<9x128x128xbf16, #tpu.memory_space<vmem>>, vector<1x128x128xbf16>
    %35 = vector.shape_cast %34 : vector<1x128x128xbf16> to vector<128x128xbf16>
    %cst_33 = arith.constant dense<0.000000e+00> : vector<126x128xf32>
    %36 = tpu.matmul %33, %35, %cst_33 {dimension_numbers = #tpu.dot_dimension_numbers<[1], [0], [0], [1], [0, 0, 1, 1], [], []>} : vector<126x128xbf16>, vector<128x128xbf16>, vector<126x128xf32> -> vector<126x128xf32>
    %37 = arith.addf %31, %36 : vector<126x128xf32>
    %c0_34 = arith.constant 0 : index
    %c36 = arith.constant 36 : index
    %c0_35 = arith.constant 0 : index
    %38 = vector.load %arg2[%c0_34, %c36, %c0_35] : memref<1x342x128xbf16, #tpu.memory_space<vmem>>, vector<1x126x128xbf16>
    %39 = vector.shape_cast %38 : vector<1x126x128xbf16> to vector<126x128xbf16>
    %c6 = arith.constant 6 : index
    %c0_36 = arith.constant 0 : index
    %c0_37 = arith.constant 0 : index
    %40 = vector.load %arg3[%c6, %c0_36, %c0_37] : memref<9x128x128xbf16, #tpu.memory_space<vmem>>, vector<1x128x128xbf16>
    %41 = vector.shape_cast %40 : vector<1x128x128xbf16> to vector<128x128xbf16>
    %cst_38 = arith.constant dense<0.000000e+00> : vector<126x128xf32>
    %42 = tpu.matmul %39, %41, %cst_38 {dimension_numbers = #tpu.dot_dimension_numbers<[1], [0], [0], [1], [0, 0, 1, 1], [], []>} : vector<126x128xbf16>, vector<128x128xbf16>, vector<126x128xf32> -> vector<126x128xf32>
    %43 = arith.addf %37, %42 : vector<126x128xf32>
    %c0_39 = arith.constant 0 : index
    %c37 = arith.constant 37 : index
    %c0_40 = arith.constant 0 : index
    %44 = vector.load %arg2[%c0_39, %c37, %c0_40] : memref<1x342x128xbf16, #tpu.memory_space<vmem>>, vector<1x126x128xbf16>
    %45 = vector.shape_cast %44 : vector<1x126x128xbf16> to vector<126x128xbf16>
    %c7 = arith.constant 7 : index
    %c0_41 = arith.constant 0 : index
    %c0_42 = arith.constant 0 : index
    %46 = vector.load %arg3[%c7, %c0_41, %c0_42] : memref<9x128x128xbf16, #tpu.memory_space<vmem>>, vector<1x128x128xbf16>
    %47 = vector.shape_cast %46 : vector<1x128x128xbf16> to vector<128x128xbf16>
    %cst_43 = arith.constant dense<0.000000e+00> : vector<126x128xf32>
    %48 = tpu.matmul %45, %47, %cst_43 {dimension_numbers = #tpu.dot_dimension_numbers<[1], [0], [0], [1], [0, 0, 1, 1], [], []>} : vector<126x128xbf16>, vector<128x128xbf16>, vector<126x128xf32> -> vector<126x128xf32>
    %49 = arith.addf %43, %48 : vector<126x128xf32>
    %c0_44 = arith.constant 0 : index
    %c38 = arith.constant 38 : index
    %c0_45 = arith.constant 0 : index
    %50 = vector.load %arg2[%c0_44, %c38, %c0_45] : memref<1x342x128xbf16, #tpu.memory_space<vmem>>, vector<1x126x128xbf16>
    %51 = vector.shape_cast %50 : vector<1x126x128xbf16> to vector<126x128xbf16>
    %c8 = arith.constant 8 : index
    %c0_46 = arith.constant 0 : index
    %c0_47 = arith.constant 0 : index
    %52 = vector.load %arg3[%c8, %c0_46, %c0_47] : memref<9x128x128xbf16, #tpu.memory_space<vmem>>, vector<1x128x128xbf16>
    %53 = vector.shape_cast %52 : vector<1x128x128xbf16> to vector<128x128xbf16>
    %cst_48 = arith.constant dense<0.000000e+00> : vector<126x128xf32>
    %54 = tpu.matmul %51, %53, %cst_48 {dimension_numbers = #tpu.dot_dimension_numbers<[1], [0], [0], [1], [0, 0, 1, 1], [], []>} : vector<126x128xbf16>, vector<128x128xbf16>, vector<126x128xf32> -> vector<126x128xf32>
    %55 = arith.addf %49, %54 : vector<126x128xf32>
    %c0_49 = arith.constant 0 : index
    %c19_50 = arith.constant 19 : index
    %c0_51 = arith.constant 0 : index
    %56 = vector.load %arg5[%c0_49, %c19_50, %c0_51] : memref<1x342x128xbf16, #tpu.memory_space<vmem>>, vector<1x126x128xbf16>
    %57 = vector.shape_cast %56 : vector<1x126x128xbf16> to vector<126x128xbf16>
    %58 = arith.extf %57 : vector<126x128xbf16> to vector<126x128xf32>
    %59 = arith.addf %55, %58 : vector<126x128xf32>
    %cst_52 = arith.constant 0.000000e+00 : f32
    %60 = vector.broadcast %cst_52 : f32 to vector<126x128xf32>
    %61 = arith.maximumf %59, %60 : vector<126x128xf32>
    %c0_53 = arith.constant 0 : index
    %c0_54 = arith.constant 0 : index
    %c0_55 = arith.constant 0 : index
    %62 = vector.load %arg6[%c0_53, %c0_54, %c0_55] : memref<1x288x128xf32, #tpu.memory_space<vmem>>, vector<1x126x128xf32>
    %63 = vector.shape_cast %62 : vector<1x126x128xf32> to vector<126x128xf32>
    %64 = vector.shape_cast %61 : vector<126x128xf32> to vector<1x126x128xf32>
    tpu.vector_store %arg6[%c0_53, %c0_54, %c0_55], %64 {strides = array<i32>} : memref<1x288x128xf32, #tpu.memory_space<vmem>>, vector<1x126x128xf32>,
    %c0_56 = arith.constant 0 : index
    %c126 = arith.constant 126 : index
    %c0_57 = arith.constant 0 : index
    %65 = vector.load %arg2[%c0_56, %c126, %c0_57] : memref<1x342x128xbf16, #tpu.memory_space<vmem>>, vector<1x126x128xbf16>
    %66 = vector.shape_cast %65 : vector<1x126x128xbf16> to vector<126x128xbf16>
    %c0_58 = arith.constant 0 : index
    %c0_59 = arith.constant 0 : index
    %c0_60 = arith.constant 0 : index
    %67 = vector.load %arg3[%c0_58, %c0_59, %c0_60] : memref<9x128x128xbf16, #tpu.memory_space<vmem>>, vector<1x128x128xbf16>
    %68 = vector.shape_cast %67 : vector<1x128x128xbf16> to vector<128x128xbf16>
    %cst_61 = arith.constant dense<0.000000e+00> : vector<126x128xf32>
    %69 = tpu.matmul %66, %68, %cst_61 {dimension_numbers = #tpu.dot_dimension_numbers<[1], [0], [0], [1], [0, 0, 1, 1], [], []>} : vector<126x128xbf16>, vector<128x128xbf16>, vector<126x128xf32> -> vector<126x128xf32>
    %70 = vector.broadcast %0 : vector<1x128xf32> to vector<126x128xf32>
    %71 = arith.addf %70, %69 : vector<126x128xf32>
    %c0_62 = arith.constant 0 : index
    %c127 = arith.constant 127 : index
    %c0_63 = arith.constant 0 : index
    %72 = vector.load %arg2[%c0_62, %c127, %c0_63] : memref<1x342x128xbf16, #tpu.memory_space<vmem>>, vector<1x126x128xbf16>
    %73 = vector.shape_cast %72 : vector<1x126x128xbf16> to vector<126x128xbf16>
    %c1_64 = arith.constant 1 : index
    %c0_65 = arith.constant 0 : index
    %c0_66 = arith.constant 0 : index
    %74 = vector.load %arg3[%c1_64, %c0_65, %c0_66] : memref<9x128x128xbf16, #tpu.memory_space<vmem>>, vector<1x128x128xbf16>
    %75 = vector.shape_cast %74 : vector<1x128x128xbf16> to vector<128x128xbf16>
    %cst_67 = arith.constant dense<0.000000e+00> : vector<126x128xf32>
    %76 = tpu.matmul %73, %75, %cst_67 {dimension_numbers = #tpu.dot_dimension_numbers<[1], [0], [0], [1], [0, 0, 1, 1], [], []>} : vector<126x128xbf16>, vector<128x128xbf16>, vector<126x128xf32> -> vector<126x128xf32>
    %77 = arith.addf %71, %76 : vector<126x128xf32>
    %c0_68 = arith.constant 0 : index
    %c128 = arith.constant 128 : index
    %c0_69 = arith.constant 0 : index
    %78 = vector.load %arg2[%c0_68, %c128, %c0_69] : memref<1x342x128xbf16, #tpu.memory_space<vmem>>, vector<1x126x128xbf16>
    %79 = vector.shape_cast %78 : vector<1x126x128xbf16> to vector<126x128xbf16>
    %c2_70 = arith.constant 2 : index
    %c0_71 = arith.constant 0 : index
    %c0_72 = arith.constant 0 : index
    %80 = vector.load %arg3[%c2_70, %c0_71, %c0_72] : memref<9x128x128xbf16, #tpu.memory_space<vmem>>, vector<1x128x128xbf16>
    %81 = vector.shape_cast %80 : vector<1x128x128xbf16> to vector<128x128xbf16>
    %cst_73 = arith.constant dense<0.000000e+00> : vector<126x128xf32>
    %82 = tpu.matmul %79, %81, %cst_73 {dimension_numbers = #tpu.dot_dimension_numbers<[1], [0], [0], [1], [0, 0, 1, 1], [], []>} : vector<126x128xbf16>, vector<128x128xbf16>, vector<126x128xf32> -> vector<126x128xf32>
    %83 = arith.addf %77, %82 : vector<126x128xf32>
    %c0_74 = arith.constant 0 : index
    %c144 = arith.constant 144 : index
    %c0_75 = arith.constant 0 : index
    %84 = vector.load %arg2[%c0_74, %c144, %c0_75] : memref<1x342x128xbf16, #tpu.memory_space<vmem>>, vector<1x126x128xbf16>
    %85 = vector.shape_cast %84 : vector<1x126x128xbf16> to vector<126x128xbf16>
    %c3_76 = arith.constant 3 : index
    %c0_77 = arith.constant 0 : index
    %c0_78 = arith.constant 0 : index
    %86 = vector.load %arg3[%c3_76, %c0_77, %c0_78] : memref<9x128x128xbf16, #tpu.memory_space<vmem>>, vector<1x128x128xbf16>
    %87 = vector.shape_cast %86 : vector<1x128x128xbf16> to vector<128x128xbf16>
    %cst_79 = arith.constant dense<0.000000e+00> : vector<126x128xf32>
    %88 = tpu.matmul %85, %87, %cst_79 {dimension_numbers = #tpu.dot_dimension_numbers<[1], [0], [0], [1], [0, 0, 1, 1], [], []>} : vector<126x128xbf16>, vector<128x128xbf16>, vector<126x128xf32> -> vector<126x128xf32>
    %89 = arith.addf %83, %88 : vector<126x128xf32>
    %c0_80 = arith.constant 0 : index
    %c145 = arith.constant 145 : index
    %c0_81 = arith.constant 0 : index
    %90 = vector.load %arg2[%c0_80, %c145, %c0_81] : memref<1x342x128xbf16, #tpu.memory_space<vmem>>, vector<1x126x128xbf16>
    %91 = vector.shape_cast %90 : vector<1x126x128xbf16> to vector<126x128xbf16>
    %c4_82 = arith.constant 4 : index
    %c0_83 = arith.constant 0 : index
    %c0_84 = arith.constant 0 : index
    %92 = vector.load %arg3[%c4_82, %c0_83, %c0_84] : memref<9x128x128xbf16, #tpu.memory_space<vmem>>, vector<1x128x128xbf16>
    %93 = vector.shape_cast %92 : vector<1x128x128xbf16> to vector<128x128xbf16>
    %cst_85 = arith.constant dense<0.000000e+00> : vector<126x128xf32>
    %94 = tpu.matmul %91, %93, %cst_85 {dimension_numbers = #tpu.dot_dimension_numbers<[1], [0], [0], [1], [0, 0, 1, 1], [], []>} : vector<126x128xbf16>, vector<128x128xbf16>, vector<126x128xf32> -> vector<126x128xf32>
    %95 = arith.addf %89, %94 : vector<126x128xf32>
    %c0_86 = arith.constant 0 : index
    %c146 = arith.constant 146 : index
    %c0_87 = arith.constant 0 : index
    %96 = vector.load %arg2[%c0_86, %c146, %c0_87] : memref<1x342x128xbf16, #tpu.memory_space<vmem>>, vector<1x126x128xbf16>
    %97 = vector.shape_cast %96 : vector<1x126x128xbf16> to vector<126x128xbf16>
    %c5_88 = arith.constant 5 : index
    %c0_89 = arith.constant 0 : index
    %c0_90 = arith.constant 0 : index
    %98 = vector.load %arg3[%c5_88, %c0_89, %c0_90] : memref<9x128x128xbf16, #tpu.memory_space<vmem>>, vector<1x128x128xbf16>
    %99 = vector.shape_cast %98 : vector<1x128x128xbf16> to vector<128x128xbf16>
    %cst_91 = arith.constant dense<0.000000e+00> : vector<126x128xf32>
    %100 = tpu.matmul %97, %99, %cst_91 {dimension_numbers = #tpu.dot_dimension_numbers<[1], [0], [0], [1], [0, 0, 1, 1], [], []>} : vector<126x128xbf16>, vector<128x128xbf16>, vector<126x128xf32> -> vector<126x128xf32>
    %101 = arith.addf %95, %100 : vector<126x128xf32>
    %c0_92 = arith.constant 0 : index
    %c162 = arith.constant 162 : index
    %c0_93 = arith.constant 0 : index
    %102 = vector.load %arg2[%c0_92, %c162, %c0_93] : memref<1x342x128xbf16, #tpu.memory_space<vmem>>, vector<1x126x128xbf16>
    %103 = vector.shape_cast %102 : vector<1x126x128xbf16> to vector<126x128xbf16>
    %c6_94 = arith.constant 6 : index
    %c0_95 = arith.constant 0 : index
    %c0_96 = arith.constant 0 : index
    %104 = vector.load %arg3[%c6_94, %c0_95, %c0_96] : memref<9x128x128xbf16, #tpu.memory_space<vmem>>, vector<1x128x128xbf16>
    %105 = vector.shape_cast %104 : vector<1x128x128xbf16> to vector<128x128xbf16>
    %cst_97 = arith.constant dense<0.000000e+00> : vector<126x128xf32>
    %106 = tpu.matmul %103, %105, %cst_97 {dimension_numbers = #tpu.dot_dimension_numbers<[1], [0], [0], [1], [0, 0, 1, 1], [], []>} : vector<126x128xbf16>, vector<128x128xbf16>, vector<126x128xf32> -> vector<126x128xf32>
    %107 = arith.addf %101, %106 : vector<126x128xf32>
    %c0_98 = arith.constant 0 : index
    %c163 = arith.constant 163 : index
    %c0_99 = arith.constant 0 : index
    %108 = vector.load %arg2[%c0_98, %c163, %c0_99] : memref<1x342x128xbf16, #tpu.memory_space<vmem>>, vector<1x126x128xbf16>
    %109 = vector.shape_cast %108 : vector<1x126x128xbf16> to vector<126x128xbf16>
    %c7_100 = arith.constant 7 : index
    %c0_101 = arith.constant 0 : index
    %c0_102 = arith.constant 0 : index
    %110 = vector.load %arg3[%c7_100, %c0_101, %c0_102] : memref<9x128x128xbf16, #tpu.memory_space<vmem>>, vector<1x128x128xbf16>
    %111 = vector.shape_cast %110 : vector<1x128x128xbf16> to vector<128x128xbf16>
    %cst_103 = arith.constant dense<0.000000e+00> : vector<126x128xf32>
    %112 = tpu.matmul %109, %111, %cst_103 {dimension_numbers = #tpu.dot_dimension_numbers<[1], [0], [0], [1], [0, 0, 1, 1], [], []>} : vector<126x128xbf16>, vector<128x128xbf16>, vector<126x128xf32> -> vector<126x128xf32>
    %113 = arith.addf %107, %112 : vector<126x128xf32>
    %c0_104 = arith.constant 0 : index
    %c164 = arith.constant 164 : index
    %c0_105 = arith.constant 0 : index
    %114 = vector.load %arg2[%c0_104, %c164, %c0_105] : memref<1x342x128xbf16, #tpu.memory_space<vmem>>, vector<1x126x128xbf16>
    %115 = vector.shape_cast %114 : vector<1x126x128xbf16> to vector<126x128xbf16>
    %c8_106 = arith.constant 8 : index
    %c0_107 = arith.constant 0 : index
    %c0_108 = arith.constant 0 : index
    %116 = vector.load %arg3[%c8_106, %c0_107, %c0_108] : memref<9x128x128xbf16, #tpu.memory_space<vmem>>, vector<1x128x128xbf16>
    %117 = vector.shape_cast %116 : vector<1x128x128xbf16> to vector<128x128xbf16>
    %cst_109 = arith.constant dense<0.000000e+00> : vector<126x128xf32>
    %118 = tpu.matmul %115, %117, %cst_109 {dimension_numbers = #tpu.dot_dimension_numbers<[1], [0], [0], [1], [0, 0, 1, 1], [], []>} : vector<126x128xbf16>, vector<128x128xbf16>, vector<126x128xf32> -> vector<126x128xf32>
    %119 = arith.addf %113, %118 : vector<126x128xf32>
    %c0_110 = arith.constant 0 : index
    %c145_111 = arith.constant 145 : index
    %c0_112 = arith.constant 0 : index
    %120 = vector.load %arg5[%c0_110, %c145_111, %c0_112] : memref<1x342x128xbf16, #tpu.memory_space<vmem>>, vector<1x126x128xbf16>
    %121 = vector.shape_cast %120 : vector<1x126x128xbf16> to vector<126x128xbf16>
    %122 = arith.extf %121 : vector<126x128xbf16> to vector<126x128xf32>
    %123 = arith.addf %119, %122 : vector<126x128xf32>
    %cst_113 = arith.constant 0.000000e+00 : f32
    %124 = vector.broadcast %cst_113 : f32 to vector<126x128xf32>
    %125 = arith.maximumf %123, %124 : vector<126x128xf32>
    %c0_114 = arith.constant 0 : index
    %c126_115 = arith.constant 126 : index
    %c0_116 = arith.constant 0 : index
    %126 = vector.load %arg6[%c0_114, %c126_115, %c0_116] : memref<1x288x128xf32, #tpu.memory_space<vmem>>, vector<1x126x128xf32>
    %127 = vector.shape_cast %126 : vector<1x126x128xf32> to vector<126x128xf32>
    %128 = vector.shape_cast %125 : vector<126x128xf32> to vector<1x126x128xf32>
    tpu.vector_store %arg6[%c0_114, %c126_115, %c0_116], %128 {strides = array<i32>} : memref<1x288x128xf32, #tpu.memory_space<vmem>>, vector<1x126x128xf32>,
    %c0_117 = arith.constant 0 : index
    %c252 = arith.constant 252 : index
    %c0_118 = arith.constant 0 : index
    %129 = vector.load %arg2[%c0_117, %c252, %c0_118] : memref<1x342x128xbf16, #tpu.memory_space<vmem>>, vector<1x36x128xbf16>
    %130 = vector.shape_cast %129 : vector<1x36x128xbf16> to vector<36x128xbf16>
    %c0_119 = arith.constant 0 : index
    %c0_120 = arith.constant 0 : index
    %c0_121 = arith.constant 0 : index
    %131 = vector.load %arg3[%c0_119, %c0_120, %c0_121] : memref<9x128x128xbf16, #tpu.memory_space<vmem>>, vector<1x128x128xbf16>
    %132 = vector.shape_cast %131 : vector<1x128x128xbf16> to vector<128x128xbf16>
    %cst_122 = arith.constant dense<0.000000e+00> : vector<36x128xf32>
    %133 = tpu.matmul %130, %132, %cst_122 {dimension_numbers = #tpu.dot_dimension_numbers<[1], [0], [0], [1], [0, 0, 1, 1], [], []>} : vector<36x128xbf16>, vector<128x128xbf16>, vector<36x128xf32> -> vector<36x128xf32>
    %134 = vector.broadcast %0 : vector<1x128xf32> to vector<36x128xf32>
    %135 = arith.addf %134, %133 : vector<36x128xf32>
    %c0_123 = arith.constant 0 : index
    %c253 = arith.constant 253 : index
    %c0_124 = arith.constant 0 : index
    %136 = vector.load %arg2[%c0_123, %c253, %c0_124] : memref<1x342x128xbf16, #tpu.memory_space<vmem>>, vector<1x36x128xbf16>
    %137 = vector.shape_cast %136 : vector<1x36x128xbf16> to vector<36x128xbf16>
    %c1_125 = arith.constant 1 : index
    %c0_126 = arith.constant 0 : index
    %c0_127 = arith.constant 0 : index
    %138 = vector.load %arg3[%c1_125, %c0_126, %c0_127] : memref<9x128x128xbf16, #tpu.memory_space<vmem>>, vector<1x128x128xbf16>
    %139 = vector.shape_cast %138 : vector<1x128x128xbf16> to vector<128x128xbf16>
    %cst_128 = arith.constant dense<0.000000e+00> : vector<36x128xf32>
    %140 = tpu.matmul %137, %139, %cst_128 {dimension_numbers = #tpu.dot_dimension_numbers<[1], [0], [0], [1], [0, 0, 1, 1], [], []>} : vector<36x128xbf16>, vector<128x128xbf16>, vector<36x128xf32> -> vector<36x128xf32>
    %141 = arith.addf %135, %140 : vector<36x128xf32>
    %c0_129 = arith.constant 0 : index
    %c254 = arith.constant 254 : index
    %c0_130 = arith.constant 0 : index
    %142 = vector.load %arg2[%c0_129, %c254, %c0_130] : memref<1x342x128xbf16, #tpu.memory_space<vmem>>, vector<1x36x128xbf16>
    %143 = vector.shape_cast %142 : vector<1x36x128xbf16> to vector<36x128xbf16>
    %c2_131 = arith.constant 2 : index
    %c0_132 = arith.constant 0 : index
    %c0_133 = arith.constant 0 : index
    %144 = vector.load %arg3[%c2_131, %c0_132, %c0_133] : memref<9x128x128xbf16, #tpu.memory_space<vmem>>, vector<1x128x128xbf16>
    %145 = vector.shape_cast %144 : vector<1x128x128xbf16> to vector<128x128xbf16>
    %cst_134 = arith.constant dense<0.000000e+00> : vector<36x128xf32>
    %146 = tpu.matmul %143, %145, %cst_134 {dimension_numbers = #tpu.dot_dimension_numbers<[1], [0], [0], [1], [0, 0, 1, 1], [], []>} : vector<36x128xbf16>, vector<128x128xbf16>, vector<36x128xf32> -> vector<36x128xf32>
    %147 = arith.addf %141, %146 : vector<36x128xf32>
    %c0_135 = arith.constant 0 : index
    %c270 = arith.constant 270 : index
    %c0_136 = arith.constant 0 : index
    %148 = vector.load %arg2[%c0_135, %c270, %c0_136] : memref<1x342x128xbf16, #tpu.memory_space<vmem>>, vector<1x36x128xbf16>
    %149 = vector.shape_cast %148 : vector<1x36x128xbf16> to vector<36x128xbf16>
    %c3_137 = arith.constant 3 : index
    %c0_138 = arith.constant 0 : index
    %c0_139 = arith.constant 0 : index
    %150 = vector.load %arg3[%c3_137, %c0_138, %c0_139] : memref<9x128x128xbf16, #tpu.memory_space<vmem>>, vector<1x128x128xbf16>
    %151 = vector.shape_cast %150 : vector<1x128x128xbf16> to vector<128x128xbf16>
    %cst_140 = arith.constant dense<0.000000e+00> : vector<36x128xf32>
    %152 = tpu.matmul %149, %151, %cst_140 {dimension_numbers = #tpu.dot_dimension_numbers<[1], [0], [0], [1], [0, 0, 1, 1], [], []>} : vector<36x128xbf16>, vector<128x128xbf16>, vector<36x128xf32> -> vector<36x128xf32>
    %153 = arith.addf %147, %152 : vector<36x128xf32>
    %c0_141 = arith.constant 0 : index
    %c271 = arith.constant 271 : index
    %c0_142 = arith.constant 0 : index
    %154 = vector.load %arg2[%c0_141, %c271, %c0_142] : memref<1x342x128xbf16, #tpu.memory_space<vmem>>, vector<1x36x128xbf16>
    %155 = vector.shape_cast %154 : vector<1x36x128xbf16> to vector<36x128xbf16>
    %c4_143 = arith.constant 4 : index
    %c0_144 = arith.constant 0 : index
    %c0_145 = arith.constant 0 : index
    %156 = vector.load %arg3[%c4_143, %c0_144, %c0_145] : memref<9x128x128xbf16, #tpu.memory_space<vmem>>, vector<1x128x128xbf16>
    %157 = vector.shape_cast %156 : vector<1x128x128xbf16> to vector<128x128xbf16>
    %cst_146 = arith.constant dense<0.000000e+00> : vector<36x128xf32>
    %158 = tpu.matmul %155, %157, %cst_146 {dimension_numbers = #tpu.dot_dimension_numbers<[1], [0], [0], [1], [0, 0, 1, 1], [], []>} : vector<36x128xbf16>, vector<128x128xbf16>, vector<36x128xf32> -> vector<36x128xf32>
    %159 = arith.addf %153, %158 : vector<36x128xf32>
    %c0_147 = arith.constant 0 : index
    %c272 = arith.constant 272 : index
    %c0_148 = arith.constant 0 : index
    %160 = vector.load %arg2[%c0_147, %c272, %c0_148] : memref<1x342x128xbf16, #tpu.memory_space<vmem>>, vector<1x36x128xbf16>
    %161 = vector.shape_cast %160 : vector<1x36x128xbf16> to vector<36x128xbf16>
    %c5_149 = arith.constant 5 : index
    %c0_150 = arith.constant 0 : index
    %c0_151 = arith.constant 0 : index
    %162 = vector.load %arg3[%c5_149, %c0_150, %c0_151] : memref<9x128x128xbf16, #tpu.memory_space<vmem>>, vector<1x128x128xbf16>
    %163 = vector.shape_cast %162 : vector<1x128x128xbf16> to vector<128x128xbf16>
    %cst_152 = arith.constant dense<0.000000e+00> : vector<36x128xf32>
    %164 = tpu.matmul %161, %163, %cst_152 {dimension_numbers = #tpu.dot_dimension_numbers<[1], [0], [0], [1], [0, 0, 1, 1], [], []>} : vector<36x128xbf16>, vector<128x128xbf16>, vector<36x128xf32> -> vector<36x128xf32>
    %165 = arith.addf %159, %164 : vector<36x128xf32>
    %c0_153 = arith.constant 0 : index
    %c288 = arith.constant 288 : index
    %c0_154 = arith.constant 0 : index
    %166 = vector.load %arg2[%c0_153, %c288, %c0_154] : memref<1x342x128xbf16, #tpu.memory_space<vmem>>, vector<1x36x128xbf16>
    %167 = vector.shape_cast %166 : vector<1x36x128xbf16> to vector<36x128xbf16>
    %c6_155 = arith.constant 6 : index
    %c0_156 = arith.constant 0 : index
    %c0_157 = arith.constant 0 : index
    %168 = vector.load %arg3[%c6_155, %c0_156, %c0_157] : memref<9x128x128xbf16, #tpu.memory_space<vmem>>, vector<1x128x128xbf16>
    %169 = vector.shape_cast %168 : vector<1x128x128xbf16> to vector<128x128xbf16>
    %cst_158 = arith.constant dense<0.000000e+00> : vector<36x128xf32>
    %170 = tpu.matmul %167, %169, %cst_158 {dimension_numbers = #tpu.dot_dimension_numbers<[1], [0], [0], [1], [0, 0, 1, 1], [], []>} : vector<36x128xbf16>, vector<128x128xbf16>, vector<36x128xf32> -> vector<36x128xf32>
    %171 = arith.addf %165, %170 : vector<36x128xf32>
    %c0_159 = arith.constant 0 : index
    %c289 = arith.constant 289 : index
    %c0_160 = arith.constant 0 : index
    %172 = vector.load %arg2[%c0_159, %c289, %c0_160] : memref<1x342x128xbf16, #tpu.memory_space<vmem>>, vector<1x36x128xbf16>
    %173 = vector.shape_cast %172 : vector<1x36x128xbf16> to vector<36x128xbf16>
    %c7_161 = arith.constant 7 : index
    %c0_162 = arith.constant 0 : index
    %c0_163 = arith.constant 0 : index
    %174 = vector.load %arg3[%c7_161, %c0_162, %c0_163] : memref<9x128x128xbf16, #tpu.memory_space<vmem>>, vector<1x128x128xbf16>
    %175 = vector.shape_cast %174 : vector<1x128x128xbf16> to vector<128x128xbf16>
    %cst_164 = arith.constant dense<0.000000e+00> : vector<36x128xf32>
    %176 = tpu.matmul %173, %175, %cst_164 {dimension_numbers = #tpu.dot_dimension_numbers<[1], [0], [0], [1], [0, 0, 1, 1], [], []>} : vector<36x128xbf16>, vector<128x128xbf16>, vector<36x128xf32> -> vector<36x128xf32>
    %177 = arith.addf %171, %176 : vector<36x128xf32>
    %c0_165 = arith.constant 0 : index
    %c290 = arith.constant 290 : index
    %c0_166 = arith.constant 0 : index
    %178 = vector.load %arg2[%c0_165, %c290, %c0_166] : memref<1x342x128xbf16, #tpu.memory_space<vmem>>, vector<1x36x128xbf16>
    %179 = vector.shape_cast %178 : vector<1x36x128xbf16> to vector<36x128xbf16>
    %c8_167 = arith.constant 8 : index
    %c0_168 = arith.constant 0 : index
    %c0_169 = arith.constant 0 : index
    %180 = vector.load %arg3[%c8_167, %c0_168, %c0_169] : memref<9x128x128xbf16, #tpu.memory_space<vmem>>, vector<1x128x128xbf16>
    %181 = vector.shape_cast %180 : vector<1x128x128xbf16> to vector<128x128xbf16>
    %cst_170 = arith.constant dense<0.000000e+00> : vector<36x128xf32>
    %182 = tpu.matmul %179, %181, %cst_170 {dimension_numbers = #tpu.dot_dimension_numbers<[1], [0], [0], [1], [0, 0, 1, 1], [], []>} : vector<36x128xbf16>, vector<128x128xbf16>, vector<36x128xf32> -> vector<36x128xf32>
    %183 = arith.addf %177, %182 : vector<36x128xf32>
    %c0_171 = arith.constant 0 : index
    %c271_172 = arith.constant 271 : index
    %c0_173 = arith.constant 0 : index
    %184 = vector.load %arg5[%c0_171, %c271_172, %c0_173] : memref<1x342x128xbf16, #tpu.memory_space<vmem>>, vector<1x36x128xbf16>
    %185 = vector.shape_cast %184 : vector<1x36x128xbf16> to vector<36x128xbf16>
    %186 = arith.extf %185 : vector<36x128xbf16> to vector<36x128xf32>
    %187 = arith.addf %183, %186 : vector<36x128xf32>
    %cst_174 = arith.constant 0.000000e+00 : f32
    %188 = vector.broadcast %cst_174 : f32 to vector<36x128xf32>
    %189 = arith.maximumf %187, %188 : vector<36x128xf32>
    %c0_175 = arith.constant 0 : index
    %c252_176 = arith.constant 252 : index
    %c0_177 = arith.constant 0 : index
    %190 = vector.load %arg6[%c0_175, %c252_176, %c0_177] : memref<1x288x128xf32, #tpu.memory_space<vmem>>, vector<1x36x128xf32>
    %191 = vector.shape_cast %190 : vector<1x36x128xf32> to vector<36x128xf32>
    %192 = vector.shape_cast %189 : vector<36x128xf32> to vector<1x36x128xf32>
    tpu.vector_store %arg6[%c0_175, %c252_176, %c0_177], %192 {strides = array<i32>} : memref<1x288x128xf32, #tpu.memory_space<vmem>>, vector<1x36x128xf32>,
    return
  }
  func.func @transform_0(%arg0: i32, %arg1: i32) -> (i32, i32, i32) {
    %c0_i32 = arith.constant 0 : i32
    %c0_i32_0 = arith.constant 0 : i32
    %c0_i32_1 = arith.constant 0 : i32
    return %arg0, %c0_i32, %c0_i32_0 : i32, i32, i32
  }
  func.func @transform_1(%arg0: i32, %arg1: i32) -> (i32, i32, i32) {
    %c0_i32 = arith.constant 0 : i32
    %c0_i32_0 = arith.constant 0 : i32
    %c0_i32_1 = arith.constant 0 : i32
    return %c0_i32, %c0_i32_0, %arg1 : i32, i32, i32
  }
  func.func @transform_2(%arg0: i32, %arg1: i32) -> (i32, i32) {
    %c0_i32 = arith.constant 0 : i32
    %c0_i32_0 = arith.constant 0 : i32
    return %c0_i32, %arg1 : i32, i32
  }
  func.func @transform_3(%arg0: i32, %arg1: i32) -> (i32, i32, i32) {
    %c0_i32 = arith.constant 0 : i32
    %c0_i32_0 = arith.constant 0 : i32
    return %arg0, %c0_i32, %arg1 : i32, i32, i32
  }
  func.func @transform_4(%arg0: i32, %arg1: i32) -> (i32, i32, i32) {
    %c0_i32 = arith.constant 0 : i32
    %c0_i32_0 = arith.constant 0 : i32
    return %arg0, %c0_i32, %arg1 : i32, i32, i32
  }
}

</mosaic_0001>

<bundles_post_ra>
// kernel: basic_block_forward.4
= control target key start
LH: loop header
LB: loop body
LE: loop exit
PB: predicated region body
PF: predicated region fallthrough
CT: control target
= control target key end

     0   :  { %s1983_s15 = smov 0   ;;  %s1985_s16 = smov 0   ;;  %s2716_s0 = inlined_call_operand.vmem [shape: bf16[2,288,128], index: 0, kind: input, shape index: {}]   ;;  %s2717_s1 = inlined_call_operand.vmem [shape: bf16[1,128,128], index: 1, kind: input, shape index: {}]   ;;  %s2718_s2 = inlined_call_operand.vmem [shape: f32[1,128], index: 2, kind: input, shape index: {}]   ;;  %s2719_s3 = inlined_call_operand.vmem [shape: f32[288,1], index: 3, kind: input, shape index: {}]   ;;  %s2720_s4 = inlined_call_operand.vmem [shape: bf16[2,342,128], index: 4, kind: output, shape index: {}]  }
   0x1   :  { %s1987_s17 = smov 0  }
   0x2 LB: > { %s26_s18 = sadd.s32 1, %s1951_s16  ;;  %p1663_p0 = scmp.ge.s32.totalorder %s1955_s17, 1  ;;  %s1955_s17 = sphi %s1987_s17, %s14_s17   ;;  %s1951_s16 = sphi %s1985_s16, %s2740_s16   ;;  %s1947_s15 = sphi %s1983_s15, %s2739_s15  }
   0x3   : > { %p28_p1 = scmp.ge.s32.totalorder %s26_s18, 2  ;;  %p193_p2 = scmp.lt.s32.totalorder %s1955_s17, 3 }
   0x5   : > { %s2742_s18 = smov (%p28_p1, %s26_s18), 0  ;;  %p194_p3 = pnand %p1663_p0, %p193_p2 }
   0x6   : > { %p229_p4 = scmp.lt.s32.totalorder (!%p194_p3), %s1947_s15, 1 }
   0x7   : > { %197 = sbr.rel (%p194_p3) target bundleno = 280 (0x118), region = 36 }
   0xc   : > { %v459_v0 = vld [vmem:[%s2719_s3 + $0x20] sm:$0xff]  ;;  %v457_v1 = vld [vmem:[%s2719_s3 + $0x10] sm:$0xff]  ;;  %v1957_v3 = vmov 0   ;;  %v1851_v4 = vld [vmem:[%s2717_s1 + $0x38] sm:$0xff]  ;;  %s2744_s15 = smov (!%p229_p4, %s1947_s15), 1  ;;  %vm864_vm0 = vcmask 1044480  }
   0xd   : > { %v455_v2 = vld [vmem:[%s2719_s3] sm:$0xff]  ;;  %1931 = vset.pattern.permute.xlu2 %v1957_v3  ;;  %1930 = vset.pattern.permute.xlu1 %v1957_v3  ;;  %v2016_v5 = vld [vmem:[%s2717_s1 + $0x38] sm:$0xff]  ;;  %s1903_s29 = smul.u32 172, %s2744_s15  ;;  %v1850_v6 = vld [vmem:[%s2717_s1 + $0x30] sm:$0xff]  ;;  %vm1350_vm1 = vcmask 1045504   ;;  %vm252_vm2 = vcmask 1041408  }
   0xe   : > { %1929 = vset.pattern.permute.xlu0 %v1957_v3  ;;  %493 = vperm.xlu2 %1931, %v459_v0   ;;  %v2029_v7 = vld [vmem:[%s2717_s1 + $0x30] sm:$0xff]  ;;  %v460_v8 = vld [vmem:[%s2719_s3 + $0x28] sm:$0xff]  ;;  %v458_v9 = vld [vmem:[%s2719_s3 + $0x18] sm:$0xff]  ;;  %s1902_s12 = smul.u32 144, %s2744_s15  ;;  %vm253_vm3 = vsmask.f32 1280 }
   0xf   : > { %483 = vperm.xlu1 %1930, %v457_v1   ;;  %473 = vperm.xlu0 %1929, %v455_v2   ;;  %s2034_s10 = scalar_lea.vmem %s2720_s4, %s1903_s29  ;;  %v456_v10 = vld [vmem:[%s2719_s3 + $0x8] sm:$0xff]  ;;  %v1848_v13 = vld [vmem:[%s2717_s1 + $0x20] sm:$0xff]  ;;  %v462_v16 = vld [vmem:[%s2719_s3 + $0x38] sm:$0xff]  ;;  %vm761_vm5 = vcmask 1043457   ;;  %vm762_vm6 = vsmask.f32 7942 }
  0x10   : > { %387 = vmatpush.bf16.msra.mxu0 %v1851_v4  ;;  %1878 = vmatpush.bf16.msra.mxu3 %v1851_v4  ;;  %250 = vst [vmem:[%s2034_s10] sm:$0xf] %v1957_v3  ;;  %v1849_v11 = vld [vmem:[%s2717_s1 + $0x28] sm:$0xff]  ;;  %v2069_v14 = vld [vmem:[%s2717_s1 + $0x20] sm:$0xff]  ;;  %v461_v17 = vld [vmem:[%s2719_s3 + $0x30] sm:$0xff]  ;;  %s2097_s22 = scalar_lea.vmem %s2716_s0, %s1902_s12  ;;  %vm583_vm8 = vsmask.f32 5392 }
  0x11   : > { %938 = vmatpush.bf16.msra.mxu1 %v2016_v5  ;;  %1886 = vmatpush.bf16.msra.mxu2 %v2016_v5  ;;  %251 = vst [vmem:[%s2034_s10 + $0x4] sm:$0xf] %v1957_v3  ;;  %v2056_v12 = vld [vmem:[%s2717_s1 + $0x28] sm:$0xff]  ;;  %v463_v15 = vld [vmem:[%s2719_s3 + $0x40] sm:$0xff]  ;;  %v1847_v18 = vld [vmem:[%s2717_s1 + $0x18] sm:$0xff]  ;;  %vm782_vm13 = vcmask 1040384  }
  0x12   : > { %1548 = vst [vmem:[%s2034_s10 + $0x9c] sm:$0xf] %v1957_v3  ;;  %v2089_v19 = vld [vmem:[%s2717_s1 + $0x18] sm:$0xff]  ;;  %v1846_v20 = vld [vmem:[%s2717_s1 + $0x10] sm:$0xff]  ;;  %v1852_v24 = vld [vmem:[%s2097_s22 + $0x3c] sm:$0xf0] }
  0x13   : > { %1549 = vst [vmem:[%s2034_s10 + $0xa0] sm:$0xf] %v1957_v3  ;;  %v2104_v21 = vld [vmem:[%s2717_s1 + $0x10] sm:$0xff]  ;;  %v466_v22 = vld [vmem:[%s2719_s3 + $0x58] sm:$0xff]  ;;  %v464_v26 = vld [vmem:[%s2719_s3 + $0x48] sm:$0xff] }
  0x14   : > { %388 = vmatpush.bf16.msra.mxu0 %v1850_v6  ;;  %1879 = vmatpush.bf16.msra.mxu3 %v1850_v6  ;;  %1550 = vst [vmem:[%s2034_s10 + $0xa4] sm:$0xf] %v1957_v3  ;;  %v1732_v23 = vld [vmem:[%s2097_s22 + $0x3c] sm:$0x8]  ;;  %v465_v25 = vld [vmem:[%s2719_s3 + $0x50] sm:$0xff]  ;;  %v1845_v27 = vld [vmem:[%s2717_s1 + $0x8] sm:$0xff] }
  0x15   : > { %939 = vmatpush.bf16.msra.mxu1 %v2029_v7  ;;  %1888 = vmatpush.bf16.msra.mxu2 %v2029_v7  ;;  %1551 = vst [vmem:[%s2034_s10 + $0xa8] sm:$0x7] %v1957_v3  ;;  %v2125_v28 = vld [vmem:[%s2717_s1 + $0x8] sm:$0xff]  ;;  %v1733_v30 = vor.u32 %v1852_v24, %v1732_v23  ;;  %v1844_v33 = vld [vmem:[%s2717_s1] sm:$0xff]  ;;  %v1877_v35 = vld [vmem:[%s2717_s1 + $0x38] sm:$0xff] }
  0x16   : > { %498 = vperm.xlu2 %1931, %v460_v8   ;;  %v2128_v29 = vld [vmem:[%s2097_s22 + $0x44] sm:$0xff]  ;;  %v2134_v32 = vld [vmem:[%s2097_s22 + $0x6c] sm:$0xff]  ;;  %v470_v51 = vld [vmem:[%s2719_s3 + $0x78] sm:$0x3f]  ;;  %vm783_vm9 = vsmask.f32 256 }
  0x17   : > { %488 = vperm.xlu1 %1930, %v458_v9   ;;  %478 = vperm.xlu0 %1929, %v456_v10   ;;  %v2131_v31 = vld [vmem:[%s2097_s22 + $0x64] sm:$0xff]  ;;  %v865_v36 = vrot.slane %v1733_v30, 3  ;;  %v866_v37 = vrot.slane %v2128_v29, 3  ;;  %v876_v39 = vrot.slane %v2134_v32, 3  ;;  %v469_v40 = vld [vmem:[%s2719_s3 + $0x70] sm:$0xff]  ;;  %v1873_v55 = vld [vmem:[%s2717_s1 + $0x18] sm:$0xff] }
  0x18   : > { %389 = vmatpush.bf16.msra.mxu0 %v1849_v11  ;;  %1880 = vmatpush.bf16.msra.mxu3 %v1849_v11  ;;  %v2144_v34 = vld [vmem:[%s2717_s1] sm:$0xff]  ;;  %v874_v38 = vrot.slane %v2131_v31, 3  ;;  %v468_v41 = vld [vmem:[%s2719_s3 + $0x68] sm:$0xff]  ;;  %v1876_v47 = vld [vmem:[%s2717_s1 + $0x30] sm:$0xff]  ;;  %vm1131_vm10 = vsmask.f32 4368 }
  0x19   : > { %940 = vmatpush.bf16.msra.mxu1 %v2056_v12  ;;  %1890 = vmatpush.bf16.msra.mxu2 %v2056_v12  ;;  %v467_v42 = vld [vmem:[%s2719_s3 + $0x60] sm:$0xff]  ;;  %v1841_v44 = vld [vmem:[%s2097_s22 + $0x28] sm:$0xff]  ;;  %v867_v45 = vsel %vm864_vm0, %v865_v36, %v866_v37  ;;  %v2190_v54 = vld [vmem:[%s2097_s22 + $0x74] sm:$0xff]  ;;  %vm1311_vm14 = vsmask.f32 3328 }
  0x1a   : > { %v1836_v43 = vld [vmem:[%s2097_s22] sm:$0xff]  ;;  %v877_v46 = vsel %vm864_vm0, %v874_v38, %v876_v39  ;;  %v1875_v48 = vld [vmem:[%s2717_s1 + $0x28] sm:$0xff]  ;;  %v878_v57 = vrot.slane %v2190_v54, 3  ;;  %v1006_v59 = vld [vmem:[%s2719_s3 + $0x96] sm:$0xff]  ;;  %vm1475_vm15 = vsmask.f32 7440 }
  0x1b   : > { %v1004_v49 = vld [vmem:[%s2719_s3 + $0x86] sm:$0xff]  ;;  %v1003_v50 = vld [vmem:[%s2719_s3 + $0x7e] sm:$0xff]  ;;  %v1005_v60 = vld [vmem:[%s2719_s3 + $0x8e] sm:$0xff] }
  0x1c   : > { %390 = vmatpush.bf16.msra.mxu0 %v1848_v13  ;;  %1881 = vmatpush.bf16.msra.mxu3 %v1848_v13  ;;  %v1874_v52 = vld [vmem:[%s2717_s1 + $0x20] sm:$0xff]  ;;  %v1854_v53 = vld [vmem:[%s2097_s22 + $0x4c] sm:$0xff]  ;;  %v879_v0 = vsel %vm864_vm0, %v876_v39, %v878_v57  ;;  %v1010_v3 = vld [vmem:[%s2719_s3 + $0xb6] sm:$0xff] }
  0x1d   : > { %941 = vmatpush.bf16.msra.mxu1 %v2069_v14  ;;  %1892 = vmatpush.bf16.msra.mxu2 %v2069_v14  ;;  %v868_v56 = vrot.slane %v1854_v53, 3  ;;  %v1007_v58 = vld [vmem:[%s2719_s3 + $0x9e] sm:$0xff]  ;;  %v1837_v61 = vld [vmem:[%s2097_s22 + $0x8] sm:$0xff]  ;;  %v1842_v62 = vld [vmem:[%s2097_s22 + $0x30] sm:$0xff] }
  0x1e   : > { %513 = vperm.xlu2 %1931, %v463_v15   ;;  %v1872_v1 = vld [vmem:[%s2717_s1 + $0x10] sm:$0xff]  ;;  %v1871_v2 = vld [vmem:[%s2717_s1 + $0x8] sm:$0xff]  ;;  %v1796_v4 = vld [vmem:[%s2097_s22 + $0x7c] sm:$0xc] }
  0x1f   : > { %508 = vperm.xlu1 %1930, %v462_v16   ;;  %503 = vperm.xlu0 %1929, %v461_v17   ;;  %v869_v63 = vsel %vm864_vm0, %v866_v37, %v868_v56  ;;  %v1009_v6 = vld [vmem:[%s2719_s3 + $0xae] sm:$0xff]  ;;  %v1870_v8 = vld [vmem:[%s2717_s1] sm:$0xff]  ;;  %v1843_v13 = vld [vmem:[%s2097_s22 + $0x38] sm:$0x70] }
  0x20   : > { %391 = vmatpush.bf16.msra.mxu0 %v1847_v18  ;;  %1882 = vmatpush.bf16.msra.mxu3 %v1847_v18  ;;  %v1855_v9 = vld [vmem:[%s2097_s22 + $0x54] sm:$0xff]  ;;  %v1869_v10 = vld [vmem:[%s2097_s22 + $0x84] sm:$0xff]  ;;  %v1856_v17 = vld [vmem:[%s2097_s22 + $0x5c] sm:$0xff] }
  0x21   : > { %942 = vmatpush.bf16.msra.mxu1 %v2089_v19  ;;  %1894 = vmatpush.bf16.msra.mxu2 %v2089_v19  ;;  %v1352_v16 = vrot.slane %v1869_v10, 2  ;;  %v1013_v18 = vld [vmem:[%s2719_s3 + $0xce] sm:$0xff]  ;;  %v1439_v31 = vld [vmem:[%s2719_s3 + $0x11c] sm:$0xf]  ;;  %vm2313_vm4 = vmand %vm252_vm2, %vm253_vm3  ;;  %vm1291_vm2 = vcmask 1043456  }
  0x22   : > { %v1320_v29 = vld [vmem:[%s2097_s22 + $0x8c] sm:$0xf]  ;;  %v2339_v10 = vld [vmem:[%s2718_s2] ss:$0 sm:$0xff]  ;;  %vm2354_vm7 = vmand %vm761_vm5, %vm762_vm6  ;;  %vm1532_vm6 = vcmask 1043459  }
  0x23   : > { %v1437_v39 = vld [vmem:[%s2719_s3 + $0x10c] sm:$0xff]  ;;  %vm2380_vm11 = vmor %vm253_vm3, %vm583_vm8  ;;  %vm1292_vm3 = vsmask.f32 7938  ;;  %vm1533_vm8 = vsmask.f32 7950 }
  0x24   : > { %392 = vmatpush.bf16.msra.mxu0 %v1846_v20  ;;  %1883 = vmatpush.bf16.msra.mxu3 %v1846_v20  ;;  %v1012_v20 = vld [vmem:[%s2719_s3 + $0xc6] sm:$0xff]  ;;  %vm2392_vm12 = vmor %vm783_vm9, %vm1131_vm10 }
  0x25   : > { %943 = vmatpush.bf16.msra.mxu1 %v2104_v21  ;;  %1896 = vmatpush.bf16.msra.mxu2 %v2104_v21  ;;  %vm2612_vm5 = vmand %vm1291_vm2, %vm1292_vm3 }
  0x26   : > { %528 = vperm.xlu2 %1931, %v466_v22   ;;  %v1838_v22 = vld [vmem:[%s2097_s22 + $0x10] sm:$0xff]  ;;  %vm2666_vm10 = vmand %vm1532_vm6, %vm1533_vm8 }
  0x27   : > { %523 = vperm.xlu1 %1930, %v465_v25   ;;  %518 = vperm.xlu0 %1929, %v464_v26   ;;  %v872_v26 = vrot.slane %v1856_v17, 3 }
  0x28   : > { %393 = vmatpush.bf16.msra.mxu0 %v1845_v27  ;;  %1884 = vmatpush.bf16.msra.mxu3 %v1845_v27  ;;  %v804_v27 = vld [vmem:[%s2097_s22 + $0x7c] sm:$0x3] }
  0x29   : > { %944 = vmatpush.bf16.msra.mxu1 %v2125_v28  ;;  %1898 = vmatpush.bf16.msra.mxu2 %v2125_v28  ;;  %v875_v30 = vsel %vm864_vm0, %v872_v26, %v874_v38  ;;  %v854_v32 = vunpack.c.l.b16 %v804_v27 }
  0x2b   : > { %v863_v36 = vpack.c.b16 %v854_v32, %v854_v32 }
  0x2c   : > { %394 = vmatpush.bf16.msra.mxu0 %v1844_v33  ;;  %1885 = vmatpush.bf16.msra.mxu3 %v1844_v33  ;;  %v1018_v33 = vld [vmem:[%s2719_s3 + $0xf6] sm:$0x3f] }
  0x2d   : > { %945 = vmatpush.bf16.msra.mxu1 %v2144_v34  ;;  %1900 = vmatpush.bf16.msra.mxu2 %v2144_v34 }
  0x2e   : > { %543 = vperm.xlu2 %1931, %v469_v40   ;;  %v1436_v40 = vld [vmem:[%s2719_s3 + $0x104] sm:$0xff] }
  0x2f   : > { %538 = vperm.xlu1 %1930, %v468_v41   ;;  %533 = vperm.xlu0 %1929, %v467_v42   ;;  %v1435_v41 = vld [vmem:[%s2719_s3 + $0xfc] sm:$0xff] }
  0x30   : > { %395 = vmatmul.bf16.vlgmr.msra.gmra.mxu0 %v1836_v43  ;;  %420 = vmatmul.bf16.vlgmr.msra.gmra.mxu3 %v1841_v44  ;;  %v1839_v42 = vld [vmem:[%s2097_s22 + $0x18] sm:$0xff] }
  0x31   : > { %1407 = vmatpush.bf16.msrb.mxu2 %v1877_v35  ;;  %946 = vmatmul.bf16.vlgmr.msra.gmra.mxu1 %v867_v45  ;;  %v1017_v35 = vld [vmem:[%s2719_s3 + $0xee] sm:$0xff]  ;;  %v1015_v45 = vld [vmem:[%s2719_s3 + $0xde] sm:$0xff] }
  0x32   : > { %971 = vmatmul.bf16.vlgmr.msra.gmra.mxu2 %v877_v46  ;;  %1887 = vmatpush.bf16.msrb.mxu3 %v2016_v5  ;;  %v1868_v5 = vld [vmem:[%s2097_s22 + $0x7c] sm:$0xf0]  ;;  %v1014_v46 = vld [vmem:[%s2719_s3 + $0xd6] sm:$0xff] }
  0x33   : > { %v1797_v11 = vor.u32 %v1868_v5, %v1796_v4 }
  0x35   : > { %1408 = vmatpush.bf16.msrb.mxu2 %v1876_v47  ;;  %v1351_v15 = vrot.slane %v1797_v11, 2  ;;  %v1438_v47 = vld [vmem:[%s2719_s3 + $0x114] sm:$0xff] }
  0x36   : > { %1026 = vperm.xlu2 %1931, %v1004_v49   ;;  %1889 = vmatpush.bf16.msrb.mxu3 %v2029_v7  ;;  %v1008_v7 = vld [vmem:[%s2719_s3 + $0xa6] sm:$0xff] }
  0x37   : > { %1021 = vperm.xlu1 %1930, %v1003_v50   ;;  %548 = vperm.xlu0 %1929, %v470_v51   ;;  %v1353_v25 = vsel %vm1350_vm1, %v1351_v15, %v1352_v16  ;;  %v1016_v49 = vld [vmem:[%s2719_s3 + $0xe6] sm:$0xff] }
  0x38   : > { %v1840_v50 = vld [vmem:[%s2097_s22 + $0x20] sm:$0xff] }
  0x39   : > { %1409 = vmatpush.bf16.msrb.mxu2 %v1875_v48 }
  0x3a   : > { %1891 = vmatpush.bf16.msrb.mxu3 %v2056_v12  ;;  %v1696_v12 = vld [vmem:[%s2097_s22 + $0x38] sm:$0xf] }
  0x3b   : > { %v1697_v23 = vor.u32 %v1843_v13, %v1696_v12 }
  0x3d   : > { %1410 = vmatpush.bf16.msrb.mxu2 %v1874_v52 }
  0x3e   : > { %1041 = vperm.xlu2 %1931, %v1007_v58   ;;  %1893 = vmatpush.bf16.msrb.mxu3 %v2069_v14  ;;  %v870_v14 = vrot.slane %v1855_v9, 3 }
  0x3f   : > { %1036 = vperm.xlu1 %1930, %v1006_v59   ;;  %1031 = vperm.xlu0 %1929, %v1005_v60   ;;  %v255_v59 = vld [vmem:[%s2034_s10 + $0x8] sm:$0x3] }
  0x40   : > { %400 = vmatmul.bf16.gmra.mxu0 %v1837_v61  ;;  %425 = vmatmul.bf16.gmra.mxu3 %v1842_v62  ;;  %v871_v24 = vsel %vm864_vm0, %v868_v56, %v870_v14  ;;  %v873_v43 = vsel %vm864_vm0, %v870_v14, %v872_v26  ;;  %v256_v61 = vsel %vm2313_vm4, 0, %v255_v59 }
  0x41   : > { %1411 = vmatpush.bf16.msrb.mxu2 %v1873_v55  ;;  %951 = vmatmul.bf16.gmra.mxu1 %v869_v63  ;;  %257 = vst [vmem:[%s2034_s10 + $0x8] sm:$0x3] %v256_v61 }
  0x42   : > { %976 = vmatmul.bf16.gmra.mxu2 %v879_v0  ;;  %1895 = vmatpush.bf16.msrb.mxu3 %v2089_v19  ;;  %v1011_v19 = vld [vmem:[%s2719_s3 + $0xbe] sm:$0xff] }
  0x45   : > { %1412 = vmatpush.bf16.msrb.mxu2 %v1872_v1 }
  0x46   : > { %1056 = vperm.xlu2 %1931, %v1010_v3   ;;  %1897 = vmatpush.bf16.msrb.mxu3 %v2104_v21  ;;  %v1346_v21 = vunpack.c.l.b16 %v1320_v29 }
  0x47   : > { %1051 = vperm.xlu1 %1930, %v1009_v6   ;;  %1046 = vperm.xlu0 %1929, %v1008_v7  }
  0x48   : > { %v1349_v37 = vpack.c.b16 %v1346_v21, %v1346_v21 }
  0x49   : > { %1413 = vmatpush.bf16.msrb.mxu2 %v1871_v2 }
  0x4a   : > { %1899 = vmatpush.bf16.msrb.mxu3 %v2125_v28  ;;  %v880_v28 = vrot.slane %v863_v36, 3  ;;  %v1354_v38 = vrot.slane %v1349_v37, 2  ;;  %v764_v36 = vld [vmem:[%s2034_s10 + $0x8] sm:$0xe] }
  0x4c   : > { %v1355_v44 = vsel %vm1350_vm1, %v1352_v16, %v1354_v38  ;;  %vm2565_vm1 = vmor %vm1311_vm14, %vm1475_vm15 }
  0x4d   : > { %1414 = vmatpush.bf16.msrb.mxu2 %v1870_v8 }
  0x4e   : > { %1071 = vperm.xlu2 %1931, %v1013_v18   ;;  %1901 = vmatpush.bf16.msrb.mxu3 %v2144_v34  ;;  %v881_v34 = vsel %vm864_vm0, %v878_v57, %v880_v28  ;;  %vm2547_vm0 = vmand %vm782_vm13, %vm783_vm9 }
  0x4f   : > { %1066 = vperm.xlu1 %1930, %v1012_v20   ;;  %1061 = vperm.xlu0 %1929, %v1011_v19   ;;  %vm2643_vm9 = vmand %vm1291_vm2, %vm1311_vm14 }
  0x50   : > { %405 = vmatmul.bf16.gmra.mxu0 %v1838_v22  ;;  %430 = vmatmul.bf16.gmra.mxu3 %v1697_v23 }
  0x51   : > { %956 = vmatmul.bf16.gmra.mxu1 %v871_v24 }
  0x52   : > { %1415 = vmatmul.bf16.vlgmr.msrb.gmra.mxu2 %v1353_v25 }
  0x56   : > { %1096 = vperm.xlu2 %1931, %v1018_v33  }
  0x57   : > { %1091 = vperm.xlu1 %1930, %v1017_v35   ;;  %1462 = vperm.xlu0 %1929, %v1439_v31  }
  0x5e   : > { %1452 = vperm.xlu2 %1931, %v1437_v39  }
  0x5f   : > { %1447 = vperm.xlu1 %1930, %v1436_v40   ;;  %1442 = vperm.xlu0 %1929, %v1435_v41  }
  0x60   : > { %410 = vmatmul.bf16.gmra.mxu0 %v1839_v42  ;;  %981 = vmatmul.bf16.vlgmr.msrb.gmra.mxu3 %v881_v34 }
  0x61   : > { %961 = vmatmul.bf16.gmra.mxu1 %v873_v43 }
  0x62   : > { %1420 = vmatmul.bf16.gmra.mxu2 %v1355_v44 }
  0x66   : > { %1081 = vperm.xlu2 %1931, %v1015_v45  }
  0x67   : > { %1076 = vperm.xlu1 %1930, %v1014_v46   ;;  %1457 = vperm.xlu0 %1929, %v1438_v47  }
  0x68   : > { %v2293_v48 = vpop.permute.xlu2 %493 }
  0x6f   : > { %1086 = vperm.xlu0 %1929, %v1016_v49  }
  0x70   : > { %415 = vmatmul.bf16.gmra.mxu0 %v1840_v50  ;;  %v2299_v51 = vpop.permute.xlu2 %498 }
  0x71   : > { %966 = vmatmul.bf16.gmra.mxu1 %v875_v30 }
  0x72   : > { %1425 = vmatmul.bf16.gmra.mxu2 %v1354_v38 }
  0x78   : > { %v2301_v52 = vpop.permute.xlu2 %513 }
  0x80   : > { %v2303_v53 = vpop.permute.xlu2 %528 }
  0x81   : > { %v2305_v54 = vpop.permute.xlu1 %483  ;;  %v474_v55 = vpop.permute.xlu0 %473 }
  0x88   : > { %v2307_v56 = vpop.permute.xlu2 %543 }
  0x89   : > { %v2309_v57 = vpop.permute.xlu1 %488  ;;  %v479_v58 = vpop.permute.xlu0 %478 }
  0x90   : > { %v1027_v62 = vpop.permute.xlu2 %1026 }
  0x91   : > { %v2320_v63 = vpop.permute.xlu1 %508  ;;  %v2322_v0 = vpop.permute.xlu0 %503 }
  0x98   : > { %v2324_v1 = vpop.permute.xlu2 %1041 }
  0x99   : > { %v524_v2 = vpop.permute.xlu1 %523  ;;  %v2326_v3 = vpop.permute.xlu0 %518 }
  0xa0   : > { %v2328_v4 = vpop.permute.xlu2 %1056 }
  0xa1   : > { %v2330_v5 = vpop.permute.xlu1 %538  ;;  %v2332_v6 = vpop.permute.xlu0 %533 }
  0xa8   : > { %v1072_v7 = vpop.permute.xlu2 %1071 }
  0xa9   : > { %v1022_v8 = vpop.permute.xlu1 %1021  ;;  %v2334_v9 = vpop.permute.xlu0 %548 }
  0xad   : > { %v396_v11 = vpop.f32.mrf.mxu0 }
  0xae   : > { %v439_v12 = vadd.f32 %v2339_v10, %v396_v11  ;;  %v947_v13 = vpop.f32.mrf.mxu1 }
  0xaf   : > { %v987_v14 = vadd.f32 %v2339_v10, %v947_v13 }
  0xb0   : > { %v551_v15 = vmul.f32 %v474_v55, %v439_v12  ;;  %v2349_v22 = vpop.permute.xlu2 %1096 }
  0xb1   : > { %v1099_v16 = vmul.f32 %v1022_v8, %v987_v14  ;;  %v2343_v17 = vpop.permute.xlu1 %1036  ;;  %v2345_v18 = vpop.permute.xlu0 %1031 }
  0xb2   : > { %v567_v20 = vpack.c.bf16 %v551_v15, %v551_v15 }
  0xb3   : > { %v2347_v19 = vpack.c.bf16 %v1099_v16, %v1099_v16  ;;  %v421_v23 = vpop.f32.mrf.mxu3 }
  0xb4   : > { %v586_v24 = vshrl.u32 %v567_v20, 16  ;;  %v589_v25 = vshll.u32 %v567_v20, 16  ;;  %v449_v26 = vadd.f32 %v2339_v10, %v421_v23 }
  0xb5   : > { %v972_v27 = vpop.f32.mrf.mxu2  ;;  %v398_v29 = vpop.f32.mrf.mxu0  ;;  %v1134_v37 = vshrl.u32 %v2347_v19, 16 }
  0xb6   : > { %v588_v30 = vrot.slane %v586_v24, 6  ;;  %v591_v32 = vrot.slane %v589_v25, 7  ;;  %v561_v21 = vmul.f32 %v524_v2, %v449_v26  ;;  %v440_v33 = vadd.f32 %v2339_v10, %v398_v29  ;;  %v949_v35 = vpop.f32.mrf.mxu1 }
  0xb7   : > { %v988_v28 = vadd.f32 %v2339_v10, %v949_v35  ;;  %v997_v41 = vadd.f32 %v2339_v10, %v972_v27  ;;  %v2369_v47 = vrot.slane %v1134_v37, 7 }
  0xb8   : > { %v592_v38 = vor.u32 %v591_v32, %v588_v30  ;;  %v577_v39 = vpack.c.bf16 %v561_v21, %v561_v21  ;;  %v552_v40 = vmul.f32 %v479_v58, %v440_v33  ;;  %v2374_v11 = vpop.permute.xlu2 %1452 }
  0xb9   : > { %v1100_v42 = vmul.f32 %v1027_v62, %v988_v28  ;;  %v2362_v34 = vpop.permute.xlu1 %1051  ;;  %v2364_v43 = vpop.permute.xlu0 %1046  ;;  %v1109_v61 = vmul.f32 %v1072_v7, %v997_v41  ;;  %v1140_v20 = vrot.slane %v2369_v47, 4 }
  0xba   : > { %v765_v44 = vsel %vm2354_vm7, %v592_v38, %v764_v36  ;;  %v685_v45 = vshrl.u32 %v577_v39, 16  ;;  %v688_v46 = vshll.u32 %v577_v39, 16  ;;  %v568_v49 = vpack.c.bf16 %v552_v40, %v552_v40 }
  0xbb   : > { %766 = vst [vmem:[%s2034_s10 + $0x8] sm:$0xe] %v765_v44  ;;  %v1116_v50 = vpack.c.bf16 %v1100_v42, %v1100_v42  ;;  %v423_v55 = vpop.f32.mrf.mxu3  ;;  %v593_v30 = vrot.slane %v592_v38, 4 }
  0xbc   : > { %v450_v58 = vadd.f32 %v2339_v10, %v423_v55  ;;  %v595_v62 = vshrl.u32 %v568_v49, 16  ;;  %v598_v2 = vshll.u32 %v568_v49, 16  ;;  %v687_v13 = vrot.slane %v685_v45, 6 }
  0xbd   : > { %v2372_v59 = vpop.f32.mrf.mxu2  ;;  %v1142_v8 = vshrl.u32 %v1116_v50, 16  ;;  %v401_v12 = vpop.f32.mrf.mxu0  ;;  %v690_v14 = vrot.slane %v688_v46, 7  ;;  %v1145_v26 = vshll.u32 %v1116_v50, 16 }
  0xbe   : > { %v562_v15 = vmul.f32 %v2303_v53, %v450_v58  ;;  %v952_v16 = vpop.f32.mrf.mxu1  ;;  %v597_v23 = vrot.slane %v595_v62, 6  ;;  %v600_v24 = vrot.slane %v598_v2, 7  ;;  %v441_v29 = vadd.f32 %v2339_v10, %v401_v12 }
  0xbf   : > { %v2384_v25 = vrot.slane %v1142_v8, 7  ;;  %v2387_v53 = vpack.c.bf16 %v1109_v61, %v1109_v61  ;;  %v989_v33 = vadd.f32 %v2339_v10, %v952_v16  ;;  %v2401_v37 = vor.u32 %v690_v14, %v687_v13 }
  0xc0   : > { %v578_v27 = vpack.c.bf16 %v562_v15, %v562_v15  ;;  %v2389_v32 = vor.u32 %v600_v24, %v597_v23  ;;  %v553_v41 = vmul.f32 %v2305_v54, %v441_v29  ;;  %v1082_v24 = vpop.permute.xlu2 %1081 }
  0xc1   : > { %v2397_v35 = vpop.permute.xlu1 %1066  ;;  %v2399_v36 = vpop.permute.xlu0 %1061  ;;  %v1147_v28 = vor.u32 %v1145_v26, %v2384_v25  ;;  %v1101_v42 = vmul.f32 %v2345_v18, %v989_v33  ;;  %v1223_v58 = vshrl.u32 %v2387_v53, 16  ;;  %v693_v18 = vrot.slane %v2401_v37, 4 }
  0xc2   : > { %v695_v38 = vshrl.u32 %v578_v27, 16  ;;  %v698_v39 = vshll.u32 %v578_v27, 16  ;;  %v602_v40 = vsel %vm2380_vm11, %v593_v30, %v2389_v32  ;;  %v569_v61 = vpack.c.bf16 %v553_v41, %v553_v41 }
  0xc3   : > { %v426_v44 = vpop.f32.mrf.mxu3  ;;  %767 = vst [vmem:[%s2034_s10 + $0xc] sm:$0xf] %v602_v40  ;;  %v1148_v45 = vsel %vm2392_vm12, %v1140_v20, %v1147_v28  ;;  %v1117_v62 = vpack.c.bf16 %v1101_v42, %v1101_v42  ;;  %v1149_v15 = vrot.slane %v2384_v25, 4 }
  0xc4   : > { %v697_v46 = vrot.slane %v695_v38, 6  ;;  %v700_v49 = vrot.slane %v698_v39, 7  ;;  %v451_v50 = vadd.f32 %v2339_v10, %v426_v44  ;;  %1297 = vst [vmem:[%s2034_s10 + $0x4c] sm:$0xf] %v1148_v45  ;;  %v605_v16 = vshrl.u32 %v569_v61, 16 }
  0xc5   : > { %v977_v55 = vpop.f32.mrf.mxu2  ;;  %v403_v54 = vpop.f32.mrf.mxu0  ;;  %v608_v20 = vshll.u32 %v569_v61, 16  ;;  %v1151_v23 = vshrl.u32 %v1117_v62, 16  ;;  %v1154_v27 = vshll.u32 %v1117_v62, 16  ;;  %v603_v45 = vrot.slane %v2389_v32, 4 }
  0xc6   : > { %v999_v2 = vadd.f32 %v2339_v10, %v977_v55  ;;  %v701_v8 = vor.u32 %v700_v49, %v697_v46  ;;  %v563_v12 = vmul.f32 %v2332_v6, %v451_v50  ;;  %v442_v13 = vadd.f32 %v2339_v10, %v403_v54  ;;  %v954_v14 = vpop.f32.mrf.mxu1 }
  0xc7   : > { %v607_v33 = vrot.slane %v605_v16, 6  ;;  %v610_v28 = vrot.slane %v608_v20, 7  ;;  %v2423_v38 = vrot.slane %v1151_v23, 7  ;;  %v990_v42 = vadd.f32 %v2339_v10, %v954_v14 }
  0xc8   : > { %v702_v26 = vsel %vm2380_vm11, %v693_v18, %v701_v8  ;;  %v579_v29 = vpack.c.bf16 %v563_v12, %v563_v12  ;;  %v1111_v30 = vmul.f32 %v1082_v24, %v999_v2  ;;  %v554_v6 = vmul.f32 %v2309_v57, %v442_v13 }
  0xc9   : > { %777 = vst [vmem:[%s2034_s10 + $0x34] sm:$0xf] %v702_v26  ;;  %v2426_v39 = vpop.permute.xlu1 %1091  ;;  %v2431_v44 = vpop.permute.xlu0 %1462  ;;  %v611_v46 = vor.u32 %v610_v28, %v607_v33  ;;  %v1156_v49 = vor.u32 %v1154_v27, %v2423_v38  ;;  %v1137_v57 = vshll.u32 %v2347_v19, 16  ;;  %v2436_v61 = vrot.slane %v1223_v58, 7 }
  0xca   : > { %v705_v25 = vshrl.u32 %v579_v29, 16  ;;  %v708_v40 = vshll.u32 %v579_v29, 16  ;;  %v2428_v41 = vpack.c.bf16 %v1111_v30, %v1111_v30  ;;  %v570_v50 = vpack.c.bf16 %v554_v6, %v554_v6 }
  0xcb   : > { %v428_v55 = vpop.f32.mrf.mxu3  ;;  %v703_v18 = vrot.slane %v701_v8, 4  ;;  %v612_v12 = vsel %vm2380_vm11, %v603_v45, %v611_v46  ;;  %v1157_v32 = vsel %vm2392_vm12, %v1149_v15, %v1156_v49  ;;  %v1102_v20 = vmul.f32 %v2343_v17, %v990_v42 }
  0xcc   : > { %v707_v62 = vrot.slane %v705_v25, 6  ;;  %v710_v2 = vrot.slane %v708_v40, 7  ;;  %v615_v13 = vshrl.u32 %v570_v50, 16  ;;  %768 = vst [vmem:[%s2034_s10 + $0x10] sm:$0xf] %v612_v12  ;;  %v1241_v19 = vshrl.u32 %v2428_v41, 16 }
  0xcd   : > { %v979_v54 = vpop.f32.mrf.mxu2  ;;  %v406_v14 = vpop.f32.mrf.mxu0  ;;  %v618_v58 = vshll.u32 %v570_v50, 16  ;;  %v2448_v8 = vor.u32 %v1137_v57, %v2369_v47  ;;  %1298 = vst [vmem:[%s2034_s10 + $0x50] sm:$0xf] %v1157_v32  ;;  %v452_v26 = vadd.f32 %v2339_v10, %v428_v55  ;;  %v1230_v27 = vrot.slane %v2436_v61, 4 }
  0xce   : > { %v2443_v16 = vor.u32 %v710_v2, %v707_v62  ;;  %v957_v23 = vpop.f32.mrf.mxu1  ;;  %v617_v24 = vrot.slane %v615_v13, 6  ;;  %v443_v15 = vadd.f32 %v2339_v10, %v406_v14  ;;  %v2456_v29 = vadd.f32 %v2339_v10, %v2372_v59 }
  0xcf   : > { %v1158_v30 = vrot.slane %v2423_v38, 4  ;;  %v620_v47 = vrot.slane %v618_v58, 7  ;;  %v1118_v33 = vpack.c.bf16 %v1102_v20, %v1102_v20  ;;  %v564_v28 = vmul.f32 %v2330_v5, %v452_v26 }
  0xd0   : > { %v712_v17 = vsel %vm2380_vm11, %v703_v18, %v2443_v16  ;;  %v555_v6 = vmul.f32 %v2293_v48, %v443_v15  ;;  %v613_v40 = vrot.slane %v611_v46, 4  ;;  %v2467_v42 = vrot.slane %v1241_v19, 7 }
  0xd1   : > { %778 = vst [vmem:[%s2034_s10 + $0x38] sm:$0xf] %v712_v17  ;;  %v2465_v25 = vpop.permute.xlu1 %1447  ;;  %v1244_v59 = vshll.u32 %v2428_v41, 16  ;;  %v991_v38 = vadd.f32 %v2339_v10, %v957_v23  ;;  %v621_v45 = vor.u32 %v620_v47, %v617_v24  ;;  %v1160_v49 = vshrl.u32 %v1118_v33, 16  ;;  %v1443_v46 = vpop.permute.xlu0 %1442 }
  0xd2   : > { %v580_v50 = vpack.c.bf16 %v564_v28, %v564_v28  ;;  %v2472_v55 = vadd.f32 %v2339_v10, %v979_v54  ;;  %v713_v5 = vrot.slane %v2443_v16, 4  ;;  %v571_v48 = vpack.c.bf16 %v555_v6, %v555_v6 }
  0xd3   : > { %v431_v57 = vpop.f32.mrf.mxu3  ;;  %v1103_v62 = vmul.f32 %v2324_v1, %v991_v38  ;;  %v622_v41 = vsel %vm2380_vm11, %v613_v40, %v621_v45  ;;  %v1162_v12 = vrot.slane %v1160_v49, 7  ;;  %v1163_v32 = vshll.u32 %v1118_v33, 16 }
  0xd4   : > { %v453_v2 = vadd.f32 %v2339_v10, %v431_v57  ;;  %v715_v13 = vshrl.u32 %v580_v50, 16  ;;  %769 = vst [vmem:[%s2034_s10 + $0x14] sm:$0xf] %v622_v41  ;;  %v718_v14 = vshll.u32 %v580_v50, 16  ;;  %v625_v54 = vshrl.u32 %v571_v48, 16 }
  0xd5   : > { %v1416_v18 = vpop.f32.mrf.mxu2  ;;  %v628_v19 = vshll.u32 %v571_v48, 16  ;;  %v1119_v58 = vpack.c.bf16 %v1103_v62, %v1103_v62  ;;  %v623_v16 = vrot.slane %v621_v45, 4  ;;  %v1165_v20 = vor.u32 %v1163_v32, %v1162_v12  ;;  %v408_v24 = vpop.f32.mrf.mxu0 }
  0xd6   : > { %v717_v23 = vrot.slane %v715_v13, 6  ;;  %v565_v1 = vmul.f32 %v2307_v56, %v453_v2  ;;  %v959_v26 = vpop.f32.mrf.mxu1  ;;  %v720_v15 = vrot.slane %v718_v14, 7  ;;  %v627_v17 = vrot.slane %v625_v54, 6 }
  0xd7   : > { %v630_v47 = vrot.slane %v628_v19, 7  ;;  %v1169_v28 = vshrl.u32 %v1119_v58, 16  ;;  %v1166_v33 = vsel %vm2392_vm12, %v1158_v30, %v1165_v20  ;;  %v1172_v6 = vshll.u32 %v1119_v58, 16 }
  0xd8   : > { %v581_v40 = vpack.c.bf16 %v565_v1, %v565_v1  ;;  %v1430_v38 = vadd.f32 %v2339_v10, %v1416_v18  ;;  %1299 = vst [vmem:[%s2034_s10 + $0x54] sm:$0xf] %v1166_v33  ;;  %v721_v49 = vor.u32 %v720_v15, %v717_v23  ;;  %v444_v56 = vadd.f32 %v2339_v10, %v408_v24 }
  0xd9   : > { %v2485_v45 = vor.u32 %v630_v47, %v627_v17  ;;  %v2487_v50 = vrot.slane %v1169_v28, 7  ;;  %v992_v2 = vadd.f32 %v2339_v10, %v959_v26  ;;  %v1077_v30 = vpop.permute.xlu1 %1076  ;;  %v2492_v41 = vor.u32 %v1244_v59, %v2467_v42  ;;  %v2505_v1 = vpop.permute.xlu0 %1457 }
  0xda   : > { %v725_v57 = vshrl.u32 %v581_v40, 16  ;;  %v728_v48 = vshll.u32 %v581_v40, 16  ;;  %v1465_v62 = vmul.f32 %v1443_v46, %v1430_v38  ;;  %v1167_v18 = vrot.slane %v1162_v12, 4 }
  0xdb   : > { %v722_v32 = vsel %vm2380_vm11, %v713_v5, %v721_v49  ;;  %v632_v13 = vsel %vm2380_vm11, %v623_v16, %v2485_v45  ;;  %v433_v14 = vpop.f32.mrf.mxu3  ;;  %v723_v19 = vrot.slane %v721_v49, 4  ;;  %v1174_v46 = vor.u32 %v1172_v6, %v2487_v50 }
  0xdc   : > { %779 = vst [vmem:[%s2034_s10 + $0x3c] sm:$0xf] %v722_v32  ;;  %v727_v58 = vrot.slane %v725_v57, 6  ;;  %v730_v20 = vrot.slane %v728_v48, 7  ;;  %v1470_v59 = vpack.c.bf16 %v1465_v62, %v1465_v62  ;;  %v556_v12 = vmul.f32 %v2299_v51, %v444_v56 }
  0xdd   : > { %v1418_v54 = vpop.f32.mrf.mxu2  ;;  %770 = vst [vmem:[%s2034_s10 + $0x18] sm:$0xf] %v632_v13  ;;  %v1104_v23 = vmul.f32 %v2364_v43, %v992_v2  ;;  %v1110_v5 = vmul.f32 %v1077_v30, %v2456_v29  ;;  %v633_v16 = vrot.slane %v2485_v45, 4  ;;  %v1175_v24 = vsel %vm2392_vm12, %v1167_v18, %v1174_v46  ;;  %v411_v40 = vpop.f32.mrf.mxu0 }
  0xde   : > { %v2510_v26 = vor.u32 %v730_v20, %v727_v58  ;;  %v454_v15 = vadd.f32 %v2339_v10, %v433_v14  ;;  %1300 = vst [vmem:[%s2034_s10 + $0x58] sm:$0xf] %v1175_v24  ;;  %v1478_v17 = vshll.u32 %v1470_v59, 16  ;;  %v1481_v51 = vshrl.u32 %v1470_v59, 16  ;;  %v962_v38 = vpop.f32.mrf.mxu1 }
  0xdf   : > { %v572_v47 = vpack.c.bf16 %v556_v12, %v556_v12  ;;  %v1120_v43 = vpack.c.bf16 %v1104_v23, %v1104_v23  ;;  %v1126_v28 = vpack.c.bf16 %v1110_v5, %v1110_v5  ;;  %v1431_v6 = vadd.f32 %v2339_v10, %v1418_v54 }
  0xe0   : > { %v732_v29 = vsel %vm2380_vm11, %v723_v19, %v2510_v26  ;;  %v566_v33 = vmul.f32 %v2334_v9, %v454_v15  ;;  %v2520_v49 = vrot.slane %v1478_v17, 5  ;;  %v1483_v45 = vrot.slane %v1481_v51, 4 }
  0xe1   : > { %780 = vst [vmem:[%s2034_s10 + $0x40] sm:$0xf] %v732_v29  ;;  %v635_v56 = vshrl.u32 %v572_v47, 16  ;;  %v638_v57 = vshll.u32 %v572_v47, 16  ;;  %v1176_v48 = vrot.slane %v2487_v50, 4  ;;  %v1178_v62 = vshrl.u32 %v1120_v43, 16 }
  0xe2   : > { %v1181_v2 = vshll.u32 %v1120_v43, 16  ;;  %v1232_v30 = vshrl.u32 %v1126_v28, 16  ;;  %v1484_v18 = vor.u32 %v1483_v45, %v2520_v49  ;;  %v582_v13 = vpack.c.bf16 %v566_v33, %v566_v33  ;;  %v1087_v43 = vpop.permute.xlu0 %1086 }
  0xe3   : > { %v637_v9 = vrot.slane %v635_v56, 6  ;;  %v640_v32 = vrot.slane %v638_v57, 7  ;;  %v2524_v54 = vrot.slane %v1178_v62, 7  ;;  %v1235_v46 = vshll.u32 %v1126_v28, 16  ;;  %v982_v29 = vpop.f32.mrf.mxu3 }
  0xe4   : > { %v1234_v19 = vrot.slane %v1232_v30, 7  ;;  %v1466_v58 = vmul.f32 %v2465_v25, %v1431_v6  ;;  %v735_v59 = vshrl.u32 %v582_v13, 16  ;;  %v738_v50 = vshll.u32 %v582_v13, 16  ;;  %v785_v6 = vld [vmem:[%s2034_s10 + $0x48] sm:$0x1] }
  0xe5   : > { %v1421_v14 = vpop.f32.mrf.mxu2  ;;  %v2527_v20 = vor.u32 %v640_v32, %v637_v9  ;;  %v445_v12 = vadd.f32 %v2339_v10, %v411_v40  ;;  %v733_v23 = vrot.slane %v2510_v26, 4  ;;  %v1183_v5 = vor.u32 %v1181_v2, %v2524_v54  ;;  %v413_v30 = vpop.f32.mrf.mxu0 }
  0xe6   : > { %v1237_v24 = vor.u32 %v1235_v46, %v1234_v19  ;;  %v1239_v15 = vrot.slane %v1234_v19, 4  ;;  %v1485_v17 = vrot.slane %v1484_v18, 4  ;;  %v737_v25 = vrot.slane %v735_v59, 6  ;;  %v964_v18 = vpop.f32.mrf.mxu1 }
  0xe7   : > { %v642_v51 = vsel %vm2380_vm11, %v633_v16, %v2527_v20  ;;  %v740_v47 = vrot.slane %v738_v50, 7  ;;  %v1184_v28 = vsel %vm2392_vm12, %v1176_v48, %v1183_v5  ;;  %v1471_v40 = vpack.c.bf16 %v1466_v58, %v1466_v58 }
  0xe8   : > { %771 = vst [vmem:[%s2034_s10 + $0x1c] sm:$0xf] %v642_v51  ;;  %v1238_v26 = vsel %vm2392_vm12, %v1230_v27, %v1237_v24  ;;  %v1247_v33 = vsel %vm2392_vm12, %v1239_v15, %v2492_v41  ;;  %v743_v56 = vrot.slane %v737_v25, 4  ;;  %v557_v57 = vmul.f32 %v2322_v0, %v445_v12 }
  0xe9   : > { %1301 = vst [vmem:[%s2034_s10 + $0x5c] sm:$0xf] %v1184_v28  ;;  %v741_v45 = vor.u32 %v740_v47, %v737_v25  ;;  %v993_v27 = vadd.f32 %v2339_v10, %v962_v38  ;;  %v1487_v48 = vshll.u32 %v1471_v40, 16  ;;  %v1491_v41 = vshrl.u32 %v1471_v40, 16 }
  0xea   : > { %1307 = vst [vmem:[%s2034_s10 + $0x74] sm:$0xf] %v1238_v26  ;;  %v1112_v62 = vmul.f32 %v1087_v43, %v2472_v55  ;;  %v1001_v2 = vadd.f32 %v2339_v10, %v982_v29  ;;  %v786_v0 = vsel %vm2547_vm0, %v743_v56, %v785_v6  ;;  %v573_v32 = vpack.c.bf16 %v557_v57, %v557_v57 }
  0xeb   : > { %1308 = vst [vmem:[%s2034_s10 + $0x78] sm:$0xf] %v1247_v33  ;;  %v742_v9 = vsel %vm2380_vm11, %v733_v23, %v741_v45  ;;  %v1105_v55 = vmul.f32 %v2362_v34, %v993_v27  ;;  %v1489_v19 = vrot.slane %v1487_v48, 5  ;;  %v1493_v46 = vrot.slane %v1491_v41, 4  ;;  %v984_v57 = vpop.f32.mrf.mxu3 }
  0xec   : > { %781 = vst [vmem:[%s2034_s10 + $0x44] sm:$0xf] %v742_v9  ;;  %v1128_v58 = vpack.c.bf16 %v1112_v62, %v1112_v62  ;;  %v1113_v59 = vmul.f32 %v2426_v39, %v1001_v2  ;;  %v645_v50 = vshrl.u32 %v573_v32, 16  ;;  %v648_v12 = vshll.u32 %v573_v32, 16 }
  0xed   : > { %v2570_v13 = vpop.f32.mrf.mxu2  ;;  %787 = vst [vmem:[%s2034_s10 + $0x48] sm:$0x1] %v786_v0  ;;  %v1121_v23 = vpack.c.bf16 %v1105_v55, %v1105_v55  ;;  %v1432_v5 = vadd.f32 %v2339_v10, %v1421_v14  ;;  %v643_v24 = vrot.slane %v2527_v20, 4  ;;  %v1490_v34 = vsel %vm2565_vm1, %v1485_v17, %v1489_v19 }
  0xee   : > { %v1494_v15 = vor.u32 %v1493_v46, %v1489_v19  ;;  %v1250_v51 = vshrl.u32 %v1128_v58, 16  ;;  %1538 = vst [vmem:[%s2034_s10 + $0x88] sm:$0xf] %v1490_v34  ;;  %v647_v25 = vrot.slane %v645_v50, 6  ;;  %v650_v47 = vrot.slane %v648_v12, 7  ;;  %v967_v9 = vpop.f32.mrf.mxu1 }
  0xef   : > { %v1187_v43 = vshrl.u32 %v1121_v23, 16  ;;  %v1253_v29 = vshll.u32 %v1128_v58, 16  ;;  %v1190_v28 = vshll.u32 %v1121_v23, 16  ;;  %v1129_v26 = vpack.c.bf16 %v1113_v59, %v1113_v59 }
  0xf0   : > { %v1252_v39 = vrot.slane %v1250_v51, 7  ;;  %v1467_v33 = vmul.f32 %v2374_v11, %v1432_v5  ;;  %v2581_v16 = vor.u32 %v650_v47, %v647_v25  ;;  %v446_v20 = vadd.f32 %v2339_v10, %v413_v30 }
  0xf1   : > { %v2583_v14 = vrot.slane %v1187_v43, 7  ;;  %v994_v17 = vadd.f32 %v2339_v10, %v964_v18  ;;  %v1248_v6 = vrot.slane %v2467_v42, 4  ;;  %v1185_v40 = vrot.slane %v2524_v54, 4  ;;  %v416_v18 = vpop.f32.mrf.mxu0 }
  0xf2   : > { %v1255_v45 = vor.u32 %v1253_v29, %v1252_v39  ;;  %v1259_v56 = vshrl.u32 %v1129_v26, 16  ;;  %v1495_v27 = vrot.slane %v1494_v15, 4  ;;  %v652_v11 = vsel %vm2380_vm11, %v643_v24, %v2581_v16 }
  0xf3   : > { %v1192_v48 = vor.u32 %v1190_v28, %v2583_v14  ;;  %v1262_v41 = vshll.u32 %v1129_v26, 16  ;;  %772 = vst [vmem:[%s2034_s10 + $0x20] sm:$0xf] %v652_v11  ;;  %v1472_v54 = vpack.c.bf16 %v1467_v33, %v1467_v33  ;;  %v558_v30 = vmul.f32 %v2320_v63, %v446_v20 }
  0xf4   : > { %v1256_v42 = vsel %vm2392_vm12, %v1248_v6, %v1255_v45  ;;  %v2596_v2 = vrot.slane %v1259_v56, 7  ;;  %v1106_v32 = vmul.f32 %v2328_v4, %v994_v17  ;;  %v1002_v55 = vadd.f32 %v2339_v10, %v984_v57  ;;  %v1294_v23 = vld [vmem:[%s2034_s10 + $0x48] sm:$0xf] }
  0xf5   : > { %v1426_v62 = vpop.f32.mrf.mxu2  ;;  %v1193_v0 = vsel %vm2392_vm12, %v1185_v40, %v1192_v48  ;;  %1309 = vst [vmem:[%s2034_s10 + $0x7c] sm:$0xf] %v1256_v42  ;;  %v1257_v19 = vrot.slane %v1252_v39, 4  ;;  %v1497_v58 = vshll.u32 %v1472_v54, 16  ;;  %v1501_v59 = vshrl.u32 %v1472_v54, 16 }
  0xf6   : > { %1302 = vst [vmem:[%s2034_s10 + $0x60] sm:$0xf] %v1193_v0  ;;  %v1264_v46 = vor.u32 %v1262_v41, %v2596_v2  ;;  %v574_v63 = vpack.c.bf16 %v558_v30, %v558_v30  ;;  %v1122_v50 = vpack.c.bf16 %v1106_v32, %v1106_v32  ;;  %v1114_v12 = vmul.f32 %v2349_v22, %v1002_v55 }
  0xf7   : > { %v653_v5 = vrot.slane %v2581_v16, 4  ;;  %v1499_v24 = vrot.slane %v1497_v58, 5  ;;  %v1503_v34 = vrot.slane %v1501_v59, 4  ;;  %v1295_v39 = vsel %vm2612_vm5, %v2448_v8, %v1294_v23 }
  0xf8   : > { %v1265_v4 = vsel %vm2392_vm12, %v1257_v19, %v1264_v46  ;;  %v655_v51 = vshrl.u32 %v574_v63, 16  ;;  %v658_v25 = vshll.u32 %v574_v63, 16  ;;  %v1196_v22 = vshrl.u32 %v1122_v50, 16  ;;  %1296 = vst [vmem:[%s2034_s10 + $0x48] sm:$0xf] %v1295_v39 }
  0xf9   : > { %1310 = vst [vmem:[%s2034_s10 + $0x80] sm:$0xf] %v1265_v4  ;;  %v1199_v47 = vshll.u32 %v1122_v50, 16  ;;  %v1500_v43 = vsel %vm2565_vm1, %v1495_v27, %v1499_v24  ;;  %v1504_v29 = vor.u32 %v1503_v34, %v1499_v24  ;;  %v1130_v28 = vpack.c.bf16 %v1114_v12, %v1114_v12  ;;  %v418_v42 = vpop.f32.mrf.mxu0 }
  0xfa   : > { %1539 = vst [vmem:[%s2034_s10 + $0x8c] sm:$0xf] %v1500_v43  ;;  %v657_v26 = vrot.slane %v655_v51, 6  ;;  %v660_v33 = vrot.slane %v658_v25, 7  ;;  %v2623_v16 = vrot.slane %v1196_v22, 7  ;;  %v1433_v20 = vadd.f32 %v2339_v10, %v2570_v13 }
  0xfb   : > { %v1194_v6 = vrot.slane %v2583_v14, 4  ;;  %v1266_v40 = vrot.slane %v2596_v2, 4  ;;  %v1268_v45 = vshrl.u32 %v1130_v28, 16  ;;  %v447_v56 = vadd.f32 %v2339_v10, %v416_v18  ;;  %v969_v2 = vpop.f32.mrf.mxu1 }
  0xfc   : > { %v1505_v57 = vrot.slane %v1504_v29, 4  ;;  %v661_v8 = vor.u32 %v660_v33, %v657_v26  ;;  %v1201_v27 = vor.u32 %v1199_v47, %v2623_v16  ;;  %v1271_v11 = vshll.u32 %v1130_v28, 16 }
  0xfd   : > { %v1428_v17 = vpop.f32.mrf.mxu2  ;;  %v1270_v48 = vrot.slane %v1268_v45, 7  ;;  %v1468_v13 = vmul.f32 %v2505_v1, %v1433_v20  ;;  %v559_v41 = vmul.f32 %v2301_v52, %v447_v56  ;;  %v995_v14 = vadd.f32 %v2339_v10, %v967_v9  ;;  %v1313_v1 = vld [vmem:[%s2034_s10 + $0x84] sm:$0xf] }
  0xfe   : > { %v662_v54 = vsel %vm2380_vm11, %v653_v5, %v661_v8  ;;  %v1202_v30 = vsel %vm2392_vm12, %v1194_v6, %v1201_v27  ;;  %v1434_v18 = vadd.f32 %v2339_v10, %v1426_v62  ;;  %v663_v19 = vrot.slane %v661_v8, 4 }
  0xff   : > { %773 = vst [vmem:[%s2034_s10 + $0x24] sm:$0xf] %v662_v54  ;;  %v1273_v0 = vor.u32 %v1271_v11, %v1270_v48  ;;  %v1473_v9 = vpack.c.bf16 %v1468_v13, %v1468_v13  ;;  %v575_v32 = vpack.c.bf16 %v559_v41, %v559_v41  ;;  %v1107_v55 = vmul.f32 %v2399_v36, %v995_v14  ;;  %v1542_v41 = vld [vmem:[%s2034_s10 + $0x98] sm:$0x3] }
 0x100   : > { %1303 = vst [vmem:[%s2034_s10 + $0x64] sm:$0xf] %v1202_v30  ;;  %v1469_v46 = vmul.f32 %v2431_v44, %v1434_v18  ;;  %v448_v62 = vadd.f32 %v2339_v10, %v418_v42  ;;  %v996_v58 = vadd.f32 %v2339_v10, %v969_v2  ;;  %v1203_v45 = vrot.slane %v2623_v16, 4 }
 0x101   : > { %v1274_v59 = vsel %vm2392_vm12, %v1266_v40, %v1273_v0  ;;  %v1507_v63 = vshll.u32 %v1473_v9, 16  ;;  %v1511_v50 = vshrl.u32 %v1473_v9, 16  ;;  %v665_v12 = vshrl.u32 %v575_v32, 16 }
 0x102   : > { %v1314_v23 = vsel %vm2643_vm9, %v1274_v59, %v1313_v1  ;;  %v668_v5 = vshll.u32 %v575_v32, 16  ;;  %v1123_v36 = vpack.c.bf16 %v1107_v55, %v1107_v55  ;;  %v1474_v4 = vpack.c.bf16 %v1469_v46, %v1469_v46 }
 0x103   : > { %1315 = vst [vmem:[%s2034_s10 + $0x84] sm:$0xf] %v1314_v23  ;;  %v1509_v24 = vrot.slane %v1507_v63, 5  ;;  %v1513_v44 = vrot.slane %v1511_v50, 4  ;;  %v667_v34 = vrot.slane %v665_v12, 6  ;;  %v560_v15 = vmul.f32 %v2326_v3, %v448_v62 }
 0x104   : > { %v670_v10 = vrot.slane %v668_v5, 7  ;;  %v1205_v51 = vshrl.u32 %v1123_v36, 16  ;;  %v1208_v25 = vshll.u32 %v1123_v36, 16  ;;  %v1517_v22 = vshll.u32 %v1474_v4, 16 }
 0x105   : > { %v1510_v47 = vsel %vm2565_vm1, %v1505_v57, %v1509_v24  ;;  %v1514_v43 = vor.u32 %v1513_v44, %v1509_v24  ;;  %v1521_v29 = vshrl.u32 %v1474_v4, 16  ;;  %v576_v28 = vpack.c.bf16 %v560_v15, %v560_v15 }
 0x106   : > { %1540 = vst [vmem:[%s2034_s10 + $0x90] sm:$0xf] %v1510_v47  ;;  %v671_v39 = vor.u32 %v670_v10, %v667_v34  ;;  %v1207_v26 = vrot.slane %v1205_v51, 7  ;;  %v1519_v33 = vrot.slane %v1517_v22, 5  ;;  %v1108_v20 = vmul.f32 %v2397_v35, %v996_v58 }
 0x107   : > { %v1515_v3 = vrot.slane %v1514_v43, 4  ;;  %v1523_v17 = vrot.slane %v1521_v29, 4  ;;  %v675_v6 = vshrl.u32 %v576_v28, 16  ;;  %v678_v40 = vshll.u32 %v576_v28, 16 }
 0x108   : > { %v672_v57 = vsel %vm2380_vm11, %v663_v19, %v671_v39  ;;  %v1210_v8 = vor.u32 %v1208_v25, %v1207_v26  ;;  %v1124_v14 = vpack.c.bf16 %v1108_v20, %v1108_v20  ;;  %v673_v2 = vrot.slane %v671_v39, 4 }
 0x109   : > { %774 = vst [vmem:[%s2034_s10 + $0x28] sm:$0xf] %v672_v57  ;;  %v1520_v35 = vsel %vm2565_vm1, %v1515_v3, %v1519_v33  ;;  %v1524_v27 = vor.u32 %v1523_v17, %v1519_v33  ;;  %v677_v11 = vrot.slane %v675_v6, 6  ;;  %v680_v48 = vrot.slane %v678_v40, 7 }
 0x10a   : > { %v1535_v16 = vld [vmem:[%s2034_s10 + $0x84] sm:$0x8]  ;;  %v1211_v13 = vsel %vm2392_vm12, %v1203_v45, %v1210_v8  ;;  %1541 = vst [vmem:[%s2034_s10 + $0x94] sm:$0xf] %v1520_v35  ;;  %v1214_v30 = vshrl.u32 %v1124_v14, 16  ;;  %v1226_v1 = vshll.u32 %v2387_v53, 16 }
 0x10b   : > { %v1536_v42 = vsel %vm2666_vm10, %v2520_v49, %v1535_v16  ;;  %1304 = vst [vmem:[%s2034_s10 + $0x68] sm:$0xf] %v1211_v13  ;;  %v1525_v38 = vrot.slane %v1524_v27, 4  ;;  %v681_v54 = vor.u32 %v680_v48, %v677_v11  ;;  %v1217_v9 = vshll.u32 %v1124_v14, 16 }
 0x10c   : > { %1537 = vst [vmem:[%s2034_s10 + $0x84] sm:$0x8] %v1536_v42  ;;  %v1216_v49 = vrot.slane %v1214_v30, 7  ;;  %v1228_v60 = vor.u32 %v1226_v1, %v2436_v61  ;;  %v1212_v55 = vrot.slane %v1207_v26, 4 }
 0x10d   : > { %v1543_v18 = vsel %vm2313_vm4, %v1525_v38, %v1542_v41  ;;  %v682_v0 = vsel %vm2380_vm11, %v673_v2, %v681_v54  ;;  %v683_v52 = vrot.slane %v681_v54, 4 }
 0x10e   : > { %1544 = vst [vmem:[%s2034_s10 + $0x98] sm:$0x3] %v1543_v18  ;;  %v1219_v19 = vor.u32 %v1217_v9, %v1216_v49  ;;  %v1221_v46 = vrot.slane %v1216_v49, 4 }
 0x10f   : > { %v692_v32 = vsel %vm2380_vm11, %v683_v52, %v2401_v37  ;;  %775 = vst [vmem:[%s2034_s10 + $0x2c] sm:$0xf] %v682_v0 }
 0x110   : > { %776 = vst [vmem:[%s2034_s10 + $0x30] sm:$0xf] %v692_v32  ;;  %v1220_v62 = vsel %vm2392_vm12, %v1212_v55, %v1219_v19  ;;  %v1229_v53 = vsel %vm2392_vm12, %v1221_v46, %v1228_v60 }
 0x111   : > { %1305 = vst [vmem:[%s2034_s10 + $0x6c] sm:$0xf] %v1220_v62 }
 0x112   : > { %1306 = vst [vmem:[%s2034_s10 + $0x70] sm:$0xf] %v1229_v53 }
 0x115   : > { %v1545_v58 = vld [vmem:[%s2034_s10 + $0x98] sm:$0xe] }
 0x116   : > { %v1546_v7 = vsel %vm2354_vm7, 0, %v1545_v58 }
 0x117   : > { %1547 = vst [vmem:[%s2034_s10 + $0x98] sm:$0xe] %v1546_v7 }
 0x118 PF: > { %s14_s17 = sadd.s32 1, %s1955_s17   ;;  %s2739_s15 = smov %s1951_s16 }
 0x119   : > { %p11_p5 = scmp.ge.s32.totalorder %s14_s17, 4   ;;  %s2740_s16 = smov %s2742_s18 }
 0x11b   :  { %13 = sbr.rel (!%p11_p5) target bundleno = 2 (0x2), region = 72 }

// kernel: basic_block_forward.5
= control target key start
LH: loop header
LB: loop body
LE: loop exit
PB: predicated region body
PF: predicated region fallthrough
CT: control target
= control target key end

     0   :  { %s7423_s15 = smov 0   ;;  %s7425_s16 = smov 0   ;;  %s9208_s0 = inlined_call_operand.vmem [shape: bf16[2,342,128], index: 0, kind: input, shape index: {}]   ;;  %s9209_s1 = inlined_call_operand.vmem [shape: bf16[9,128,128], index: 1, kind: input, shape index: {}]   ;;  %s9210_s2 = inlined_call_operand.vmem [shape: f32[1,128], index: 2, kind: input, shape index: {}]   ;;  %s9211_s3 = inlined_call_operand.vmem [shape: bf16[2,342,128], index: 3, kind: input, shape index: {}]   ;;  %s9212_s4 = inlined_call_operand.vmem [shape: f32[2,288,128], index: 4, kind: output, shape index: {}]  }
   0x1   :  { %s7427_s17 = smov 0  }
   0x2 LB: > { %s26_s18 = sadd.s32 1, %s7392_s16  ;;  %p5375_p0 = scmp.ge.s32.totalorder %s7396_s17, 1  ;;  %s7396_s17 = sphi %s7427_s17, %s14_s17   ;;  %s7392_s16 = sphi %s7425_s16, %s9214_s16   ;;  %s7388_s15 = sphi %s7423_s15, %s9213_s15  }
   0x3   : > { %p28_p1 = scmp.ge.s32.totalorder %s26_s18, 2  ;;  %p208_p2 = scmp.lt.s32.totalorder %s7396_s17, 3 }
   0x5   : > { %s9216_s18 = smov (%p28_p1, %s26_s18), 0  ;;  %p209_p3 = pnand %p5375_p0, %p208_p2 }
   0x6   : > { %p252_p4 = scmp.lt.s32.totalorder (!%p209_p3), %s7388_s15, 1 }
   0x7   : > { %212 = sbr.rel (%p209_p3) target bundleno = 858 (0x35a), region = 36 }
   0xc   : > { %v6858_v0 = vld [vmem:[%s9209_s1 + $0x38] sm:$0xff]  ;;  %v6857_v4 = vld [vmem:[%s9209_s1 + $0x30] sm:$0xff]  ;;  %s9218_s15 = smov (!%p252_p4, %s7388_s15), 1  ;;  %v6856_v8 = vld [vmem:[%s9209_s1 + $0x28] sm:$0xff]  ;;  %vm498_vm0 = vsmask.f32 7424 }
   0xd   : > { %v6866_v1 = vld [vmem:[%s9209_s1 + $0x78] sm:$0xff]  ;;  %409 = vmatpush.bf16.msra.mxu0 %v6858_v0  ;;  %v6865_v5 = vld [vmem:[%s9209_s1 + $0x70] sm:$0xff]  ;;  %v6864_v9 = vld [vmem:[%s9209_s1 + $0x68] sm:$0xff]  ;;  %s7335_s21 = smul.u32 172, %s9218_s15  ;;  %vm704_vm1 = vcmask 1046528   ;;  %vm1346_vm3 = vcmask 1045504  }
   0xe   : > { %v6874_v2 = vld [vmem:[%s9209_s1 + $0xb8] sm:$0xff]  ;;  %618 = vmatpush.bf16.msra.mxu1 %v6866_v1  ;;  %v6873_v6 = vld [vmem:[%s9209_s1 + $0xb0] sm:$0xff]  ;;  %v6872_v10 = vld [vmem:[%s9209_s1 + $0xa8] sm:$0xff]  ;;  %vm1127_vm2 = vsmask.f32 6400  ;;  %vm1944_vm5 = vcmask 1044480  }
   0xf   : > { %v6890_v3 = vld [vmem:[%s9209_s1 + $0xf8] sm:$0xff]  ;;  %776 = vmatpush.bf16.msra.mxu2 %v6874_v2  ;;  %v6889_v7 = vld [vmem:[%s9209_s1 + $0xf0] sm:$0xff]  ;;  %v6888_v11 = vld [vmem:[%s9209_s1 + $0xe8] sm:$0xff]  ;;  %s7497_s6 = scalar_lea.vmem %s9208_s0, %s7335_s21  ;;  %vm1721_vm4 = vsmask.f32 5376  ;;  %s8253_s26 = scalar_lea.vmem %s9211_s3, %s7335_s21  ;;  %vm5214_vm7 = vcmask 1040384  }
  0x10   : > { %985 = vmatpush.bf16.msra.mxu3 %v6890_v3  ;;  %v6855_v12 = vld [vmem:[%s9209_s1 + $0x20] sm:$0xff]  ;;  %v6854_v16 = vld [vmem:[%s9209_s1 + $0x18] sm:$0xff]  ;;  %v6853_v21 = vld [vmem:[%s9209_s1 + $0x10] sm:$0xff]  ;;  %vm2466_vm6 = vsmask.f32 4352  ;;  %s7336_s7 = smul.u32 288, %s9218_s15 }
  0x11   : > { %410 = vmatpush.bf16.msra.mxu0 %v6857_v4  ;;  %v6863_v13 = vld [vmem:[%s9209_s1 + $0x60] sm:$0xff]  ;;  %v6862_v17 = vld [vmem:[%s9209_s1 + $0x58] sm:$0xff]  ;;  %v6861_v22 = vld [vmem:[%s9209_s1 + $0x50] sm:$0xff] }
  0x12   : > { %619 = vmatpush.bf16.msra.mxu1 %v6865_v5  ;;  %v6871_v14 = vld [vmem:[%s9209_s1 + $0xa0] sm:$0xff]  ;;  %v6870_v18 = vld [vmem:[%s9209_s1 + $0x98] sm:$0xff]  ;;  %v7519_v24 = vld [vmem:[%s7497_s6 + $0x8] sm:$0xff]  ;;  %s8303_s9 = scalar_lea.vmem %s9212_s4, %s7336_s7 }
  0x13   : > { %777 = vmatpush.bf16.msra.mxu2 %v6873_v6  ;;  %v6887_v15 = vld [vmem:[%s9209_s1 + $0xe0] sm:$0xff]  ;;  %v6886_v19 = vld [vmem:[%s9209_s1 + $0xd8] sm:$0xff]  ;;  %v6869_v25 = vld [vmem:[%s9209_s1 + $0x90] sm:$0xff]  ;;  %v507_v35 = vshll.u32 %v7519_v24, 16  ;;  %v706_v48 = vrot.slane %v7519_v24, 1  ;;  %v511_v1 = vshrl.u32 %v7519_v24, 16 }
  0x14   : > { %986 = vmatpush.bf16.msra.mxu3 %v6889_v7  ;;  %v7116_v20 = vld [vmem:[%s7497_s6] sm:$0xff]   ;;  %v6885_v26 = vld [vmem:[%s9209_s1 + $0xd0] sm:$0xff]  ;;  %v5549_v29 = vld [vmem:[%s7497_s6 + $0x8] sm:$0xe] }
  0x15   : > { %411 = vmatpush.bf16.msra.mxu0 %v6856_v8  ;;  %v502_v23 = vshll.u32 %v7116_v20, 16  ;;  %v7231_v27 = vld [vmem:[%s7497_s6] sm:$0xf0]  ;;  %v7232_v28 = vld [vmem:[%s7497_s6] sm:$0xe]  ;;  %v6852_v31 = vld [vmem:[%s9209_s1 + $0x8] sm:$0xff] }
  0x16   : > { %620 = vmatpush.bf16.msra.mxu1 %v6864_v9  ;;  %v6875_v30 = vld [vmem:[%s7497_s6 + $0x8] sm:$0xf0]  ;;  %v500_v33 = vshrl.u32 %v7116_v20, 16  ;;  %v7233_v38 = vor.u32 %v7232_v28, %v7231_v27  ;;  %v7545_v39 = vld [vmem:[%s7497_s6 + $0x10] sm:$0xff]  ;;  %v6851_v41 = vld [vmem:[%s9209_s1] sm:$0xff]  ;;  %v509_v44 = vrot.slane %v507_v35, 1 }
  0x17   : > { %778 = vmatpush.bf16.msra.mxu2 %v6872_v10  ;;  %v6860_v32 = vld [vmem:[%s9209_s1 + $0x48] sm:$0xff]  ;;  %v504_v34 = vrot.slane %v502_v23, 1  ;;  %v5550_v40 = vor.u32 %v6875_v30, %v5549_v29  ;;  %v6859_v42 = vld [vmem:[%s9209_s1 + $0x40] sm:$0xff]  ;;  %v915_v50 = vrot.slane %v7545_v39, 1  ;;  %v6928_v51 = vld [vmem:[%s9209_s1 + $0x1b8] sm:$0xff] }
  0x18   : > { %987 = vmatpush.bf16.msra.mxu3 %v6888_v11  ;;  %v6868_v36 = vld [vmem:[%s9209_s1 + $0x88] sm:$0xff]  ;;  %v6867_v45 = vld [vmem:[%s9209_s1 + $0x80] sm:$0xff]  ;;  %v705_v47 = vrot.slane %v7233_v38, 1  ;;  %v6905_v52 = vld [vmem:[%s9209_s1 + $0x138] sm:$0xff]  ;;  %v513_v6 = vor.u32 %v511_v1, %v509_v44 }
  0x19   : > { %412 = vmatpush.bf16.msra.mxu0 %v6855_v12  ;;  %v6884_v37 = vld [vmem:[%s9209_s1 + $0xc8] sm:$0xff]  ;;  %v505_v43 = vor.u32 %v504_v34, %v500_v33  ;;  %v6883_v46 = vld [vmem:[%s9209_s1 + $0xc0] sm:$0xff]  ;;  %v914_v49 = vrot.slane %v5550_v40, 1  ;;  %v6913_v56 = vld [vmem:[%s9209_s1 + $0x178] sm:$0xff] }
  0x1a   : > { %621 = vmatpush.bf16.msra.mxu1 %v6863_v13  ;;  %v707_v54 = vsel %vm704_vm1, %v705_v47, %v706_v48  ;;  %v6936_v57 = vld [vmem:[%s9209_s1 + $0x1f8] sm:$0xff]  ;;  %v6927_v58 = vld [vmem:[%s9209_s1 + $0x1b0] sm:$0xff]  ;;  %v6926_v63 = vld [vmem:[%s9209_s1 + $0x1a8] sm:$0xff] }
  0x1b   : > { %779 = vmatpush.bf16.msra.mxu2 %v6871_v14  ;;  %v510_v53 = vsel %vm498_vm0, %v505_v43, %v509_v44  ;;  %v916_v55 = vsel %vm704_vm1, %v914_v49, %v915_v50  ;;  %v6904_v59 = vld [vmem:[%s9209_s1 + $0x130] sm:$0xff]  ;;  %v6903_v0 = vld [vmem:[%s9209_s1 + $0x128] sm:$0xff]  ;;  %v6877_v3 = vld [vmem:[%s7497_s6 + $0x18] sm:$0xff] }
  0x1c   : > { %988 = vmatpush.bf16.msra.mxu3 %v6887_v15  ;;  %v6846_v60 = vld [vmem:[%s7497_s6 + $0x10] sm:$0xff]  ;;  %v6911_v4 = vld [vmem:[%s9209_s1 + $0x168] sm:$0xff]  ;;  %v917_v9 = vrot.slane %v6877_v3, 1  ;;  %v6847_v13 = vld [vmem:[%s7497_s6 + $0x18] sm:$0xff] }
  0x1d   : > { %413 = vmatpush.bf16.msra.mxu0 %v6854_v16  ;;  %v6912_v61 = vld [vmem:[%s9209_s1 + $0x170] sm:$0xff]  ;;  %v515_v2 = vshll.u32 %v6846_v60, 16  ;;  %v6934_v5 = vld [vmem:[%s9209_s1 + $0x1e8] sm:$0xff]  ;;  %v708_v8 = vrot.slane %v6846_v60, 1  ;;  %v6925_v14 = vld [vmem:[%s9209_s1 + $0x1a0] sm:$0xff]  ;;  %v710_v23 = vrot.slane %v6847_v13, 1 }
  0x1e   : > { %622 = vmatpush.bf16.msra.mxu1 %v6862_v17  ;;  %v6935_v62 = vld [vmem:[%s9209_s1 + $0x1f0] sm:$0xff]  ;;  %v918_v12 = vsel %vm704_vm1, %v915_v50, %v917_v9  ;;  %v6902_v15 = vld [vmem:[%s9209_s1 + $0x120] sm:$0xff]  ;;  %v6924_v29 = vld [vmem:[%s9209_s1 + $0x198] sm:$0xff]  ;;  %v527_v33 = vshrl.u32 %v6847_v13, 16 }
  0x1f   : > { %780 = vmatpush.bf16.msra.mxu2 %v6870_v18  ;;  %v517_v7 = vrot.slane %v515_v2, 1  ;;  %v709_v11 = vsel %vm704_vm1, %v706_v48, %v708_v8  ;;  %v6910_v16 = vld [vmem:[%s9209_s1 + $0x160] sm:$0xff]  ;;  %v519_v18 = vshrl.u32 %v6846_v60, 16  ;;  %v6901_v30 = vld [vmem:[%s9209_s1 + $0x118] sm:$0xff]  ;;  %v6879_v35 = vld [vmem:[%s7497_s6 + $0x28] sm:$0xff] }
  0x20   : > { %989 = vmatpush.bf16.msra.mxu3 %v6886_v19  ;;  %v6933_v17 = vld [vmem:[%s9209_s1 + $0x1e0] sm:$0xff]  ;;  %v523_v19 = vshll.u32 %v6847_v13, 16  ;;  %v921_v39 = vrot.slane %v6879_v35, 1  ;;  %v6849_v43 = vld [vmem:[%s7497_s6 + $0x28] sm:$0xff]  ;;  %v6923_v44 = vld [vmem:[%s9209_s1 + $0x190] sm:$0xff] }
  0x21   : > { %414 = vmatpush.bf16.msra.mxu0 %v6853_v21  ;;  %v518_v10 = vsel %vm498_vm0, %v513_v6, %v517_v7  ;;  %v521_v21 = vor.u32 %v519_v18, %v517_v7  ;;  %v6848_v28 = vld [vmem:[%s7497_s6 + $0x20] sm:$0xff]  ;;  %v6931_v47 = vld [vmem:[%s9209_s1 + $0x1d0] sm:$0xff]  ;;  %v539_v49 = vshll.u32 %v6849_v43, 16  ;;  %v6881_v1 = vld [vmem:[%s7497_s6 + $0x38] sm:$0xff] }
  0x22   : > { %623 = vmatpush.bf16.msra.mxu1 %v6861_v22  ;;  %v525_v22 = vrot.slane %v523_v19, 1  ;;  %v531_v34 = vshll.u32 %v6848_v28, 16  ;;  %v712_v38 = vrot.slane %v6848_v28, 1  ;;  %v535_v48 = vshrl.u32 %v6848_v28, 16  ;;  %v6880_v50 = vld [vmem:[%s7497_s6 + $0x30] sm:$0xff]  ;;  %v295_v6 = vld [vmem:[%s7497_s6 + $0x38] sm:$0xff]  }
  0x23   : > { %781 = vmatpush.bf16.msra.mxu2 %v6869_v25  ;;  %v7366_v7 = vld [vmem:[%s7497_s6 + $0x38] sm:$0xf]  }
  0x24   : > { %990 = vmatpush.bf16.msra.mxu3 %v6885_v26  ;;  %v526_v25 = vsel %vm498_vm0, %v521_v21, %v525_v22  ;;  %v711_v26 = vsel %vm704_vm1, %v708_v8, %v710_v23  ;;  %v6952_v35 = vld [vmem:[%s9209_s1 + $0x38] sm:$0xff] }
  0x25   : > { %415 = vmatpush.bf16.msra.mxu0 %v6852_v31  ;;  %v6909_v31 = vld [vmem:[%s9209_s1 + $0x158] sm:$0xff] }
  0x26   : > { %624 = vmatpush.bf16.msra.mxu1 %v6860_v32  ;;  %v6932_v32 = vld [vmem:[%s9209_s1 + $0x1d8] sm:$0xff] }
  0x27   : > { %782 = vmatpush.bf16.msra.mxu2 %v6868_v36  ;;  %v529_v36 = vor.u32 %v527_v33, %v525_v22 }
  0x28   : > { %991 = vmatpush.bf16.msra.mxu3 %v6884_v37  ;;  %v533_v37 = vrot.slane %v531_v34, 1 }
  0x29   : > { %416 = vmatpush.bf16.msra.mxu0 %v6851_v41  ;;  %v713_v41 = vsel %vm704_vm1, %v710_v23, %v712_v38 }
  0x2a   : > { %625 = vmatpush.bf16.msra.mxu1 %v6859_v42  ;;  %v534_v40 = vsel %vm498_vm0, %v529_v36, %v533_v37 }
  0x2b   : > { %783 = vmatpush.bf16.msra.mxu2 %v6867_v45  ;;  %v6900_v45 = vld [vmem:[%s9209_s1 + $0x110] sm:$0xff] }
  0x2c   : > { %992 = vmatpush.bf16.msra.mxu3 %v6883_v46  ;;  %417 = vmatmul.bf16.vlgmr.msra.gmra.mxu0 %v7116_v20  ;;  %v6878_v20 = vld [vmem:[%s7497_s6 + $0x20] sm:$0xff]  ;;  %v6908_v46 = vld [vmem:[%s9209_s1 + $0x150] sm:$0xff] }
  0x2d   : > { %1260 = vmatpush.bf16.msrb.mxu0 %v6905_v52  ;;  %626 = vmatmul.bf16.vlgmr.msra.gmra.mxu1 %v510_v53  ;;  %v541_v52 = vrot.slane %v539_v49, 1  ;;  %v714_v53 = vrot.slane %v6849_v43, 1 }
  0x2e   : > { %784 = vmatmul.bf16.vlgmr.msra.gmra.mxu2 %v707_v54  ;;  %1420 = vmatpush.bf16.msrb.mxu1 %v6913_v56  ;;  %v923_v54 = vrot.slane %v6880_v50, 1 }
  0x2f   : > { %1635 = vmatpush.bf16.msrb.mxu2 %v6928_v51  ;;  %993 = vmatmul.bf16.vlgmr.msra.gmra.mxu3 %v916_v55  ;;  %v537_v51 = vor.u32 %v535_v48, %v533_v37  ;;  %v715_v56 = vsel %vm704_vm1, %v712_v38, %v714_v53 }
  0x30   : > { %1858 = vmatpush.bf16.msrb.mxu3 %v6936_v57  ;;  %v924_v57 = vsel %vm704_vm1, %v921_v39, %v923_v54 }
  0x31   : > { %1261 = vmatpush.bf16.msrb.mxu0 %v6904_v59  ;;  %v542_v55 = vsel %vm498_vm0, %v537_v51, %v541_v52  ;;  %v6922_v59 = vld [vmem:[%s9209_s1 + $0x188] sm:$0xff]  ;;  %v6959_v51 = vld [vmem:[%s9209_s1 + $0x70] sm:$0xff] }
  0x32   : > { %1421 = vmatpush.bf16.msrb.mxu1 %v6912_v61  ;;  %v6907_v61 = vld [vmem:[%s9209_s1 + $0x148] sm:$0xff] }
  0x33   : > { %1636 = vmatpush.bf16.msrb.mxu2 %v6927_v58  ;;  %v6850_v58 = vld [vmem:[%s7497_s6 + $0x30] sm:$0xff] }
  0x34   : > { %1859 = vmatpush.bf16.msrb.mxu3 %v6935_v62  ;;  %v6930_v62 = vld [vmem:[%s9209_s1 + $0x1c8] sm:$0xff] }
  0x35   : > { %1262 = vmatpush.bf16.msrb.mxu0 %v6903_v0  ;;  %v547_v0 = vshll.u32 %v6850_v58, 16 }
  0x36   : > { %1422 = vmatpush.bf16.msrb.mxu1 %v6911_v4  ;;  %v716_v4 = vrot.slane %v6850_v58, 1 }
  0x37   : > { %1637 = vmatpush.bf16.msrb.mxu2 %v6926_v63  ;;  %v543_v63 = vshrl.u32 %v6849_v43, 16  ;;  %v549_v3 = vrot.slane %v547_v0, 1 }
  0x38   : > { %1860 = vmatpush.bf16.msrb.mxu3 %v6934_v5  ;;  %v925_v5 = vrot.slane %v6881_v1, 1  ;;  %v6943_v1 = vld [vmem:[%s9209_s1 + $0x230] sm:$0xff] }
  0x39   : > { %1263 = vmatpush.bf16.msrb.mxu0 %v6902_v15  ;;  %v545_v2 = vor.u32 %v543_v63, %v541_v52  ;;  %v551_v15 = vshrl.u32 %v6850_v58, 16 }
  0x3a   : > { %1423 = vmatpush.bf16.msrb.mxu1 %v6910_v16  ;;  %v555_v16 = vshll.u32 %v295_v6, 16 }
  0x3b   : > { %1638 = vmatpush.bf16.msrb.mxu2 %v6925_v14  ;;  %v550_v8 = vsel %vm498_vm0, %v545_v2, %v549_v3  ;;  %v6929_v14 = vld [vmem:[%s9209_s1 + $0x1c0] sm:$0xff]  ;;  %v553_v18 = vor.u32 %v551_v15, %v549_v3 }
  0x3c   : > { %422 = vmatmul.bf16.gmra.mxu0 %v7519_v24  ;;  %1861 = vmatpush.bf16.msrb.mxu3 %v6933_v17  ;;  %v919_v24 = vrot.slane %v6878_v20, 1  ;;  %v6882_v17 = vld [vmem:[%s7497_s6 + $0x40] sm:$0xff]  ;;  %v557_v19 = vrot.slane %v555_v16, 1  ;;  %v718_v20 = vrot.slane %v295_v6, 1  ;;  %v7745_v16 = vld [vmem:[%s7497_s6 + $0x18] sm:$0xff] }
  0x3d   : > { %631 = vmatmul.bf16.gmra.mxu1 %v518_v10  ;;  %1264 = vmatpush.bf16.msrb.mxu0 %v6901_v30  ;;  %v926_v10 = vsel %vm704_vm1, %v923_v54, %v925_v5  ;;  %v927_v21 = vrot.slane %v6882_v17, 1  ;;  %v7701_v30 = vld [vmem:[%s7497_s6 + $0x14] sm:$0xf] }
  0x3e   : > { %789 = vmatmul.bf16.gmra.mxu2 %v709_v11  ;;  %v920_v27 = vsel %vm704_vm1, %v917_v9, %v919_v24  ;;  %1424 = vmatpush.bf16.msrb.mxu1 %v6909_v31  ;;  %v922_v42 = vsel %vm704_vm1, %v919_v24, %v921_v39  ;;  %v717_v9 = vsel %vm704_vm1, %v714_v53, %v716_v4  ;;  %v6921_v11 = vld [vmem:[%s9209_s1 + $0x180] sm:$0xff]  ;;  %v6944_v31 = vld [vmem:[%s9209_s1 + $0x238] sm:$0xff]  ;;  %v1537_v37 = vunpack.c.l.b16 %v7701_v30 }
  0x3f   : > { %998 = vmatmul.bf16.gmra.mxu3 %v918_v12  ;;  %1639 = vmatpush.bf16.msrb.mxu2 %v6924_v29  ;;  %v6898_v12 = vld [vmem:[%s9209_s1 + $0x100] sm:$0xff]  ;;  %v558_v22 = vsel %vm498_vm0, %v553_v18, %v557_v19  ;;  %v719_v23 = vsel %vm704_vm1, %v716_v4, %v718_v20  ;;  %v928_v24 = vsel %vm704_vm1, %v925_v5, %v927_v21  ;;  %v1485_v29 = vld [vmem:[%s7497_s6 + $0x10] sm:$0xc] }
  0x40   : > { %1862 = vmatpush.bf16.msrb.mxu3 %v6932_v32  ;;  %v559_v32 = vshrl.u32 %v295_v6, 16  ;;  %v1536_v36 = vunpack.c.l.b16 %v1485_v29  ;;  %v6951_v4 = vld [vmem:[%s9209_s1 + $0x30] sm:$0xff] }
  0x41   : > { %1265 = vmatpush.bf16.msrb.mxu0 %v6900_v45  ;;  %v6968_v45 = vld [vmem:[%s9209_s1 + $0xb8] sm:$0xff] }
  0x42   : > { %1425 = vmatpush.bf16.msrb.mxu1 %v6908_v46  ;;  %v561_v39 = vor.u32 %v559_v32, %v557_v19 }
  0x43   : > { %1640 = vmatpush.bf16.msrb.mxu2 %v6923_v44  ;;  %v1553_v44 = vpack.c.b16 %v1537_v37, %v1536_v36 }
  0x44   : > { %1863 = vmatpush.bf16.msrb.mxu3 %v6931_v47 }
  0x45   : > { %v1723_v52 = vshrl.u32 %v1553_v44, 16  ;;  %v1726_v53 = vshll.u32 %v1553_v44, 16 }
  0x46   : > { %1426 = vmatpush.bf16.msrb.mxu1 %v6907_v61 }
  0x47   : > { %1641 = vmatpush.bf16.msrb.mxu2 %v6922_v59  ;;  %v1725_v61 = vrot.slane %v1723_v52, 2 }
  0x48   : > { %1864 = vmatpush.bf16.msrb.mxu3 %v6930_v62  ;;  %v1728_v62 = vrot.slane %v1726_v53, 3 }
  0x4b   : > { %1642 = vmatpush.bf16.msrb.mxu2 %v6921_v11 }
  0x4c   : > { %427 = vmatmul.bf16.gmra.mxu0 %v6846_v60  ;;  %v6899_v60 = vld [vmem:[%s9209_s1 + $0x108] sm:$0xff]  ;;  %1865 = vmatpush.bf16.msrb.mxu3 %v6929_v14 }
  0x4d   : > { %636 = vmatmul.bf16.gmra.mxu1 %v526_v25  ;;  %1266 = vmatpush.bf16.msrb.mxu0 %v6899_v60  ;;  %v6960_v25 = vld [vmem:[%s9209_s1 + $0x78] sm:$0xff] }
  0x4e   : > { %794 = vmatmul.bf16.gmra.mxu2 %v711_v26  ;;  %v7384_v26 = vld [vmem:[%s7497_s6 + $0x38] sm:$0x70] }
  0x4f   : > { %1003 = vmatmul.bf16.gmra.mxu3 %v920_v27  ;;  %2603 = vmatpush.bf16.msra.mxu2 %v6960_v25  ;;  %v1050_v27 = vld [vmem:[%s7497_s6 + $0x8] sm:$0xe]  ;;  %v7367_v38 = vor.u32 %v7384_v26, %v7366_v7  ;;  %v1562_v7 = vrot.slane %v1553_v44, 2 }
  0x50   : > { %v1101_v33 = vunpack.c.l.b16 %v1050_v27  ;;  %2748 = vmatpush.bf16.msra.mxu3 %v6968_v45  ;;  %v6958_v25 = vld [vmem:[%s9209_s1 + $0x68] sm:$0xff] }
  0x51   : > { %1267 = vmatpush.bf16.msrb.mxu0 %v6898_v12  ;;  %v6950_v44 = vld [vmem:[%s9209_s1 + $0x28] sm:$0xff] }
  0x53   : > { %2604 = vmatpush.bf16.msra.mxu2 %v6959_v51 }
  0x55   : > { %2018 = vmatpush.bf16.msra.mxu0 %v6944_v31 }
  0x57   : > { %2605 = vmatpush.bf16.msra.mxu2 %v6958_v25 }
  0x59   : > { %2019 = vmatpush.bf16.msra.mxu0 %v6943_v1 }
  0x5c   : > { %432 = vmatmul.bf16.gmra.mxu0 %v6847_v13  ;;  %v6906_v13 = vld [vmem:[%s9209_s1 + $0x140] sm:$0xff] }
  0x5d   : > { %641 = vmatmul.bf16.gmra.mxu1 %v534_v40  ;;  %v7711_v40 = vld [vmem:[%s7497_s6 + $0x10] sm:$0xff] }
  0x5e   : > { %799 = vmatmul.bf16.gmra.mxu2 %v713_v41  ;;  %1427 = vmatpush.bf16.msrb.mxu1 %v6906_v13  ;;  %v1137_v48 = vshrl.u32 %v7711_v40, 16  ;;  %v1140_v49 = vshll.u32 %v7711_v40, 16  ;;  %v1348_v6 = vrot.slane %v7711_v40, 2 }
  0x5f   : > { %1008 = vmatmul.bf16.gmra.mxu3 %v922_v42  ;;  %v1325_v42 = vld [vmem:[%s7497_s6 + $0x8] sm:$0xc] }
  0x60   : > { %v1344_v50 = vunpack.c.l.b16 %v1325_v42  ;;  %v1142_v59 = vrot.slane %v1140_v49, 2 }
  0x62   : > { %2381 = vmatpush.bf16.msra.mxu1 %v6952_v35 }
  0x66   : > { %2382 = vmatpush.bf16.msra.mxu1 %v6951_v4 }
  0x6a   : > { %2383 = vmatpush.bf16.msra.mxu1 %v6950_v44 }
  0x6c   : > { %437 = vmatmul.bf16.gmra.mxu0 %v6848_v28  ;;  %v1051_v28 = vld [vmem:[%s7497_s6 + $0xc] sm:$0xf] }
  0x6d   : > { %646 = vmatmul.bf16.gmra.mxu1 %v542_v55  ;;  %v1102_v34 = vunpack.c.l.b16 %v1051_v28 }
  0x6e   : > { %804 = vmatmul.bf16.gmra.mxu2 %v715_v56 }
  0x6f   : > { %1013 = vmatmul.bf16.gmra.mxu3 %v924_v57  ;;  %v1118_v41 = vpack.c.b16 %v1102_v34, %v1101_v33  ;;  %v1345_v60 = vpack.c.b16 %v1102_v34, %v1344_v50 }
  0x71   : > { %v1129_v46 = vshrl.u32 %v1118_v41, 16  ;;  %v1132_v47 = vshll.u32 %v1118_v41, 16  ;;  %v1347_v5 = vrot.slane %v1345_v60, 2  ;;  %v6942_v41 = vld [vmem:[%s9209_s1 + $0x228] sm:$0xff] }
  0x72   : > { %2020 = vmatpush.bf16.msra.mxu0 %v6942_v41  ;;  %v7783_v60 = vld [vmem:[%s7497_s6 + $0x28] sm:$0xff]  ;;  %v6965_v41 = vld [vmem:[%s9209_s1 + $0xa0] sm:$0xff] }
  0x73   : > { %v1131_v56 = vrot.slane %v1129_v46, 1  ;;  %v1134_v57 = vrot.slane %v1132_v47, 2  ;;  %v1349_v15 = vsel %vm1346_vm3, %v1347_v5, %v1348_v6  ;;  %v1350_v46 = vrot.slane %v7745_v16, 2 }
  0x74   : > { %v1752_v4 = vshll.u32 %v7783_v60, 16 }
  0x75   : > { %v1135_v2 = vor.u32 %v1134_v57, %v1131_v56  ;;  %v7777_v56 = vld [vmem:[%s7497_s6 + $0x20] sm:$0xff] }
  0x76   : > { %v1158_v1 = vshll.u32 %v7777_v56, 16 }
  0x7c   : > { %442 = vmatmul.bf16.gmra.mxu0 %v6849_v43  ;;  %v7715_v43 = vld [vmem:[%s7497_s6 + $0x18] sm:$0xff] }
  0x7d   : > { %651 = vmatmul.bf16.gmra.mxu1 %v550_v8  ;;  %v1731_v54 = vshrl.u32 %v7715_v43, 16  ;;  %v1734_v55 = vshll.u32 %v7715_v43, 16  ;;  %v7739_v8 = vld [vmem:[%s9210_s2] ss:$0 sm:$0xff]  ;;  %v1946_v30 = vrot.slane %v7715_v43, 3 }
  0x7e   : > { %809 = vmatmul.bf16.gmra.mxu2 %v717_v9  ;;  %v1563_v9 = vrot.slane %v7715_v43, 2 }
  0x7f   : > { %1018 = vmatmul.bf16.gmra.mxu3 %v926_v10  ;;  %v1733_v63 = vrot.slane %v1731_v54, 2  ;;  %v1736_v0 = vrot.slane %v1734_v55, 3  ;;  %v1729_v10 = vor.u32 %v1728_v62, %v1725_v61  ;;  %v1351_v55 = vsel %vm1346_vm3, %v1348_v6, %v1350_v46  ;;  %v6966_v62 = vld [vmem:[%s9209_s1 + $0xa8] sm:$0xff] }
  0x80   : > { %v1564_v18 = vsel %vm1346_vm3, %v1562_v7, %v1563_v9 }
  0x81   : > { %v1737_v11 = vor.u32 %v1736_v0, %v1733_v63  ;;  %v1155_v0 = vshrl.u32 %v7777_v56, 16 }
  0x83   : > { %v1738_v19 = vsel %vm1721_vm4, %v1729_v10, %v1737_v11 }
  0x8c   : > { %447 = vmatmul.bf16.gmra.mxu0 %v6850_v58  ;;  %v1139_v58 = vrot.slane %v1137_v48, 1 }
  0x8d   : > { %656 = vmatmul.bf16.gmra.mxu1 %v558_v22 }
  0x8e   : > { %814 = vmatmul.bf16.gmra.mxu2 %v719_v23  ;;  %v1143_v3 = vor.u32 %v1142_v59, %v1139_v58  ;;  %v1146_v23 = vshrl.u32 %v7745_v16, 16 }
  0x8f   : > { %1023 = vmatmul.bf16.gmra.mxu3 %v928_v24  ;;  %v1149_v24 = vshll.u32 %v7745_v16, 16 }
  0x90   : > { %v1144_v14 = vsel %vm1127_vm2, %v1135_v2, %v1143_v3  ;;  %v1148_v34 = vrot.slane %v1146_v23, 1  ;;  %v6957_v2 = vld [vmem:[%s9209_s1 + $0x60] sm:$0xff]  ;;  %v1567_v23 = vrot.slane %v7783_v60, 2 }
  0x91   : > { %v1151_v35 = vrot.slane %v1149_v24, 2  ;;  %2606 = vmatpush.bf16.msra.mxu2 %v6957_v2 }
  0x93   : > { %v1152_v45 = vor.u32 %v1151_v35, %v1148_v34 }
  0x95   : > { %v1153_v54 = vsel %vm1127_vm2, %v1143_v3, %v1152_v45  ;;  %v1749_v3 = vshrl.u32 %v7783_v60, 16 }
  0x9c   : > { %452 = vmatmul.bf16.gmra.mxu0 %v7367_v38 }
  0x9d   : > { %661 = vmatmul.bf16.gmra.mxu1 %v561_v39 }
  0x9e   : > { %819 = vmatmul.bf16.gmra.mxu2 %v718_v20  ;;  %v7751_v20 = vld [vmem:[%s7497_s6 + $0x20] sm:$0xff] }
  0x9f   : > { %1028 = vmatmul.bf16.gmra.mxu3 %v927_v21  ;;  %v6967_v21 = vld [vmem:[%s9209_s1 + $0xb0] sm:$0xff]  ;;  %v1740_v26 = vshrl.u32 %v7751_v20, 16  ;;  %v1743_v27 = vshll.u32 %v7751_v20, 16  ;;  %v1565_v47 = vrot.slane %v7751_v20, 2 }
  0xa0   : > { %2749 = vmatpush.bf16.msra.mxu3 %v6967_v21 }
  0xa1   : > { %v1742_v38 = vrot.slane %v1740_v26, 2  ;;  %v1745_v39 = vrot.slane %v1743_v27, 3  ;;  %v1566_v58 = vsel %vm1346_vm3, %v1563_v9, %v1565_v47  ;;  %v1568_v35 = vsel %vm1346_vm3, %v1565_v47, %v1567_v23 }
  0xa3   : > { %v1746_v48 = vor.u32 %v1745_v39, %v1742_v38  ;;  %v7817_v38 = vld [vmem:[%s7497_s6 + $0x30] sm:$0xff] }
  0xa4   : > { %2750 = vmatpush.bf16.msra.mxu3 %v6966_v62  ;;  %v1758_v47 = vshrl.u32 %v7817_v38, 16  ;;  %v6940_v62 = vld [vmem:[%s9209_s1 + $0x218] sm:$0xff] }
  0xa5   : > { %v1747_v59 = vsel %vm1721_vm4, %v1737_v11, %v1746_v48  ;;  %v1157_v11 = vrot.slane %v1155_v0, 1  ;;  %v6948_v0 = vld [vmem:[%s9209_s1 + $0x18] sm:$0xff] }
  0xa8   : > { %2751 = vmatpush.bf16.msra.mxu3 %v6965_v41 }
  0xa9   : > { %v418_v12 = vpop.f32.mrf.mxu0 }
  0xaa   : > { %v627_v13 = vpop.f32.mrf.mxu1  ;;  %v461_v17 = vadd.f32 %v7739_v8, %v418_v12  ;;  %v1160_v12 = vrot.slane %v1158_v1, 2 }
  0xac   : > { %v667_v22 = vadd.f32 %v627_v13, %v461_v17  ;;  %1268 = vmatmul.bf16.vlgmr.msrb.gmra.mxu0 %v1144_v14  ;;  %v1751_v14 = vrot.slane %v1749_v3, 2  ;;  %v6941_v17 = vld [vmem:[%s9209_s1 + $0x220] sm:$0xff]  ;;  %v1161_v21 = vor.u32 %v1160_v12, %v1157_v11  ;;  %v1569_v3 = vrot.slane %v7817_v38, 2 }
  0xad   : > { %1428 = vmatmul.bf16.vlgmr.msrb.gmra.mxu1 %v1349_v15  ;;  %v1754_v15 = vrot.slane %v1752_v4, 3  ;;  %2021 = vmatpush.bf16.msra.mxu0 %v6941_v17 }
  0xae   : > { %1643 = vmatmul.bf16.vlgmr.msrb.gmra.mxu2 %v1564_v18 }
  0xaf   : > { %1866 = vmatmul.bf16.vlgmr.msrb.gmra.mxu3 %v1738_v19  ;;  %v6949_v19 = vld [vmem:[%s9209_s1 + $0x20] sm:$0xff]  ;;  %v1755_v24 = vor.u32 %v1754_v15, %v1751_v14  ;;  %v1570_v15 = vsel %vm1346_vm3, %v1567_v23, %v1569_v3  ;;  %v6955_v23 = vld [vmem:[%s9209_s1 + $0x50] sm:$0xff] }
  0xb0   : > { %2384 = vmatpush.bf16.msra.mxu1 %v6949_v19 }
  0xb1   : > { %v785_v28 = vpop.f32.mrf.mxu2  ;;  %v420_v32 = vpop.f32.mrf.mxu0  ;;  %2022 = vmatpush.bf16.msra.mxu0 %v6940_v62  ;;  %v7879_v62 = vld [vmem:[%s7497_s6 + $0x38] sm:$0xff] }
  0xb2   : > { %v994_v29 = vpop.f32.mrf.mxu3  ;;  %v825_v31 = vadd.f32 %v785_v28, %v667_v22  ;;  %v629_v33 = vpop.f32.mrf.mxu1  ;;  %v462_v36 = vadd.f32 %v7739_v8, %v420_v32  ;;  %v1352_v22 = vrot.slane %v7777_v56, 2 }
  0xb4   : > { %v7764_v40 = vadd.f32 %v994_v29, %v825_v31  ;;  %v668_v42 = vadd.f32 %v629_v33, %v462_v36  ;;  %v1162_v31 = vsel %vm1127_vm2, %v1152_v45, %v1161_v21  ;;  %v1353_v32 = vsel %vm1346_vm3, %v1350_v46, %v1352_v22  ;;  %v7811_v33 = vld [vmem:[%s7497_s6 + $0x28] sm:$0xff]  ;;  %v6956_v46 = vld [vmem:[%s9209_s1 + $0x58] sm:$0xff]  ;;  %2385 = vmatpush.bf16.msra.mxu1 %v6948_v0 }
  0xb5   : > { %v1756_v36 = vsel %vm1721_vm4, %v1746_v48, %v1755_v24  ;;  %v1164_v44 = vshrl.u32 %v7811_v33, 16  ;;  %v1167_v45 = vshll.u32 %v7811_v33, 16  ;;  %v1761_v48 = vshll.u32 %v7817_v38, 16  ;;  %2607 = vmatpush.bf16.msra.mxu2 %v6956_v46 }
  0xb6   : > { %v1354_v2 = vrot.slane %v7811_v33, 2 }
  0xb8   : > { %v1355_v12 = vsel %vm1346_vm3, %v1352_v22, %v1354_v2 }
  0xb9   : > { %v787_v49 = vpop.f32.mrf.mxu2  ;;  %v423_v52 = vpop.f32.mrf.mxu0  ;;  %2608 = vmatpush.bf16.msra.mxu2 %v6955_v23 }
  0xba   : > { %v996_v50 = vpop.f32.mrf.mxu3  ;;  %v826_v51 = vadd.f32 %v787_v49, %v668_v42  ;;  %v632_v53 = vpop.f32.mrf.mxu1  ;;  %v463_v57 = vadd.f32 %v7739_v8, %v423_v52 }
  0xbc   : > { %v7785_v61 = vadd.f32 %v996_v50, %v826_v51  ;;  %v669_v63 = vadd.f32 %v632_v53, %v463_v57  ;;  %1273 = vmatmul.bf16.gmra.mxu0 %v1153_v54  ;;  %v1166_v54 = vrot.slane %v1164_v44, 1  ;;  %v1760_v57 = vrot.slane %v1758_v47, 2  ;;  %v6947_v47 = vld [vmem:[%s9209_s1 + $0x10] sm:$0xff] }
  0xbd   : > { %1433 = vmatmul.bf16.gmra.mxu1 %v1351_v55  ;;  %v1169_v55 = vrot.slane %v1167_v45, 2  ;;  %v6939_v45 = vld [vmem:[%s9209_s1 + $0x210] sm:$0xff] }
  0xbe   : > { %1648 = vmatmul.bf16.gmra.mxu2 %v1566_v58  ;;  %v1763_v58 = vrot.slane %v1761_v48, 3  ;;  %2023 = vmatpush.bf16.msra.mxu0 %v6939_v45 }
  0xbf   : > { %1871 = vmatmul.bf16.gmra.mxu3 %v1747_v59  ;;  %v1170_v1 = vor.u32 %v1169_v55, %v1166_v54  ;;  %2386 = vmatpush.bf16.msra.mxu1 %v6947_v47 }
  0xc0   : > { %v1764_v4 = vor.u32 %v1763_v58, %v1760_v57 }
  0xc1   : > { %v790_v5 = vpop.f32.mrf.mxu2  ;;  %v425_v9 = vpop.f32.mrf.mxu0  ;;  %v1171_v11 = vsel %vm1127_vm2, %v1161_v21, %v1170_v1 }
  0xc2   : > { %v999_v6 = vpop.f32.mrf.mxu3  ;;  %v827_v7 = vadd.f32 %v790_v5, %v669_v63  ;;  %v634_v10 = vpop.f32.mrf.mxu1  ;;  %v464_v13 = vadd.f32 %v7739_v8, %v425_v9  ;;  %v1765_v17 = vsel %vm1721_vm4, %v1755_v24, %v1764_v4 }
  0xc4   : > { %v7798_v16 = vadd.f32 %v999_v6, %v827_v7  ;;  %v670_v18 = vadd.f32 %v634_v10, %v464_v13  ;;  %v7845_v13 = vld [vmem:[%s7497_s6 + $0x30] sm:$0xff] }
  0xc5   : > { %v1173_v21 = vshrl.u32 %v7845_v13, 16  ;;  %v1176_v22 = vshll.u32 %v7845_v13, 16 }
  0xc9   : > { %v792_v25 = vpop.f32.mrf.mxu2  ;;  %v428_v28 = vpop.f32.mrf.mxu0 }
  0xca   : > { %v1001_v26 = vpop.f32.mrf.mxu3  ;;  %v828_v27 = vadd.f32 %v792_v25, %v670_v18  ;;  %v637_v29 = vpop.f32.mrf.mxu1  ;;  %v465_v34 = vadd.f32 %v7739_v8, %v428_v28  ;;  %v7851_v18 = vld [vmem:[%s7497_s6 + $0x38] sm:$0xff] }
  0xcb   : > { %v6964_v25 = vld [vmem:[%s9209_s1 + $0x98] sm:$0xff]  ;;  %v1767_v24 = vshrl.u32 %v7851_v18, 16 }
  0xcc   : > { %v7819_v39 = vadd.f32 %v1001_v26, %v828_v27  ;;  %v671_v42 = vadd.f32 %v637_v29, %v465_v34  ;;  %1278 = vmatmul.bf16.gmra.mxu0 %v1162_v31  ;;  %v1770_v27 = vshll.u32 %v7851_v18, 16  ;;  %2752 = vmatpush.bf16.msra.mxu3 %v6964_v25  ;;  %v1175_v34 = vrot.slane %v1173_v21, 1 }
  0xcd   : > { %1438 = vmatmul.bf16.gmra.mxu1 %v1353_v32  ;;  %v1769_v41 = vrot.slane %v1767_v24, 2 }
  0xce   : > { %1653 = vmatmul.bf16.gmra.mxu2 %v1568_v35  ;;  %v1178_v35 = vrot.slane %v1176_v22, 2 }
  0xcf   : > { %1876 = vmatmul.bf16.gmra.mxu3 %v1756_v36 }
  0xd0   : > { %v1179_v48 = vor.u32 %v1178_v35, %v1175_v34 }
  0xd1   : > { %v795_v49 = vpop.f32.mrf.mxu2  ;;  %v430_v52 = vpop.f32.mrf.mxu0 }
  0xd2   : > { %v1004_v50 = vpop.f32.mrf.mxu3  ;;  %v829_v51 = vadd.f32 %v795_v49, %v671_v42  ;;  %v639_v53 = vpop.f32.mrf.mxu1  ;;  %v466_v56 = vadd.f32 %v7739_v8, %v430_v52  ;;  %v1772_v42 = vrot.slane %v1770_v27, 3  ;;  %v1356_v49 = vrot.slane %v7845_v13, 2  ;;  %v6938_v27 = vld [vmem:[%s9209_s1 + $0x208] sm:$0xff] }
  0xd3   : > { %v1180_v57 = vsel %vm1127_vm2, %v1170_v1, %v1179_v48  ;;  %v1182_v1 = vshrl.u32 %v7879_v62, 16  ;;  %2024 = vmatpush.bf16.msra.mxu0 %v6938_v27  ;;  %v1066_v27 = vld [vmem:[%s7497_s6 + $0x48] sm:$0x1] }
  0xd4   : > { %v7832_v59 = vadd.f32 %v1004_v50, %v829_v51  ;;  %v672_v63 = vadd.f32 %v639_v53, %v466_v56  ;;  %v1571_v50 = vrot.slane %v7851_v18, 2  ;;  %v1773_v51 = vor.u32 %v1772_v42, %v1769_v41 }
  0xd5   : > { %v1357_v58 = vsel %vm1346_vm3, %v1354_v2, %v1356_v49  ;;  %v1185_v2 = vshll.u32 %v7879_v62, 16  ;;  %v1184_v25 = vrot.slane %v1182_v1, 1 }
  0xd6   : > { %v1572_v0 = vsel %vm1346_vm3, %v1569_v3, %v1571_v50  ;;  %v6954_v3 = vld [vmem:[%s9209_s1 + $0x48] sm:$0xff] }
  0xd7   : > { %2609 = vmatpush.bf16.msra.mxu2 %v6954_v3 }
  0xd9   : > { %v797_v5 = vpop.f32.mrf.mxu2  ;;  %v433_v9 = vpop.f32.mrf.mxu0 }
  0xda   : > { %v1006_v6 = vpop.f32.mrf.mxu3  ;;  %v830_v7 = vadd.f32 %v797_v5, %v672_v63  ;;  %v642_v10 = vpop.f32.mrf.mxu1  ;;  %v467_v14 = vadd.f32 %v7739_v8, %v433_v9  ;;  %v1774_v5 = vsel %vm1721_vm4, %v1764_v4, %v1773_v51  ;;  %v6963_v9 = vld [vmem:[%s9209_s1 + $0x90] sm:$0xff] }
  0xdb   : > { %2753 = vmatpush.bf16.msra.mxu3 %v6963_v9 }
  0xdc   : > { %v7853_v19 = vadd.f32 %v1006_v6, %v830_v7  ;;  %v673_v26 = vadd.f32 %v642_v10, %v467_v14  ;;  %1283 = vmatmul.bf16.gmra.mxu0 %v1171_v11  ;;  %v7885_v6 = vld [vmem:[%s7497_s6 + $0x40] sm:$0xff] }
  0xdd   : > { %1443 = vmatmul.bf16.gmra.mxu1 %v1355_v12  ;;  %v1776_v4 = vshrl.u32 %v7885_v6, 16  ;;  %v1779_v11 = vshll.u32 %v7885_v6, 16 }
  0xde   : > { %1658 = vmatmul.bf16.gmra.mxu2 %v1570_v15 }
  0xdf   : > { %1881 = vmatmul.bf16.gmra.mxu3 %v1765_v17  ;;  %v1778_v22 = vrot.slane %v1776_v4, 2  ;;  %v1781_v23 = vrot.slane %v1779_v11, 3 }
  0xe1   : > { %v800_v28 = vpop.f32.mrf.mxu2  ;;  %v435_v32 = vpop.f32.mrf.mxu0  ;;  %v7910_v34 = vor.u32 %v1781_v23, %v1778_v22 }
  0xe2   : > { %v1009_v29 = vpop.f32.mrf.mxu3  ;;  %v831_v31 = vadd.f32 %v800_v28, %v673_v26  ;;  %v644_v33 = vpop.f32.mrf.mxu1  ;;  %v468_v36 = vadd.f32 %v7739_v8, %v435_v32  ;;  %v1187_v26 = vrot.slane %v1185_v2, 2  ;;  %v1358_v32 = vrot.slane %v7879_v62, 2 }
  0xe4   : > { %v7866_v44 = vadd.f32 %v1009_v29, %v831_v31  ;;  %v674_v46 = vadd.f32 %v644_v33, %v468_v36  ;;  %v6946_v29 = vld [vmem:[%s9209_s1 + $0x8] sm:$0xff]  ;;  %v1188_v31 = vor.u32 %v1187_v26, %v1184_v25  ;;  %v1573_v33 = vrot.slane %v7885_v6, 2  ;;  %v6945_v25 = vld [vmem:[%s9209_s1] sm:$0xff] }
  0xe5   : > { %2387 = vmatpush.bf16.msra.mxu1 %v6946_v29  ;;  %v1359_v47 = vsel %vm1346_vm3, %v1356_v49, %v1358_v32 }
  0xe9   : > { %v802_v52 = vpop.f32.mrf.mxu2  ;;  %v438_v55 = vpop.f32.mrf.mxu0  ;;  %2388 = vmatpush.bf16.msra.mxu1 %v6945_v25 }
  0xea   : > { %v1011_v53 = vpop.f32.mrf.mxu3  ;;  %v832_v54 = vadd.f32 %v802_v52, %v674_v46  ;;  %v647_v56 = vpop.f32.mrf.mxu1  ;;  %v469_v63 = vadd.f32 %v7739_v8, %v438_v55  ;;  %v1189_v46 = vsel %vm1127_vm2, %v1179_v48, %v1188_v31  ;;  %v7915_v52 = vld [vmem:[%s7497_s6 + $0x40] sm:$0xff]  ;;  %v1783_v55 = vsel %vm1721_vm4, %v1773_v51, %v7910_v34  ;;  %v6962_v48 = vld [vmem:[%s9209_s1 + $0x88] sm:$0xff] }
  0xeb   : > { %v6953_v51 = vld [vmem:[%s9209_s1 + $0x40] sm:$0xff]  ;;  %2754 = vmatpush.bf16.msra.mxu3 %v6962_v48 }
  0xec   : > { %v7887_v7 = vadd.f32 %v1011_v53, %v832_v54  ;;  %v675_v10 = vadd.f32 %v647_v56, %v469_v63  ;;  %1288 = vmatmul.bf16.gmra.mxu0 %v1180_v57  ;;  %v1574_v54 = vsel %vm1346_vm3, %v1571_v50, %v1573_v33  ;;  %v7924_v56 = vld [vmem:[%s7497_s6 + $0x48] sm:$0xff]  ;;  %v1194_v50 = vshll.u32 %v7915_v52, 16  ;;  %2610 = vmatpush.bf16.msra.mxu2 %v6953_v51 }
  0xed   : > { %1448 = vmatmul.bf16.gmra.mxu1 %v1357_v58  ;;  %v1191_v58 = vshrl.u32 %v7915_v52, 16  ;;  %v1785_v62 = vshrl.u32 %v7924_v56, 16  ;;  %v1788_v63 = vshll.u32 %v7924_v56, 16  ;;  %v1575_v22 = vrot.slane %v7924_v56, 2 }
  0xee   : > { %1663 = vmatmul.bf16.gmra.mxu2 %v1572_v0  ;;  %v1196_v3 = vrot.slane %v1194_v50, 2 }
  0xef   : > { %1886 = vmatmul.bf16.gmra.mxu3 %v1774_v5  ;;  %v1193_v2 = vrot.slane %v1191_v58, 1  ;;  %v1787_v11 = vrot.slane %v1785_v62, 2  ;;  %v1501_v58 = vld [vmem:[%s7497_s6 + $0x50] sm:$0x1] }
  0xf0   : > { %v1552_v51 = vunpack.c.l.b16 %v1501_v58 }
  0xf1   : > { %v805_v12 = vpop.f32.mrf.mxu2  ;;  %v440_v15 = vpop.f32.mrf.mxu0  ;;  %v7948_v26 = vor.u32 %v1196_v3, %v1193_v2 }
  0xf2   : > { %v1014_v13 = vpop.f32.mrf.mxu3  ;;  %v833_v14 = vadd.f32 %v805_v12, %v675_v10  ;;  %v649_v17 = vpop.f32.mrf.mxu1  ;;  %v470_v21 = vadd.f32 %v7739_v8, %v440_v15  ;;  %v1790_v12 = vrot.slane %v1788_v63, 3  ;;  %v6937_v15 = vld [vmem:[%s9209_s1 + $0x200] sm:$0xff]  ;;  %v1561_v3 = vpack.c.b16 %v1552_v51, %v1552_v51 }
  0xf3   : > { %2025 = vmatpush.bf16.msra.mxu0 %v6937_v15 }
  0xf4   : > { %v7900_v24 = vadd.f32 %v1014_v13, %v833_v14  ;;  %v676_v28 = vadd.f32 %v649_v17, %v470_v21  ;;  %v1700_v14 = vld [vmem:[%s7497_s6 + $0x50] sm:$0x3]  ;;  %v1360_v21 = vrot.slane %v7915_v52, 2  ;;  %v7952_v23 = vor.u32 %v1790_v12, %v1787_v11  ;;  %v7014_v52 = vld [vmem:[%s9209_s1 + $0x1b8] sm:$0xff] }
  0xf6   : > { %v1792_v48 = vsel %vm1721_vm4, %v7910_v34, %v7952_v23 }
  0xf9   : > { %v807_v35 = vpop.f32.mrf.mxu2  ;;  %v443_v42 = vpop.f32.mrf.mxu0 }
  0xfa   : > { %v1016_v36 = vpop.f32.mrf.mxu3  ;;  %v834_v41 = vadd.f32 %v807_v35, %v676_v28  ;;  %v652_v45 = vpop.f32.mrf.mxu1  ;;  %v471_v53 = vadd.f32 %v7739_v8, %v443_v42  ;;  %v1719_v28 = vunpack.c.l.b16 %v1700_v14  ;;  %v6982_v14 = vld [vmem:[%s9209_s1 + $0xf8] sm:$0xff] }
  0xfb   : > { %2941 = vmatpush.bf16.msrb.mxu0 %v6982_v14 }
  0xfc   : > { %v7926_v57 = vadd.f32 %v1016_v36, %v834_v41  ;;  %v677_v49 = vadd.f32 %v652_v45, %v471_v53  ;;  %1293 = vmatmul.bf16.gmra.mxu0 %v1189_v46  ;;  %v6961_v36 = vld [vmem:[%s9209_s1 + $0x80] sm:$0xff]  ;;  %v1198_v46 = vsel %vm1127_vm2, %v1188_v31, %v7948_v26  ;;  %v1117_v53 = vunpack.c.l.b16 %v1066_v27 }
  0xfd   : > { %1453 = vmatmul.bf16.gmra.mxu1 %v1359_v47  ;;  %v1361_v47 = vsel %vm1346_vm3, %v1358_v32, %v1360_v21  ;;  %2755 = vmatpush.bf16.msra.mxu3 %v6961_v36  ;;  %v7320_v36 = vld [vmem:[%s7497_s6 + $0x3c] sm:$0xf0]  }
  0xfe   : > { %1668 = vmatmul.bf16.gmra.mxu2 %v1574_v54  ;;  %v1126_v50 = vpack.c.b16 %v1117_v53, %v1117_v53 }
  0xff   : > { %1891 = vmatmul.bf16.gmra.mxu3 %v1783_v55  ;;  %v1576_v55 = vsel %vm1346_vm3, %v1573_v33, %v1575_v22  ;;  %v6998_v33 = vld [vmem:[%s9209_s1 + $0x178] sm:$0xff] }
 0x100   : > { %3301 = vmatpush.bf16.msrb.mxu2 %v6998_v33  ;;  %v1362_v27 = vrot.slane %v1126_v50, 2  ;;  %v8006_v33 = vld [vmem:[%s7497_s6 + $0x44] sm:$0xff]  }
 0x101   : > { %v810_v0 = vpop.f32.mrf.mxu2  ;;  %v445_v10 = vpop.f32.mrf.mxu0  ;;  %3509 = vmatpush.bf16.msrb.mxu3 %v7014_v52 }
 0x102   : > { %v1019_v5 = vpop.f32.mrf.mxu3  ;;  %v835_v9 = vadd.f32 %v810_v0, %v677_v49  ;;  %v654_v1 = vpop.f32.mrf.mxu1  ;;  %v472_v4 = vadd.f32 %v7739_v8, %v445_v10  ;;  %v7972_v49 = vpack.c.b16 %v1719_v28, %v1719_v28  ;;  %v1577_v28 = vrot.slane %v1561_v3, 2 }
 0x104   : > { %v7939_v13 = vadd.f32 %v1019_v5, %v835_v9  ;;  %v678_v17 = vadd.f32 %v654_v1, %v472_v4  ;;  %v1794_v62 = vshrl.u32 %v7972_v49, 16  ;;  %v1797_v34 = vshll.u32 %v7972_v49, 16 }
 0x105   : > { %v1200_v1 = vshll.u32 %v1126_v50, 16  ;;  %v1578_v58 = vsel %vm1346_vm3, %v1575_v22, %v1577_v28  ;;  %v1923_v50 = vld [vmem:[%s7497_s6 + $0x10] sm:$0x8] }
 0x106   : > { %v1796_v4 = vrot.slane %v1794_v62, 2  ;;  %v1799_v11 = vrot.slane %v1797_v34, 3  ;;  %v6997_v22 = vld [vmem:[%s9209_s1 + $0x170] sm:$0xff]  ;;  %v2476_v34 = vshrl.u32 %v8006_v33, 16 }
 0x107   : > { %v1202_v25 = vrot.slane %v1200_v1, 2  ;;  %3302 = vmatpush.bf16.msrb.mxu2 %v6997_v22  ;;  %v6989_v28 = vld [vmem:[%s9209_s1 + $0x130] sm:$0xff] }
 0x108   : > { %v2478_v14 = vrot.slane %v2476_v34, 3 }
 0x109   : > { %v812_v29 = vpop.f32.mrf.mxu2  ;;  %v448_v42 = vpop.f32.mrf.mxu0  ;;  %v1203_v53 = vsel %vm1127_vm2, %v7948_v26, %v1202_v25  ;;  %v6981_v25 = vld [vmem:[%s9209_s1 + $0xf0] sm:$0xff] }
 0x10a   : > { %v1021_v35 = vpop.f32.mrf.mxu3  ;;  %v836_v41 = vadd.f32 %v812_v29, %v678_v17  ;;  %v657_v45 = vpop.f32.mrf.mxu1  ;;  %v473_v54 = vadd.f32 %v7739_v8, %v448_v42  ;;  %v6990_v17 = vld [vmem:[%s9209_s1 + $0x138] sm:$0xff]  ;;  %v1800_v29 = vor.u32 %v1799_v11, %v1796_v4  ;;  %2942 = vmatpush.bf16.msrb.mxu0 %v6981_v25 }
 0x10b   : > { %3145 = vmatpush.bf16.msrb.mxu1 %v6990_v17 }
 0x10c   : > { %v7974_v31 = vadd.f32 %v1021_v35, %v836_v41  ;;  %v679_v32 = vadd.f32 %v657_v45, %v473_v54  ;;  %1298 = vmatmul.bf16.gmra.mxu0 %v1198_v46  ;;  %v7270_v35 = vld [vmem:[%s7497_s6 + $0x3c] sm:$0x8]  ;;  %v1363_v54 = vsel %vm1346_vm3, %v1360_v21, %v1362_v27  ;;  %v1942_v21 = vunpack.c.l.b16 %v1923_v50  ;;  %v7013_v50 = vld [vmem:[%s9209_s1 + $0x1b0] sm:$0xff] }
 0x10d   : > { %1458 = vmatmul.bf16.gmra.mxu1 %v1361_v47  ;;  %3510 = vmatpush.bf16.msrb.mxu3 %v7013_v50 }
 0x10e   : > { %1673 = vmatmul.bf16.gmra.mxu2 %v1576_v55  ;;  %v7271_v55 = vor.u32 %v7320_v36, %v7270_v35 }
 0x10f   : > { %1896 = vmatmul.bf16.gmra.mxu3 %v1792_v48  ;;  %3146 = vmatpush.bf16.msrb.mxu1 %v6989_v28 }
 0x110   : > { %v2468_v62 = vshrl.u32 %v7271_v55, 16 }
 0x111   : > { %v815_v63 = vpop.f32.mrf.mxu2  ;;  %v450_v9 = vpop.f32.mrf.mxu0 }
 0x112   : > { %v1024_v0 = vpop.f32.mrf.mxu3  ;;  %v837_v5 = vadd.f32 %v815_v63, %v679_v32  ;;  %v659_v10 = vpop.f32.mrf.mxu1  ;;  %v474_v2 = vadd.f32 %v7739_v8, %v450_v9  ;;  %v1801_v32 = vsel %vm1721_vm4, %v7952_v23, %v1800_v29  ;;  %v2471_v23 = vshll.u32 %v7271_v55, 16 }
 0x113   : > { %v2479_v63 = vshll.u32 %v8006_v33, 16  ;;  %v2470_v3 = vrot.slane %v2468_v62, 3 }
 0x114   : > { %v7983_v12 = vadd.f32 %v1024_v0, %v837_v5  ;;  %v680_v15 = vadd.f32 %v659_v10, %v474_v2  ;;  %v1943_v2 = vpack.c.b16 %v1537_v37, %v1942_v21  ;;  %v2473_v11 = vrot.slane %v2471_v23, 4 }
 0x115   : > { %v2308_v37 = vrot.slane %v7271_v55, 3 }
 0x116   : > { %v1945_v29 = vrot.slane %v1943_v2, 3  ;;  %v2474_v35 = vor.u32 %v2473_v11, %v2470_v3  ;;  %v6988_v2 = vld [vmem:[%s9209_s1 + $0x128] sm:$0xff]  ;;  %v1948_v3 = vrot.slane %v7751_v20, 3  ;;  %v8068_v20 = vld [vmem:[%s7497_s6 + $0x54] sm:$0xff]  }
 0x117   : > { %3147 = vmatpush.bf16.msrb.mxu1 %v6988_v2  ;;  %v7243_v2 = vld [vmem:[%s7497_s6 + $0x50] sm:$0xff]  }
 0x118   : > { %v1949_v28 = vsel %vm1944_vm5, %v1946_v30, %v1948_v3 }
 0x119   : > { %v817_v41 = vpop.f32.mrf.mxu2  ;;  %v453_v46 = vpop.f32.mrf.mxu0 }
 0x11a   : > { %v1026_v42 = vpop.f32.mrf.mxu3  ;;  %v838_v45 = vadd.f32 %v817_v41, %v680_v15  ;;  %v662_v47 = vpop.f32.mrf.mxu1  ;;  %v475_v48 = vadd.f32 %v7739_v8, %v453_v46  ;;  %v2481_v15 = vrot.slane %v2479_v63, 4 }
 0x11c   : > { %v8008_v51 = vadd.f32 %v1026_v42, %v838_v45  ;;  %v681_v26 = vadd.f32 %v662_v47, %v475_v48  ;;  %1303 = vmatmul.bf16.gmra.mxu0 %v1203_v53  ;;  %v2482_v36 = vor.u32 %v2481_v15, %v2478_v14  ;;  %v1947_v53 = vsel %vm1944_vm5, %v1945_v29, %v1946_v30  ;;  %v7241_v48 = vld [vmem:[%s7497_s6 + $0x40] sm:$0xff]  }
 0x11d   : > { %1463 = vmatmul.bf16.gmra.mxu1 %v1363_v54  ;;  %v2494_v30 = vshrl.u32 %v8068_v20, 16 }
 0x11e   : > { %1678 = vmatmul.bf16.gmra.mxu2 %v1578_v58  ;;  %v2483_v55 = vsel %vm2466_vm6, %v2474_v35, %v2482_v36  ;;  %v8037_v58 = vld [vmem:[%s7497_s6 + $0x4c] sm:$0xff]  }
 0x11f   : > { %1901 = vmatmul.bf16.gmra.mxu3 %v1801_v32  ;;  %v2485_v52 = vshrl.u32 %v8037_v58, 16 }
 0x121   : > { %v820_v0 = vpop.f32.mrf.mxu2  ;;  %v455_v10 = vpop.f32.mrf.mxu0 }
 0x122   : > { %v1029_v5 = vpop.f32.mrf.mxu3  ;;  %v839_v9 = vadd.f32 %v820_v0, %v681_v26  ;;  %v664_v1 = vpop.f32.mrf.mxu1  ;;  %v476_v4 = vadd.f32 %v7739_v8, %v455_v10  ;;  %v2309_v8 = vrot.slane %v8006_v33, 3  ;;  %v2488_v26 = vshll.u32 %v8037_v58, 16  ;;  %v6980_v10 = vld [vmem:[%s9209_s1 + $0xe8] sm:$0xff] }
 0x123   : > { %v2487_v0 = vrot.slane %v2485_v52, 3  ;;  %2943 = vmatpush.bf16.msrb.mxu0 %v6980_v10  ;;  %v6987_v52 = vld [vmem:[%s9209_s1 + $0x120] sm:$0xff] }
 0x124   : > { %v8021_v17 = vadd.f32 %v1029_v5, %v839_v9  ;;  %v682_v27 = vadd.f32 %v664_v1, %v476_v4  ;;  %v2310_v43 = vsel %vm1944_vm5, %v2308_v37, %v2309_v8  ;;  %v2490_v5 = vrot.slane %v2488_v26, 4  ;;  %3148 = vmatpush.bf16.msrb.mxu1 %v6987_v52  ;;  %v7244_v52 = vld [vmem:[%s7497_s6 + $0x58] sm:$0xff]  }
 0x125   : > { %v2311_v4 = vrot.slane %v8037_v58, 3  ;;  %v1950_v26 = vrot.slane %v7783_v60, 3  ;;  %v8098_v60 = vld [vmem:[%s7497_s6 + $0x5c] sm:$0xff]  }
 0x127   : > { %v2312_v29 = vsel %vm1944_vm5, %v2309_v8, %v2311_v4  ;;  %v2497_v8 = vshll.u32 %v8068_v20, 16 }
 0x129   : > { %v822_v41 = vpop.f32.mrf.mxu2  ;;  %v1269_v46 = vpop.f32.mrf.mxu0  ;;  %v2499_v58 = vrot.slane %v2497_v8, 4  ;;  %v1952_v8 = vrot.slane %v7817_v38, 3  ;;  %v8127_v38 = vld [vmem:[%s7497_s6 + $0x64] sm:$0xff]  }
 0x12a   : > { %v1031_v42 = vpop.f32.mrf.mxu3  ;;  %v840_v45 = vadd.f32 %v822_v41, %v682_v27  ;;  %v1429_v47 = vpop.f32.mrf.mxu1  ;;  %v1309_v54 = vadd.f32 %v1269_v46, %v7764_v40  ;;  %v6996_v40 = vld [vmem:[%s9209_s1 + $0x168] sm:$0xff] }
 0x12b   : > { %3303 = vmatpush.bf16.msrb.mxu2 %v6996_v40  ;;  %v8065_v41 = vld [vmem:[%s7497_s6 + $0x48] sm:$0xff]  }
 0x12c   : > { %v8039_v32 = vadd.f32 %v1031_v42, %v840_v45  ;;  %v1469_v33 = vadd.f32 %v1429_v47, %v1309_v54  ;;  %2026 = vmatmul.bf16.vlgmr.msra.gmra.mxu0 %v1947_v53  ;;  %v7012_v45 = vld [vmem:[%s9209_s1 + $0x1a8] sm:$0xff] }
 0x12d   : > { %2389 = vmatmul.bf16.vlgmr.msra.gmra.mxu1 %v2310_v43  ;;  %3511 = vmatpush.bf16.msrb.mxu3 %v7012_v45 }
 0x12e   : > { %2611 = vmatmul.bf16.vlgmr.msra.gmra.mxu2 %v2483_v55 }
 0x12f   : > { %2756 = vmatmul.bf16.vlgmr.msra.gmra.mxu3 %v7241_v48  ;;  %v2496_v48 = vrot.slane %v2494_v30, 3  ;;  %v6986_v30 = vld [vmem:[%s9209_s1 + $0x118] sm:$0xff] }
 0x130   : > { %3149 = vmatpush.bf16.msrb.mxu1 %v6986_v30 }
 0x131   : > { %v1644_v21 = vpop.f32.mrf.mxu2  ;;  %v1271_v23 = vpop.f32.mrf.mxu0 }
 0x132   : > { %v1867_v62 = vpop.f32.mrf.mxu3  ;;  %v1684_v22 = vadd.f32 %v1644_v21, %v1469_v33  ;;  %v1431_v34 = vpop.f32.mrf.mxu1  ;;  %v1310_v63 = vadd.f32 %v1271_v23, %v7785_v61  ;;  %v2491_v61 = vor.u32 %v2490_v5, %v2487_v0  ;;  %v6979_v33 = vld [vmem:[%s9209_s1 + $0xe0] sm:$0xff]  ;;  %v2313_v21 = vrot.slane %v8068_v20, 3 }
 0x133   : > { %2944 = vmatpush.bf16.msrb.mxu0 %v6979_v33  ;;  %v1951_v0 = vsel %vm1944_vm5, %v1948_v3, %v1950_v26  ;;  %v2503_v3 = vshrl.u32 %v8098_v60, 16 }
 0x134   : > { %v8050_v9 = vadd.f32 %v1867_v62, %v1684_v22  ;;  %v1470_v1 = vadd.f32 %v1431_v34, %v1310_v63  ;;  %v2492_v35 = vsel %vm2466_vm6, %v2482_v36, %v2491_v61  ;;  %v2314_v5 = vsel %vm1944_vm5, %v2311_v4, %v2313_v21 }
 0x135   : > { %v2506_v4 = vshll.u32 %v8098_v60, 16 }
 0x137   : > { %v2508_v20 = vrot.slane %v2506_v4, 4  ;;  %v2317_v4 = vrot.slane %v8127_v38, 3 }
 0x139   : > { %v1646_v11 = vpop.f32.mrf.mxu2  ;;  %v1274_v25 = vpop.f32.mrf.mxu0 }
 0x13a   : > { %v1869_v14 = vpop.f32.mrf.mxu3  ;;  %v1685_v15 = vadd.f32 %v1646_v11, %v1470_v1  ;;  %v1434_v27 = vpop.f32.mrf.mxu1  ;;  %v1311_v37 = vadd.f32 %v1274_v25, %v7798_v16  ;;  %v6995_v16 = vld [vmem:[%s9209_s1 + $0x160] sm:$0xff] }
 0x13b   : > { %3304 = vmatpush.bf16.msrb.mxu2 %v6995_v16 }
 0x13c   : > { %v8070_v42 = vadd.f32 %v1869_v14, %v1685_v15  ;;  %v1471_v46 = vadd.f32 %v1434_v27, %v1311_v37  ;;  %2031 = vmatmul.bf16.gmra.mxu0 %v1949_v28  ;;  %v7011_v14 = vld [vmem:[%s9209_s1 + $0x1a0] sm:$0xff] }
 0x13d   : > { %2394 = vmatmul.bf16.gmra.mxu1 %v2312_v29  ;;  %3512 = vmatpush.bf16.msrb.mxu3 %v7011_v14  ;;  %v6977_v14 = vld [vmem:[%s9209_s1 + $0xd0] sm:$0xff] }
 0x13e   : > { %2616 = vmatmul.bf16.gmra.mxu2 %v2492_v35  ;;  %v2505_v35 = vrot.slane %v2503_v3, 3  ;;  %v1954_v3 = vrot.slane %v7851_v18, 3  ;;  %v8156_v18 = vld [vmem:[%s7497_s6 + $0x6c] sm:$0xff]  }
 0x13f   : > { %2761 = vmatmul.bf16.gmra.mxu3 %v8065_v41 }
 0x141   : > { %v1649_v36 = vpop.f32.mrf.mxu2  ;;  %v1276_v43 = vpop.f32.mrf.mxu0 }
 0x142   : > { %v1872_v47 = vpop.f32.mrf.mxu3  ;;  %v1686_v53 = vadd.f32 %v1649_v36, %v1471_v46  ;;  %v1436_v54 = vpop.f32.mrf.mxu1  ;;  %v1312_v55 = vadd.f32 %v1276_v43, %v7819_v39  ;;  %v2500_v39 = vor.u32 %v2499_v58, %v2496_v48  ;;  %v6978_v46 = vld [vmem:[%s9209_s1 + $0xd8] sm:$0xff]  ;;  %v2315_v36 = vrot.slane %v8098_v60, 3 }
 0x143   : > { %2945 = vmatpush.bf16.msrb.mxu0 %v6978_v46  ;;  %v1953_v48 = vsel %vm1944_vm5, %v1950_v26, %v1952_v8  ;;  %v2512_v26 = vshrl.u32 %v8127_v38, 16 }
 0x144   : > { %v8082_v50 = vadd.f32 %v1872_v47, %v1686_v53  ;;  %v1472_v40 = vadd.f32 %v1436_v54, %v1312_v55  ;;  %v2501_v1 = vsel %vm2466_vm6, %v2491_v61, %v2500_v39  ;;  %v2316_v58 = vsel %vm1944_vm5, %v2313_v21, %v2315_v36 }
 0x145   : > { %v2515_v21 = vshll.u32 %v8127_v38, 16  ;;  %v8172_v38 = vld [vmem:[%s7497_s6 + $0x70] sm:$0xff]  }
 0x147   : > { %2946 = vmatpush.bf16.msrb.mxu0 %v6977_v14 }
 0x149   : > { %v1651_v62 = vpop.f32.mrf.mxu2  ;;  %v1279_v34 = vpop.f32.mrf.mxu0 }
 0x14a   : > { %v1874_v22 = vpop.f32.mrf.mxu3  ;;  %v1687_v23 = vadd.f32 %v1651_v62, %v1472_v40  ;;  %v1439_v63 = vpop.f32.mrf.mxu1  ;;  %v1313_v10 = vadd.f32 %v1279_v34, %v7832_v59  ;;  %v6994_v59 = vld [vmem:[%s9209_s1 + $0x158] sm:$0xff] }
 0x14b   : > { %3305 = vmatpush.bf16.msrb.mxu2 %v6994_v59  ;;  %v6985_v59 = vld [vmem:[%s9209_s1 + $0x110] sm:$0xff] }
 0x14c   : > { %v8100_v11 = vadd.f32 %v1874_v22, %v1687_v23  ;;  %v1473_v15 = vadd.f32 %v1439_v63, %v1313_v10  ;;  %2036 = vmatmul.bf16.gmra.mxu0 %v1951_v0  ;;  %v7010_v22 = vld [vmem:[%s9209_s1 + $0x198] sm:$0xff]  ;;  %3150 = vmatpush.bf16.msrb.mxu1 %v6985_v59 }
 0x14d   : > { %2399 = vmatmul.bf16.gmra.mxu1 %v2314_v5  ;;  %3513 = vmatpush.bf16.msrb.mxu3 %v7010_v22  ;;  %v8175_v22 = vld [vmem:[%s7497_s6 + $0x78] sm:$0xf] }
 0x14e   : > { %2621 = vmatmul.bf16.gmra.mxu2 %v2501_v1  ;;  %v2514_v1 = vrot.slane %v2512_v26, 3  ;;  %v6984_v26 = vld [vmem:[%s9209_s1 + $0x108] sm:$0xff] }
 0x14f   : > { %2766 = vmatmul.bf16.gmra.mxu3 %v7243_v2  ;;  %v2517_v2 = vrot.slane %v2515_v21, 4  ;;  %v1956_v21 = vrot.slane %v7885_v6, 3 }
 0x150   : > { %3151 = vmatpush.bf16.msrb.mxu1 %v6984_v26 }
 0x151   : > { %v1654_v61 = vpop.f32.mrf.mxu2  ;;  %v1281_v28 = vpop.f32.mrf.mxu0  ;;  %v1957_v14 = vsel %vm1944_vm5, %v1954_v3, %v1956_v21 }
 0x152   : > { %v1877_v25 = vpop.f32.mrf.mxu3  ;;  %v1688_v27 = vadd.f32 %v1654_v61, %v1473_v15  ;;  %v1441_v29 = vpop.f32.mrf.mxu1  ;;  %v1314_v37 = vadd.f32 %v1281_v28, %v7853_v19  ;;  %v2509_v19 = vor.u32 %v2508_v20, %v2505_v35  ;;  %v2318_v35 = vsel %vm1944_vm5, %v2315_v36, %v2317_v4 }
 0x153   : > { %v2524_v36 = vshll.u32 %v8156_v18, 16 }
 0x154   : > { %v8111_v45 = vadd.f32 %v1877_v25, %v1688_v27  ;;  %v1474_v16 = vadd.f32 %v1441_v29, %v1314_v37  ;;  %v2510_v40 = vsel %vm2466_vm6, %v2500_v39, %v2509_v19  ;;  %v1955_v37 = vsel %vm1944_vm5, %v1952_v8, %v1954_v3 }
 0x155   : > { %v2521_v8 = vshrl.u32 %v8156_v18, 16 }
 0x159   : > { %v1656_v47 = vpop.f32.mrf.mxu2  ;;  %v1284_v54 = vpop.f32.mrf.mxu0 }
 0x15a   : > { %v1879_v53 = vpop.f32.mrf.mxu3  ;;  %v1689_v43 = vadd.f32 %v1656_v47, %v1474_v16  ;;  %v1444_v55 = vpop.f32.mrf.mxu1  ;;  %v1315_v33 = vadd.f32 %v1284_v54, %v7866_v44  ;;  %v6993_v44 = vld [vmem:[%s9209_s1 + $0x150] sm:$0xff]  ;;  %v7245_v16 = vld [vmem:[%s7497_s6 + $0x60] sm:$0xff]  }
 0x15b   : > { %3306 = vmatpush.bf16.msrb.mxu2 %v6993_v44  ;;  %v7009_v47 = vld [vmem:[%s9209_s1 + $0x190] sm:$0xff] }
 0x15c   : > { %v8129_v62 = vadd.f32 %v1879_v53, %v1689_v43  ;;  %v1475_v23 = vadd.f32 %v1444_v55, %v1315_v33  ;;  %2041 = vmatmul.bf16.gmra.mxu0 %v1953_v48  ;;  %3514 = vmatpush.bf16.msrb.mxu3 %v7009_v47  ;;  %v2523_v33 = vrot.slane %v2521_v8, 3  ;;  %v6975_v8 = vld [vmem:[%s9209_s1 + $0xc0] sm:$0xff] }
 0x15d   : > { %2404 = vmatmul.bf16.gmra.mxu1 %v2316_v58 }
 0x15e   : > { %2626 = vmatmul.bf16.gmra.mxu2 %v2510_v40  ;;  %v2526_v40 = vrot.slane %v2524_v36, 4 }
 0x15f   : > { %2771 = vmatmul.bf16.gmra.mxu3 %v7244_v52 }
 0x161   : > { %v1659_v39 = vpop.f32.mrf.mxu2  ;;  %v1286_v0 = vpop.f32.mrf.mxu0 }
 0x162   : > { %v1882_v34 = vpop.f32.mrf.mxu3  ;;  %v1690_v63 = vadd.f32 %v1659_v39, %v1475_v23  ;;  %v1446_v5 = vpop.f32.mrf.mxu1  ;;  %v1316_v10 = vadd.f32 %v1286_v0, %v7887_v7  ;;  %v2518_v7 = vor.u32 %v2517_v2, %v2514_v1  ;;  %v6976_v23 = vld [vmem:[%s9209_s1 + $0xc8] sm:$0xff]  ;;  %v2527_v39 = vor.u32 %v2526_v40, %v2523_v33  ;;  %v7007_v33 = vld [vmem:[%s9209_s1 + $0x180] sm:$0xff] }
 0x163   : > { %2947 = vmatpush.bf16.msrb.mxu0 %v6976_v23 }
 0x164   : > { %v8140_v60 = vadd.f32 %v1882_v34, %v1690_v63  ;;  %v1476_v15 = vadd.f32 %v1446_v5, %v1316_v10  ;;  %v2519_v46 = vsel %vm2466_vm6, %v2509_v19, %v2518_v7  ;;  %v7174_v34 = vunpack.c.h.b16 %v8172_v38 }
 0x165   : > { %v2297_v63 = vunpack.c.l.b16 %v8175_v22  ;;  %v2528_v59 = vsel %vm2466_vm6, %v2518_v7, %v2527_v39 }
 0x167   : > { %2948 = vmatpush.bf16.msrb.mxu0 %v6975_v8 }
 0x169   : > { %v1661_v61 = vpop.f32.mrf.mxu2  ;;  %v1289_v28 = vpop.f32.mrf.mxu0 }
 0x16a   : > { %v1884_v25 = vpop.f32.mrf.mxu3  ;;  %v1691_v27 = vadd.f32 %v1661_v61, %v1476_v15  ;;  %v1449_v29 = vpop.f32.mrf.mxu1  ;;  %v1317_v20 = vadd.f32 %v1289_v28, %v7900_v24  ;;  %v6992_v24 = vld [vmem:[%s9209_s1 + $0x148] sm:$0xff] }
 0x16b   : > { %3307 = vmatpush.bf16.msrb.mxu2 %v6992_v24  ;;  %v7246_v61 = vld [vmem:[%s7497_s6 + $0x68] sm:$0xff]   ;;  %v2446_v24 = vld [vmem:[%s7497_s6 + $0x7c] sm:$0x7] }
 0x16c   : > { %v8158_v30 = vadd.f32 %v1884_v25, %v1691_v27  ;;  %v1477_v53 = vadd.f32 %v1449_v29, %v1317_v20  ;;  %2046 = vmatmul.bf16.gmra.mxu0 %v1955_v37  ;;  %v8194_v25 = vpack.c.b16 %v2297_v63, %v7174_v34  ;;  %v7008_v28 = vld [vmem:[%s9209_s1 + $0x188] sm:$0xff] }
 0x16d   : > { %2409 = vmatmul.bf16.gmra.mxu1 %v2318_v35  ;;  %3515 = vmatpush.bf16.msrb.mxu3 %v7008_v28 }
 0x16e   : > { %2631 = vmatmul.bf16.gmra.mxu2 %v2519_v46  ;;  %v2530_v3 = vshrl.u32 %v8194_v25, 16 }
 0x16f   : > { %2776 = vmatmul.bf16.gmra.mxu3 %v7245_v16 }
 0x171   : > { %v1664_v19 = vpop.f32.mrf.mxu2  ;;  %v1291_v55 = vpop.f32.mrf.mxu0  ;;  %3516 = vmatpush.bf16.msrb.mxu3 %v7007_v33  ;;  %v6999_v33 = vld [vmem:[%s7497_s6 + $0x50] sm:$0xf0] }
 0x172   : > { %v1887_v43 = vpop.f32.mrf.mxu3  ;;  %v1692_v54 = vadd.f32 %v1664_v19, %v1477_v53  ;;  %v1451_v48 = vpop.f32.mrf.mxu1  ;;  %v1318_v58 = vadd.f32 %v1291_v55, %v7926_v57  ;;  %v2319_v57 = vrot.slane %v8156_v18, 3  ;;  %v2532_v18 = vrot.slane %v2530_v3, 3  ;;  %v6983_v19 = vld [vmem:[%s9209_s1 + $0x100] sm:$0xff]  ;;  %v7029_v3 = vld [vmem:[%s9209_s1 + $0x1f8] sm:$0xff] }
 0x173   : > { %v2464_v55 = vunpack.c.l.b16 %v2446_v24  ;;  %3152 = vmatpush.bf16.msrb.mxu1 %v6983_v19  ;;  %3782 = vmatpush.bf16.msra.mxu0 %v7029_v3 }
 0x174   : > { %v8169_v52 = vadd.f32 %v1887_v43, %v1692_v54  ;;  %v1478_v44 = vadd.f32 %v1451_v48, %v1318_v58  ;;  %v2320_v15 = vsel %vm1944_vm5, %v2317_v4, %v2319_v57  ;;  %v2533_v4 = vshll.u32 %v8194_v25, 16 }
 0x175   : > { %v1958_v43 = vrot.slane %v7924_v56, 3  ;;  %v2321_v54 = vrot.slane %v8194_v25, 3 }
 0x176   : > { %v2535_v47 = vrot.slane %v2533_v4, 4 }
 0x177   : > { %v1959_v26 = vsel %vm1944_vm5, %v1956_v21, %v1958_v43  ;;  %v2322_v56 = vsel %vm1944_vm5, %v2319_v57, %v2321_v54 }
 0x179   : > { %v1666_v0 = vpop.f32.mrf.mxu2  ;;  %v1294_v1 = vpop.f32.mrf.mxu0 }
 0x17a   : > { %v1889_v5 = vpop.f32.mrf.mxu3  ;;  %v1693_v10 = vadd.f32 %v1666_v0, %v1478_v44  ;;  %v1454_v2 = vpop.f32.mrf.mxu1  ;;  %v1319_v6 = vadd.f32 %v1294_v1, %v7939_v13  ;;  %v6991_v13 = vld [vmem:[%s9209_s1 + $0x140] sm:$0xff] }
 0x17b   : > { %3308 = vmatpush.bf16.msrb.mxu2 %v6991_v13 }
 0x17c   : > { %v8196_v27 = vadd.f32 %v1889_v5, %v1693_v10  ;;  %v1479_v29 = vadd.f32 %v1454_v2, %v1319_v6  ;;  %2051 = vmatmul.bf16.gmra.mxu0 %v1957_v14  ;;  %v2248_v5 = vld [vmem:[%s7497_s6 + $0x7c] sm:$0x3]  ;;  %v2465_v10 = vpack.c.b16 %v2464_v55, %v2464_v55 }
 0x17d   : > { %2414 = vmatmul.bf16.gmra.mxu1 %v2320_v15  ;;  %v2298_v14 = vunpack.c.l.b16 %v2248_v5 }
 0x17e   : > { %2636 = vmatmul.bf16.gmra.mxu2 %v2528_v59  ;;  %v2539_v15 = vshrl.u32 %v2465_v10, 16  ;;  %v2542_v21 = vshll.u32 %v2465_v10, 16  ;;  %v3027_v10 = vshrl.u32 %v8065_v41, 16 }
 0x17f   : > { %2781 = vmatmul.bf16.gmra.mxu3 %v7246_v61  ;;  %v2307_v25 = vpack.c.b16 %v2298_v14, %v2298_v14 }
 0x180   : > { %v2544_v13 = vrot.slane %v2542_v21, 4 }
 0x181   : > { %v1669_v7 = vpop.f32.mrf.mxu2  ;;  %v1296_v20 = vpop.f32.mrf.mxu0 }
 0x182   : > { %v1892_v37 = vpop.f32.mrf.mxu3  ;;  %v1694_v35 = vadd.f32 %v1669_v7, %v1479_v29  ;;  %v1456_v46 = vpop.f32.mrf.mxu1  ;;  %v1320_v16 = vadd.f32 %v1296_v20, %v7974_v31  ;;  %v2536_v31 = vor.u32 %v2535_v47, %v2532_v18  ;;  %v2541_v29 = vrot.slane %v2539_v15, 3 }
 0x183   : > { %v1960_v7 = vrot.slane %v7972_v49, 3  ;;  %v2691_v49 = vpack.c.b16 %v2464_v55, %v2297_v63  ;;  %v2084_v63 = vld [vmem:[%s8253_s26 + $0xc] sm:$0xf] }
 0x184   : > { %v8207_v53 = vadd.f32 %v1892_v37, %v1694_v35  ;;  %v1480_v36 = vadd.f32 %v1456_v46, %v1320_v16  ;;  %v2537_v0 = vsel %vm2466_vm6, %v2527_v39, %v2536_v31  ;;  %v2323_v37 = vrot.slane %v2307_v25, 3  ;;  %v7249_v55 = vld [vmem:[%s7497_s6 + $0x48] sm:$0xf0] }
 0x185   : > { %v2545_v35 = vor.u32 %v2544_v13, %v2541_v29  ;;  %v1961_v24 = vsel %vm1944_vm5, %v1958_v43, %v1960_v7  ;;  %v7234_v13 = vld [vmem:[%s8253_s26 + $0x10] sm:$0xff]  }
 0x186   : > { %v2324_v8 = vsel %vm1944_vm5, %v2321_v54, %v2323_v37  ;;  %v3029_v54 = vshll.u32 %v8065_v41, 16 }
 0x187   : > { %v2546_v19 = vsel %vm2466_vm6, %v2536_v31, %v2545_v35  ;;  %v8261_v31 = vld [vmem:[%s7497_s6 + $0x50] sm:$0xff] }
 0x188   : > { %v3034_v14 = vshll.u32 %v8261_v31, 16  ;;  %v3231_v3 = vrot.slane %v8261_v31, 1 }
 0x189   : > { %v1671_v48 = vpop.f32.mrf.mxu2  ;;  %v1299_v23 = vpop.f32.mrf.mxu0 }
 0x18a   : > { %v1894_v58 = vpop.f32.mrf.mxu3  ;;  %v1695_v40 = vadd.f32 %v1671_v48, %v1480_v36  ;;  %v1459_v44 = vpop.f32.mrf.mxu1  ;;  %v1321_v34 = vadd.f32 %v1299_v23, %v7983_v12  ;;  %v7047_v12 = vld [vmem:[%s9209_s1 + $0x38] sm:$0xff]  ;;  %v7250_v48 = vld [vmem:[%s7497_s6 + $0x48] sm:$0xe]  ;;  %v3036_v29 = vrot.slane %v3034_v14, 1 }
 0x18b   : > { %4239 = vmatpush.bf16.msra.mxu2 %v7047_v12  ;;  %7311 = vmatpush.bf16.msra.mxu3 %v7047_v12  ;;  %v7251_v21 = vor.u32 %v7250_v48, %v7249_v55 }
 0x18c   : > { %v8226_v1 = vadd.f32 %v1894_v58, %v1695_v40  ;;  %v1481_v2 = vadd.f32 %v1459_v44, %v1321_v34  ;;  %2056 = vmatmul.bf16.gmra.mxu0 %v1959_v26  ;;  %v6221_v58 = vld [vmem:[%s7497_s6 + $0x50] sm:$0xe]  ;;  %v2101_v26 = vunpack.c.l.bf16 %v2084_v63 }
 0x18d   : > { %2419 = vmatmul.bf16.gmra.mxu1 %v2322_v56  ;;  %v7046_v56 = vld [vmem:[%s9209_s1 + $0x30] sm:$0xff] }
 0x18e   : > { %2641 = vmatmul.bf16.gmra.mxu2 %v2537_v0  ;;  %v2136_v25 = vrot.slane %v2101_v26, 3  ;;  %v7122_v26 = vunpack.c.h.bf16 %v7234_v13 }
 0x18f   : > { %2786 = vmatmul.bf16.gmra.mxu3 %v8172_v38  ;;  %4240 = vmatpush.bf16.msra.mxu2 %v7046_v56 }
 0x190   : > { %7312 = vmatpush.bf16.msra.mxu3 %v7046_v56  ;;  %v3038_v56 = vshrl.u32 %v8261_v31, 16 }
 0x191   : > { %v1674_v6 = vpop.f32.mrf.mxu2  ;;  %v1301_v59 = vpop.f32.mrf.mxu0 }
 0x192   : > { %v1897_v57 = vpop.f32.mrf.mxu3  ;;  %v1696_v39 = vadd.f32 %v1674_v6, %v1481_v2  ;;  %v1461_v61 = vpop.f32.mrf.mxu1  ;;  %v1322_v28 = vadd.f32 %v1301_v59, %v8008_v51  ;;  %v7037_v51 = vld [vmem:[%s9209_s1 + $0x238] sm:$0xff]  ;;  %v3031_v2 = vrot.slane %v3029_v54, 1 }
 0x193   : > { %3940 = vmatpush.bf16.msra.mxu1 %v7037_v51  ;;  %v8274_v6 = vld [vmem:[%s7497_s6 + $0x58] sm:$0xff] }
 0x194   : > { %v8233_v38 = vadd.f32 %v1897_v57, %v1696_v39  ;;  %v1482_v4 = vadd.f32 %v1461_v61, %v1322_v28  ;;  %v6222_v57 = vor.u32 %v6999_v33, %v6221_v58  ;;  %v7028_v39 = vld [vmem:[%s9209_s1 + $0x1f0] sm:$0xff]  ;;  %v3032_v28 = vor.u32 %v3031_v2, %v3027_v10  ;;  %v8312_v54 = vld [vmem:[%s7497_s6 + $0x58] sm:$0xff]  ;;  %v7045_v33 = vld [vmem:[%s9209_s1 + $0x28] sm:$0xff] }
 0x195   : > { %3783 = vmatpush.bf16.msra.mxu0 %v7028_v39  ;;  %v3439_v7 = vrot.slane %v8274_v6, 1  ;;  %4241 = vmatpush.bf16.msra.mxu2 %v7045_v33  ;;  %v7027_v2 = vld [vmem:[%s9209_s1 + $0x1e8] sm:$0xff]  ;;  %v7235_v39 = vld [vmem:[%s8253_s26 + $0x18] sm:$0xff]  }
 0x196   : > { %7313 = vmatpush.bf16.msra.mxu3 %v7045_v33  ;;  %v8367_v33 = vld [vmem:[%s7497_s6 + $0x68] sm:$0xff] }
 0x199   : > { %v1676_v20 = vpop.f32.mrf.mxu2  ;;  %v1304_v18 = vpop.f32.mrf.mxu0  ;;  %3784 = vmatpush.bf16.msra.mxu0 %v7027_v2 }
 0x19a   : > { %v1899_v46 = vpop.f32.mrf.mxu3  ;;  %v1697_v16 = vadd.f32 %v1676_v20, %v1482_v4  ;;  %v1464_v47 = vpop.f32.mrf.mxu1  ;;  %v1323_v36 = vadd.f32 %v1304_v18, %v8021_v17  ;;  %v2083_v17 = vld [vmem:[%s8253_s26 + $0x8] sm:$0xe]  ;;  %v3438_v4 = vrot.slane %v6222_v57, 1  ;;  %v7121_v20 = vunpack.c.l.bf16 %v7234_v13 }
 0x19b   : > { %v2100_v44 = vunpack.c.l.bf16 %v2083_v17 }
 0x19c   : > { %v8255_v43 = vadd.f32 %v1899_v46, %v1697_v16  ;;  %v1483_v22 = vadd.f32 %v1464_v47, %v1323_v36  ;;  %2061 = vmatmul.bf16.gmra.mxu0 %v1961_v24  ;;  %v7036_v46 = vld [vmem:[%s9209_s1 + $0x230] sm:$0xff]  ;;  %v3037_v24 = vsel %vm498_vm0, %v3032_v28, %v3036_v29  ;;  %v3440_v36 = vsel %vm704_vm1, %v3438_v4, %v3439_v7  ;;  %v7035_v4 = vld [vmem:[%s9209_s1 + $0x228] sm:$0xff] }
 0x19d   : > { %2424 = vmatmul.bf16.gmra.mxu1 %v2324_v8  ;;  %v2135_v61 = vrot.slane %v2100_v44, 3  ;;  %v2138_v17 = vrot.slane %v7121_v20, 3 }
 0x19e   : > { %2646 = vmatmul.bf16.gmra.mxu2 %v2546_v19  ;;  %3941 = vmatpush.bf16.msra.mxu1 %v7036_v46 }
 0x19f   : > { %2791 = vmatmul.bf16.gmra.mxu3 %v2691_v49  ;;  %v2137_v18 = vsel %vm1944_vm5, %v2135_v61, %v2136_v25  ;;  %v2139_v58 = vsel %vm1944_vm5, %v2136_v25, %v2138_v17 }
 0x1a1   : > { %v1679_v40 = vpop.f32.mrf.mxu2  ;;  %v1306_v0 = vpop.f32.mrf.mxu0 }
 0x1a2   : > { %v1902_v23 = vpop.f32.mrf.mxu3  ;;  %v1698_v34 = vadd.f32 %v1679_v40, %v1483_v22  ;;  %v1466_v5 = vpop.f32.mrf.mxu1  ;;  %v1324_v15 = vadd.f32 %v1306_v0, %v8039_v32  ;;  %v3230_v32 = vrot.slane %v7251_v21, 1  ;;  %v3040_v21 = vor.u32 %v3038_v56, %v3036_v29  ;;  %3942 = vmatpush.bf16.msra.mxu1 %v7035_v4 }
 0x1a4   : > { %v8276_v12 = vadd.f32 %v1902_v23, %v1698_v34  ;;  %v1484_v59 = vadd.f32 %v1466_v5, %v1324_v15  ;;  %v3232_v49 = vsel %vm704_vm1, %v3230_v32, %v3231_v3  ;;  %v3042_v34 = vshll.u32 %v8312_v54, 16  ;;  %v8323_v5 = vld [vmem:[%s7497_s6 + $0x60] sm:$0xff] }
 0x1a5   : > { %v2140_v15 = vrot.slane %v7122_v26, 3  ;;  %v3441_v61 = vrot.slane %v8323_v5, 1  ;;  %v7125_v32 = vunpack.c.l.bf16 %v7235_v39 }
 0x1a6   : > { %v3044_v57 = vrot.slane %v3042_v34, 1 }
 0x1a8   : > { %v3045_v46 = vsel %vm498_vm0, %v3040_v21, %v3044_v57 }
 0x1a9   : > { %v1681_v37 = vpop.f32.mrf.mxu2  ;;  %v2027_v16 = vpop.f32.mrf.mxu0 }
 0x1aa   : > { %v1904_v35 = vpop.f32.mrf.mxu3  ;;  %v1699_v51 = vadd.f32 %v1681_v37, %v1484_v59  ;;  %v2390_v47 = vpop.f32.mrf.mxu1  ;;  %v2067_v8 = vadd.f32 %v2027_v16, %v8050_v9  ;;  %v8308_v9 = vld [vmem:[%s9210_s2] ss:$0 sm:$0xff] }
 0x1ab   : > { %v2430_v63 = vadd.f32 %v8308_v9, %v2390_v47 }
 0x1ac   : > { %v8297_v19 = vadd.f32 %v1904_v35, %v1699_v51  ;;  %v2184_v22 = vadd.f32 %v2137_v18, %v2067_v8  ;;  %2949 = vmatmul.bf16.vlgmr.msrb.gmra.mxu0 %v8065_v41  ;;  %v2141_v35 = vsel %vm1944_vm5, %v2138_v17, %v2140_v15  ;;  %v3442_v18 = vsel %vm704_vm1, %v3439_v7, %v3441_v61 }
 0x1ad   : > { %3153 = vmatmul.bf16.vlgmr.msrb.gmra.mxu1 %v3037_v24 }
 0x1ae   : > { %3309 = vmatmul.bf16.vlgmr.msrb.gmra.mxu2 %v3232_v49  ;;  %v2200_v41 = vmax.f32 %v2184_v22, 0.0  ;;  %v7044_v22 = vld [vmem:[%s9209_s1 + $0x20] sm:$0xff] }
 0x1af   : > { %3517 = vmatmul.bf16.vlgmr.msrb.gmra.mxu3 %v3440_v36  ;;  %4242 = vmatpush.bf16.msra.mxu2 %v7044_v22 }
 0x1b0   : > { %2216 = vst [vmem:[%s8303_s9] sm:$0xff] %v2200_v41  ;;  %v7126_v41 = vunpack.c.h.bf16 %v7235_v39  ;;  %7314 = vmatpush.bf16.msra.mxu3 %v7044_v22  ;;  %v8411_v22 = vld [vmem:[%s7497_s6 + $0x70] sm:$0xff] }
 0x1b1   : > { %v2612_v55 = vpop.f32.mrf.mxu2  ;;  %v2029_v23 = vpop.f32.mrf.mxu0 }
 0x1b2   : > { %v2757_v48 = vpop.f32.mrf.mxu3  ;;  %v2652_v40 = vadd.f32 %v2612_v55, %v2430_v63  ;;  %v2392_v44 = vpop.f32.mrf.mxu1  ;;  %v2068_v0 = vadd.f32 %v2029_v23, %v8070_v42  ;;  %v3233_v42 = vrot.slane %v8312_v54, 1  ;;  %v3046_v55 = vshrl.u32 %v8312_v54, 16  ;;  %v7026_v23 = vld [vmem:[%s9209_s1 + $0x1e0] sm:$0xff] }
 0x1b3   : > { %v2431_v25 = vadd.f32 %v8308_v9, %v2392_v44  ;;  %v2144_v26 = vrot.slane %v7126_v41, 3  ;;  %3785 = vmatpush.bf16.msra.mxu0 %v7026_v23 }
 0x1b4   : > { %v8325_v10 = vadd.f32 %v2757_v48, %v2652_v40  ;;  %v2185_v14 = vadd.f32 %v2139_v58, %v2068_v0  ;;  %v3234_v16 = vsel %vm704_vm1, %v3231_v3, %v3233_v42  ;;  %v8356_v3 = vld [vmem:[%s7497_s6 + $0x60] sm:$0xff]  ;;  %v3048_v56 = vor.u32 %v3046_v55, %v3044_v57 }
 0x1b5   : > { %v3050_v48 = vshll.u32 %v8356_v3, 16  ;;  %v7236_v0 = vld [vmem:[%s8253_s26 + $0x20] sm:$0xff]  }
 0x1b6   : > { %v2201_v59 = vmax.f32 %v2185_v14, 0.0  ;;  %v3443_v14 = vrot.slane %v8367_v33, 1 }
 0x1b7   : > { %v3052_v34 = vrot.slane %v3050_v48, 1 }
 0x1b8   : > { %2217 = vst [vmem:[%s8303_s9 + $0x8] sm:$0xff] %v2201_v59  ;;  %v7129_v59 = vunpack.c.l.bf16 %v7236_v0 }
 0x1b9   : > { %v2614_v28 = vpop.f32.mrf.mxu2  ;;  %v2032_v29 = vpop.f32.mrf.mxu0  ;;  %v3053_v4 = vsel %vm498_vm0, %v3048_v56, %v3052_v34 }
 0x1ba   : > { %v2759_v13 = vpop.f32.mrf.mxu3  ;;  %v2653_v37 = vadd.f32 %v2614_v28, %v2431_v25  ;;  %v2395_v20 = vpop.f32.mrf.mxu1  ;;  %v2069_v51 = vadd.f32 %v2032_v29, %v8082_v50  ;;  %v2142_v50 = vrot.slane %v7125_v32, 3  ;;  %v7034_v25 = vld [vmem:[%s9209_s1 + $0x220] sm:$0xff] }
 0x1bb   : > { %v2432_v8 = vadd.f32 %v8308_v9, %v2395_v20  ;;  %3943 = vmatpush.bf16.msra.mxu1 %v7034_v25 }
 0x1bc   : > { %v8351_v47 = vadd.f32 %v2759_v13, %v2653_v37  ;;  %v2186_v24 = vadd.f32 %v2141_v35, %v2069_v51  ;;  %2954 = vmatmul.bf16.gmra.mxu0 %v8261_v31  ;;  %v2143_v7 = vsel %vm1944_vm5, %v2140_v15, %v2142_v50  ;;  %v2145_v13 = vsel %vm1944_vm5, %v2142_v50, %v2144_v26 }
 0x1bd   : > { %3158 = vmatmul.bf16.gmra.mxu1 %v3045_v46  ;;  %v3444_v35 = vsel %vm704_vm1, %v3441_v61, %v3443_v14 }
 0x1be   : > { %3314 = vmatmul.bf16.gmra.mxu2 %v3234_v16  ;;  %v2202_v49 = vmax.f32 %v2186_v24, 0.0  ;;  %v7043_v24 = vld [vmem:[%s9209_s1 + $0x18] sm:$0xff] }
 0x1bf   : > { %3522 = vmatmul.bf16.gmra.mxu3 %v3442_v18  ;;  %4243 = vmatpush.bf16.msra.mxu2 %v7043_v24 }
 0x1c0   : > { %2218 = vst [vmem:[%s8303_s9 + $0x10] sm:$0xff] %v2202_v49  ;;  %v7130_v49 = vunpack.c.h.bf16 %v7236_v0  ;;  %7315 = vmatpush.bf16.msra.mxu3 %v7043_v24  ;;  %v8455_v24 = vld [vmem:[%s7497_s6 + $0x78] sm:$0xff] }
 0x1c1   : > { %v2617_v6 = vpop.f32.mrf.mxu2  ;;  %v2034_v17 = vpop.f32.mrf.mxu0 }
 0x1c2   : > { %v2762_v36 = vpop.f32.mrf.mxu3  ;;  %v2654_v31 = vadd.f32 %v2617_v6, %v2432_v8  ;;  %v2397_v63 = vpop.f32.mrf.mxu1  ;;  %v2070_v58 = vadd.f32 %v2034_v17, %v8100_v11  ;;  %v3235_v11 = vrot.slane %v8356_v3, 1  ;;  %v3054_v6 = vshrl.u32 %v8356_v3, 16  ;;  %v7025_v17 = vld [vmem:[%s9209_s1 + $0x1d8] sm:$0xff] }
 0x1c3   : > { %v2433_v15 = vadd.f32 %v8308_v9, %v2397_v63  ;;  %v2148_v41 = vrot.slane %v7130_v49, 3  ;;  %3786 = vmatpush.bf16.msra.mxu0 %v7025_v17 }
 0x1c4   : > { %v8369_v40 = vadd.f32 %v2762_v36, %v2654_v31  ;;  %v2187_v44 = vadd.f32 %v2143_v7, %v2070_v58  ;;  %v3236_v29 = vsel %vm704_vm1, %v3233_v42, %v3235_v11  ;;  %v8400_v42 = vld [vmem:[%s7497_s6 + $0x68] sm:$0xff]  ;;  %v3056_v55 = vor.u32 %v3054_v6, %v3052_v34 }
 0x1c5   : > { %v3058_v36 = vshll.u32 %v8400_v42, 16  ;;  %v7237_v58 = vld [vmem:[%s8253_s26 + $0x28] sm:$0xff]  }
 0x1c6   : > { %v2203_v2 = vmax.f32 %v2187_v44, 0.0  ;;  %v3445_v44 = vrot.slane %v8411_v22, 1 }
 0x1c7   : > { %v3060_v48 = vrot.slane %v3058_v36, 1 }
 0x1c8   : > { %2219 = vst [vmem:[%s8303_s9 + $0x18] sm:$0xff] %v2203_v2  ;;  %v7133_v2 = vunpack.c.l.bf16 %v7237_v58 }
 0x1c9   : > { %v2619_v21 = vpop.f32.mrf.mxu2  ;;  %v2037_v57 = vpop.f32.mrf.mxu0  ;;  %v3061_v25 = vsel %vm498_vm0, %v3056_v55, %v3060_v48 }
 0x1ca   : > { %v2764_v39 = vpop.f32.mrf.mxu3  ;;  %v2655_v28 = vadd.f32 %v2619_v21, %v2433_v15  ;;  %v2400_v32 = vpop.f32.mrf.mxu1  ;;  %v2071_v37 = vadd.f32 %v2037_v57, %v8111_v45  ;;  %v2146_v45 = vrot.slane %v7129_v59, 3  ;;  %v7033_v15 = vld [vmem:[%s9209_s1 + $0x218] sm:$0xff] }
 0x1cb   : > { %v2434_v51 = vadd.f32 %v8308_v9, %v2400_v32  ;;  %3944 = vmatpush.bf16.msra.mxu1 %v7033_v15 }
 0x1cc   : > { %v8395_v20 = vadd.f32 %v2764_v39, %v2655_v28  ;;  %v2188_v46 = vadd.f32 %v2145_v13, %v2071_v37  ;;  %2959 = vmatmul.bf16.gmra.mxu0 %v8312_v54  ;;  %v2147_v61 = vsel %vm1944_vm5, %v2144_v26, %v2146_v45  ;;  %v2149_v39 = vsel %vm1944_vm5, %v2146_v45, %v2148_v41 }
 0x1cd   : > { %3163 = vmatmul.bf16.gmra.mxu1 %v3053_v4  ;;  %v3446_v13 = vsel %vm704_vm1, %v3443_v14, %v3445_v44 }
 0x1ce   : > { %3319 = vmatmul.bf16.gmra.mxu2 %v3236_v29  ;;  %v2204_v16 = vmax.f32 %v2188_v46, 0.0  ;;  %v7042_v46 = vld [vmem:[%s9209_s1 + $0x10] sm:$0xff] }
 0x1cf   : > { %3527 = vmatmul.bf16.gmra.mxu3 %v3444_v35  ;;  %4244 = vmatpush.bf16.msra.mxu2 %v7042_v46 }
 0x1d0   : > { %2220 = vst [vmem:[%s8303_s9 + $0x20] sm:$0xff] %v2204_v16  ;;  %v7134_v16 = vunpack.c.h.bf16 %v7237_v58  ;;  %7316 = vmatpush.bf16.msra.mxu3 %v7042_v46  ;;  %v8499_v46 = vld [vmem:[%s7497_s6 + $0x80] sm:$0xff] }
 0x1d1   : > { %v2622_v5 = vpop.f32.mrf.mxu2  ;;  %v2039_v50 = vpop.f32.mrf.mxu0 }
 0x1d2   : > { %v2767_v18 = vpop.f32.mrf.mxu3  ;;  %v2656_v54 = vadd.f32 %v2622_v5, %v2434_v51  ;;  %v2402_v8 = vpop.f32.mrf.mxu1  ;;  %v2072_v7 = vadd.f32 %v2039_v50, %v8129_v62  ;;  %v3237_v62 = vrot.slane %v8400_v42, 1  ;;  %v3062_v5 = vshrl.u32 %v8400_v42, 16  ;;  %v7024_v50 = vld [vmem:[%s9209_s1 + $0x1d0] sm:$0xff] }
 0x1d3   : > { %v2435_v26 = vadd.f32 %v8308_v9, %v2402_v8  ;;  %v2152_v49 = vrot.slane %v7134_v16, 3  ;;  %3787 = vmatpush.bf16.msra.mxu0 %v7024_v50 }
 0x1d4   : > { %v8413_v31 = vadd.f32 %v2767_v18, %v2656_v54  ;;  %v2189_v63 = vadd.f32 %v2147_v61, %v2072_v7  ;;  %v3238_v57 = vsel %vm704_vm1, %v3235_v11, %v3237_v62  ;;  %v8444_v11 = vld [vmem:[%s7497_s6 + $0x70] sm:$0xff]  ;;  %v3064_v6 = vor.u32 %v3062_v5, %v3060_v48 }
 0x1d5   : > { %v3066_v18 = vshll.u32 %v8444_v11, 16  ;;  %v3239_v17 = vrot.slane %v8444_v11, 1 }
 0x1d6   : > { %v2205_v23 = vmax.f32 %v2189_v63, 0.0  ;;  %v7238_v63 = vld [vmem:[%s8253_s26 + $0x30] sm:$0xff]  }
 0x1d7   : > { %v3068_v36 = vrot.slane %v3066_v18, 1  ;;  %v7137_v15 = vunpack.c.l.bf16 %v7238_v63 }
 0x1d8   : > { %2221 = vst [vmem:[%s8303_s9 + $0x28] sm:$0xff] %v2205_v23  ;;  %v7032_v23 = vld [vmem:[%s9209_s1 + $0x210] sm:$0xff] }
 0x1d9   : > { %v2624_v56 = vpop.f32.mrf.mxu2  ;;  %v2042_v34 = vpop.f32.mrf.mxu0  ;;  %3945 = vmatpush.bf16.msra.mxu1 %v7032_v23 }
 0x1da   : > { %v2769_v0 = vpop.f32.mrf.mxu3  ;;  %v2657_v21 = vadd.f32 %v2624_v56, %v2435_v26  ;;  %v2405_v59 = vpop.f32.mrf.mxu1  ;;  %v2073_v28 = vadd.f32 %v2042_v34, %v8140_v60  ;;  %v2150_v60 = vrot.slane %v7133_v2, 3  ;;  %v3069_v2 = vsel %vm498_vm0, %v3064_v6, %v3068_v36  ;;  %v8513_v6 = vld [vmem:[%s7497_s6 + $0x80] sm:$0xf]  }
 0x1db   : > { %v2436_v37 = vadd.f32 %v8308_v9, %v2405_v59  ;;  %v3240_v34 = vsel %vm704_vm1, %v3237_v62, %v3239_v17  ;;  %v8488_v62 = vld [vmem:[%s7497_s6 + $0x78] sm:$0xff] }
 0x1dc   : > { %v8439_v32 = vadd.f32 %v2769_v0, %v2657_v21  ;;  %v2190_v4 = vadd.f32 %v2149_v39, %v2073_v28  ;;  %2964 = vmatmul.bf16.gmra.mxu0 %v8356_v3  ;;  %v2151_v14 = vsel %vm1944_vm5, %v2148_v41, %v2150_v60  ;;  %v2153_v48 = vsel %vm1944_vm5, %v2150_v60, %v2152_v49 }
 0x1dd   : > { %3168 = vmatmul.bf16.gmra.mxu1 %v3061_v25  ;;  %v2154_v28 = vrot.slane %v7137_v15, 3 }
 0x1de   : > { %3324 = vmatmul.bf16.gmra.mxu2 %v3238_v57  ;;  %v2206_v29 = vmax.f32 %v2190_v4, 0.0  ;;  %v7041_v4 = vld [vmem:[%s9209_s1 + $0x8] sm:$0xff] }
 0x1df   : > { %3532 = vmatmul.bf16.gmra.mxu3 %v3446_v13  ;;  %4245 = vmatpush.bf16.msra.mxu2 %v7041_v4 }
 0x1e0   : > { %2222 = vst [vmem:[%s8303_s9 + $0x30] sm:$0xff] %v2206_v29  ;;  %7317 = vmatpush.bf16.msra.mxu3 %v7041_v4  ;;  %v3078_v4 = vshrl.u32 %v8488_v62, 16 }
 0x1e1   : > { %v2627_v33 = vpop.f32.mrf.mxu2  ;;  %v2044_v45 = vpop.f32.mrf.mxu0 }
 0x1e2   : > { %v2772_v35 = vpop.f32.mrf.mxu3  ;;  %v2658_v3 = vadd.f32 %v2627_v33, %v2436_v37  ;;  %v2407_v51 = vpop.f32.mrf.mxu1  ;;  %v2074_v61 = vadd.f32 %v2044_v45, %v8158_v30  ;;  %v3447_v30 = vrot.slane %v8455_v24, 1  ;;  %v2155_v37 = vsel %vm1944_vm5, %v2152_v49, %v2154_v28  ;;  %v7023_v45 = vld [vmem:[%s9209_s1 + $0x1c8] sm:$0xff]  ;;  %v8510_v49 = vld [vmem:[%s7497_s6 + $0x80] sm:$0xff]  }
 0x1e3   : > { %v2437_v41 = vadd.f32 %v8308_v9, %v2407_v51  ;;  %v3070_v33 = vshrl.u32 %v8444_v11, 16  ;;  %3788 = vmatpush.bf16.msra.mxu0 %v7023_v45 }
 0x1e4   : > { %v8457_v54 = vadd.f32 %v2772_v35, %v2658_v3  ;;  %v2191_v8 = vadd.f32 %v2151_v14, %v2074_v61  ;;  %v3448_v39 = vsel %vm704_vm1, %v3445_v44, %v3447_v30  ;;  %v7138_v44 = vunpack.c.h.bf16 %v7238_v63  ;;  %v7239_v61 = vld [vmem:[%s8253_s26 + $0x38] sm:$0xff]  }
 0x1e5   : > { %v3074_v35 = vshll.u32 %v8488_v62, 16  ;;  %v3072_v5 = vor.u32 %v3070_v33, %v3068_v36  ;;  %v7141_v36 = vunpack.c.l.bf16 %v7239_v61  ;;  %v7022_v33 = vld [vmem:[%s9209_s1 + $0x1c0] sm:$0xff] }
 0x1e6   : > { %v2207_v7 = vmax.f32 %v2191_v8, 0.0  ;;  %v2156_v16 = vrot.slane %v7138_v44, 3  ;;  %v3449_v8 = vrot.slane %v8499_v46, 1  ;;  %v7142_v44 = vunpack.c.h.bf16 %v7239_v61 }
 0x1e7   : > { %v3076_v18 = vrot.slane %v3074_v35, 1  ;;  %3789 = vmatpush.bf16.msra.mxu0 %v7022_v33 }
 0x1e8   : > { %2223 = vst [vmem:[%s8303_s9 + $0x38] sm:$0xff] %v2207_v7  ;;  %v3450_v15 = vsel %vm704_vm1, %v3447_v30, %v3449_v8  ;;  %v2160_v45 = vrot.slane %v7142_v44, 3  ;;  %v3574_v44 = vld [vmem:[%s7497_s6 + $0x50] sm:$0xe] }
 0x1e9   : > { %v2629_v55 = vpop.f32.mrf.mxu2  ;;  %v2047_v56 = vpop.f32.mrf.mxu0 }
 0x1ea   : > { %v2774_v58 = vpop.f32.mrf.mxu3  ;;  %v2659_v26 = vadd.f32 %v2629_v55, %v2437_v41  ;;  %v2410_v0 = vpop.f32.mrf.mxu1  ;;  %v2075_v21 = vadd.f32 %v2047_v56, %v8169_v52  ;;  %v2157_v55 = vsel %vm1944_vm5, %v2154_v28, %v2156_v16  ;;  %v7056_v28 = vld [vmem:[%s9209_s1 + $0x70] sm:$0xff] }
 0x1eb   : > { %v2438_v52 = vadd.f32 %v8308_v9, %v2410_v0 }
 0x1ec   : > { %v8483_v59 = vadd.f32 %v2774_v58, %v2659_v26  ;;  %v2192_v25 = vadd.f32 %v2153_v48, %v2075_v21  ;;  %2969 = vmatmul.bf16.gmra.mxu0 %v8400_v42  ;;  %v7031_v58 = vld [vmem:[%s9209_s1 + $0x208] sm:$0xff]  ;;  %v3077_v48 = vsel %vm498_vm0, %v3072_v5, %v3076_v18  ;;  %v3243_v5 = vrot.slane %v8510_v49, 1 }
 0x1ed   : > { %3173 = vmatmul.bf16.gmra.mxu1 %v3069_v2 }
 0x1ee   : > { %3329 = vmatmul.bf16.gmra.mxu2 %v3240_v34  ;;  %v2208_v57 = vmax.f32 %v2192_v25, 0.0  ;;  %3946 = vmatpush.bf16.msra.mxu1 %v7031_v58 }
 0x1ef   : > { %3537 = vmatmul.bf16.gmra.mxu3 %v3448_v39  ;;  %v2158_v39 = vrot.slane %v7141_v36, 3 }
 0x1f0   : > { %2224 = vst [vmem:[%s8303_s9 + $0x40] sm:$0xff] %v2208_v57 }
 0x1f1   : > { %v2632_v22 = vpop.f32.mrf.mxu2  ;;  %v2049_v42 = vpop.f32.mrf.mxu0 }
 0x1f2   : > { %v2777_v13 = vpop.f32.mrf.mxu3  ;;  %v2660_v60 = vadd.f32 %v2632_v22, %v2438_v52  ;;  %v2412_v29 = vpop.f32.mrf.mxu1  ;;  %v2076_v14 = vadd.f32 %v2049_v42, %v8196_v27  ;;  %v3241_v27 = vrot.slane %v8488_v62, 1 }
 0x1f3   : > { %v2439_v7 = vadd.f32 %v8308_v9, %v2412_v29 }
 0x1f4   : > { %v8501_v3 = vadd.f32 %v2777_v13, %v2660_v60  ;;  %v2193_v51 = vadd.f32 %v2155_v37, %v2076_v14  ;;  %v3242_v2 = vsel %vm704_vm1, %v3239_v17, %v3241_v27  ;;  %v7057_v17 = vld [vmem:[%s9209_s1 + $0x78] sm:$0xff]  ;;  %v3082_v60 = vshll.u32 %v8510_v49, 16  ;;  %v8552_v37 = vld [vmem:[%s7497_s6 + $0x88] sm:$0xff] }
 0x1f5   : > { %v7055_v14 = vld [vmem:[%s9209_s1 + $0x68] sm:$0xff]  ;;  %v3451_v61 = vrot.slane %v8552_v37, 1  ;;  %v7060_v37 = vld [vmem:[%s9209_s1 + $0x90] sm:$0xff] }
 0x1f6   : > { %v2209_v50 = vmax.f32 %v2193_v51, 0.0  ;;  %v3080_v51 = vor.u32 %v3078_v4, %v3076_v18  ;;  %v7054_v18 = vld [vmem:[%s9209_s1 + $0x60] sm:$0xff]  ;;  %v8611_v4 = vld [vmem:[%s7497_s6 + $0x54] sm:$0xf] }
 0x1f8   : > { %2225 = vst [vmem:[%s8303_s9 + $0x48] sm:$0xff] %v2209_v50  ;;  %v7240_v50 = vld [vmem:[%s8253_s26 + $0x40] sm:$0xff]  }
 0x1f9   : > { %v2634_v63 = vpop.f32.mrf.mxu2  ;;  %v2052_v26 = vpop.f32.mrf.mxu0 }
 0x1fa   : > { %v2779_v41 = vpop.f32.mrf.mxu3  ;;  %v2661_v23 = vadd.f32 %v2634_v63, %v2439_v7  ;;  %v2415_v56 = vpop.f32.mrf.mxu1  ;;  %v2077_v0 = vadd.f32 %v2052_v26, %v8207_v53  ;;  %v7040_v53 = vld [vmem:[%s9209_s1] sm:$0xff] }
 0x1fb   : > { %v2440_v24 = vadd.f32 %v8308_v9, %v2415_v56  ;;  %4246 = vmatpush.bf16.msra.mxu2 %v7040_v53  ;;  %7318 = vmatpush.bf16.msra.mxu3 %v7040_v53 }
 0x1fc   : > { %v8533_v21 = vadd.f32 %v2779_v41, %v2661_v23  ;;  %v2194_v34 = vadd.f32 %v2157_v55, %v2077_v0  ;;  %2974 = vmatmul.bf16.gmra.mxu0 %v8444_v11  ;;  %v2159_v11 = vsel %vm1944_vm5, %v2156_v16, %v2158_v39  ;;  %v8562_v16 = vrot.slane %v3082_v60, 1  ;;  %v7030_v55 = vld [vmem:[%s9209_s1 + $0x200] sm:$0xff] }
 0x1fd   : > { %3178 = vmatmul.bf16.gmra.mxu1 %v3077_v48  ;;  %v2161_v23 = vsel %vm1944_vm5, %v2158_v39, %v2160_v45  ;;  %v7145_v48 = vunpack.c.l.bf16 %v7240_v50 }
 0x1fe   : > { %3334 = vmatmul.bf16.gmra.mxu2 %v3242_v2  ;;  %v2210_v30 = vmax.f32 %v2194_v34, 0.0  ;;  %v3085_v56 = vsel %vm498_vm0, %v3080_v51, %v8562_v16  ;;  %v3244_v2 = vsel %vm704_vm1, %v3241_v27, %v3243_v5  ;;  %3947 = vmatpush.bf16.msra.mxu1 %v7030_v55  ;;  %v7053_v27 = vld [vmem:[%s9209_s1 + $0x58] sm:$0xff] }
 0x1ff   : > { %3542 = vmatmul.bf16.gmra.mxu3 %v3450_v15  ;;  %v3452_v15 = vsel %vm704_vm1, %v3449_v8, %v3451_v61  ;;  %v2162_v8 = vrot.slane %v7145_v48, 3 }
 0x200   : > { %4381 = vmatpush.bf16.msrb.mxu3 %v7057_v17  ;;  %2226 = vst [vmem:[%s8303_s9 + $0x50] sm:$0xff] %v2210_v30  ;;  %v7052_v30 = vld [vmem:[%s9209_s1 + $0x50] sm:$0xff] }
 0x201   : > { %v2637_v25 = vpop.f32.mrf.mxu2  ;;  %v2054_v22 = vpop.f32.mrf.mxu0 }
 0x202   : > { %v2782_v52 = vpop.f32.mrf.mxu3  ;;  %v2662_v57 = vadd.f32 %v2637_v25, %v2440_v24  ;;  %v2417_v13 = vpop.f32.mrf.mxu1  ;;  %v2078_v42 = vadd.f32 %v2054_v22, %v8226_v1  ;;  %v7064_v24 = vld [vmem:[%s9209_s1 + $0xb0] sm:$0xff]  ;;  %v7385_v22 = vld [vmem:[%s7497_s6 + $0x80] sm:$0x70] }
 0x203   : > { %v2441_v7 = vadd.f32 %v8308_v9, %v2417_v13 }
 0x204   : > { %v8554_v29 = vadd.f32 %v2782_v52, %v2662_v57  ;;  %4382 = vmatpush.bf16.msrb.mxu3 %v7056_v28  ;;  %v2195_v35 = vadd.f32 %v2159_v11, %v2078_v42  ;;  %v2163_v11 = vsel %vm1944_vm5, %v2160_v45, %v2162_v8  ;;  %v7146_v57 = vunpack.c.h.bf16 %v7240_v50  ;;  %v7098_v42 = vld [vmem:[%s9209_s1 + $0x1b8] sm:$0xff]  ;;  %v7051_v45 = vld [vmem:[%s9209_s1 + $0x48] sm:$0xff] }
 0x205   : > { %v3625_v50 = vunpack.c.l.b16 %v8611_v4  ;;  %4942 = vmatpush.bf16.msrb.mxu0 %v7098_v42 }
 0x206   : > { %v2211_v1 = vmax.f32 %v2195_v35, 0.0  ;;  %v3086_v35 = vshrl.u32 %v8510_v49, 16  ;;  %v2164_v51 = vrot.slane %v7146_v57, 3  ;;  %v7038_v57 = vld [vmem:[%s7497_s6 + $0x7c] sm:$0xf0] }
 0x208   : > { %4383 = vmatpush.bf16.msrb.mxu3 %v7055_v14  ;;  %2227 = vst [vmem:[%s8303_s9 + $0x58] sm:$0xff] %v2211_v1  ;;  %v7063_v14 = vld [vmem:[%s9209_s1 + $0xa8] sm:$0xff]  ;;  %v3624_v1 = vunpack.c.l.b16 %v3574_v44 }
 0x209   : > { %v2639_v63 = vpop.f32.mrf.mxu2  ;;  %v2057_v58 = vpop.f32.mrf.mxu0 }
 0x20a   : > { %v2784_v41 = vpop.f32.mrf.mxu3  ;;  %v2663_v36 = vadd.f32 %v2639_v63, %v2441_v7  ;;  %v2420_v26 = vpop.f32.mrf.mxu1  ;;  %v2079_v0 = vadd.f32 %v2057_v58, %v8233_v38  ;;  %v7065_v38 = vld [vmem:[%s9209_s1 + $0xb8] sm:$0xff]  ;;  %v2099_v63 = vld [vmem:[%s8253_s26 + $0x48] sm:$0x1]  ;;  %v3088_v58 = vor.u32 %v3086_v35, %v8562_v16 }
 0x20b   : > { %v2442_v46 = vadd.f32 %v8308_v9, %v2420_v26  ;;  %4485 = vmatpush.bf16.msrb.mxu2 %v7065_v38  ;;  %v7062_v26 = vld [vmem:[%s9209_s1 + $0xa0] sm:$0xff]  ;;  %v3641_v38 = vpack.c.b16 %v3625_v50, %v3624_v1 }
 0x20c   : > { %v8589_v53 = vadd.f32 %v2784_v41, %v2663_v36  ;;  %4384 = vmatpush.bf16.msrb.mxu3 %v7054_v18  ;;  %v2196_v34 = vadd.f32 %v2161_v23, %v2079_v0  ;;  %2979 = vmatmul.bf16.gmra.mxu0 %v8488_v62  ;;  %v7371_v36 = vor.u32 %v7385_v22, %v8513_v6  ;;  %v8635_v23 = vld [vmem:[%s7497_s6 + $0x58] sm:$0xff]  ;;  %v3847_v6 = vld [vmem:[%s7497_s6 + $0x50] sm:$0xc]  ;;  %v8668_v1 = vld [vmem:[%s7497_s6 + $0x84] sm:$0xff] }
 0x20d   : > { %3183 = vmatmul.bf16.gmra.mxu1 %v3085_v56  ;;  %v7050_v56 = vld [vmem:[%s9209_s1 + $0x40] sm:$0xff] }
 0x20e   : > { %3339 = vmatmul.bf16.gmra.mxu2 %v3244_v2  ;;  %v2212_v39 = vmax.f32 %v2196_v34, 0.0  ;;  %v2165_v2 = vsel %vm1944_vm5, %v2162_v8, %v2164_v51  ;;  %v2116_v34 = vunpack.c.l.bf16 %v2099_v63  ;;  %v3662_v8 = vshll.u32 %v8635_v23, 16  ;;  %v4267_v63 = vld [vmem:[%s7497_s6 + $0x7c] sm:$0xc] }
 0x20f   : > { %3547 = vmatmul.bf16.gmra.mxu3 %v3452_v15  ;;  %4486 = vmatpush.bf16.msrb.mxu2 %v7064_v24 }
 0x210   : > { %4385 = vmatpush.bf16.msrb.mxu3 %v7053_v27  ;;  %2228 = vst [vmem:[%s8303_s9 + $0x60] sm:$0xff] %v2212_v39  ;;  %v3659_v39 = vshrl.u32 %v8635_v23, 16  ;;  %v2166_v24 = vrot.slane %v2116_v34, 3  ;;  %v3664_v49 = vrot.slane %v3662_v8, 2  ;;  %v7058_v8 = vld [vmem:[%s9209_s1 + $0x80] sm:$0xff] }
 0x211   : > { %v2642_v62 = vpop.f32.mrf.mxu2  ;;  %v2059_v52 = vpop.f32.mrf.mxu0 }
 0x212   : > { %v2787_v17 = vpop.f32.mrf.mxu3  ;;  %v2664_v25 = vadd.f32 %v2642_v62, %v2442_v46  ;;  %v2422_v28 = vpop.f32.mrf.mxu1  ;;  %v2080_v13 = vadd.f32 %v2059_v52, %v8255_v43  ;;  %v7106_v43 = vld [vmem:[%s9209_s1 + $0x1f8] sm:$0xff]  ;;  %v3865_v62 = vunpack.c.l.b16 %v3847_v6  ;;  %v4153_v52 = vld [vmem:[%s7497_s6 + $0x8c] sm:$0xf]  ;;  %v3661_v44 = vrot.slane %v3659_v39, 1 }
 0x213   : > { %5064 = vmatpush.bf16.msrb.mxu1 %v7106_v43  ;;  %4487 = vmatpush.bf16.msrb.mxu2 %v7063_v14  ;;  %v2443_v41 = vadd.f32 %v8308_v9, %v2422_v28  ;;  %v6409_v28 = vld [vmem:[%s7497_s6 + $0x7c] sm:$0xc]  ;;  %v4179_v4 = vunpack.c.l.b16 %v4153_v52 }
 0x214   : > { %v8613_v60 = vadd.f32 %v2787_v17, %v2664_v25  ;;  %4386 = vmatpush.bf16.msrb.mxu3 %v7052_v30  ;;  %v2197_v33 = vadd.f32 %v2163_v11, %v2080_v13  ;;  %v3651_v30 = vshrl.u32 %v3641_v38, 16  ;;  %v3654_v25 = vshll.u32 %v3641_v38, 16 }
 0x215   : > { %v4184_v38 = vrot.slane %v8668_v1, 2  ;;  %v7069_v1 = vld [vmem:[%s9209_s1 + $0xd8] sm:$0xff] }
 0x216   : > { %v2213_v7 = vmax.f32 %v2197_v33, 0.0  ;;  %v2167_v33 = vsel %vm1944_vm5, %v2164_v51, %v2166_v24  ;;  %v3653_v43 = vrot.slane %v3651_v30, 1  ;;  %v3656_v14 = vrot.slane %v3654_v25, 2 }
 0x217   : > { %4488 = vmatpush.bf16.msrb.mxu2 %v7062_v26  ;;  %v8679_v51 = vor.u32 %v3664_v49, %v3661_v44  ;;  %v7059_v26 = vld [vmem:[%s9209_s1 + $0x88] sm:$0xff] }
 0x218   : > { %4387 = vmatpush.bf16.msrb.mxu3 %v7051_v45  ;;  %2229 = vst [vmem:[%s8303_s9 + $0x68] sm:$0xff] %v2213_v7  ;;  %v6410_v7 = vor.u32 %v7038_v57, %v6409_v28  ;;  %v8713_v28 = vld [vmem:[%s7497_s6 + $0x84] sm:$0xff] }
 0x219   : > { %v2644_v55 = vpop.f32.mrf.mxu2  ;;  %v2062_v0 = vpop.f32.mrf.mxu0 }
 0x21a   : > { %v2789_v18 = vpop.f32.mrf.mxu3  ;;  %v2665_v48 = vadd.f32 %v2644_v55, %v2443_v41  ;;  %v2425_v15 = vpop.f32.mrf.mxu1  ;;  %v2081_v16 = vadd.f32 %v2062_v0, %v8276_v12  ;;  %v7061_v12 = vld [vmem:[%s9209_s1 + $0x98] sm:$0xff]  ;;  %v8672_v41 = vld [vmem:[%s7497_s6 + $0x80] sm:$0xf]  ;;  %v7097_v55 = vld [vmem:[%s9209_s1 + $0x1b0] sm:$0xff]  ;;  %v4295_v0 = vunpack.c.l.b16 %v4267_v63  ;;  %v4183_v34 = vrot.slane %v6410_v7, 2 }
 0x21b   : > { %v2444_v17 = vadd.f32 %v8308_v9, %v2425_v15  ;;  %4489 = vmatpush.bf16.msrb.mxu2 %v7061_v12  ;;  %4943 = vmatpush.bf16.msrb.mxu0 %v7097_v55 }
 0x21c   : > { %v8646_v27 = vadd.f32 %v2789_v18, %v2665_v48  ;;  %4388 = vmatpush.bf16.msrb.mxu3 %v7050_v56  ;;  %v2198_v46 = vadd.f32 %v2165_v2, %v2081_v16  ;;  %2984 = vmatmul.bf16.gmra.mxu0 %v7371_v36  ;;  %v3657_v56 = vor.u32 %v3656_v14, %v3653_v43  ;;  %v3868_v48 = vrot.slane %v8635_v23, 2  ;;  %v4409_v23 = vld [vmem:[%s7497_s6 + $0x7c] sm:$0x8] }
 0x21d   : > { %3188 = vmatmul.bf16.gmra.mxu1 %v3088_v58  ;;  %v8681_v58 = vpack.c.b16 %v4179_v4, %v4179_v4  ;;  %v4296_v2 = vunpack.c.l.b16 %v8672_v41  ;;  %v7067_v41 = vld [vmem:[%s9209_s1 + $0xc8] sm:$0xff] }
 0x21e   : > { %3344 = vmatmul.bf16.gmra.mxu2 %v3243_v5  ;;  %v2214_v11 = vmax.f32 %v2198_v46, 0.0  ;;  %v3866_v5 = vpack.c.b16 %v3625_v50, %v3865_v62  ;;  %v3666_v24 = vsel %vm1127_vm2, %v3657_v56, %v8679_v51 }
 0x21f   : > { %3552 = vmatmul.bf16.gmra.mxu3 %v3451_v61  ;;  %4490 = vmatpush.bf16.msrb.mxu2 %v7060_v37  ;;  %v4186_v39 = vrot.slane %v8681_v58, 2  ;;  %v4301_v25 = vpack.c.b16 %v4296_v2, %v4295_v0  ;;  %v4313_v37 = vshrl.u32 %v8713_v28, 16  ;;  %v7096_v0 = vld [vmem:[%s9209_s1 + $0x1a8] sm:$0xff] }
 0x220   : > { %2230 = vst [vmem:[%s8303_s9 + $0x70] sm:$0xff] %v2214_v11  ;;  %v3867_v36 = vrot.slane %v3866_v5, 2  ;;  %v4185_v11 = vsel %vm1346_vm3, %v4183_v34, %v4184_v38  ;;  %v7081_v5 = vld [vmem:[%s9209_s1 + $0x138] sm:$0xff]  ;;  %v7104_v34 = vld [vmem:[%s9209_s1 + $0x1e8] sm:$0xff]  ;;  %4944 = vmatpush.bf16.msrb.mxu0 %v7096_v0 }
 0x221   : > { %v2647_v22 = vpop.f32.mrf.mxu2  ;;  %v2064_v42 = vpop.f32.mrf.mxu0  ;;  %v4305_v49 = vshrl.u32 %v4301_v25, 16  ;;  %v4308_v4 = vshll.u32 %v4301_v25, 16  ;;  %v7070_v25 = vld [vmem:[%s9209_s1 + $0xe0] sm:$0xff] }
 0x222   : > { %v2792_v13 = vpop.f32.mrf.mxu3  ;;  %v2666_v61 = vadd.f32 %v2647_v22, %v2444_v17  ;;  %v2427_v35 = vpop.f32.mrf.mxu1  ;;  %v2082_v45 = vadd.f32 %v2064_v42, %v8297_v19  ;;  %v7105_v19 = vld [vmem:[%s9209_s1 + $0x1f0] sm:$0xff]  ;;  %v3869_v30 = vsel %vm1346_vm3, %v3867_v36, %v3868_v48  ;;  %v7073_v22 = vld [vmem:[%s9209_s1 + $0xf8] sm:$0xff] }
 0x223   : > { %5065 = vmatpush.bf16.msrb.mxu1 %v7105_v19  ;;  %4491 = vmatpush.bf16.msrb.mxu2 %v7059_v26  ;;  %v2445_v6 = vadd.f32 %v8308_v9, %v2427_v35  ;;  %v8704_v9 = vld [vmem:[%s7497_s6 + $0x60] sm:$0xff]  ;;  %v7072_v42 = vld [vmem:[%s9209_s1 + $0xf0] sm:$0xff]  ;;  %v4307_v55 = vrot.slane %v4305_v49, 2  ;;  %v4310_v36 = vrot.slane %v4308_v4, 3  ;;  %v4315_v19 = vrot.slane %v4313_v37, 2 }
 0x224   : > { %v8674_v50 = vadd.f32 %v2792_v13, %v2666_v61  ;;  %v2199_v18 = vadd.f32 %v2167_v33, %v2082_v45  ;;  %v3671_v44 = vshll.u32 %v8704_v9, 16  ;;  %v4316_v61 = vshll.u32 %v8713_v28, 16 }
 0x226   : > { %v2215_v15 = vmax.f32 %v2199_v18, 0.0  ;;  %v3673_v63 = vrot.slane %v3671_v44, 2  ;;  %v4318_v26 = vrot.slane %v4316_v61, 3  ;;  %v8766_v44 = vld [vmem:[%s7497_s6 + $0x68] sm:$0xff] }
 0x227   : > { %4492 = vmatpush.bf16.msrb.mxu2 %v7058_v8  ;;  %v4311_v8 = vor.u32 %v4310_v36, %v4307_v55  ;;  %5066 = vmatpush.bf16.msrb.mxu1 %v7104_v34  ;;  %v3677_v58 = vshrl.u32 %v8766_v44, 16  ;;  %v7095_v34 = vld [vmem:[%s9209_s1 + $0x1a0] sm:$0xff] }
 0x228   : > { %2231 = vst [vmem:[%s8303_s9 + $0x78] sm:$0x3f] %v2215_v15  ;;  %4945 = vmatpush.bf16.msrb.mxu0 %v7095_v34 }
 0x229   : > { %v2649_v16 = vpop.f32.mrf.mxu2  ;;  %v2950_v12 = vpop.f32.mrf.mxu0  ;;  %v3679_v55 = vrot.slane %v3677_v58, 1 }
 0x22a   : > { %v2794_v46 = vpop.f32.mrf.mxu3  ;;  %v2667_v62 = vadd.f32 %v2649_v16, %v2445_v6  ;;  %v3154_v17 = vpop.f32.mrf.mxu1  ;;  %v2990_v52 = vadd.f32 %v2950_v12, %v8325_v10  ;;  %v3668_v10 = vshrl.u32 %v8704_v9, 16  ;;  %v7071_v6 = vld [vmem:[%s9209_s1 + $0xe8] sm:$0xff] }
 0x22b   : > { %v6469_v12 = vld [vmem:[%s7497_s6 + $0x8c] sm:$0xf] }
 0x22c   : > { %v8715_v57 = vadd.f32 %v2794_v46, %v2667_v62  ;;  %v3194_v13 = vadd.f32 %v3154_v17, %v2990_v52  ;;  %3790 = vmatmul.bf16.vlgmr.msra.gmra.mxu0 %v3666_v24  ;;  %v3670_v7 = vrot.slane %v3668_v10, 1  ;;  %v3870_v46 = vrot.slane %v8704_v9, 2  ;;  %v7049_v17 = vld [vmem:[%s7497_s6 + $0x8c] sm:$0x10] }
 0x22d   : > { %3948 = vmatmul.bf16.vlgmr.msra.gmra.mxu1 %v3869_v30  ;;  %v8750_v62 = vor.u32 %v4318_v26, %v4315_v19  ;;  %v7076_v9 = vld [vmem:[%s9209_s1 + $0x110] sm:$0xff] }
 0x22e   : > { %4247 = vmatmul.bf16.vlgmr.msra.gmra.mxu2 %v4185_v11  ;;  %v8747_v16 = vor.u32 %v3673_v63, %v3670_v7  ;;  %v3871_v10 = vsel %vm1346_vm3, %v3868_v48, %v3870_v46  ;;  %v7079_v48 = vld [vmem:[%s9209_s1 + $0x128] sm:$0xff] }
 0x22f   : > { %4257 = vmatmul.bf16.vlgmr.msra.gmra.mxu3 %v4186_v39  ;;  %4731 = vmatpush.bf16.msra.mxu2 %v7081_v5  ;;  %v4187_v5 = vsel %vm1346_vm3, %v4184_v38, %v4186_v39  ;;  %v4320_v4 = vsel %vm1721_vm4, %v4311_v8, %v8750_v62  ;;  %v3680_v38 = vshll.u32 %v8766_v44, 16  ;;  %v3872_v8 = vrot.slane %v8766_v44, 2 }
 0x230   : > { %4606 = vmatpush.bf16.msra.mxu3 %v7073_v22 }
 0x231   : > { %v3310_v33 = vpop.f32.mrf.mxu2  ;;  %v2952_v14 = vpop.f32.mrf.mxu0  ;;  %v3873_v44 = vsel %vm1346_vm3, %v3870_v46, %v3872_v8 }
 0x232   : > { %v3518_v35 = vpop.f32.mrf.mxu3  ;;  %v3350_v43 = vadd.f32 %v3310_v33, %v3194_v13  ;;  %v3156_v45 = vpop.f32.mrf.mxu1  ;;  %v2991_v18 = vadd.f32 %v2952_v14, %v8351_v47  ;;  %v7080_v47 = vld [vmem:[%s9209_s1 + $0x130] sm:$0xff]  ;;  %v3675_v13 = vsel %vm1127_vm2, %v8679_v51, %v8747_v16  ;;  %v8776_v51 = vor.u32 %v7049_v17, %v6469_v12  ;;  %v7078_v33 = vld [vmem:[%s9209_s1 + $0x120] sm:$0xff] }
 0x233   : > { %4732 = vmatpush.bf16.msra.mxu2 %v7080_v47  ;;  %v7068_v14 = vld [vmem:[%s9209_s1 + $0xd0] sm:$0xff] }
 0x234   : > { %4607 = vmatpush.bf16.msra.mxu3 %v7072_v42  ;;  %v8733_v56 = vadd.f32 %v3518_v35, %v3350_v43  ;;  %v3195_v15 = vadd.f32 %v3156_v45, %v2991_v18  ;;  %v4322_v39 = vshrl.u32 %v8776_v51, 16  ;;  %v4325_v61 = vshll.u32 %v8776_v51, 16 }
 0x235   : > { %v4427_v42 = vunpack.c.l.b16 %v4409_v23  ;;  %v3682_v18 = vrot.slane %v3680_v38, 2 }
 0x236   : > { %v4324_v19 = vrot.slane %v4322_v39, 2  ;;  %v4327_v26 = vrot.slane %v4325_v61, 3 }
 0x237   : > { %4733 = vmatpush.bf16.msra.mxu2 %v7079_v48  ;;  %v4428_v0 = vpack.c.b16 %v4296_v2, %v4427_v42  ;;  %v3683_v2 = vor.u32 %v3682_v18, %v3679_v55 }
 0x238   : > { %4608 = vmatpush.bf16.msra.mxu3 %v7071_v6  ;;  %v7103_v6 = vld [vmem:[%s9209_s1 + $0x1e0] sm:$0xff]  ;;  %v8815_v12 = vor.u32 %v4327_v26, %v4324_v19 }
 0x239   : > { %v3312_v24 = vpop.f32.mrf.mxu2  ;;  %v2955_v11 = vpop.f32.mrf.mxu0  ;;  %v4429_v17 = vrot.slane %v4428_v0, 3  ;;  %5067 = vmatpush.bf16.msrb.mxu1 %v7103_v6 }
 0x23a   : > { %v3520_v30 = vpop.f32.mrf.mxu3  ;;  %v3351_v52 = vadd.f32 %v3312_v24, %v3195_v15  ;;  %v3159_v22 = vpop.f32.mrf.mxu1  ;;  %v2992_v49 = vadd.f32 %v2955_v11, %v8369_v40  ;;  %v4430_v24 = vrot.slane %v8713_v28, 3  ;;  %v8827_v28 = vld [vmem:[%s7497_s6 + $0x70] sm:$0xff] }
 0x23b   : > { %4734 = vmatpush.bf16.msra.mxu2 %v7078_v33  ;;  %v7094_v33 = vld [vmem:[%s9209_s1 + $0x198] sm:$0xff] }
 0x23c   : > { %v8778_v37 = vadd.f32 %v3520_v30, %v3351_v52  ;;  %4609 = vmatpush.bf16.msra.mxu3 %v7070_v25  ;;  %v3196_v40 = vadd.f32 %v3159_v22, %v2992_v49  ;;  %3795 = vmatmul.bf16.gmra.mxu0 %v3675_v13  ;;  %v7066_v52 = vld [vmem:[%s9209_s1 + $0xc0] sm:$0xff] }
 0x23d   : > { %3953 = vmatmul.bf16.gmra.mxu1 %v3871_v10  ;;  %v3684_v10 = vsel %vm1127_vm2, %v8747_v16, %v3683_v2  ;;  %v3689_v16 = vshll.u32 %v8827_v28, 16  ;;  %4946 = vmatpush.bf16.msrb.mxu0 %v7094_v33  ;;  %v8911_v33 = vld [vmem:[%s7497_s6 + $0x80] sm:$0xff] }
 0x23e   : > { %4252 = vmatmul.bf16.gmra.mxu2 %v4187_v5  ;;  %v4329_v5 = vsel %vm1721_vm4, %v8750_v62, %v8815_v12 }
 0x23f   : > { %4389 = vmatmul.bf16.vlgmr.msrb.gmra.mxu3 %v4320_v4  ;;  %v4431_v4 = vsel %vm1944_vm5, %v4429_v17, %v4430_v24  ;;  %v3691_v39 = vrot.slane %v3689_v16, 2 }
 0x240   : > { %4610 = vmatpush.bf16.msra.mxu3 %v7069_v1 }
 0x241   : > { %v3315_v35 = vpop.f32.mrf.mxu2  ;;  %v2957_v7 = vpop.f32.mrf.mxu0 }
 0x242   : > { %v3523_v43 = vpop.f32.mrf.mxu3  ;;  %v3352_v45 = vadd.f32 %v3315_v35, %v3196_v40  ;;  %v3161_v63 = vpop.f32.mrf.mxu1  ;;  %v2993_v36 = vadd.f32 %v2957_v7, %v8395_v20  ;;  %v7077_v20 = vld [vmem:[%s9209_s1 + $0x118] sm:$0xff]  ;;  %v7075_v35 = vld [vmem:[%s9209_s1 + $0x108] sm:$0xff]  ;;  %v7074_v7 = vld [vmem:[%s9209_s1 + $0x100] sm:$0xff] }
 0x243   : > { %4735 = vmatpush.bf16.msra.mxu2 %v7077_v20 }
 0x244   : > { %v8800_v15 = vadd.f32 %v3523_v43, %v3352_v45  ;;  %4611 = vmatpush.bf16.msra.mxu3 %v7068_v14  ;;  %v3197_v47 = vadd.f32 %v3161_v63, %v2993_v36  ;;  %v7102_v14 = vld [vmem:[%s9209_s1 + $0x1d8] sm:$0xff]  ;;  %v4432_v63 = vrot.slane %v8776_v51, 3 }
 0x245   : > { %5068 = vmatpush.bf16.msrb.mxu1 %v7102_v14 }
 0x246   : > { %v4433_v20 = vsel %vm1944_vm5, %v4430_v24, %v4432_v63  ;;  %v7114_v24 = vld [vmem:[%s9209_s1 + $0x238] sm:$0xff] }
 0x247   : > { %4736 = vmatpush.bf16.msra.mxu2 %v7076_v9 }
 0x248   : > { %4612 = vmatpush.bf16.msra.mxu3 %v7067_v41 }
 0x249   : > { %v3317_v30 = vpop.f32.mrf.mxu2  ;;  %v2960_v22 = vpop.f32.mrf.mxu0 }
 0x24a   : > { %v3525_v25 = vpop.f32.mrf.mxu3  ;;  %v3353_v11 = vadd.f32 %v3317_v30, %v3197_v47  ;;  %v3164_v13 = vpop.f32.mrf.mxu1  ;;  %v2994_v49 = vadd.f32 %v2960_v22, %v8413_v31  ;;  %v3686_v31 = vshrl.u32 %v8827_v28, 16  ;;  %v8866_v47 = vld [vmem:[%s7497_s6 + $0x78] sm:$0xff]  ;;  %v7088_v30 = vld [vmem:[%s9209_s1 + $0x170] sm:$0xff] }
 0x24b   : > { %4737 = vmatpush.bf16.msra.mxu2 %v7075_v35  ;;  %v7086_v35 = vld [vmem:[%s9209_s1 + $0x160] sm:$0xff] }
 0x24c   : > { %v8834_v23 = vadd.f32 %v3525_v25, %v3353_v11  ;;  %4613 = vmatpush.bf16.msra.mxu3 %v7066_v52  ;;  %v3198_v48 = vadd.f32 %v3164_v13, %v2994_v49  ;;  %3800 = vmatmul.bf16.gmra.mxu0 %v3684_v10  ;;  %v3688_v38 = vrot.slane %v3686_v31, 1  ;;  %v7304_v25 = vld [vmem:[%s7497_s6 + $0x84] sm:$0x8]  ;;  %v7333_v52 = vld [vmem:[%s7497_s6 + $0x84] sm:$0xf0]   ;;  %v7093_v31 = vld [vmem:[%s9209_s1 + $0x190] sm:$0xff] }
 0x24d   : > { %3958 = vmatmul.bf16.gmra.mxu1 %v3873_v44  ;;  %4947 = vmatpush.bf16.msrb.mxu0 %v7093_v31 }
 0x24e   : > { %4493 = vmatmul.bf16.vlgmr.msrb.gmra.mxu2 %v4431_v4  ;;  %v8853_v45 = vor.u32 %v3691_v39, %v3688_v38  ;;  %v8890_v4 = vld [vmem:[%s7497_s6 + $0x8c] sm:$0xff]  }
 0x24f   : > { %4394 = vmatmul.bf16.gmra.mxu3 %v4329_v5  ;;  %4738 = vmatpush.bf16.msra.mxu2 %v7074_v7  ;;  %v4551_v38 = vrot.slane %v8890_v4, 3 }
 0x250   : > { %v3693_v0 = vsel %vm1127_vm2, %v3683_v2, %v8853_v45  ;;  %v7089_v2 = vld [vmem:[%s9209_s1 + $0x178] sm:$0xff] }
 0x251   : > { %v3320_v46 = vpop.f32.mrf.mxu2  ;;  %v2962_v1 = vpop.f32.mrf.mxu0  ;;  %4829 = vmatpush.bf16.msrb.mxu3 %v7089_v2 }
 0x252   : > { %v3528_v62 = vpop.f32.mrf.mxu3  ;;  %v3354_v40 = vadd.f32 %v3320_v46, %v3198_v48  ;;  %v3166_v58 = vpop.f32.mrf.mxu1  ;;  %v2995_v61 = vadd.f32 %v2962_v1, %v8439_v32  ;;  %v3874_v32 = vrot.slane %v8827_v28, 2  ;;  %v7305_v48 = vor.u32 %v7333_v52, %v7304_v25  ;;  %v7101_v46 = vld [vmem:[%s9209_s1 + $0x1d0] sm:$0xff] }
 0x253   : > { %5168 = vmatpush.bf16.msrb.mxu2 %v7114_v24  ;;  %v3876_v1 = vrot.slane %v8866_v47, 2  ;;  %5069 = vmatpush.bf16.msrb.mxu1 %v7101_v46  ;;  %v3704_v28 = vshrl.u32 %v8911_v33, 16  ;;  %v4666_v24 = vshll.u32 %v8890_v4, 16  ;;  %v7084_v52 = vld [vmem:[%s9209_s1 + $0x150] sm:$0xff]  ;;  %v4634_v46 = vld [vmem:[%s7497_s6 + $0x98] sm:$0x3] }
 0x254   : > { %v8842_v42 = vadd.f32 %v3528_v62, %v3354_v40  ;;  %v3199_v43 = vadd.f32 %v3166_v58, %v2995_v61  ;;  %v3875_v34 = vsel %vm1346_vm3, %v3872_v8, %v3874_v32  ;;  %v3695_v8 = vshrl.u32 %v8866_v47, 16  ;;  %v7087_v62 = vld [vmem:[%s9209_s1 + $0x168] sm:$0xff] }
 0x255   : > { %4830 = vmatpush.bf16.msrb.mxu3 %v7088_v30  ;;  %v4550_v58 = vrot.slane %v7305_v48, 3  ;;  %v7111_v30 = vld [vmem:[%s9209_s1 + $0x220] sm:$0xff]  ;;  %v3706_v25 = vrot.slane %v3704_v28, 1  ;;  %v4668_v31 = vrot.slane %v4666_v24, 4 }
 0x256   : > { %v3697_v44 = vrot.slane %v3695_v8, 1  ;;  %v4658_v8 = vshll.u32 %v7305_v48, 16 }
 0x259   : > { %v3322_v55 = vpop.f32.mrf.mxu2  ;;  %v2965_v19 = vpop.f32.mrf.mxu0  ;;  %4831 = vmatpush.bf16.msrb.mxu3 %v7087_v62 }
 0x25a   : > { %v3530_v18 = vpop.f32.mrf.mxu3  ;;  %v3355_v36 = vadd.f32 %v3322_v55, %v3199_v43  ;;  %v3169_v26 = vpop.f32.mrf.mxu1  ;;  %v2996_v6 = vadd.f32 %v2965_v19, %v8457_v54  ;;  %v3698_v54 = vshll.u32 %v8866_v47, 16  ;;  %v4552_v19 = vsel %vm1944_vm5, %v4550_v58, %v4551_v38  ;;  %v7100_v58 = vld [vmem:[%s9209_s1 + $0x1c8] sm:$0xff] }
 0x25b   : > { %5070 = vmatpush.bf16.msrb.mxu1 %v7100_v58  ;;  %v3590_v58 = vld [vmem:[%s7497_s6 + $0x90] sm:$0x1] }
 0x25c   : > { %v8872_v41 = vadd.f32 %v3530_v18, %v3355_v36  ;;  %v3200_v17 = vadd.f32 %v3169_v26, %v2996_v6  ;;  %3805 = vmatmul.bf16.gmra.mxu0 %v3693_v0  ;;  %v3700_v49 = vrot.slane %v3698_v54, 2  ;;  %v3877_v18 = vsel %vm1346_vm3, %v3874_v32, %v3876_v1  ;;  %v8929_v26 = vld [vmem:[%s7497_s6 + $0x90] sm:$0xff]   ;;  %v4518_v0 = vld [vmem:[%s7497_s6 + $0x98] sm:$0x1] }
 0x25d   : > { %3963 = vmatmul.bf16.gmra.mxu1 %v3875_v34  ;;  %4832 = vmatpush.bf16.msrb.mxu3 %v7086_v35  ;;  %v3707_v32 = vshll.u32 %v8911_v33, 16  ;;  %v4546_v2 = vunpack.c.l.b16 %v4518_v0  ;;  %v4663_v54 = vshrl.u32 %v8890_v4, 16  ;;  %v3878_v35 = vrot.slane %v8911_v33, 2 }
 0x25e   : > { %4498 = vmatmul.bf16.gmra.mxu2 %v4433_v20  ;;  %v8906_v40 = vor.u32 %v3700_v49, %v3697_v44  ;;  %v7218_v20 = vunpack.c.h.b16 %v8929_v26 }
 0x25f   : > { %4399 = vmatmul.bf16.gmra.mxu3 %v8815_v12 }
 0x260   : > { %v3702_v55 = vsel %vm1127_vm2, %v8853_v45, %v8906_v40  ;;  %v7112_v45 = vld [vmem:[%s9209_s1 + $0x228] sm:$0xff] }
 0x261   : > { %v3325_v11 = vpop.f32.mrf.mxu2  ;;  %v2967_v13 = vpop.f32.mrf.mxu0 }
 0x262   : > { %v3533_v12 = vpop.f32.mrf.mxu3  ;;  %v3356_v22 = vadd.f32 %v3325_v11, %v3200_v17  ;;  %v3171_v10 = vpop.f32.mrf.mxu1  ;;  %v2997_v5 = vadd.f32 %v2967_v13, %v8483_v59  ;;  %v7113_v59 = vld [vmem:[%s9209_s1 + $0x230] sm:$0xff]  ;;  %v4655_v17 = vshrl.u32 %v7305_v48, 16  ;;  %v3709_v13 = vrot.slane %v3707_v32, 2  ;;  %v8991_v32 = vld [vmem:[%s7497_s6 + $0x88] sm:$0xff] }
 0x263   : > { %5169 = vmatpush.bf16.msrb.mxu2 %v7113_v59  ;;  %v4665_v48 = vrot.slane %v4663_v54, 3  ;;  %v7092_v59 = vld [vmem:[%s9209_s1 + $0x188] sm:$0xff]  ;;  %v3713_v4 = vshrl.u32 %v8991_v32, 16 }
 0x264   : > { %v8892_v9 = vadd.f32 %v3533_v12, %v3356_v22  ;;  %v3201_v16 = vadd.f32 %v3171_v10, %v2997_v5  ;;  %v8953_v10 = vpack.c.b16 %v4546_v2, %v7218_v20  ;;  %v4657_v44 = vrot.slane %v4655_v17, 3  ;;  %4948 = vmatpush.bf16.msrb.mxu0 %v7092_v59  ;;  %v7107_v59 = vld [vmem:[%s9209_s1 + $0x200] sm:$0xff] }
 0x265   : > { %v4660_v5 = vrot.slane %v4658_v8, 4 }
 0x267   : > { %5170 = vmatpush.bf16.msrb.mxu2 %v7112_v45 }
 0x269   : > { %v3327_v39 = vpop.f32.mrf.mxu2  ;;  %v2970_v14 = vpop.f32.mrf.mxu0 }
 0x26a   : > { %v3535_v61 = vpop.f32.mrf.mxu3  ;;  %v3357_v43 = vadd.f32 %v3327_v39, %v3201_v16  ;;  %v3174_v7 = vpop.f32.mrf.mxu1  ;;  %v2998_v36 = vadd.f32 %v2970_v14, %v8501_v3  ;;  %v7085_v3 = vld [vmem:[%s9209_s1 + $0x158] sm:$0xff]  ;;  %v7083_v39 = vld [vmem:[%s9209_s1 + $0x148] sm:$0xff]  ;;  %v4661_v14 = vor.u32 %v4660_v5, %v4657_v44 }
 0x26b   : > { %4833 = vmatpush.bf16.msrb.mxu3 %v7085_v3  ;;  %5171 = vmatpush.bf16.msrb.mxu2 %v7111_v30  ;;  %v3879_v3 = vsel %vm1346_vm3, %v3876_v1, %v3878_v35  ;;  %v3716_v1 = vshll.u32 %v8991_v32, 16  ;;  %v7108_v5 = vld [vmem:[%s9209_s1 + $0x208] sm:$0xff] }
 0x26c   : > { %v8932_v34 = vadd.f32 %v3535_v61, %v3357_v43  ;;  %v3202_v6 = vadd.f32 %v3174_v7, %v2998_v36  ;;  %3810 = vmatmul.bf16.gmra.mxu0 %v3702_v55  ;;  %v8971_v61 = vor.u32 %v3709_v13, %v3706_v25  ;;  %v4553_v43 = vrot.slane %v8953_v10, 3 }
 0x26d   : > { %3968 = vmatmul.bf16.gmra.mxu1 %v3877_v18  ;;  %v8975_v7 = vor.u32 %v4668_v31, %v4665_v48  ;;  %v8977_v55 = vunpack.c.l.b16 %v4634_v46  ;;  %v7099_v31 = vld [vmem:[%s9209_s1 + $0x1c0] sm:$0xff] }
 0x26e   : > { %4503 = vmatmul.bf16.gmra.mxu2 %v4432_v63  ;;  %v3711_v28 = vsel %vm1127_vm2, %v8906_v40, %v8971_v61  ;;  %v4554_v17 = vsel %vm1944_vm5, %v4551_v38, %v4553_v43  ;;  %5071 = vmatpush.bf16.msrb.mxu1 %v7099_v31 }
 0x26f   : > { %4614 = vmatmul.bf16.vlgmr.msra.gmra.mxu3 %v4552_v19  ;;  %v7082_v19 = vld [vmem:[%s9209_s1 + $0x140] sm:$0xff]  ;;  %v4670_v8 = vsel %vm2466_vm6, %v4661_v14, %v8975_v7  ;;  %v4653_v40 = vpack.c.b16 %v8977_v55, %v7218_v20 }
 0x270   : > { %4834 = vmatpush.bf16.msrb.mxu3 %v7084_v52  ;;  %v3715_v52 = vrot.slane %v3713_v4, 1 }
 0x271   : > { %v3330_v51 = vpop.f32.mrf.mxu2  ;;  %v2972_v12 = vpop.f32.mrf.mxu0  ;;  %v4672_v38 = vshrl.u32 %v4653_v40, 16  ;;  %v4675_v24 = vshll.u32 %v4653_v40, 16 }
 0x272   : > { %v3538_v63 = vpop.f32.mrf.mxu3  ;;  %v3358_v11 = vadd.f32 %v3330_v51, %v3202_v6  ;;  %v3176_v22 = vpop.f32.mrf.mxu1  ;;  %v2999_v49 = vadd.f32 %v2972_v12, %v8533_v21  ;;  %v7110_v21 = vld [vmem:[%s9209_s1 + $0x218] sm:$0xff] }
 0x273   : > { %5172 = vmatpush.bf16.msrb.mxu2 %v7110_v21  ;;  %v4677_v13 = vrot.slane %v4675_v24, 4 }
 0x274   : > { %v8956_v16 = vadd.f32 %v3538_v63, %v3358_v11  ;;  %v3203_v62 = vadd.f32 %v3176_v22, %v2999_v49  ;;  %4835 = vmatpush.bf16.msrb.mxu3 %v7083_v39  ;;  %v3718_v11 = vrot.slane %v3716_v1, 2  ;;  %v4674_v22 = vrot.slane %v4672_v38, 3  ;;  %v7091_v49 = vld [vmem:[%s9209_s1 + $0x180] sm:$0xff] }
 0x275   : > { %4949 = vmatpush.bf16.msrb.mxu0 %v7091_v49 }
 0x276   : > { %v3719_v46 = vor.u32 %v3718_v11, %v3715_v52  ;;  %v4993_v52 = vshll.u32 %v8929_v26, 16  ;;  %v9049_v11 = vld [vmem:[%s7497_s6 + $0x98] sm:$0xff] }
 0x278   : > { %4836 = vmatpush.bf16.msrb.mxu3 %v7082_v19  ;;  %v3720_v19 = vsel %vm1127_vm2, %v8971_v61, %v3719_v46 }
 0x279   : > { %v3332_v18 = vpop.f32.mrf.mxu2  ;;  %v2975_v45 = vpop.f32.mrf.mxu0 }
 0x27a   : > { %v3540_v36 = vpop.f32.mrf.mxu3  ;;  %v3359_v0 = vadd.f32 %v3332_v18, %v3203_v62  ;;  %v3179_v6 = vpop.f32.mrf.mxu1  ;;  %v3000_v2 = vadd.f32 %v2975_v45, %v8554_v29  ;;  %v7109_v29 = vld [vmem:[%s9209_s1 + $0x210] sm:$0xff]  ;;  %v4678_v62 = vor.u32 %v4677_v13, %v4674_v22  ;;  %v3640_v45 = vunpack.c.l.b16 %v3590_v58 }
 0x27b   : > { %5173 = vmatpush.bf16.msrb.mxu2 %v7109_v29  ;;  %v7264_v22 = vld [vmem:[%s7497_s6 + $0x90] sm:$0xe] }
 0x27c   : > { %v9002_v54 = vadd.f32 %v3540_v36, %v3359_v0  ;;  %v3204_v47 = vadd.f32 %v3179_v6, %v3000_v2  ;;  %3815 = vmatmul.bf16.gmra.mxu0 %v3711_v28  ;;  %v4679_v28 = vsel %vm2466_vm6, %v8975_v7, %v4678_v62  ;;  %v3649_v61 = vpack.c.b16 %v3640_v45, %v3640_v45 }
 0x27d   : > { %3973 = vmatmul.bf16.gmra.mxu1 %v3879_v3  ;;  %v5113_v45 = vrot.slane %v9049_v11, 1 }
 0x27e   : > { %4739 = vmatmul.bf16.vlgmr.msra.gmra.mxu2 %v4670_v8  ;;  %v3882_v4 = vrot.slane %v3649_v61, 2 }
 0x27f   : > { %4619 = vmatmul.bf16.gmra.mxu3 %v4554_v17  ;;  %5174 = vmatpush.bf16.msrb.mxu2 %v7108_v5  ;;  %v7252_v5 = vld [vmem:[%s8253_s26 + $0x48] sm:$0xff]  }
 0x281   : > { %v3335_v20 = vpop.f32.mrf.mxu2  ;;  %v2977_v63 = vpop.f32.mrf.mxu0 }
 0x282   : > { %v3543_v30 = vpop.f32.mrf.mxu3  ;;  %v3360_v51 = vadd.f32 %v3335_v20, %v3204_v47  ;;  %v3181_v25 = vpop.f32.mrf.mxu1  ;;  %v3001_v12 = vadd.f32 %v2977_v63, %v8589_v53  ;;  %v3880_v53 = vrot.slane %v8991_v32, 2 }
 0x283   : > { %5175 = vmatpush.bf16.msrb.mxu2 %v7107_v59  ;;  %v4998_v59 = vshll.u32 %v9049_v11, 16 }
 0x284   : > { %v9010_v44 = vadd.f32 %v3543_v30, %v3360_v51  ;;  %v3205_v48 = vadd.f32 %v3181_v25, %v3001_v12  ;;  %v3881_v0 = vsel %vm1346_vm3, %v3878_v35, %v3880_v53  ;;  %v3883_v30 = vsel %vm1346_vm3, %v3880_v53, %v3882_v4  ;;  %v7260_v51 = vld [vmem:[%s7497_s6 + $0x88] sm:$0xff]   ;;  %v7263_v12 = vld [vmem:[%s7497_s6 + $0x90] sm:$0xf0] }
 0x285   : > { %v4995_v53 = vrot.slane %v4993_v52, 1  ;;  %v7265_v58 = vor.u32 %v7264_v22, %v7263_v12 }
 0x289   : > { %v3337_v21 = vpop.f32.mrf.mxu2  ;;  %v2980_v18 = vpop.f32.mrf.mxu0 }
 0x28a   : > { %v3545_v39 = vpop.f32.mrf.mxu3  ;;  %v3361_v14 = vadd.f32 %v3337_v21, %v3205_v48  ;;  %v3184_v36 = vpop.f32.mrf.mxu1  ;;  %v3002_v6 = vadd.f32 %v2980_v18, %v8613_v60  ;;  %v3722_v60 = vshll.u32 %v3649_v61, 16 }
 0x28c   : > { %v9034_v3 = vadd.f32 %v3545_v39, %v3361_v14  ;;  %v3206_v32 = vadd.f32 %v3184_v36, %v3002_v6  ;;  %3820 = vmatmul.bf16.gmra.mxu0 %v3720_v19  ;;  %v3724_v29 = vrot.slane %v3722_v60, 2  ;;  %v7181_v39 = vunpack.c.l.bf16 %v7252_v5  ;;  %v4970_v6 = vld [vmem:[%s7497_s6 + $0xa0] sm:$0x7] }
 0x28d   : > { %3978 = vmatmul.bf16.gmra.mxu1 %v3881_v0  ;;  %v7182_v14 = vunpack.c.h.bf16 %v7252_v5  ;;  %v5000_v19 = vrot.slane %v4998_v59, 1  ;;  %v5112_v0 = vrot.slane %v7265_v58, 1  ;;  %v4988_v60 = vunpack.c.l.b16 %v4970_v6 }
 0x28e   : > { %4744 = vmatmul.bf16.gmra.mxu2 %v4679_v28  ;;  %v3725_v20 = vsel %vm1127_vm2, %v3719_v46, %v3724_v29  ;;  %v4991_v46 = vshrl.u32 %v8929_v26, 16  ;;  %v4054_v28 = vrot.slane %v7181_v39, 1 }
 0x28f   : > { %4624 = vmatmul.bf16.gmra.mxu3 %v4553_v43 }
 0x290   : > { %v4996_v36 = vor.u32 %v4995_v53, %v4991_v46 }
 0x291   : > { %v3340_v33 = vpop.f32.mrf.mxu2  ;;  %v2982_v17 = vpop.f32.mrf.mxu0 }
 0x292   : > { %v3548_v2 = vpop.f32.mrf.mxu3  ;;  %v3362_v35 = vadd.f32 %v3340_v33, %v3206_v32  ;;  %v3186_v8 = vpop.f32.mrf.mxu1  ;;  %v3003_v40 = vadd.f32 %v2982_v17, %v8646_v27  ;;  %v4055_v32 = vrot.slane %v7182_v14, 1 }
 0x294   : > { %v9039_v7 = vadd.f32 %v3548_v2, %v3362_v35  ;;  %v3207_v47 = vadd.f32 %v3186_v8, %v3003_v40  ;;  %v7253_v2 = vld [vmem:[%s8253_s26 + $0x50] sm:$0xff]   ;;  %v5001_v8 = vsel %vm498_vm0, %v4996_v36, %v5000_v19  ;;  %v4056_v4 = vsel %vm704_vm1, %v4054_v28, %v4055_v32 }
 0x295   : > { %v7186_v22 = vunpack.c.h.bf16 %v7253_v2 }
 0x299   : > { %v3342_v1 = vpop.f32.mrf.mxu2  ;;  %v2985_v38 = vpop.f32.mrf.mxu0 }
 0x29a   : > { %v3550_v10 = vpop.f32.mrf.mxu3  ;;  %v3363_v43 = vadd.f32 %v3342_v1, %v3207_v47  ;;  %v3189_v24 = vpop.f32.mrf.mxu1  ;;  %v3004_v27 = vadd.f32 %v2985_v38, %v8674_v50  ;;  %v5114_v47 = vsel %vm704_vm1, %v5112_v0, %v5113_v45  ;;  %v7185_v1 = vunpack.c.l.bf16 %v7253_v2 }
 0x29c   : > { %v9045_v63 = vadd.f32 %v3550_v10, %v3363_v43  ;;  %v3208_v25 = vadd.f32 %v3189_v24, %v3004_v27  ;;  %3825 = vmatmul.bf16.gmra.mxu0 %v3725_v20  ;;  %v9070_v43 = vpack.c.b16 %v4988_v60, %v4988_v60  ;;  %v4057_v24 = vrot.slane %v7185_v1, 1 }
 0x29d   : > { %3983 = vmatmul.bf16.gmra.mxu1 %v3883_v30 }
 0x29e   : > { %4749 = vmatmul.bf16.gmra.mxu2 %v4678_v62  ;;  %v5006_v52 = vshll.u32 %v9070_v43, 16 }
 0x29f   : > { %4837 = vmatmul.bf16.vlgmr.msrb.gmra.mxu3 %v7260_v51 }
 0x2a0   : > { %v5008_v5 = vrot.slane %v5006_v52, 1 }
 0x2a1   : > { %v3345_v13 = vpop.f32.mrf.mxu2  ;;  %v2987_v50 = vpop.f32.mrf.mxu0 }
 0x2a2   : > { %v3553_v49 = vpop.f32.mrf.mxu3  ;;  %v3364_v48 = vadd.f32 %v3345_v13, %v3208_v25  ;;  %v3191_v31 = vpop.f32.mrf.mxu1  ;;  %v3005_v62 = vadd.f32 %v2987_v50, %v8715_v57  ;;  %v5002_v25 = vshrl.u32 %v9049_v11, 16  ;;  %v5115_v50 = vrot.slane %v9070_v43, 1 }
 0x2a4   : > { %v9057_v21 = vadd.f32 %v3553_v49, %v3364_v48  ;;  %v3209_v18 = vadd.f32 %v3191_v31, %v3005_v62  ;;  %v5004_v49 = vor.u32 %v5002_v25, %v5000_v19  ;;  %v4059_v31 = vrot.slane %v7186_v22, 1  ;;  %v7254_v62 = vld [vmem:[%s8253_s26 + $0x58] sm:$0xff]   ;;  %v7255_v25 = vld [vmem:[%s8253_s26 + $0x60] sm:$0xff]  }
 0x2a5   : > { %v5116_v36 = vsel %vm704_vm1, %v5113_v45, %v5115_v50  ;;  %v7189_v0 = vunpack.c.l.bf16 %v7254_v62  ;;  %v7190_v60 = vunpack.c.h.bf16 %v7254_v62 }
 0x2a6   : > { %v5009_v14 = vsel %vm498_vm0, %v5004_v49, %v5008_v5  ;;  %v4060_v19 = vsel %vm704_vm1, %v4057_v24, %v4059_v31 }
 0x2a7   : > { %v4061_v45 = vrot.slane %v7189_v0, 1 }
 0x2a9   : > { %v3347_v61 = vpop.f32.mrf.mxu2  ;;  %v3791_v17 = vpop.f32.mrf.mxu0 }
 0x2aa   : > { %v3555_v33 = vpop.f32.mrf.mxu3  ;;  %v3365_v35 = vadd.f32 %v3347_v61, %v3209_v18  ;;  %v3949_v57 = vpop.f32.mrf.mxu1  ;;  %v3831_v40 = vadd.f32 %v3791_v17, %v8733_v56 }
 0x2ac   : > { %v9065_v29 = vadd.f32 %v3555_v33, %v3365_v35  ;;  %v3989_v10 = vadd.f32 %v3949_v57, %v3831_v40  ;;  %4950 = vmatmul.bf16.vlgmr.msrb.gmra.mxu0 %v8929_v26  ;;  %v4861_v57 = vld [vmem:[%s7497_s6 + $0xa0] sm:$0x3] }
 0x2ad   : > { %5072 = vmatmul.bf16.vlgmr.msrb.gmra.mxu1 %v5001_v8  ;;  %v4062_v8 = vsel %vm704_vm1, %v4059_v31, %v4061_v45 }
 0x2ae   : > { %5176 = vmatmul.bf16.vlgmr.msrb.gmra.mxu2 %v5114_v47  ;;  %v4101_v38 = vadd.f32 %v4056_v4, %v3989_v10  ;;  %v4887_v47 = vunpack.c.l.b16 %v4861_v57  ;;  %v5010_v4 = vshrl.u32 %v9070_v43, 16  ;;  %v7193_v43 = vunpack.c.l.bf16 %v7255_v25 }
 0x2af   : > { %4842 = vmatmul.bf16.gmra.mxu3 %v8929_v26  ;;  %v4058_v26 = vsel %vm704_vm1, %v4055_v32, %v4057_v24 }
 0x2b0   : > { %v4117_v56 = vmax.f32 %v4101_v38, 0.0  ;;  %v4063_v38 = vrot.slane %v7190_v60, 1  ;;  %v4065_v31 = vrot.slane %v7193_v43, 1 }
 0x2b1   : > { %v4248_v20 = vpop.f32.mrf.mxu2  ;;  %v3793_v27 = vpop.f32.mrf.mxu0 }
 0x2b2   : > { %v9072_v30 = vpop.f32.mrf.mxu3  ;;  %v3951_v51 = vpop.f32.mrf.mxu1  ;;  %4133 = vst [vmem:[%s8303_s9 + $0x7e] sm:$0xff] %v4117_v56  ;;  %v3832_v12 = vadd.f32 %v3793_v27, %v8778_v37  ;;  %v4777_v37 = vpack.c.b16 %v8977_v55, %v8977_v55  ;;  %v9092_v55 = vld [vmem:[%s9210_s2] ss:$0 sm:$0xff]  ;;  %v4890_v27 = vpack.c.b16 %v4887_v47, %v4887_v47  ;;  %v4064_v22 = vsel %vm704_vm1, %v4061_v45, %v4063_v38 }
 0x2b4   : > { %v3990_v13 = vadd.f32 %v3951_v51, %v3832_v12  ;;  %v5012_v51 = vor.u32 %v5010_v4, %v5008_v5 }
 0x2b6   : > { %v4102_v48 = vadd.f32 %v4058_v26, %v3990_v13 }
 0x2b8   : > { %v4118_v46 = vmax.f32 %v4102_v48, 0.0 }
 0x2b9   : > { %v4250_v53 = vpop.f32.mrf.mxu2  ;;  %v3796_v58 = vpop.f32.mrf.mxu0 }
 0x2ba   : > { %v4260_v59 = vpop.f32.mrf.mxu3  ;;  %v3954_v39 = vpop.f32.mrf.mxu1  ;;  %4134 = vst [vmem:[%s8303_s9 + $0x86] sm:$0xff] %v4118_v46  ;;  %v3833_v18 = vadd.f32 %v3796_v58, %v8800_v15  ;;  %v4262_v15 = vadd.f32 %v9092_v55, %v4248_v20  ;;  %v4263_v10 = vadd.f32 %v9092_v55, %v4250_v53 }
 0x2bc   : > { %v3991_v6 = vadd.f32 %v3954_v39, %v3833_v18  ;;  %4955 = vmatmul.bf16.gmra.mxu0 %v9049_v11 }
 0x2bd   : > { %5077 = vmatmul.bf16.gmra.mxu1 %v5009_v14 }
 0x2be   : > { %5181 = vmatmul.bf16.gmra.mxu2 %v5116_v36  ;;  %v4103_v28 = vadd.f32 %v4060_v19, %v3991_v6 }
 0x2bf   : > { %4847 = vmatmul.bf16.gmra.mxu3 %v4777_v37  ;;  %v4066_v37 = vsel %vm704_vm1, %v4063_v38, %v4065_v31 }
 0x2c0   : > { %v4119_v32 = vmax.f32 %v4103_v28, 0.0 }
 0x2c1   : > { %v4253_v61 = vpop.f32.mrf.mxu2  ;;  %v3798_v35 = vpop.f32.mrf.mxu0 }
 0x2c2   : > { %v4390_v33 = vpop.f32.mrf.mxu3  ;;  %v3956_v17 = vpop.f32.mrf.mxu1  ;;  %4135 = vst [vmem:[%s8303_s9 + $0x8e] sm:$0xff] %v4119_v32  ;;  %v3834_v11 = vadd.f32 %v3798_v35, %v8834_v23  ;;  %v4264_v48 = vadd.f32 %v9092_v55, %v4253_v61 }
 0x2c3   : > { %v4404_v2 = vadd.f32 %v4390_v33, %v4262_v15  ;;  %v7256_v15 = vld [vmem:[%s8253_s26 + $0x68] sm:$0xff]  }
 0x2c4   : > { %v3992_v40 = vadd.f32 %v3956_v17, %v3834_v11  ;;  %v7197_v35 = vunpack.c.l.bf16 %v7256_v15  ;;  %v4266_v11 = vadd.f32 %v9092_v55, %v9072_v30 }
 0x2c6   : > { %v4104_v1 = vadd.f32 %v4062_v8, %v3992_v40  ;;  %v4069_v8 = vrot.slane %v7197_v35, 1 }
 0x2c8   : > { %v4120_v24 = vmax.f32 %v4104_v1, 0.0 }
 0x2c9   : > { %v4255_v56 = vpop.f32.mrf.mxu2  ;;  %v3801_v23 = vpop.f32.mrf.mxu0 }
 0x2ca   : > { %v4392_v20 = vpop.f32.mrf.mxu3  ;;  %v3959_v12 = vpop.f32.mrf.mxu1  ;;  %4136 = vst [vmem:[%s8303_s9 + $0x96] sm:$0xff] %v4120_v24  ;;  %v3835_v26 = vadd.f32 %v3801_v23, %v8842_v42  ;;  %v4265_v36 = vadd.f32 %v9092_v55, %v4255_v56  ;;  %v7198_v56 = vunpack.c.h.bf16 %v7256_v15 }
 0x2cb   : > { %v4405_v52 = vadd.f32 %v4392_v20, %v4263_v10 }
 0x2cc   : > { %v3993_v13 = vadd.f32 %v3959_v12, %v3835_v26  ;;  %4960 = vmatmul.bf16.gmra.mxu0 %v4890_v27  ;;  %v4071_v30 = vrot.slane %v7198_v56, 1 }
 0x2cd   : > { %5082 = vmatmul.bf16.gmra.mxu1 %v5012_v51 }
 0x2ce   : > { %5186 = vmatmul.bf16.gmra.mxu2 %v5115_v50  ;;  %v4105_v49 = vadd.f32 %v4064_v22, %v3993_v13  ;;  %v7194_v50 = vunpack.c.h.bf16 %v7255_v25 }
 0x2d0   : > { %v4121_v5 = vmax.f32 %v4105_v49, 0.0  ;;  %v4067_v19 = vrot.slane %v7194_v50, 1 }
 0x2d1   : > { %v4494_v53 = vpop.f32.mrf.mxu2  ;;  %v3803_v42 = vpop.f32.mrf.mxu0 }
 0x2d2   : > { %v4395_v46 = vpop.f32.mrf.mxu3  ;;  %v9106_v62 = vadd.f32 %v4494_v53, %v4404_v2  ;;  %v3961_v58 = vpop.f32.mrf.mxu1  ;;  %4137 = vst [vmem:[%s8303_s9 + $0x9e] sm:$0xff] %v4121_v5  ;;  %v3836_v39 = vadd.f32 %v3803_v42, %v8872_v41  ;;  %v4068_v2 = vsel %vm704_vm1, %v4065_v31, %v4067_v19  ;;  %v4070_v24 = vsel %vm704_vm1, %v4067_v19, %v4069_v8 }
 0x2d3   : > { %v4406_v59 = vadd.f32 %v4395_v46, %v4264_v48 }
 0x2d4   : > { %v3994_v14 = vadd.f32 %v3961_v58, %v3836_v39 }
 0x2d6   : > { %v4106_v18 = vadd.f32 %v4066_v37, %v3994_v14 }
 0x2d8   : > { %v4122_v0 = vmax.f32 %v4106_v18, 0.0 }
 0x2d9   : > { %v4496_v28 = vpop.f32.mrf.mxu2  ;;  %v3806_v61 = vpop.f32.mrf.mxu0 }
 0x2da   : > { %v4397_v6 = vpop.f32.mrf.mxu3  ;;  %v9113_v32 = vadd.f32 %v4496_v28, %v4405_v52  ;;  %v3964_v33 = vpop.f32.mrf.mxu1  ;;  %4138 = vst [vmem:[%s8303_s9 + $0xa6] sm:$0xff] %v4122_v0  ;;  %v3837_v41 = vadd.f32 %v3806_v61, %v8892_v9  ;;  %v7257_v52 = vld [vmem:[%s8253_s26 + $0x70] sm:$0xff]   ;;  %v7258_v0 = vld [vmem:[%s8253_s26 + $0x78] sm:$0xff]  }
 0x2db   : > { %v4407_v45 = vadd.f32 %v4397_v6, %v4265_v36  ;;  %v7201_v43 = vunpack.c.l.bf16 %v7257_v52  ;;  %v7202_v39 = vunpack.c.h.bf16 %v7257_v52 }
 0x2dc   : > { %v3995_v17 = vadd.f32 %v3964_v33, %v3837_v41 }
 0x2dd   : > { %v4073_v48 = vrot.slane %v7201_v43, 1  ;;  %v4075_v14 = vrot.slane %v7202_v39, 1 }
 0x2de   : > { %v4107_v57 = vadd.f32 %v4068_v2, %v3995_v17 }
 0x2e0   : > { %v4123_v60 = vmax.f32 %v4107_v57, 0.0 }
 0x2e1   : > { %v4499_v47 = vpop.f32.mrf.mxu2  ;;  %v3808_v10 = vpop.f32.mrf.mxu0 }
 0x2e2   : > { %v4400_v40 = vpop.f32.mrf.mxu3  ;;  %v9120_v1 = vadd.f32 %v4499_v47, %v4406_v59  ;;  %v3966_v38 = vpop.f32.mrf.mxu1  ;;  %4139 = vst [vmem:[%s8303_s9 + $0xae] sm:$0xff] %v4123_v60  ;;  %v3838_v9 = vadd.f32 %v3808_v10, %v8932_v34  ;;  %v4072_v34 = vsel %vm704_vm1, %v4069_v8, %v4071_v30 }
 0x2e3   : > { %v4408_v4 = vadd.f32 %v4400_v40, %v4266_v11 }
 0x2e4   : > { %v3996_v20 = vadd.f32 %v3966_v38, %v3838_v9 }
 0x2e6   : > { %v4108_v27 = vadd.f32 %v4070_v24, %v3996_v20  ;;  %v7259_v24 = vld [vmem:[%s8253_s26 + $0x80] sm:$0xff]  }
 0x2e8   : > { %v4124_v55 = vmax.f32 %v4108_v27, 0.0 }
 0x2e9   : > { %v4501_v25 = vpop.f32.mrf.mxu2  ;;  %v3811_v12 = vpop.f32.mrf.mxu0 }
 0x2ea   : > { %v4402_v51 = vpop.f32.mrf.mxu3  ;;  %v9126_v23 = vadd.f32 %v4501_v25, %v4407_v45  ;;  %v3969_v26 = vpop.f32.mrf.mxu1  ;;  %4140 = vst [vmem:[%s8303_s9 + $0xb6] sm:$0xff] %v4124_v55  ;;  %v3839_v22 = vadd.f32 %v3811_v12, %v8956_v16  ;;  %v4074_v16 = vsel %vm704_vm1, %v4071_v30, %v4073_v48  ;;  %v4076_v45 = vsel %vm704_vm1, %v4073_v48, %v4075_v14 }
 0x2ec   : > { %v3997_v13 = vadd.f32 %v3969_v26, %v3839_v22 }
 0x2ee   : > { %v4109_v49 = vadd.f32 %v4072_v34, %v3997_v13 }
 0x2f0   : > { %v4125_v31 = vmax.f32 %v4109_v49, 0.0 }
 0x2f1   : > { %v4504_v5 = vpop.f32.mrf.mxu2  ;;  %v3813_v59 = vpop.f32.mrf.mxu0 }
 0x2f2   : > { %v9131_v46 = vpop.f32.mrf.mxu3  ;;  %v9133_v53 = vadd.f32 %v4504_v5, %v4408_v4  ;;  %v3971_v42 = vpop.f32.mrf.mxu1  ;;  %4141 = vst [vmem:[%s8303_s9 + $0xbe] sm:$0xff] %v4125_v31  ;;  %v3840_v58 = vadd.f32 %v3813_v59, %v9002_v54  ;;  %v7205_v54 = vunpack.c.l.bf16 %v7258_v0 }
 0x2f4   : > { %v3998_v37 = vadd.f32 %v3971_v42, %v3840_v58  ;;  %v4077_v41 = vrot.slane %v7205_v54, 1  ;;  %v5196_v54 = vld [vmem:[%s8253_s26 + $0x84] sm:$0x8] }
 0x2f6   : > { %v4110_v50 = vadd.f32 %v4074_v16, %v3998_v37  ;;  %v4078_v60 = vsel %vm704_vm1, %v4075_v14, %v4077_v41 }
 0x2f8   : > { %v4126_v18 = vmax.f32 %v4110_v50, 0.0 }
 0x2f9   : > { %v4506_v36 = vpop.f32.mrf.mxu2  ;;  %v3816_v6 = vpop.f32.mrf.mxu0 }
 0x2fa   : > { %v9138_v19 = vpop.f32.mrf.mxu3  ;;  %v3974_v28 = vpop.f32.mrf.mxu1  ;;  %4142 = vst [vmem:[%s8303_s9 + $0xc6] sm:$0xff] %v4126_v18  ;;  %v3841_v15 = vadd.f32 %v3816_v6, %v9010_v44  ;;  %v7206_v44 = vunpack.c.h.bf16 %v7258_v0 }
 0x2fc   : > { %v3999_v61 = vadd.f32 %v3974_v28, %v3841_v15  ;;  %v4079_v4 = vrot.slane %v7206_v44, 1 }
 0x2fe   : > { %v4111_v33 = vadd.f32 %v4076_v45, %v3999_v61  ;;  %v4080_v30 = vsel %vm704_vm1, %v4077_v41, %v4079_v4  ;;  %v4629_v45 = vadd.f32 %v9131_v46, %v9106_v62 }
 0x300   : > { %v4127_v2 = vmax.f32 %v4111_v33, 0.0 }
 0x301   : > { %v4740_v17 = vpop.f32.mrf.mxu2  ;;  %v3818_v57 = vpop.f32.mrf.mxu0 }
 0x302   : > { %v9144_v35 = vpop.f32.mrf.mxu3  ;;  %v3976_v11 = vpop.f32.mrf.mxu1  ;;  %4143 = vst [vmem:[%s8303_s9 + $0xce] sm:$0xff] %v4127_v2  ;;  %v3842_v8 = vadd.f32 %v3818_v57, %v9034_v3  ;;  %v7209_v3 = vunpack.c.l.bf16 %v7259_v24  ;;  %v4754_v33 = vadd.f32 %v4740_v17, %v4629_v45 }
 0x304   : > { %v4000_v40 = vadd.f32 %v3976_v11, %v3842_v8  ;;  %v4081_v25 = vrot.slane %v7209_v3, 1  ;;  %v5202_v8 = vunpack.c.l.bf16 %v5196_v54 }
 0x306   : > { %v4112_v47 = vadd.f32 %v4078_v60, %v4000_v40  ;;  %v4082_v13 = vsel %vm704_vm1, %v4079_v4, %v4081_v25  ;;  %v5215_v4 = vrot.slane %v5202_v8, 7 }
 0x308   : > { %v4128_v10 = vmax.f32 %v4112_v47, 0.0 }
 0x309   : > { %v4742_v9 = vpop.f32.mrf.mxu2  ;;  %v3821_v56 = vpop.f32.mrf.mxu0 }
 0x30a   : > { %v9149_v38 = vpop.f32.mrf.mxu3  ;;  %v3979_v20 = vpop.f32.mrf.mxu1  ;;  %4144 = vst [vmem:[%s8303_s9 + $0xd6] sm:$0xff] %v4128_v10  ;;  %v3843_v27 = vadd.f32 %v3821_v56, %v9039_v7  ;;  %v7210_v7 = vunpack.c.h.bf16 %v7259_v24  ;;  %v4630_v10 = vadd.f32 %v9138_v19, %v9113_v32  ;;  %v4631_v32 = vadd.f32 %v9144_v35, %v9120_v1 }
 0x30b   : > { %v4632_v1 = vadd.f32 %v9149_v38, %v9126_v23 }
 0x30c   : > { %v4001_v55 = vadd.f32 %v3979_v20, %v3843_v27  ;;  %v4083_v31 = vrot.slane %v7210_v7, 1  ;;  %v4755_v62 = vadd.f32 %v4742_v9, %v4630_v10 }
 0x30e   : > { %v4113_v51 = vadd.f32 %v4080_v30, %v4001_v55 }
 0x310   : > { %v4129_v52 = vmax.f32 %v4113_v51, 0.0 }
 0x311   : > { %v9157_v26 = vpop.f32.mrf.mxu2  ;;  %v3823_v22 = vpop.f32.mrf.mxu0 }
 0x312   : > { %v9155_v12 = vpop.f32.mrf.mxu3  ;;  %v3981_v34 = vpop.f32.mrf.mxu1  ;;  %4145 = vst [vmem:[%s8303_s9 + $0xde] sm:$0xff] %v4129_v52  ;;  %v3844_v43 = vadd.f32 %v3823_v22, %v9045_v63  ;;  %v4084_v63 = vsel %vm704_vm1, %v4081_v25, %v4083_v31  ;;  %v7267_v22 = vld [vmem:[%s8253_s26 + $0x90] sm:$0xff]   ;;  %v4756_v9 = vadd.f32 %v9157_v26, %v4631_v32 }
 0x313   : > { %v4633_v23 = vadd.f32 %v9155_v12, %v9133_v53 }
 0x314   : > { %v4002_v49 = vadd.f32 %v3981_v34, %v3844_v43 }
 0x316   : > { %v4114_v48 = vadd.f32 %v4082_v13, %v4002_v49  ;;  %v7229_v49 = vunpack.c.l.bf16 %v7267_v22 }
 0x318   : > { %v4130_v5 = vmax.f32 %v4114_v48, 0.0 }
 0x319   : > { %v9162_v42 = vpop.f32.mrf.mxu2  ;;  %v3826_v58 = vpop.f32.mrf.mxu0 }
 0x31a   : > { %v4627_v59 = vpop.f32.mrf.mxu3  ;;  %v3984_v16 = vpop.f32.mrf.mxu1  ;;  %4146 = vst [vmem:[%s8303_s9 + $0xe6] sm:$0xff] %v4130_v5  ;;  %v3845_v39 = vadd.f32 %v3826_v58, %v9057_v21  ;;  %v7266_v21 = vld [vmem:[%s8253_s26 + $0x88] sm:$0xff]   ;;  %v4757_v26 = vadd.f32 %v9162_v42, %v4632_v1  ;;  %v5201_v42 = vld [vmem:[%s8253_s26 + $0x98] sm:$0x3] }
 0x31b   : > { %v7225_v11 = vunpack.c.l.bf16 %v7266_v21  ;;  %v7226_v20 = vunpack.c.h.bf16 %v7266_v21 }
 0x31c   : > { %v4003_v37 = vadd.f32 %v3984_v16, %v3845_v39  ;;  %v5220_v39 = vrot.slane %v7229_v49, 7 }
 0x31d   : > { %v5218_v52 = vrot.slane %v7226_v20, 7 }
 0x31e   : > { %v4115_v50 = vadd.f32 %v4084_v63, %v4003_v37 }
 0x320   : > { %v4131_v14 = vmax.f32 %v4115_v50, 0.0 }
 0x321   : > { %v9167_v18 = vpop.f32.mrf.mxu2  ;;  %v3828_v0 = vpop.f32.mrf.mxu0 }
 0x322   : > { %v4838_v36 = vpop.f32.mrf.mxu3  ;;  %v3986_v6 = vpop.f32.mrf.mxu1  ;;  %4147 = vst [vmem:[%s8303_s9 + $0xee] sm:$0xff] %v4131_v14  ;;  %v3846_v28 = vadd.f32 %v3828_v0, %v9065_v29  ;;  %v5216_v29 = vrot.slane %v7225_v11, 7  ;;  %v5221_v14 = vsel %vm5214_vm7, %v5218_v52, %v5220_v39  ;;  %v5207_v11 = vunpack.c.l.bf16 %v5201_v42 }
 0x323   : > { %v4852_v60 = vadd.f32 %v4838_v36, %v4754_v33  ;;  %v7230_v36 = vunpack.c.h.bf16 %v7267_v22 }
 0x324   : > { %v4004_v15 = vadd.f32 %v3986_v6, %v3846_v28  ;;  %v5217_v56 = vsel %vm5214_vm7, %v5215_v4, %v5216_v29  ;;  %v5219_v7 = vsel %vm5214_vm7, %v5216_v29, %v5218_v52  ;;  %v5224_v53 = vrot.slane %v5207_v11, 7 }
 0x325   : > { %v5222_v21 = vrot.slane %v7230_v36, 7 }
 0x326   : > { %v4116_v61 = vadd.f32 %v4083_v31, %v4004_v15 }
 0x328   : > { %v4132_v41 = vmax.f32 %v4116_v61, 0.0  ;;  %v4758_v61 = vadd.f32 %v9167_v18, %v4633_v23  ;;  %v5225_v18 = vsel %vm5214_vm7, %v5222_v21, %v5224_v53 }
 0x329   : > { %v4752_v2 = vpop.f32.mrf.mxu2  ;;  %v4951_v44 = vpop.f32.mrf.mxu0 }
 0x32a   : > { %v4840_v57 = vpop.f32.mrf.mxu3  ;;  %v5073_v40 = vpop.f32.mrf.mxu1  ;;  %4148 = vst [vmem:[%s8303_s9 + $0xf6] sm:$0x3f] %v4132_v41  ;;  %v4965_v47 = vadd.f32 %v4951_v44, %v4852_v60  ;;  %v5223_v2 = vsel %vm5214_vm7, %v5220_v39, %v5222_v21 }
 0x32b   : > { %v4853_v27 = vadd.f32 %v4840_v57, %v4755_v62 }
 0x32c   : > { %v5087_v46 = vadd.f32 %v5073_v40, %v4965_v47 }
 0x331   : > { %v5177_v24 = vpop.f32.mrf.mxu2  ;;  %v4953_v3 = vpop.f32.mrf.mxu0 }
 0x332   : > { %v4843_v17 = vpop.f32.mrf.mxu3  ;;  %v5191_v30 = vadd.f32 %v5177_v24, %v5087_v46  ;;  %v5075_v55 = vpop.f32.mrf.mxu1  ;;  %v4966_v25 = vadd.f32 %v4953_v3, %v4853_v27 }
 0x333   : > { %v4854_v48 = vadd.f32 %v4843_v17, %v4756_v9 }
 0x334   : > { %v5231_v51 = vadd.f32 %v5217_v56, %v5191_v30  ;;  %v5088_v34 = vadd.f32 %v5075_v55, %v4966_v25 }
 0x336   : > { %v5236_v19 = vmax.f32 %v5231_v51, 0.0 }
 0x338   : > { %5241 = vst [vmem:[%s8303_s9 + $0xfc] sm:$0xff] %v5236_v19 }
 0x339   : > { %v5179_v13 = vpop.f32.mrf.mxu2  ;;  %v4956_v5 = vpop.f32.mrf.mxu0 }
 0x33a   : > { %v4845_v43 = vpop.f32.mrf.mxu3  ;;  %v5192_v31 = vadd.f32 %v5179_v13, %v5088_v34  ;;  %v5078_v59 = vpop.f32.mrf.mxu1  ;;  %v4967_v16 = vadd.f32 %v4956_v5, %v4854_v48 }
 0x33b   : > { %v4855_v0 = vadd.f32 %v4845_v43, %v4757_v26 }
 0x33c   : > { %v5232_v58 = vadd.f32 %v5219_v7, %v5192_v31  ;;  %v5089_v63 = vadd.f32 %v5078_v59, %v4967_v16 }
 0x33e   : > { %v5237_v35 = vmax.f32 %v5232_v58, 0.0 }
 0x340   : > { %5242 = vst [vmem:[%s8303_s9 + $0x104] sm:$0xff] %v5237_v35 }
 0x341   : > { %v5182_v50 = vpop.f32.mrf.mxu2  ;;  %v4958_v28 = vpop.f32.mrf.mxu0 }
 0x342   : > { %v4848_v37 = vpop.f32.mrf.mxu3  ;;  %v5193_v6 = vadd.f32 %v5182_v50, %v5089_v63  ;;  %v5080_v15 = vpop.f32.mrf.mxu1  ;;  %v4968_v54 = vadd.f32 %v4958_v28, %v4855_v0 }
 0x343   : > { %v4856_v8 = vadd.f32 %v4848_v37, %v4758_v61 }
 0x344   : > { %v5233_v45 = vadd.f32 %v5221_v14, %v5193_v6  ;;  %v5090_v33 = vadd.f32 %v5080_v15, %v4968_v54 }
 0x346   : > { %v5238_v38 = vmax.f32 %v5233_v45, 0.0 }
 0x348   : > { %5243 = vst [vmem:[%s8303_s9 + $0x10c] sm:$0xff] %v5238_v38 }
 0x349   : > { %v5184_v41 = vpop.f32.mrf.mxu2  ;;  %v4961_v44 = vpop.f32.mrf.mxu0 }
 0x34a   : > { %v4850_v57 = vpop.f32.mrf.mxu3  ;;  %v5194_v60 = vadd.f32 %v5184_v41, %v5090_v33  ;;  %v5083_v40 = vpop.f32.mrf.mxu1  ;;  %v4969_v4 = vadd.f32 %v4961_v44, %v4856_v8 }
 0x34c   : > { %v5234_v47 = vadd.f32 %v5223_v2, %v5194_v60  ;;  %v5091_v29 = vadd.f32 %v5083_v40, %v4969_v4 }
 0x34e   : > { %v5239_v12 = vmax.f32 %v5234_v47, 0.0 }
 0x350   : > { %5244 = vst [vmem:[%s8303_s9 + $0x114] sm:$0xff] %v5239_v12 }
 0x351   : > { %v5187_v10 = vpop.f32.mrf.mxu2  ;;  %v4963_v46 = vpop.f32.mrf.mxu0 }
 0x352   : > { %v5195_v62 = vadd.f32 %v5187_v10, %v5091_v29  ;;  %v5085_v17 = vpop.f32.mrf.mxu1 }
 0x354   : > { %v5235_v24 = vadd.f32 %v5225_v18, %v5195_v62 }
 0x356   : > { %v5240_v56 = vmax.f32 %v5235_v24, 0.0 }
 0x358   : > { %5245 = vst [vmem:[%s8303_s9 + $0x11c] sm:$0xf] %v5240_v56 }
 0x359   : > { %v5189_v20 = vpop.f32.mrf.mxu2 }
 0x35a PF: > { %s14_s17 = sadd.s32 1, %s7396_s17   ;;  %s9213_s15 = smov %s7392_s16 }
 0x35b   : > { %p11_p5 = scmp.ge.s32.totalorder %s14_s17, 4   ;;  %s9214_s16 = smov %s9216_s18 }
 0x35d   :  { %13 = sbr.rel (!%p11_p5) target bundleno = 2 (0x2), region = 83 }

// kernel: basic_block_forward.3
= control target key start
LH: loop header
LB: loop body
LE: loop exit
PB: predicated region body
PF: predicated region fallthrough
CT: control target
= control target key end

     0   :  { %s7759_s15 = smov 0   ;;  %s7761_s16 = smov 0   ;;  %s9776_s0 = inlined_call_operand.vmem [shape: bf16[2,342,128], index: 0, kind: input, shape index: {}]   ;;  %s9777_s1 = inlined_call_operand.vmem [shape: bf16[9,128,128], index: 1, kind: input, shape index: {}]   ;;  %s9778_s2 = inlined_call_operand.vmem [shape: f32[1,128], index: 2, kind: input, shape index: {}]   ;;  %s9779_s3 = inlined_call_operand.vmem [shape: f32[288,1], index: 3, kind: input, shape index: {}]   ;;  %s9780_s4 = inlined_call_operand.vmem [shape: bf16[2,342,128], index: 4, kind: output, shape index: {}]  }
   0x1   :  { %s7763_s17 = smov 0  }
   0x2 LB: > { %s26_s18 = sadd.s32 1, %s7727_s16  ;;  %p5792_p0 = scmp.ge.s32.totalorder %s7731_s17, 1  ;;  %s7731_s17 = sphi %s7763_s17, %s14_s17   ;;  %s7727_s16 = sphi %s7761_s16, %s9794_s16   ;;  %s7723_s15 = sphi %s7759_s15, %s9793_s15  }
   0x3   : > { %p28_p1 = scmp.ge.s32.totalorder %s26_s18, 2  ;;  %p193_p2 = scmp.lt.s32.totalorder %s7731_s17, 3 }
   0x5   : > { %s9796_s18 = smov (%p28_p1, %s26_s18), 0  ;;  %p194_p3 = pnand %p5792_p0, %p193_p2 }
   0x6   : > { %p229_p4 = scmp.lt.s32.totalorder (!%p194_p3), %s7723_s15, 1 }
   0x7   : > { %197 = sbr.rel (%p194_p3) target bundleno = 877 (0x36d), region = 36 }
   0xc   : > { %v7274_v0 = vld [vmem:[%s9777_s1 + $0x38] sm:$0xff]  ;;  %v7273_v4 = vld [vmem:[%s9777_s1 + $0x30] sm:$0xff]  ;;  %s9798_s15 = smov (!%p229_p4, %s7723_s15), 1  ;;  %v7272_v8 = vld [vmem:[%s9777_s1 + $0x28] sm:$0xff]  ;;  %vm476_vm0 = vsmask.f32 7424 }
   0xd   : > { %v7282_v1 = vld [vmem:[%s9777_s1 + $0x78] sm:$0xff]  ;;  %387 = vmatpush.bf16.msra.mxu0 %v7274_v0  ;;  %v7281_v5 = vld [vmem:[%s9777_s1 + $0x70] sm:$0xff]  ;;  %v7280_v9 = vld [vmem:[%s9777_s1 + $0x68] sm:$0xff]  ;;  %s7666_s21 = smul.u32 172, %s9798_s15  ;;  %vm682_vm1 = vcmask 1046528   ;;  %vm1324_vm3 = vcmask 1045504  }
   0xe   : > { %v7290_v2 = vld [vmem:[%s9777_s1 + $0xb8] sm:$0xff]  ;;  %596 = vmatpush.bf16.msra.mxu1 %v7282_v1  ;;  %v7289_v6 = vld [vmem:[%s9777_s1 + $0xb0] sm:$0xff]  ;;  %v7288_v10 = vld [vmem:[%s9777_s1 + $0xa8] sm:$0xff]  ;;  %vm1105_vm2 = vsmask.f32 6400  ;;  %vm1922_vm5 = vcmask 1044480  }
   0xf   : > { %v7306_v3 = vld [vmem:[%s9777_s1 + $0xf8] sm:$0xff]  ;;  %754 = vmatpush.bf16.msra.mxu2 %v7290_v2  ;;  %v7305_v7 = vld [vmem:[%s9777_s1 + $0xf0] sm:$0xff]  ;;  %v7304_v11 = vld [vmem:[%s9777_s1 + $0xe8] sm:$0xff]  ;;  %s7833_s6 = scalar_lea.vmem %s9776_s0, %s7666_s21  ;;  %vm1699_vm4 = vsmask.f32 5376  ;;  %s8327_s24 = scalar_lea.vmem %s9780_s4, %s7666_s21  ;;  %vm252_vm7 = vcmask 1041408  }
  0x10   : > { %963 = vmatpush.bf16.msra.mxu3 %v7306_v3  ;;  %v7271_v12 = vld [vmem:[%s9777_s1 + $0x20] sm:$0xff]  ;;  %v7270_v16 = vld [vmem:[%s9777_s1 + $0x18] sm:$0xff]  ;;  %v7269_v21 = vld [vmem:[%s9777_s1 + $0x10] sm:$0xff]  ;;  %vm2644_vm6 = vsmask.f32 4352  ;;  %vm2383_vm10 = vcmask 1043457  }
  0x11   : > { %388 = vmatpush.bf16.msra.mxu0 %v7273_v4  ;;  %v7279_v13 = vld [vmem:[%s9777_s1 + $0x60] sm:$0xff]  ;;  %v7278_v17 = vld [vmem:[%s9777_s1 + $0x58] sm:$0xff]  ;;  %v7277_v22 = vld [vmem:[%s9777_s1 + $0x50] sm:$0xff]  ;;  %vm253_vm8 = vsmask.f32 1280  ;;  %vm2404_vm15 = vcmask 1040384  }
  0x12   : > { %597 = vmatpush.bf16.msra.mxu1 %v7281_v5  ;;  %v7287_v14 = vld [vmem:[%s9777_s1 + $0xa0] sm:$0xff]  ;;  %v7286_v18 = vld [vmem:[%s9777_s1 + $0x98] sm:$0xff]  ;;  %v7855_v24 = vld [vmem:[%s7833_s6 + $0x8] sm:$0xff]  ;;  %vm2384_vm11 = vsmask.f32 7942 }
  0x13   : > { %755 = vmatpush.bf16.msra.mxu2 %v7289_v6  ;;  %v7303_v15 = vld [vmem:[%s9777_s1 + $0xe0] sm:$0xff]  ;;  %v7302_v19 = vld [vmem:[%s9777_s1 + $0xd8] sm:$0xff]  ;;  %v7285_v25 = vld [vmem:[%s9777_s1 + $0x90] sm:$0xff]  ;;  %v485_v35 = vshll.u32 %v7855_v24, 16  ;;  %v684_v48 = vrot.slane %v7855_v24, 1  ;;  %v489_v1 = vshrl.u32 %v7855_v24, 16 }
  0x14   : > { %964 = vmatpush.bf16.msra.mxu3 %v7305_v7  ;;  %v7532_v20 = vld [vmem:[%s7833_s6] sm:$0xff]   ;;  %v7301_v26 = vld [vmem:[%s9777_s1 + $0xd0] sm:$0xff]  ;;  %v5965_v29 = vld [vmem:[%s7833_s6 + $0x8] sm:$0xe]  ;;  %vm2205_vm13 = vsmask.f32 5392 }
  0x15   : > { %389 = vmatpush.bf16.msra.mxu0 %v7272_v8  ;;  %v480_v23 = vshll.u32 %v7532_v20, 16  ;;  %v7579_v27 = vld [vmem:[%s7833_s6] sm:$0xf0]  ;;  %v7580_v28 = vld [vmem:[%s7833_s6] sm:$0xe]  ;;  %v7268_v31 = vld [vmem:[%s9777_s1 + $0x8] sm:$0xff] }
  0x16   : > { %598 = vmatpush.bf16.msra.mxu1 %v7280_v9  ;;  %v7291_v30 = vld [vmem:[%s7833_s6 + $0x8] sm:$0xf0]  ;;  %v478_v33 = vshrl.u32 %v7532_v20, 16  ;;  %v7581_v38 = vor.u32 %v7580_v28, %v7579_v27  ;;  %v7881_v39 = vld [vmem:[%s7833_s6 + $0x10] sm:$0xff]  ;;  %v7267_v41 = vld [vmem:[%s9777_s1] sm:$0xff]  ;;  %v487_v44 = vrot.slane %v485_v35, 1 }
  0x17   : > { %756 = vmatpush.bf16.msra.mxu2 %v7288_v10  ;;  %v7276_v32 = vld [vmem:[%s9777_s1 + $0x48] sm:$0xff]  ;;  %v482_v34 = vrot.slane %v480_v23, 1  ;;  %v5966_v40 = vor.u32 %v7291_v30, %v5965_v29  ;;  %v7275_v42 = vld [vmem:[%s9777_s1 + $0x40] sm:$0xff]  ;;  %v893_v50 = vrot.slane %v7881_v39, 1  ;;  %v7344_v51 = vld [vmem:[%s9777_s1 + $0x1b8] sm:$0xff] }
  0x18   : > { %965 = vmatpush.bf16.msra.mxu3 %v7304_v11  ;;  %v7284_v36 = vld [vmem:[%s9777_s1 + $0x88] sm:$0xff]  ;;  %v7283_v45 = vld [vmem:[%s9777_s1 + $0x80] sm:$0xff]  ;;  %v683_v47 = vrot.slane %v7581_v38, 1  ;;  %v7321_v52 = vld [vmem:[%s9777_s1 + $0x138] sm:$0xff]  ;;  %v491_v6 = vor.u32 %v489_v1, %v487_v44 }
  0x19   : > { %390 = vmatpush.bf16.msra.mxu0 %v7271_v12  ;;  %v7300_v37 = vld [vmem:[%s9777_s1 + $0xc8] sm:$0xff]  ;;  %v483_v43 = vor.u32 %v482_v34, %v478_v33  ;;  %v7299_v46 = vld [vmem:[%s9777_s1 + $0xc0] sm:$0xff]  ;;  %v892_v49 = vrot.slane %v5966_v40, 1  ;;  %v7329_v56 = vld [vmem:[%s9777_s1 + $0x178] sm:$0xff] }
  0x1a   : > { %599 = vmatpush.bf16.msra.mxu1 %v7279_v13  ;;  %v685_v54 = vsel %vm682_vm1, %v683_v47, %v684_v48  ;;  %v7352_v57 = vld [vmem:[%s9777_s1 + $0x1f8] sm:$0xff]  ;;  %v7343_v58 = vld [vmem:[%s9777_s1 + $0x1b0] sm:$0xff]  ;;  %v7342_v63 = vld [vmem:[%s9777_s1 + $0x1a8] sm:$0xff] }
  0x1b   : > { %757 = vmatpush.bf16.msra.mxu2 %v7287_v14  ;;  %v488_v53 = vsel %vm476_vm0, %v483_v43, %v487_v44  ;;  %v894_v55 = vsel %vm682_vm1, %v892_v49, %v893_v50  ;;  %v7320_v59 = vld [vmem:[%s9777_s1 + $0x130] sm:$0xff]  ;;  %v7319_v0 = vld [vmem:[%s9777_s1 + $0x128] sm:$0xff]  ;;  %v7293_v3 = vld [vmem:[%s7833_s6 + $0x18] sm:$0xff] }
  0x1c   : > { %966 = vmatpush.bf16.msra.mxu3 %v7303_v15  ;;  %v7262_v60 = vld [vmem:[%s7833_s6 + $0x10] sm:$0xff]  ;;  %v7327_v4 = vld [vmem:[%s9777_s1 + $0x168] sm:$0xff]  ;;  %v895_v9 = vrot.slane %v7293_v3, 1  ;;  %v7263_v13 = vld [vmem:[%s7833_s6 + $0x18] sm:$0xff] }
  0x1d   : > { %391 = vmatpush.bf16.msra.mxu0 %v7270_v16  ;;  %v7328_v61 = vld [vmem:[%s9777_s1 + $0x170] sm:$0xff]  ;;  %v493_v2 = vshll.u32 %v7262_v60, 16  ;;  %v7350_v5 = vld [vmem:[%s9777_s1 + $0x1e8] sm:$0xff]  ;;  %v686_v8 = vrot.slane %v7262_v60, 1  ;;  %v7341_v14 = vld [vmem:[%s9777_s1 + $0x1a0] sm:$0xff]  ;;  %v688_v23 = vrot.slane %v7263_v13, 1 }
  0x1e   : > { %600 = vmatpush.bf16.msra.mxu1 %v7278_v17  ;;  %v7351_v62 = vld [vmem:[%s9777_s1 + $0x1f0] sm:$0xff]  ;;  %v896_v12 = vsel %vm682_vm1, %v893_v50, %v895_v9  ;;  %v7318_v15 = vld [vmem:[%s9777_s1 + $0x120] sm:$0xff]  ;;  %v7340_v29 = vld [vmem:[%s9777_s1 + $0x198] sm:$0xff]  ;;  %v505_v33 = vshrl.u32 %v7263_v13, 16 }
  0x1f   : > { %758 = vmatpush.bf16.msra.mxu2 %v7286_v18  ;;  %v495_v7 = vrot.slane %v493_v2, 1  ;;  %v687_v11 = vsel %vm682_vm1, %v684_v48, %v686_v8  ;;  %v7326_v16 = vld [vmem:[%s9777_s1 + $0x160] sm:$0xff]  ;;  %v497_v18 = vshrl.u32 %v7262_v60, 16  ;;  %v7317_v30 = vld [vmem:[%s9777_s1 + $0x118] sm:$0xff]  ;;  %v7295_v35 = vld [vmem:[%s7833_s6 + $0x28] sm:$0xff] }
  0x20   : > { %967 = vmatpush.bf16.msra.mxu3 %v7302_v19  ;;  %v7349_v17 = vld [vmem:[%s9777_s1 + $0x1e0] sm:$0xff]  ;;  %v501_v19 = vshll.u32 %v7263_v13, 16  ;;  %v899_v39 = vrot.slane %v7295_v35, 1  ;;  %v7265_v43 = vld [vmem:[%s7833_s6 + $0x28] sm:$0xff]  ;;  %v7339_v44 = vld [vmem:[%s9777_s1 + $0x190] sm:$0xff] }
  0x21   : > { %392 = vmatpush.bf16.msra.mxu0 %v7269_v21  ;;  %v496_v10 = vsel %vm476_vm0, %v491_v6, %v495_v7  ;;  %v499_v21 = vor.u32 %v497_v18, %v495_v7  ;;  %v7264_v28 = vld [vmem:[%s7833_s6 + $0x20] sm:$0xff]  ;;  %v7347_v47 = vld [vmem:[%s9777_s1 + $0x1d0] sm:$0xff]  ;;  %v517_v49 = vshll.u32 %v7265_v43, 16  ;;  %v7297_v1 = vld [vmem:[%s7833_s6 + $0x38] sm:$0xff] }
  0x22   : > { %601 = vmatpush.bf16.msra.mxu1 %v7277_v22  ;;  %v503_v22 = vrot.slane %v501_v19, 1  ;;  %v509_v34 = vshll.u32 %v7264_v28, 16  ;;  %v690_v38 = vrot.slane %v7264_v28, 1  ;;  %v513_v48 = vshrl.u32 %v7264_v28, 16  ;;  %v7296_v50 = vld [vmem:[%s7833_s6 + $0x30] sm:$0xff]  ;;  %v273_v6 = vld [vmem:[%s7833_s6 + $0x38] sm:$0xff]   ;;  %vm8613_vm9 = vmand %vm252_vm7, %vm253_vm8 }
  0x23   : > { %759 = vmatpush.bf16.msra.mxu2 %v7285_v25  ;;  %v7701_v7 = vld [vmem:[%s7833_s6 + $0x38] sm:$0xf]   ;;  %vm8705_vm12 = vmand %vm2383_vm10, %vm2384_vm11  ;;  %vm2405_vm7 = vsmask.f32 256  ;;  %vm5661_vm10 = vcmask 1043459  }
  0x24   : > { %968 = vmatpush.bf16.msra.mxu3 %v7301_v26  ;;  %v504_v25 = vsel %vm476_vm0, %v499_v21, %v503_v22  ;;  %v689_v26 = vsel %vm682_vm1, %v686_v8, %v688_v23  ;;  %vm8742_vm14 = vmor %vm253_vm8, %vm2205_vm13  ;;  %vm5662_vm11 = vsmask.f32 7950 }
  0x25   : > { %393 = vmatpush.bf16.msra.mxu0 %v7268_v31  ;;  %v7325_v31 = vld [vmem:[%s9777_s1 + $0x158] sm:$0xff]  ;;  %vm9144_vm8 = vmand %vm2404_vm15, %vm2405_vm7 }
  0x26   : > { %602 = vmatpush.bf16.msra.mxu1 %v7276_v32  ;;  %v7348_v32 = vld [vmem:[%s9777_s1 + $0x1d8] sm:$0xff]  ;;  %vm5663_vm13 = vmand %vm5661_vm10, %vm5662_vm11 }
  0x27   : > { %760 = vmatpush.bf16.msra.mxu2 %v7284_v36  ;;  %v507_v36 = vor.u32 %v505_v33, %v503_v22  ;;  %v537_v33 = vshrl.u32 %v273_v6, 16 }
  0x28   : > { %969 = vmatpush.bf16.msra.mxu3 %v7300_v37  ;;  %v511_v37 = vrot.slane %v509_v34, 1 }
  0x29   : > { %394 = vmatpush.bf16.msra.mxu0 %v7267_v41  ;;  %v691_v41 = vsel %vm682_vm1, %v688_v23, %v690_v38 }
  0x2a   : > { %603 = vmatpush.bf16.msra.mxu1 %v7275_v42  ;;  %v512_v40 = vsel %vm476_vm0, %v507_v36, %v511_v37  ;;  %v7384_v36 = vld [vmem:[%s9777_s1 + $0xb8] sm:$0xff] }
  0x2b   : > { %761 = vmatpush.bf16.msra.mxu2 %v7283_v45  ;;  %v7316_v45 = vld [vmem:[%s9777_s1 + $0x110] sm:$0xff] }
  0x2c   : > { %970 = vmatpush.bf16.msra.mxu3 %v7299_v46  ;;  %395 = vmatmul.bf16.vlgmr.msra.gmra.mxu0 %v7532_v20  ;;  %v7294_v20 = vld [vmem:[%s7833_s6 + $0x20] sm:$0xff]  ;;  %v7324_v46 = vld [vmem:[%s9777_s1 + $0x150] sm:$0xff] }
  0x2d   : > { %1238 = vmatpush.bf16.msrb.mxu0 %v7321_v52  ;;  %604 = vmatmul.bf16.vlgmr.msra.gmra.mxu1 %v488_v53  ;;  %v519_v52 = vrot.slane %v517_v49, 1  ;;  %v692_v53 = vrot.slane %v7265_v43, 1 }
  0x2e   : > { %762 = vmatmul.bf16.vlgmr.msra.gmra.mxu2 %v685_v54  ;;  %1398 = vmatpush.bf16.msrb.mxu1 %v7329_v56  ;;  %v901_v54 = vrot.slane %v7296_v50, 1 }
  0x2f   : > { %1613 = vmatpush.bf16.msrb.mxu2 %v7344_v51  ;;  %971 = vmatmul.bf16.vlgmr.msra.gmra.mxu3 %v894_v55  ;;  %v515_v51 = vor.u32 %v513_v48, %v511_v37  ;;  %v693_v56 = vsel %vm682_vm1, %v690_v38, %v692_v53 }
  0x30   : > { %1836 = vmatpush.bf16.msrb.mxu3 %v7352_v57  ;;  %v902_v57 = vsel %vm682_vm1, %v899_v39, %v901_v54 }
  0x31   : > { %1239 = vmatpush.bf16.msrb.mxu0 %v7320_v59  ;;  %v520_v55 = vsel %vm476_vm0, %v515_v51, %v519_v52  ;;  %v7338_v59 = vld [vmem:[%s9777_s1 + $0x188] sm:$0xff]  ;;  %v7375_v51 = vld [vmem:[%s9777_s1 + $0x70] sm:$0xff] }
  0x32   : > { %1399 = vmatpush.bf16.msrb.mxu1 %v7328_v61  ;;  %v7323_v61 = vld [vmem:[%s9777_s1 + $0x148] sm:$0xff] }
  0x33   : > { %1614 = vmatpush.bf16.msrb.mxu2 %v7343_v58  ;;  %v7266_v58 = vld [vmem:[%s7833_s6 + $0x30] sm:$0xff] }
  0x34   : > { %1837 = vmatpush.bf16.msrb.mxu3 %v7351_v62  ;;  %v7346_v62 = vld [vmem:[%s9777_s1 + $0x1c8] sm:$0xff] }
  0x35   : > { %1240 = vmatpush.bf16.msrb.mxu0 %v7319_v0  ;;  %v525_v0 = vshll.u32 %v7266_v58, 16 }
  0x36   : > { %1400 = vmatpush.bf16.msrb.mxu1 %v7327_v4  ;;  %v694_v4 = vrot.slane %v7266_v58, 1 }
  0x37   : > { %1615 = vmatpush.bf16.msrb.mxu2 %v7342_v63  ;;  %v521_v63 = vshrl.u32 %v7265_v43, 16  ;;  %v527_v3 = vrot.slane %v525_v0, 1 }
  0x38   : > { %1838 = vmatpush.bf16.msrb.mxu3 %v7350_v5  ;;  %v903_v5 = vrot.slane %v7297_v1, 1 }
  0x39   : > { %1241 = vmatpush.bf16.msrb.mxu0 %v7318_v15  ;;  %v523_v2 = vor.u32 %v521_v63, %v519_v52  ;;  %v529_v15 = vshrl.u32 %v7266_v58, 16  ;;  %v7359_v52 = vld [vmem:[%s9777_s1 + $0x230] sm:$0xff] }
  0x3a   : > { %1401 = vmatpush.bf16.msrb.mxu1 %v7326_v16  ;;  %v533_v16 = vshll.u32 %v273_v6, 16 }
  0x3b   : > { %1616 = vmatpush.bf16.msrb.mxu2 %v7341_v14  ;;  %v528_v8 = vsel %vm476_vm0, %v523_v2, %v527_v3  ;;  %v7345_v14 = vld [vmem:[%s9777_s1 + $0x1c0] sm:$0xff]  ;;  %v531_v18 = vor.u32 %v529_v15, %v527_v3  ;;  %v7367_v2 = vld [vmem:[%s9777_s1 + $0x30] sm:$0xff] }
  0x3c   : > { %400 = vmatmul.bf16.gmra.mxu0 %v7855_v24  ;;  %1839 = vmatpush.bf16.msrb.mxu3 %v7349_v17  ;;  %v897_v24 = vrot.slane %v7294_v20, 1  ;;  %v7298_v17 = vld [vmem:[%s7833_s6 + $0x40] sm:$0xff]  ;;  %v535_v19 = vrot.slane %v533_v16, 1  ;;  %v696_v20 = vrot.slane %v273_v6, 1 }
  0x3d   : > { %609 = vmatmul.bf16.gmra.mxu1 %v496_v10  ;;  %1242 = vmatpush.bf16.msrb.mxu0 %v7317_v30  ;;  %v904_v10 = vsel %vm682_vm1, %v901_v54, %v903_v5  ;;  %v905_v21 = vrot.slane %v7298_v17, 1  ;;  %v1463_v30 = vld [vmem:[%s7833_s6 + $0x10] sm:$0xc]  ;;  %v8084_v17 = vld [vmem:[%s7833_s6 + $0x18] sm:$0xff] }
  0x3e   : > { %767 = vmatmul.bf16.gmra.mxu2 %v687_v11  ;;  %v898_v27 = vsel %vm682_vm1, %v895_v9, %v897_v24  ;;  %1402 = vmatpush.bf16.msrb.mxu1 %v7325_v31  ;;  %v900_v42 = vsel %vm682_vm1, %v897_v24, %v899_v39  ;;  %v695_v9 = vsel %vm682_vm1, %v692_v53, %v694_v4  ;;  %v7337_v11 = vld [vmem:[%s9777_s1 + $0x180] sm:$0xff]  ;;  %v8040_v31 = vld [vmem:[%s7833_s6 + $0x14] sm:$0xf]  ;;  %v1514_v37 = vunpack.c.l.b16 %v1463_v30 }
  0x3f   : > { %976 = vmatmul.bf16.gmra.mxu3 %v896_v12  ;;  %1617 = vmatpush.bf16.msrb.mxu2 %v7340_v29  ;;  %v7314_v12 = vld [vmem:[%s9777_s1 + $0x100] sm:$0xff]  ;;  %v536_v22 = vsel %vm476_vm0, %v531_v18, %v535_v19  ;;  %v697_v23 = vsel %vm682_vm1, %v694_v4, %v696_v20  ;;  %v906_v24 = vsel %vm682_vm1, %v903_v5, %v905_v21  ;;  %v1029_v29 = vld [vmem:[%s7833_s6 + $0xc] sm:$0xf]  ;;  %v1515_v38 = vunpack.c.l.b16 %v8040_v31  ;;  %v7383_v5 = vld [vmem:[%s9777_s1 + $0xb0] sm:$0xff] }
  0x40   : > { %1840 = vmatpush.bf16.msrb.mxu3 %v7348_v32  ;;  %v7368_v32 = vld [vmem:[%s9777_s1 + $0x38] sm:$0xff]  ;;  %v1080_v35 = vunpack.c.l.b16 %v1029_v29  ;;  %v7429_v31 = vld [vmem:[%s9777_s1 + $0x1b0] sm:$0xff] }
  0x41   : > { %1243 = vmatpush.bf16.msrb.mxu0 %v7316_v45  ;;  %v1531_v45 = vpack.c.b16 %v1515_v38, %v1514_v37 }
  0x42   : > { %1403 = vmatpush.bf16.msrb.mxu1 %v7324_v46 }
  0x43   : > { %1618 = vmatpush.bf16.msrb.mxu2 %v7339_v44  ;;  %v8054_v44 = vld [vmem:[%s7833_s6 + $0x18] sm:$0xff]  ;;  %v1701_v53 = vshrl.u32 %v1531_v45, 16  ;;  %v1704_v54 = vshll.u32 %v1531_v45, 16 }
  0x44   : > { %1841 = vmatpush.bf16.msrb.mxu3 %v7347_v47 }
  0x45   : > { %v1706_v63 = vrot.slane %v1704_v54, 3 }
  0x46   : > { %1404 = vmatpush.bf16.msrb.mxu1 %v7323_v61 }
  0x47   : > { %1619 = vmatpush.bf16.msrb.mxu2 %v7338_v59 }
  0x48   : > { %1842 = vmatpush.bf16.msrb.mxu3 %v7346_v62  ;;  %v1703_v62 = vrot.slane %v1701_v53, 2 }
  0x4b   : > { %1620 = vmatpush.bf16.msrb.mxu2 %v7337_v11  ;;  %v1707_v11 = vor.u32 %v1706_v63, %v1703_v62 }
  0x4c   : > { %405 = vmatmul.bf16.gmra.mxu0 %v7262_v60  ;;  %v7315_v60 = vld [vmem:[%s9777_s1 + $0x108] sm:$0xff]  ;;  %1843 = vmatpush.bf16.msrb.mxu3 %v7345_v14 }
  0x4d   : > { %614 = vmatmul.bf16.gmra.mxu1 %v504_v25  ;;  %1244 = vmatpush.bf16.msrb.mxu0 %v7315_v60  ;;  %v7376_v25 = vld [vmem:[%s9777_s1 + $0x78] sm:$0xff] }
  0x4e   : > { %772 = vmatmul.bf16.gmra.mxu2 %v689_v26  ;;  %v7360_v26 = vld [vmem:[%s9777_s1 + $0x238] sm:$0xff] }
  0x4f   : > { %981 = vmatmul.bf16.gmra.mxu3 %v898_v27  ;;  %2781 = vmatpush.bf16.msra.mxu2 %v7376_v25  ;;  %v7719_v27 = vld [vmem:[%s7833_s6 + $0x38] sm:$0x70]  ;;  %v7374_v25 = vld [vmem:[%s9777_s1 + $0x68] sm:$0xff] }
  0x50   : > { %2926 = vmatpush.bf16.msra.mxu3 %v7384_v36  ;;  %v7702_v39 = vor.u32 %v7719_v27, %v7701_v7 }
  0x51   : > { %1245 = vmatpush.bf16.msrb.mxu0 %v7314_v12 }
  0x53   : > { %2782 = vmatpush.bf16.msra.mxu2 %v7375_v51 }
  0x54   : > { %2927 = vmatpush.bf16.msra.mxu3 %v7383_v5 }
  0x55   : > { %1996 = vmatpush.bf16.msra.mxu0 %v7360_v26  ;;  %v7358_v26 = vld [vmem:[%s9777_s1 + $0x228] sm:$0xff] }
  0x57   : > { %2783 = vmatpush.bf16.msra.mxu2 %v7374_v25 }
  0x59   : > { %1997 = vmatpush.bf16.msra.mxu0 %v7359_v52 }
  0x5c   : > { %410 = vmatmul.bf16.gmra.mxu0 %v7263_v13  ;;  %v7322_v13 = vld [vmem:[%s9777_s1 + $0x140] sm:$0xff] }
  0x5d   : > { %619 = vmatmul.bf16.gmra.mxu1 %v512_v40  ;;  %v539_v40 = vor.u32 %v537_v33, %v535_v19  ;;  %1998 = vmatpush.bf16.msra.mxu0 %v7358_v26 }
  0x5e   : > { %777 = vmatmul.bf16.gmra.mxu2 %v691_v41  ;;  %1405 = vmatpush.bf16.msrb.mxu1 %v7322_v13  ;;  %v8050_v41 = vld [vmem:[%s7833_s6 + $0x10] sm:$0xff] }
  0x5f   : > { %986 = vmatmul.bf16.gmra.mxu3 %v900_v42  ;;  %v1115_v48 = vshrl.u32 %v8050_v41, 16  ;;  %v1118_v49 = vshll.u32 %v8050_v41, 16  ;;  %v1326_v7 = vrot.slane %v8050_v41, 2 }
  0x61   : > { %v1117_v59 = vrot.slane %v1115_v48, 1  ;;  %v1120_v60 = vrot.slane %v1118_v49, 2 }
  0x62   : > { %2559 = vmatpush.bf16.msra.mxu1 %v7368_v32 }
  0x63   : > { %v1121_v4 = vor.u32 %v1120_v60, %v1117_v59 }
  0x66   : > { %2560 = vmatpush.bf16.msra.mxu1 %v7367_v2  ;;  %v7373_v2 = vld [vmem:[%s9777_s1 + $0x60] sm:$0xff] }
  0x67   : > { %2784 = vmatpush.bf16.msra.mxu2 %v7373_v2 }
  0x6c   : > { %415 = vmatmul.bf16.gmra.mxu0 %v7264_v28  ;;  %v1028_v28 = vld [vmem:[%s7833_s6 + $0x8] sm:$0xe] }
  0x6d   : > { %624 = vmatmul.bf16.gmra.mxu1 %v520_v55  ;;  %v1079_v34 = vunpack.c.l.b16 %v1028_v28  ;;  %v1709_v55 = vshrl.u32 %v8054_v44, 16 }
  0x6e   : > { %782 = vmatmul.bf16.gmra.mxu2 %v693_v56  ;;  %v1712_v56 = vshll.u32 %v8054_v44, 16 }
  0x6f   : > { %991 = vmatmul.bf16.gmra.mxu3 %v902_v57  ;;  %v1096_v42 = vpack.c.b16 %v1080_v35, %v1079_v34  ;;  %v1711_v0 = vrot.slane %v1709_v55, 2 }
  0x70   : > { %v1714_v1 = vrot.slane %v1712_v56, 3 }
  0x71   : > { %v1107_v46 = vshrl.u32 %v1096_v42, 16  ;;  %v1110_v47 = vshll.u32 %v1096_v42, 16  ;;  %v7366_v42 = vld [vmem:[%s9777_s1 + $0x28] sm:$0xff] }
  0x72   : > { %v1715_v12 = vor.u32 %v1714_v1, %v1711_v0  ;;  %2561 = vmatpush.bf16.msra.mxu1 %v7366_v42 }
  0x73   : > { %v1109_v57 = vrot.slane %v1107_v46, 1 }
  0x7c   : > { %420 = vmatmul.bf16.gmra.mxu0 %v7265_v43  ;;  %v1303_v43 = vld [vmem:[%s7833_s6 + $0x8] sm:$0xc] }
  0x7d   : > { %629 = vmatmul.bf16.gmra.mxu1 %v528_v8  ;;  %v1322_v50 = vunpack.c.l.b16 %v1303_v43  ;;  %v1540_v8 = vrot.slane %v1531_v45, 2  ;;  %v7382_v45 = vld [vmem:[%s9777_s1 + $0xa8] sm:$0xff] }
  0x7e   : > { %787 = vmatmul.bf16.gmra.mxu2 %v695_v9  ;;  %v8078_v9 = vld [vmem:[%s9778_s2] ss:$0 sm:$0xff]  ;;  %2928 = vmatpush.bf16.msra.mxu3 %v7382_v45 }
  0x7f   : > { %996 = vmatmul.bf16.gmra.mxu3 %v904_v10  ;;  %v1323_v61 = vpack.c.b16 %v1080_v35, %v1322_v50  ;;  %v1541_v10 = vrot.slane %v8054_v44, 2 }
  0x81   : > { %v1325_v6 = vrot.slane %v1323_v61, 2  ;;  %v1542_v19 = vsel %vm1324_vm3, %v1540_v8, %v1541_v10  ;;  %v8122_v61 = vld [vmem:[%s7833_s6 + $0x28] sm:$0xff] }
  0x82   : > { %v1730_v5 = vshll.u32 %v8122_v61, 16 }
  0x83   : > { %v1327_v16 = vsel %vm1324_vm3, %v1325_v6, %v1326_v7 }
  0x8c   : > { %425 = vmatmul.bf16.gmra.mxu0 %v7266_v58  ;;  %v1112_v58 = vrot.slane %v1110_v47, 2  ;;  %v1328_v47 = vrot.slane %v8084_v17, 2 }
  0x8d   : > { %634 = vmatmul.bf16.gmra.mxu1 %v536_v22 }
  0x8e   : > { %792 = vmatmul.bf16.gmra.mxu2 %v697_v23  ;;  %v1113_v3 = vor.u32 %v1112_v58, %v1109_v57  ;;  %v1124_v23 = vshrl.u32 %v8084_v17, 16  ;;  %v1329_v56 = vsel %vm1324_vm3, %v1326_v7, %v1328_v47  ;;  %v8116_v57 = vld [vmem:[%s7833_s6 + $0x20] sm:$0xff] }
  0x8f   : > { %1001 = vmatmul.bf16.gmra.mxu3 %v906_v24  ;;  %v1127_v24 = vshll.u32 %v8084_v17, 16  ;;  %v1133_v0 = vshrl.u32 %v8116_v57, 16  ;;  %v1136_v1 = vshll.u32 %v8116_v57, 16 }
  0x90   : > { %v1122_v15 = vsel %vm1105_vm2, %v1113_v3, %v1121_v4  ;;  %v1126_v35 = vrot.slane %v1124_v23, 1  ;;  %v7357_v3 = vld [vmem:[%s9777_s1 + $0x220] sm:$0xff]  ;;  %v1330_v23 = vrot.slane %v8116_v57, 2 }
  0x91   : > { %v1129_v36 = vrot.slane %v1127_v24, 2  ;;  %1999 = vmatpush.bf16.msra.mxu0 %v7357_v3  ;;  %v1545_v24 = vrot.slane %v8122_v61, 2 }
  0x93   : > { %v1130_v46 = vor.u32 %v1129_v36, %v1126_v35 }
  0x95   : > { %v1131_v55 = vsel %vm1105_vm2, %v1121_v4, %v1130_v46  ;;  %v1727_v4 = vshrl.u32 %v8122_v61, 16 }
  0x9c   : > { %430 = vmatmul.bf16.gmra.mxu0 %v7702_v39 }
  0x9d   : > { %639 = vmatmul.bf16.gmra.mxu1 %v539_v40 }
  0x9e   : > { %797 = vmatmul.bf16.gmra.mxu2 %v696_v20  ;;  %v1716_v20 = vsel %vm1699_vm4, %v1707_v11, %v1715_v12 }
  0x9f   : > { %1006 = vmatmul.bf16.gmra.mxu3 %v905_v21  ;;  %v8090_v21 = vld [vmem:[%s7833_s6 + $0x20] sm:$0xff] }
  0xa0   : > { %v1718_v27 = vshrl.u32 %v8090_v21, 16  ;;  %v1721_v28 = vshll.u32 %v8090_v21, 16  ;;  %v1543_v48 = vrot.slane %v8090_v21, 2 }
  0xa2   : > { %v1720_v39 = vrot.slane %v1718_v27, 2  ;;  %v1723_v40 = vrot.slane %v1721_v28, 3  ;;  %v1544_v59 = vsel %vm1324_vm3, %v1541_v10, %v1543_v48  ;;  %v1546_v36 = vsel %vm1324_vm3, %v1543_v48, %v1545_v24 }
  0xa4   : > { %v1724_v49 = vor.u32 %v1723_v40, %v1720_v39  ;;  %v8156_v39 = vld [vmem:[%s7833_s6 + $0x30] sm:$0xff] }
  0xa5   : > { %v1736_v48 = vshrl.u32 %v8156_v39, 16 }
  0xa6   : > { %v1725_v60 = vsel %vm1699_vm4, %v1715_v12, %v1724_v49  ;;  %v1135_v12 = vrot.slane %v1133_v0, 1 }
  0xa9   : > { %v396_v13 = vpop.f32.mrf.mxu0 }
  0xaa   : > { %v605_v14 = vpop.f32.mrf.mxu1  ;;  %v439_v18 = vadd.f32 %v8078_v9, %v396_v13  ;;  %v1138_v13 = vrot.slane %v1136_v1, 2  ;;  %v7380_v1 = vld [vmem:[%s9777_s1 + $0x98] sm:$0xff] }
  0xac   : > { %v645_v22 = vadd.f32 %v605_v14, %v439_v18  ;;  %1246 = vmatmul.bf16.vlgmr.msrb.gmra.mxu0 %v1122_v15  ;;  %v1729_v15 = vrot.slane %v1727_v4, 2  ;;  %v7365_v18 = vld [vmem:[%s9777_s1 + $0x20] sm:$0xff]  ;;  %v1547_v4 = vrot.slane %v8156_v39, 2 }
  0xad   : > { %1406 = vmatmul.bf16.vlgmr.msrb.gmra.mxu1 %v1327_v16  ;;  %v1732_v16 = vrot.slane %v1730_v5, 3 }
  0xae   : > { %1621 = vmatmul.bf16.vlgmr.msrb.gmra.mxu2 %v1542_v19  ;;  %2562 = vmatpush.bf16.msra.mxu1 %v7365_v18 }
  0xaf   : > { %1844 = vmatmul.bf16.vlgmr.msrb.gmra.mxu3 %v1716_v20  ;;  %v7381_v20 = vld [vmem:[%s9777_s1 + $0xa0] sm:$0xff]  ;;  %v1733_v25 = vor.u32 %v1732_v16, %v1729_v15  ;;  %v1548_v16 = vsel %vm1324_vm3, %v1545_v24, %v1547_v4  ;;  %v7355_v24 = vld [vmem:[%s9777_s1 + $0x210] sm:$0xff] }
  0xb0   : > { %2929 = vmatpush.bf16.msra.mxu3 %v7381_v20 }
  0xb1   : > { %v763_v29 = vpop.f32.mrf.mxu2  ;;  %v398_v33 = vpop.f32.mrf.mxu0 }
  0xb2   : > { %v972_v30 = vpop.f32.mrf.mxu3  ;;  %v803_v32 = vadd.f32 %v763_v29, %v645_v22  ;;  %v607_v34 = vpop.f32.mrf.mxu1  ;;  %v440_v37 = vadd.f32 %v8078_v9, %v398_v33  ;;  %v1139_v22 = vor.u32 %v1138_v13, %v1135_v12  ;;  %v1331_v33 = vsel %vm1324_vm3, %v1328_v47, %v1330_v23  ;;  %v7356_v47 = vld [vmem:[%s9777_s1 + $0x218] sm:$0xff] }
  0xb3   : > { %2000 = vmatpush.bf16.msra.mxu0 %v7356_v47 }
  0xb4   : > { %v8103_v41 = vadd.f32 %v972_v30, %v803_v32  ;;  %v646_v43 = vadd.f32 %v607_v34, %v440_v37  ;;  %v1140_v32 = vsel %vm1105_vm2, %v1130_v46, %v1139_v22  ;;  %v8150_v34 = vld [vmem:[%s7833_s6 + $0x28] sm:$0xff]  ;;  %v1734_v37 = vsel %vm1699_vm4, %v1724_v49, %v1733_v25  ;;  %v7372_v46 = vld [vmem:[%s9777_s1 + $0x58] sm:$0xff]  ;;  %2930 = vmatpush.bf16.msra.mxu3 %v7380_v1 }
  0xb5   : > { %v1145_v45 = vshll.u32 %v8150_v34, 16  ;;  %v1739_v49 = vshll.u32 %v8156_v39, 16  ;;  %2785 = vmatpush.bf16.msra.mxu2 %v7372_v46  ;;  %v1332_v3 = vrot.slane %v8150_v34, 2  ;;  %v7363_v46 = vld [vmem:[%s9777_s1 + $0x10] sm:$0xff] }
  0xb7   : > { %v1333_v13 = vsel %vm1324_vm3, %v1330_v23, %v1332_v3  ;;  %2001 = vmatpush.bf16.msra.mxu0 %v7355_v24 }
  0xb9   : > { %v765_v50 = vpop.f32.mrf.mxu2  ;;  %v401_v53 = vpop.f32.mrf.mxu0 }
  0xba   : > { %v974_v51 = vpop.f32.mrf.mxu3  ;;  %v804_v52 = vadd.f32 %v765_v50, %v646_v43  ;;  %v610_v54 = vpop.f32.mrf.mxu1  ;;  %v441_v58 = vadd.f32 %v8078_v9, %v401_v53  ;;  %v1142_v43 = vshrl.u32 %v8150_v34, 16 }
  0xbc   : > { %v8124_v62 = vadd.f32 %v974_v51, %v804_v52  ;;  %v647_v63 = vadd.f32 %v610_v54, %v441_v58  ;;  %1251 = vmatmul.bf16.gmra.mxu0 %v1131_v55  ;;  %v1144_v55 = vrot.slane %v1142_v43, 1  ;;  %v1738_v58 = vrot.slane %v1736_v48, 2  ;;  %v7379_v48 = vld [vmem:[%s9777_s1 + $0x90] sm:$0xff] }
  0xbd   : > { %1411 = vmatmul.bf16.gmra.mxu1 %v1329_v56  ;;  %v1147_v56 = vrot.slane %v1145_v45, 2  ;;  %2931 = vmatpush.bf16.msra.mxu3 %v7379_v48 }
  0xbe   : > { %1626 = vmatmul.bf16.gmra.mxu2 %v1544_v59  ;;  %v1741_v59 = vrot.slane %v1739_v49, 3 }
  0xbf   : > { %1849 = vmatmul.bf16.gmra.mxu3 %v1725_v60  ;;  %v1148_v2 = vor.u32 %v1147_v56, %v1144_v55 }
  0xc0   : > { %v1742_v5 = vor.u32 %v1741_v59, %v1738_v58 }
  0xc1   : > { %v768_v6 = vpop.f32.mrf.mxu2  ;;  %v403_v10 = vpop.f32.mrf.mxu0  ;;  %v1149_v12 = vsel %vm1105_vm2, %v1139_v22, %v1148_v2 }
  0xc2   : > { %v977_v7 = vpop.f32.mrf.mxu3  ;;  %v805_v8 = vadd.f32 %v768_v6, %v647_v63  ;;  %v612_v11 = vpop.f32.mrf.mxu1  ;;  %v442_v14 = vadd.f32 %v8078_v9, %v403_v10  ;;  %v7364_v63 = vld [vmem:[%s9777_s1 + $0x18] sm:$0xff]  ;;  %v1743_v18 = vsel %vm1699_vm4, %v1733_v25, %v1742_v5 }
  0xc3   : > { %2563 = vmatpush.bf16.msra.mxu1 %v7364_v63  ;;  %v8218_v63 = vld [vmem:[%s7833_s6 + $0x38] sm:$0xff] }
  0xc4   : > { %v8137_v17 = vadd.f32 %v977_v7, %v805_v8  ;;  %v648_v19 = vadd.f32 %v612_v11, %v442_v14  ;;  %v8184_v14 = vld [vmem:[%s7833_s6 + $0x30] sm:$0xff] }
  0xc5   : > { %v1151_v22 = vshrl.u32 %v8184_v14, 16  ;;  %v1154_v23 = vshll.u32 %v8184_v14, 16 }
  0xc7   : > { %2564 = vmatpush.bf16.msra.mxu1 %v7363_v46 }
  0xc9   : > { %v770_v26 = vpop.f32.mrf.mxu2  ;;  %v406_v29 = vpop.f32.mrf.mxu0 }
  0xca   : > { %v979_v27 = vpop.f32.mrf.mxu3  ;;  %v806_v28 = vadd.f32 %v770_v26, %v648_v19  ;;  %v615_v30 = vpop.f32.mrf.mxu1  ;;  %v443_v35 = vadd.f32 %v8078_v9, %v406_v29  ;;  %v8190_v19 = vld [vmem:[%s7833_s6 + $0x38] sm:$0xff] }
  0xcb   : > { %v1745_v25 = vshrl.u32 %v8190_v19, 16 }
  0xcc   : > { %v8158_v40 = vadd.f32 %v979_v27, %v806_v28  ;;  %v649_v42 = vadd.f32 %v615_v30, %v443_v35  ;;  %1256 = vmatmul.bf16.gmra.mxu0 %v1140_v32  ;;  %v7371_v27 = vld [vmem:[%s9777_s1 + $0x50] sm:$0xff]  ;;  %v1748_v28 = vshll.u32 %v8190_v19, 16  ;;  %v1153_v35 = vrot.slane %v1151_v22, 1 }
  0xcd   : > { %1416 = vmatmul.bf16.gmra.mxu1 %v1331_v33  ;;  %2786 = vmatpush.bf16.msra.mxu2 %v7371_v27 }
  0xce   : > { %1631 = vmatmul.bf16.gmra.mxu2 %v1546_v36  ;;  %v1156_v36 = vrot.slane %v1154_v23, 2  ;;  %v1750_v43 = vrot.slane %v1748_v28, 3  ;;  %v7362_v28 = vld [vmem:[%s9777_s1 + $0x8] sm:$0xff] }
  0xcf   : > { %1854 = vmatmul.bf16.gmra.mxu3 %v1734_v37  ;;  %2565 = vmatpush.bf16.msra.mxu1 %v7362_v28 }
  0xd0   : > { %v1157_v49 = vor.u32 %v1156_v36, %v1153_v35 }
  0xd1   : > { %v773_v50 = vpop.f32.mrf.mxu2  ;;  %v408_v53 = vpop.f32.mrf.mxu0 }
  0xd2   : > { %v982_v51 = vpop.f32.mrf.mxu3  ;;  %v807_v52 = vadd.f32 %v773_v50, %v649_v42  ;;  %v617_v54 = vpop.f32.mrf.mxu1  ;;  %v444_v57 = vadd.f32 %v8078_v9, %v408_v53  ;;  %v1747_v42 = vrot.slane %v1745_v25, 2  ;;  %v1334_v50 = vrot.slane %v8184_v14, 2 }
  0xd3   : > { %v1158_v58 = vsel %vm1105_vm2, %v1148_v2, %v1157_v49  ;;  %v1160_v2 = vshrl.u32 %v8218_v63, 16 }
  0xd4   : > { %v8171_v60 = vadd.f32 %v982_v51, %v807_v52  ;;  %v650_v0 = vadd.f32 %v617_v54, %v444_v57  ;;  %v1549_v51 = vrot.slane %v8190_v19, 2  ;;  %v1751_v52 = vor.u32 %v1750_v43, %v1747_v42 }
  0xd5   : > { %v1335_v59 = vsel %vm1324_vm3, %v1332_v3, %v1334_v50  ;;  %v1163_v3 = vshll.u32 %v8218_v63, 16 }
  0xd6   : > { %v1550_v1 = vsel %vm1324_vm3, %v1547_v4, %v1549_v51  ;;  %v7354_v4 = vld [vmem:[%s9777_s1 + $0x208] sm:$0xff] }
  0xd7   : > { %2002 = vmatpush.bf16.msra.mxu0 %v7354_v4  ;;  %v1165_v22 = vrot.slane %v1163_v3, 2 }
  0xd9   : > { %v775_v6 = vpop.f32.mrf.mxu2  ;;  %v411_v10 = vpop.f32.mrf.mxu0 }
  0xda   : > { %v984_v7 = vpop.f32.mrf.mxu3  ;;  %v808_v8 = vadd.f32 %v775_v6, %v650_v0  ;;  %v620_v11 = vpop.f32.mrf.mxu1  ;;  %v445_v15 = vadd.f32 %v8078_v9, %v411_v10  ;;  %v1752_v6 = vsel %vm1699_vm4, %v1742_v5, %v1751_v52 }
  0xdc   : > { %v8192_v20 = vadd.f32 %v984_v7, %v808_v8  ;;  %v651_v26 = vadd.f32 %v620_v11, %v445_v15  ;;  %1261 = vmatmul.bf16.gmra.mxu0 %v1149_v12  ;;  %v8224_v7 = vld [vmem:[%s7833_s6 + $0x40] sm:$0xff]  ;;  %v7370_v11 = vld [vmem:[%s9777_s1 + $0x48] sm:$0xff] }
  0xdd   : > { %1421 = vmatmul.bf16.gmra.mxu1 %v1333_v13  ;;  %v1754_v5 = vshrl.u32 %v8224_v7, 16  ;;  %v1757_v12 = vshll.u32 %v8224_v7, 16  ;;  %2787 = vmatpush.bf16.msra.mxu2 %v7370_v11 }
  0xde   : > { %1636 = vmatmul.bf16.gmra.mxu2 %v1548_v16 }
  0xdf   : > { %1859 = vmatmul.bf16.gmra.mxu3 %v1743_v18  ;;  %v1756_v27 = vrot.slane %v1754_v5, 2  ;;  %v1759_v24 = vrot.slane %v1757_v12, 3 }
  0xe1   : > { %v778_v29 = vpop.f32.mrf.mxu2  ;;  %v413_v33 = vpop.f32.mrf.mxu0  ;;  %v1760_v35 = vor.u32 %v1759_v24, %v1756_v27  ;;  %v1044_v27 = vld [vmem:[%s7833_s6 + $0x48] sm:$0x1] }
  0xe2   : > { %v987_v30 = vpop.f32.mrf.mxu3  ;;  %v809_v32 = vadd.f32 %v778_v29, %v651_v26  ;;  %v622_v34 = vpop.f32.mrf.mxu1  ;;  %v446_v37 = vadd.f32 %v8078_v9, %v413_v33  ;;  %v1162_v26 = vrot.slane %v1160_v2, 1  ;;  %v1336_v33 = vrot.slane %v8218_v63, 2  ;;  %v7369_v63 = vld [vmem:[%s9777_s1 + $0x40] sm:$0xff] }
  0xe3   : > { %2788 = vmatpush.bf16.msra.mxu2 %v7369_v63 }
  0xe4   : > { %v8205_v45 = vadd.f32 %v987_v30, %v809_v32  ;;  %v652_v47 = vadd.f32 %v622_v34, %v446_v37  ;;  %v7378_v30 = vld [vmem:[%s9777_s1 + $0x88] sm:$0xff]  ;;  %v1166_v32 = vor.u32 %v1165_v22, %v1162_v26  ;;  %v1551_v34 = vrot.slane %v8224_v7, 2  ;;  %v7377_v26 = vld [vmem:[%s9777_s1 + $0x80] sm:$0xff] }
  0xe5   : > { %2932 = vmatpush.bf16.msra.mxu3 %v7378_v30  ;;  %v1337_v48 = vsel %vm1324_vm3, %v1334_v50, %v1336_v33 }
  0xe9   : > { %v780_v53 = vpop.f32.mrf.mxu2  ;;  %v416_v56 = vpop.f32.mrf.mxu0  ;;  %2933 = vmatpush.bf16.msra.mxu3 %v7377_v26  ;;  %v7430_v26 = vld [vmem:[%s9777_s1 + $0x1b8] sm:$0xff] }
  0xea   : > { %v989_v54 = vpop.f32.mrf.mxu3  ;;  %v810_v55 = vadd.f32 %v780_v53, %v652_v47  ;;  %v625_v57 = vpop.f32.mrf.mxu1  ;;  %v447_v0 = vadd.f32 %v8078_v9, %v416_v56  ;;  %v1167_v47 = vsel %vm1105_vm2, %v1157_v49, %v1166_v32  ;;  %v8252_v53 = vld [vmem:[%s7833_s6 + $0x40] sm:$0xff]  ;;  %v1761_v56 = vsel %vm1699_vm4, %v1751_v52, %v1760_v35 }
  0xeb   : > { %v1169_v49 = vshrl.u32 %v8252_v53, 16  ;;  %v1172_v50 = vshll.u32 %v8252_v53, 16 }
  0xec   : > { %v8226_v8 = vadd.f32 %v989_v54, %v810_v55  ;;  %v653_v10 = vadd.f32 %v625_v57, %v447_v0  ;;  %1266 = vmatmul.bf16.gmra.mxu0 %v1158_v58  ;;  %v1552_v55 = vsel %vm1324_vm3, %v1549_v51, %v1551_v34  ;;  %v8258_v57 = vld [vmem:[%s7833_s6 + $0x48] sm:$0xff]  ;;  %v7353_v51 = vld [vmem:[%s9777_s1 + $0x200] sm:$0xff] }
  0xed   : > { %1426 = vmatmul.bf16.gmra.mxu1 %v1335_v59  ;;  %v1763_v52 = vshrl.u32 %v8258_v57, 16  ;;  %v1766_v0 = vshll.u32 %v8258_v57, 16  ;;  %2003 = vmatpush.bf16.msra.mxu0 %v7353_v51  ;;  %v1171_v11 = vrot.slane %v1169_v49, 1  ;;  %v1174_v4 = vrot.slane %v1172_v50, 2  ;;  %v1479_v50 = vld [vmem:[%s7833_s6 + $0x50] sm:$0x1] }
  0xee   : > { %1641 = vmatmul.bf16.gmra.mxu2 %v1550_v1  ;;  %v1553_v24 = vrot.slane %v8258_v57, 2  ;;  %3687 = vmatpush.bf16.msrb.mxu3 %v7430_v26 }
  0xef   : > { %1864 = vmatmul.bf16.gmra.mxu3 %v1752_v6  ;;  %v1765_v12 = vrot.slane %v1763_v52, 2  ;;  %v1175_v22 = vor.u32 %v1174_v4, %v1171_v11 }
  0xf1   : > { %v783_v13 = vpop.f32.mrf.mxu2  ;;  %v418_v16 = vpop.f32.mrf.mxu0 }
  0xf2   : > { %v992_v14 = vpop.f32.mrf.mxu3  ;;  %v811_v15 = vadd.f32 %v783_v13, %v653_v10  ;;  %v627_v18 = vpop.f32.mrf.mxu1  ;;  %v448_v23 = vadd.f32 %v8078_v9, %v418_v16  ;;  %v1768_v13 = vrot.slane %v1766_v0, 3  ;;  %v7361_v16 = vld [vmem:[%s9777_s1] sm:$0xff]  ;;  %3688 = vmatpush.bf16.msrb.mxu3 %v7429_v31 }
  0xf3   : > { %2566 = vmatpush.bf16.msra.mxu1 %v7361_v16 }
  0xf4   : > { %v8239_v25 = vadd.f32 %v992_v14, %v811_v15  ;;  %v654_v29 = vadd.f32 %v627_v18, %v448_v23  ;;  %v1678_v15 = vld [vmem:[%s7833_s6 + $0x50] sm:$0x3]  ;;  %v1338_v23 = vrot.slane %v8252_v53, 2  ;;  %v8285_v28 = vor.u32 %v1768_v13, %v1765_v12 }
  0xf9   : > { %v785_v36 = vpop.f32.mrf.mxu2  ;;  %v421_v43 = vpop.f32.mrf.mxu0 }
  0xfa   : > { %v994_v37 = vpop.f32.mrf.mxu3  ;;  %v812_v42 = vadd.f32 %v785_v36, %v654_v29  ;;  %v630_v46 = vpop.f32.mrf.mxu1  ;;  %v449_v54 = vadd.f32 %v8078_v9, %v421_v43  ;;  %v1697_v29 = vunpack.c.l.b16 %v1678_v15  ;;  %v7406_v15 = vld [vmem:[%s9777_s1 + $0x138] sm:$0xff] }
  0xfb   : > { %3323 = vmatpush.bf16.msrb.mxu1 %v7406_v15  ;;  %v2062_v15 = vld [vmem:[%s9779_s3 + $0x8] sm:$0xff] }
  0xfc   : > { %v8260_v58 = vadd.f32 %v994_v37, %v812_v42  ;;  %v655_v59 = vadd.f32 %v630_v46, %v449_v54  ;;  %1271 = vmatmul.bf16.gmra.mxu0 %v1167_v47  ;;  %v1095_v37 = vunpack.c.l.b16 %v1044_v27  ;;  %v1176_v47 = vsel %vm1105_vm2, %v1166_v32, %v1175_v22 }
  0xfd   : > { %1431 = vmatmul.bf16.gmra.mxu1 %v1337_v48  ;;  %v1339_v48 = vsel %vm1324_vm3, %v1336_v33, %v1338_v23  ;;  %v7414_v33 = vld [vmem:[%s9777_s1 + $0x178] sm:$0xff] }
  0xfe   : > { %1646 = vmatmul.bf16.gmra.mxu2 %v1552_v55  ;;  %v1554_v55 = vsel %vm1324_vm3, %v1551_v34, %v1553_v24  ;;  %v1104_v32 = vpack.c.b16 %v1095_v37, %v1095_v37  ;;  %v7398_v34 = vld [vmem:[%s9777_s1 + $0xf8] sm:$0xff]  ;;  %v7651_v37 = vld [vmem:[%s7833_s6 + $0x3c] sm:$0xf0]  }
  0xff   : > { %1869 = vmatmul.bf16.gmra.mxu3 %v1761_v56  ;;  %v1770_v56 = vsel %vm1699_vm4, %v1760_v35, %v8285_v28  ;;  %v1530_v35 = vunpack.c.l.b16 %v1479_v50  ;;  %3479 = vmatpush.bf16.msrb.mxu2 %v7414_v33  ;;  %v2061_v50 = vld [vmem:[%s9779_s3] sm:$0xff] }
 0x100   : > { %3119 = vmatpush.bf16.msrb.mxu0 %v7398_v34  ;;  %v1340_v27 = vrot.slane %v1104_v32, 2  ;;  %v8346_v33 = vld [vmem:[%s7833_s6 + $0x44] sm:$0xff]  }
 0x101   : > { %v788_v1 = vpop.f32.mrf.mxu2  ;;  %v423_v2 = vpop.f32.mrf.mxu0  ;;  %v1539_v4 = vpack.c.b16 %v1530_v35, %v1530_v35 }
 0x102   : > { %v997_v6 = vpop.f32.mrf.mxu3  ;;  %v813_v10 = vadd.f32 %v788_v1, %v655_v59  ;;  %v632_v3 = vpop.f32.mrf.mxu1  ;;  %v450_v5 = vadd.f32 %v8078_v9, %v423_v2  ;;  %v8297_v59 = vpack.c.b16 %v1697_v29, %v1697_v29 }
 0x103   : > { %v1555_v29 = vrot.slane %v1539_v4, 2 }
 0x104   : > { %v8273_v14 = vadd.f32 %v997_v6, %v813_v10  ;;  %v656_v18 = vadd.f32 %v632_v3, %v450_v5  ;;  %v1772_v51 = vshrl.u32 %v8297_v59, 16  ;;  %v1775_v52 = vshll.u32 %v8297_v59, 16 }
 0x105   : > { %v1178_v6 = vshll.u32 %v1104_v32, 16  ;;  %v1556_v53 = vsel %vm1324_vm3, %v1553_v24, %v1555_v29  ;;  %v1901_v32 = vld [vmem:[%s7833_s6 + $0x10] sm:$0x8] }
 0x106   : > { %v1774_v5 = vrot.slane %v1772_v51, 2  ;;  %v1777_v12 = vrot.slane %v1775_v52, 3  ;;  %v1920_v24 = vunpack.c.l.b16 %v1901_v32  ;;  %v7413_v51 = vld [vmem:[%s9777_s1 + $0x170] sm:$0xff] }
 0x107   : > { %v7397_v52 = vld [vmem:[%s9777_s1 + $0xf0] sm:$0xff]  ;;  %3480 = vmatpush.bf16.msrb.mxu2 %v7413_v51 }
 0x108   : > { %3120 = vmatpush.bf16.msrb.mxu0 %v7397_v52  ;;  %v8391_v32 = vld [vmem:[%s7833_s6 + $0x4c] sm:$0xff]  }
 0x109   : > { %v790_v30 = vpop.f32.mrf.mxu2  ;;  %v426_v43 = vpop.f32.mrf.mxu0  ;;  %v2666_v51 = vshll.u32 %v8391_v32, 16 }
 0x10a   : > { %v999_v36 = vpop.f32.mrf.mxu3  ;;  %v814_v42 = vadd.f32 %v790_v30, %v656_v18  ;;  %v635_v46 = vpop.f32.mrf.mxu1  ;;  %v451_v54 = vadd.f32 %v8078_v9, %v426_v43  ;;  %v1180_v18 = vrot.slane %v1178_v6, 2  ;;  %v1778_v30 = vor.u32 %v1777_v12, %v1774_v5 }
 0x10b   : > { %v2657_v6 = vshll.u32 %v8346_v33, 16  ;;  %v1921_v5 = vpack.c.b16 %v1515_v38, %v1920_v24  ;;  %v7412_v24 = vld [vmem:[%s9777_s1 + $0x168] sm:$0xff] }
 0x10c   : > { %v8299_v49 = vadd.f32 %v999_v36, %v814_v42  ;;  %v657_v63 = vadd.f32 %v635_v46, %v451_v54  ;;  %1276 = vmatmul.bf16.gmra.mxu0 %v1176_v47  ;;  %v7601_v36 = vld [vmem:[%s7833_s6 + $0x3c] sm:$0x8]  ;;  %v1181_v46 = vsel %vm1105_vm2, %v1175_v22, %v1180_v18  ;;  %v7733_v22 = vmov 0   ;;  %3481 = vmatpush.bf16.msrb.mxu2 %v7412_v24 }
 0x10d   : > { %1436 = vmatmul.bf16.gmra.mxu1 %v1339_v48  ;;  %7692 = vset.pattern.permute.xlu0 %v7733_v22  ;;  %250 = vst [vmem:[%s8327_s24] sm:$0xf] %v7733_v22  ;;  %v1923_v38 = vrot.slane %v1921_v5, 3 }
 0x10e   : > { %1651 = vmatmul.bf16.gmra.mxu2 %v1554_v55  ;;  %v1341_v55 = vsel %vm1324_vm3, %v1338_v23, %v1340_v27  ;;  %7693 = vset.pattern.permute.xlu1 %v7733_v22  ;;  %v1779_v23 = vsel %vm1699_vm4, %v8285_v28, %v1778_v30  ;;  %251 = vst [vmem:[%s8327_s24 + $0x4] sm:$0xf] %v7733_v22  ;;  %v2659_v27 = vrot.slane %v2657_v6, 4  ;;  %v7405_v30 = vld [vmem:[%s9777_s1 + $0x130] sm:$0xff] }
 0x10f   : > { %1874 = vmatmul.bf16.gmra.mxu3 %v1770_v56  ;;  %v8332_v56 = vor.u32 %v7651_v37, %v7601_v36  ;;  %2079 = vperm.xlu0 %7692, %v2061_v50   ;;  %5677 = vst [vmem:[%s8327_s24 + $0x9c] sm:$0xf] %v7733_v22  ;;  %v1924_v37 = vrot.slane %v8054_v44, 3 }
 0x110   : > { %7694 = vset.pattern.permute.xlu2 %v7733_v22  ;;  %5678 = vst [vmem:[%s8327_s24 + $0xa0] sm:$0xf] %v7733_v22  ;;  %3324 = vmatpush.bf16.msrb.mxu1 %v7405_v30 }
 0x111   : > { %v793_v0 = vpop.f32.mrf.mxu2  ;;  %v428_v2 = vpop.f32.mrf.mxu0  ;;  %v2646_v28 = vshrl.u32 %v8332_v56, 16  ;;  %5679 = vst [vmem:[%s8327_s24 + $0xa4] sm:$0xf] %v7733_v22  ;;  %v1925_v50 = vsel %vm1922_vm5, %v1923_v38, %v1924_v37 }
 0x112   : > { %v1002_v1 = vpop.f32.mrf.mxu3  ;;  %v815_v10 = vadd.f32 %v793_v0, %v657_v63  ;;  %v637_v3 = vpop.f32.mrf.mxu1  ;;  %v452_v11 = vadd.f32 %v8078_v9, %v428_v2  ;;  %v2649_v0 = vshll.u32 %v8332_v56, 16  ;;  %5680 = vst [vmem:[%s8327_s24 + $0xa8] sm:$0x7] %v7733_v22 }
 0x113   : > { %v2648_v12 = vrot.slane %v2646_v28, 3  ;;  %v2663_v28 = vshrl.u32 %v8391_v32, 16 }
 0x114   : > { %v8311_v13 = vadd.f32 %v1002_v1, %v815_v10  ;;  %v658_v16 = vadd.f32 %v637_v3, %v452_v11  ;;  %v2654_v1 = vshrl.u32 %v8346_v33, 16  ;;  %v2651_v18 = vrot.slane %v2649_v0, 4 }
 0x116   : > { %v2656_v26 = vrot.slane %v2654_v1, 3 }
 0x117   : > { %2084 = vperm.xlu0 %7692, %v2062_v15  }
 0x119   : > { %v795_v42 = vpop.f32.mrf.mxu2  ;;  %v431_v48 = vpop.f32.mrf.mxu0 }
 0x11a   : > { %v1004_v43 = vpop.f32.mrf.mxu3  ;;  %v816_v47 = vadd.f32 %v795_v42, %v658_v16  ;;  %v640_v54 = vpop.f32.mrf.mxu1  ;;  %v453_v63 = vadd.f32 %v8078_v9, %v431_v48  ;;  %v2487_v42 = vrot.slane %v8346_v33, 3 }
 0x11c   : > { %v8349_v34 = vadd.f32 %v1004_v43, %v816_v47  ;;  %v659_v35 = vadd.f32 %v640_v54, %v453_v63  ;;  %1281 = vmatmul.bf16.gmra.mxu0 %v1181_v46  ;;  %v2652_v43 = vor.u32 %v2651_v18, %v2648_v12  ;;  %v2660_v46 = vor.u32 %v2659_v27, %v2656_v26  ;;  %v7404_v12 = vld [vmem:[%s9777_s1 + $0x128] sm:$0xff] }
 0x11d   : > { %1441 = vmatmul.bf16.gmra.mxu1 %v1341_v55  ;;  %v1926_v18 = vrot.slane %v8090_v21, 3  ;;  %v8425_v21 = vld [vmem:[%s7833_s6 + $0x54] sm:$0xff]  }
 0x11e   : > { %1656 = vmatmul.bf16.gmra.mxu2 %v1556_v53  ;;  %v2661_v53 = vsel %vm2644_vm6, %v2652_v43, %v2660_v46  ;;  %3325 = vmatpush.bf16.msrb.mxu1 %v7404_v12  ;;  %v2067_v12 = vld [vmem:[%s9779_s3 + $0x30] sm:$0xff] }
 0x11f   : > { %1879 = vmatmul.bf16.gmra.mxu3 %v1779_v23  ;;  %v7582_v23 = vld [vmem:[%s7833_s6 + $0x40] sm:$0xff]   ;;  %2109 = vperm.xlu0 %7692, %v2067_v12  }
 0x121   : > { %v798_v10 = vpop.f32.mrf.mxu2  ;;  %v433_v11 = vpop.f32.mrf.mxu0 }
 0x122   : > { %v1007_v2 = vpop.f32.mrf.mxu3  ;;  %v817_v3 = vadd.f32 %v798_v10, %v659_v35  ;;  %v642_v4 = vpop.f32.mrf.mxu1  ;;  %v454_v16 = vadd.f32 %v8078_v9, %v433_v11  ;;  %v2486_v9 = vrot.slane %v8332_v56, 3  ;;  %v2063_v56 = vld [vmem:[%s9779_s3 + $0x10] sm:$0xff]  ;;  %v2665_v11 = vrot.slane %v2663_v28, 3 }
 0x123   : > { %2089 = vperm.xlu1 %7693, %v2063_v56  }
 0x124   : > { %v8371_v29 = vadd.f32 %v1007_v2, %v817_v3  ;;  %v660_v36 = vadd.f32 %v642_v4, %v454_v16  ;;  %v2488_v44 = vsel %vm1922_vm5, %v2486_v9, %v2487_v42  ;;  %v2064_v2 = vld [vmem:[%s9779_s3 + $0x18] sm:$0xff]  ;;  %v2668_v4 = vrot.slane %v2666_v51, 4  ;;  %v7428_v16 = vld [vmem:[%s9777_s1 + $0x1a8] sm:$0xff]  ;;  %v7427_v51 = vld [vmem:[%s9777_s1 + $0x1a0] sm:$0xff] }
 0x125   : > { %3689 = vmatpush.bf16.msrb.mxu3 %v7428_v16  ;;  %v1927_v9 = vsel %vm1922_vm5, %v1924_v37, %v1926_v18  ;;  %v7411_v37 = vld [vmem:[%s9777_s1 + $0x160] sm:$0xff]  ;;  %v7584_v16 = vld [vmem:[%s7833_s6 + $0x50] sm:$0xff]  }
 0x126   : > { %v2669_v26 = vor.u32 %v2668_v4, %v2665_v11  ;;  %3482 = vmatpush.bf16.msrb.mxu2 %v7411_v37 }
 0x129   : > { %v800_v47 = vpop.f32.mrf.mxu2  ;;  %v1247_v55 = vpop.f32.mrf.mxu0  ;;  %3690 = vmatpush.bf16.msrb.mxu3 %v7427_v51 }
 0x12a   : > { %v1009_v48 = vpop.f32.mrf.mxu3  ;;  %v818_v54 = vadd.f32 %v800_v47, %v660_v36  ;;  %v1407_v22 = vpop.f32.mrf.mxu1  ;;  %v1287_v63 = vadd.f32 %v1247_v55, %v8103_v41  ;;  %v7396_v41 = vld [vmem:[%s9777_s1 + $0xe8] sm:$0xff] }
 0x12b   : > { %3121 = vmatpush.bf16.msrb.mxu0 %v7396_v41  ;;  %2094 = vperm.xlu1 %7693, %v2064_v2   ;;  %v7403_v41 = vld [vmem:[%s9777_s1 + $0x120] sm:$0xff] }
 0x12c   : > { %v8393_v33 = vadd.f32 %v1009_v48, %v818_v54  ;;  %v1447_v35 = vadd.f32 %v1407_v22, %v1287_v63  ;;  %2004 = vmatmul.bf16.vlgmr.msra.gmra.mxu0 %v1925_v50  ;;  %v2670_v48 = vsel %vm2644_vm6, %v2660_v46, %v2669_v26  ;;  %v8422_v54 = vld [vmem:[%s7833_s6 + $0x48] sm:$0xff]   ;;  %v2675_v46 = vshll.u32 %v8425_v21, 16  ;;  %3326 = vmatpush.bf16.msrb.mxu1 %v7403_v41 }
 0x12d   : > { %2567 = vmatmul.bf16.vlgmr.msra.gmra.mxu1 %v2488_v44 }
 0x12e   : > { %2789 = vmatmul.bf16.vlgmr.msra.gmra.mxu2 %v2661_v53 }
 0x12f   : > { %2934 = vmatmul.bf16.vlgmr.msra.gmra.mxu3 %v7582_v23 }
 0x131   : > { %v1622_v52 = vpop.f32.mrf.mxu2  ;;  %v1249_v6 = vpop.f32.mrf.mxu0 }
 0x132   : > { %v1845_v0 = vpop.f32.mrf.mxu3  ;;  %v1662_v1 = vadd.f32 %v1622_v52, %v1447_v35  ;;  %v1409_v10 = vpop.f32.mrf.mxu1  ;;  %v1288_v3 = vadd.f32 %v1249_v6, %v8124_v62  ;;  %v2489_v62 = vrot.slane %v8391_v32, 3  ;;  %v2677_v35 = vrot.slane %v2675_v46, 4  ;;  %v7402_v46 = vld [vmem:[%s9777_s1 + $0x118] sm:$0xff] }
 0x133   : > { %v1928_v52 = vrot.slane %v8122_v61, 3  ;;  %3327 = vmatpush.bf16.msrb.mxu1 %v7402_v46 }
 0x134   : > { %v8407_v5 = vadd.f32 %v1845_v0, %v1662_v1  ;;  %v1448_v15 = vadd.f32 %v1409_v10, %v1288_v3  ;;  %v2490_v43 = vsel %vm1922_vm5, %v2487_v42, %v2489_v62  ;;  %v2672_v42 = vshrl.u32 %v8425_v21, 16 }
 0x135   : > { %v2491_v0 = vrot.slane %v8425_v21, 3  ;;  %v1929_v11 = vsel %vm1922_vm5, %v1926_v18, %v1928_v52  ;;  %v7410_v18 = vld [vmem:[%s9777_s1 + $0x158] sm:$0xff] }
 0x136   : > { %v2674_v32 = vrot.slane %v2672_v42, 3  ;;  %3483 = vmatpush.bf16.msrb.mxu2 %v7410_v18  ;;  %v2068_v21 = vld [vmem:[%s9779_s3 + $0x38] sm:$0xff] }
 0x137   : > { %v2492_v4 = vsel %vm1922_vm5, %v2489_v62, %v2491_v0  ;;  %2114 = vperm.xlu1 %7693, %v2068_v21  }
 0x139   : > { %v1624_v27 = vpop.f32.mrf.mxu2  ;;  %v1252_v31 = vpop.f32.mrf.mxu0 }
 0x13a   : > { %v1847_v30 = vpop.f32.mrf.mxu3  ;;  %v1663_v36 = vadd.f32 %v1624_v27, %v1448_v15  ;;  %v1412_v38 = vpop.f32.mrf.mxu1  ;;  %v1289_v47 = vadd.f32 %v1252_v31, %v8137_v17  ;;  %v7395_v17 = vld [vmem:[%s9777_s1 + $0xe0] sm:$0xff] }
 0x13b   : > { %3122 = vmatpush.bf16.msrb.mxu0 %v7395_v17  ;;  %v8458_v27 = vld [vmem:[%s7833_s6 + $0x5c] sm:$0xff]  }
 0x13c   : > { %v8427_v55 = vadd.f32 %v1847_v30, %v1663_v36  ;;  %v1449_v22 = vadd.f32 %v1412_v38, %v1289_v47  ;;  %2009 = vmatmul.bf16.gmra.mxu0 %v1927_v9  ;;  %v2681_v62 = vshrl.u32 %v8458_v27, 16 }
 0x13d   : > { %2572 = vmatmul.bf16.gmra.mxu1 %v2490_v43 }
 0x13e   : > { %2794 = vmatmul.bf16.gmra.mxu2 %v2670_v48  ;;  %v2065_v48 = vld [vmem:[%s9779_s3 + $0x20] sm:$0xff]  ;;  %v2683_v37 = vrot.slane %v2681_v62, 3 }
 0x13f   : > { %2939 = vmatmul.bf16.gmra.mxu3 %v8422_v54  ;;  %2099 = vperm.xlu2 %7694, %v2065_v48  }
 0x141   : > { %v1627_v50 = vpop.f32.mrf.mxu2  ;;  %v1254_v63 = vpop.f32.mrf.mxu0 }
 0x142   : > { %v1850_v44 = vpop.f32.mrf.mxu3  ;;  %v1664_v56 = vadd.f32 %v1627_v50, %v1449_v22  ;;  %v1414_v53 = vpop.f32.mrf.mxu1  ;;  %v1290_v23 = vadd.f32 %v1254_v63, %v8158_v40  ;;  %v2678_v40 = vor.u32 %v2677_v35, %v2674_v32 }
 0x144   : > { %v8439_v24 = vadd.f32 %v1850_v44, %v1664_v56  ;;  %v1450_v28 = vadd.f32 %v1414_v53, %v1290_v23  ;;  %v2679_v15 = vsel %vm2644_vm6, %v2669_v26, %v2678_v40  ;;  %v2684_v26 = vshll.u32 %v8458_v27, 16  ;;  %v7426_v44 = vld [vmem:[%s9777_s1 + $0x198] sm:$0xff] }
 0x145   : > { %v1930_v56 = vrot.slane %v8156_v39, 3  ;;  %3691 = vmatpush.bf16.msrb.mxu3 %v7426_v44 }
 0x146   : > { %v2686_v17 = vrot.slane %v2684_v26, 4  ;;  %v7401_v26 = vld [vmem:[%s9777_s1 + $0x110] sm:$0xff] }
 0x147   : > { %3328 = vmatpush.bf16.msrb.mxu1 %v7401_v26 }
 0x148   : > { %v2687_v63 = vor.u32 %v2686_v17, %v2683_v37 }
 0x149   : > { %v1629_v1 = vpop.f32.mrf.mxu2  ;;  %v1257_v2 = vpop.f32.mrf.mxu0 }
 0x14a   : > { %v1852_v6 = vpop.f32.mrf.mxu3  ;;  %v1665_v10 = vadd.f32 %v1629_v1, %v1450_v28  ;;  %v1417_v3 = vpop.f32.mrf.mxu1  ;;  %v1291_v61 = vadd.f32 %v1257_v2, %v8171_v60  ;;  %v7394_v60 = vld [vmem:[%s9777_s1 + $0xd8] sm:$0xff]  ;;  %v1931_v28 = vsel %vm1922_vm5, %v1928_v52, %v1930_v56  ;;  %v2066_v1 = vld [vmem:[%s9779_s3 + $0x28] sm:$0xff]  ;;  %v7409_v52 = vld [vmem:[%s9777_s1 + $0x150] sm:$0xff] }
 0x14b   : > { %3123 = vmatpush.bf16.msrb.mxu0 %v7394_v60  ;;  %v8496_v2 = vld [vmem:[%s7833_s6 + $0x64] sm:$0xff]   ;;  %2104 = vperm.xlu2 %7694, %v2066_v1  }
 0x14c   : > { %v8460_v30 = vadd.f32 %v1852_v6, %v1665_v10  ;;  %v1451_v36 = vadd.f32 %v1417_v3, %v1291_v61  ;;  %2014 = vmatmul.bf16.gmra.mxu0 %v1929_v11  ;;  %v2688_v6 = vsel %vm2644_vm6, %v2678_v40, %v2687_v63  ;;  %v7585_v10 = vld [vmem:[%s7833_s6 + $0x58] sm:$0xff]   ;;  %v2693_v40 = vshll.u32 %v8496_v2, 16  ;;  %3484 = vmatpush.bf16.msrb.mxu2 %v7409_v52 }
 0x14d   : > { %2577 = vmatmul.bf16.gmra.mxu1 %v2492_v4 }
 0x14e   : > { %2799 = vmatmul.bf16.gmra.mxu2 %v2679_v15  ;;  %v2695_v60 = vrot.slane %v2693_v40, 4  ;;  %v7400_v40 = vld [vmem:[%s9777_s1 + $0x108] sm:$0xff] }
 0x14f   : > { %2944 = vmatmul.bf16.gmra.mxu3 %v7584_v16  ;;  %3329 = vmatpush.bf16.msrb.mxu1 %v7400_v40 }
 0x151   : > { %v1632_v31 = vpop.f32.mrf.mxu2  ;;  %v1259_v43 = vpop.f32.mrf.mxu0 }
 0x152   : > { %v1855_v38 = vpop.f32.mrf.mxu3  ;;  %v1666_v9 = vadd.f32 %v1632_v31, %v1451_v36  ;;  %v1419_v47 = vpop.f32.mrf.mxu1  ;;  %v1292_v22 = vadd.f32 %v1259_v43, %v8192_v20  ;;  %v2493_v20 = vrot.slane %v8458_v27, 3  ;;  %v2070_v27 = vld [vmem:[%s9779_s3 + $0x48] sm:$0xff] }
 0x153   : > { %2124 = vperm.xlu0 %7692, %v2070_v27  }
 0x154   : > { %v8477_v42 = vadd.f32 %v1855_v38, %v1666_v9  ;;  %v1452_v50 = vadd.f32 %v1419_v47, %v1292_v22  ;;  %v2494_v51 = vsel %vm1922_vm5, %v2491_v0, %v2493_v20  ;;  %v2690_v0 = vshrl.u32 %v8496_v2, 16  ;;  %v7425_v38 = vld [vmem:[%s9777_s1 + $0x190] sm:$0xff] }
 0x155   : > { %v1932_v9 = vrot.slane %v8190_v19, 3  ;;  %3692 = vmatpush.bf16.msrb.mxu3 %v7425_v38 }
 0x156   : > { %v2692_v18 = vrot.slane %v2690_v0, 3  ;;  %v8553_v0 = vld [vmem:[%s7833_s6 + $0x78] sm:$0xf] }
 0x157   : > { %v1933_v17 = vsel %vm1922_vm5, %v1930_v56, %v1932_v9  ;;  %v7408_v56 = vld [vmem:[%s9777_s1 + $0x148] sm:$0xff]  ;;  %v2475_v27 = vunpack.c.l.b16 %v8553_v0  ;;  %v7453_v0 = vld [vmem:[%s9777_s1 + $0x238] sm:$0xff] }
 0x158   : > { %v2696_v43 = vor.u32 %v2695_v60, %v2692_v18  ;;  %3485 = vmatpush.bf16.msrb.mxu2 %v7408_v56 }
 0x159   : > { %v1634_v53 = vpop.f32.mrf.mxu2  ;;  %v1262_v35 = vpop.f32.mrf.mxu0 }
 0x15a   : > { %v1857_v23 = vpop.f32.mrf.mxu3  ;;  %v1667_v32 = vadd.f32 %v1634_v53, %v1452_v50  ;;  %v1422_v41 = vpop.f32.mrf.mxu1  ;;  %v1293_v39 = vadd.f32 %v1262_v35, %v8205_v45  ;;  %v7393_v45 = vld [vmem:[%s9777_s1 + $0xd0] sm:$0xff]  ;;  %v2697_v44 = vsel %vm2644_vm6, %v2687_v63, %v2696_v43  ;;  %v7586_v53 = vld [vmem:[%s7833_s6 + $0x60] sm:$0xff]  }
 0x15b   : > { %3124 = vmatpush.bf16.msrb.mxu0 %v7393_v45  ;;  %v2071_v50 = vld [vmem:[%s9779_s3 + $0x50] sm:$0xff] }
 0x15c   : > { %v8498_v3 = vadd.f32 %v1857_v23, %v1667_v32  ;;  %v1453_v11 = vadd.f32 %v1422_v41, %v1293_v39  ;;  %2019 = vmatmul.bf16.gmra.mxu0 %v1931_v28  ;;  %v8531_v23 = vld [vmem:[%s7833_s6 + $0x6c] sm:$0xff]   ;;  %2129 = vperm.xlu1 %7693, %v2071_v50  }
 0x15d   : > { %2582 = vmatmul.bf16.gmra.mxu1 %v2494_v51  ;;  %v2702_v63 = vshll.u32 %v8531_v23, 16  ;;  %v8550_v45 = vld [vmem:[%s7833_s6 + $0x70] sm:$0xff]  }
 0x15e   : > { %2804 = vmatmul.bf16.gmra.mxu2 %v2688_v6  ;;  %v2069_v6 = vld [vmem:[%s9779_s3 + $0x40] sm:$0xff] }
 0x15f   : > { %2949 = vmatmul.bf16.gmra.mxu3 %v7585_v10  ;;  %2119 = vperm.xlu2 %7694, %v2069_v6  }
 0x161   : > { %v1637_v4 = vpop.f32.mrf.mxu2  ;;  %v1264_v15 = vpop.f32.mrf.mxu0 }
 0x162   : > { %v1860_v12 = vpop.f32.mrf.mxu3  ;;  %v1668_v61 = vadd.f32 %v1637_v4, %v1453_v11  ;;  %v1424_v16 = vpop.f32.mrf.mxu1  ;;  %v1294_v36 = vadd.f32 %v1264_v15, %v8226_v8  ;;  %v2495_v8 = vrot.slane %v8496_v2, 3  ;;  %v2704_v11 = vrot.slane %v2702_v63, 4 }
 0x164   : > { %v8512_v62 = vadd.f32 %v1860_v12, %v1668_v61  ;;  %v1454_v31 = vadd.f32 %v1424_v16, %v1294_v36  ;;  %v2496_v46 = vsel %vm1922_vm5, %v2493_v20, %v2495_v8  ;;  %v2699_v20 = vshrl.u32 %v8531_v23, 16  ;;  %v7424_v12 = vld [vmem:[%s9777_s1 + $0x188] sm:$0xff] }
 0x165   : > { %v2497_v61 = vrot.slane %v8531_v23, 3  ;;  %v7562_v16 = vunpack.c.h.b16 %v8550_v45  ;;  %3693 = vmatpush.bf16.msrb.mxu3 %v7424_v12 }
 0x166   : > { %v2701_v2 = vrot.slane %v2699_v20, 3 }
 0x168   : > { %v2705_v15 = vor.u32 %v2704_v11, %v2701_v2 }
 0x169   : > { %v1639_v47 = vpop.f32.mrf.mxu2  ;;  %v1267_v22 = vpop.f32.mrf.mxu0 }
 0x16a   : > { %v1862_v48 = vpop.f32.mrf.mxu3  ;;  %v1669_v21 = vadd.f32 %v1639_v47, %v1454_v31  ;;  %v1427_v37 = vpop.f32.mrf.mxu1  ;;  %v1295_v19 = vadd.f32 %v1267_v22, %v8239_v25  ;;  %v7392_v25 = vld [vmem:[%s9777_s1 + $0xc8] sm:$0xff]  ;;  %v2498_v47 = vsel %vm1922_vm5, %v2495_v8, %v2497_v61 }
 0x16b   : > { %3125 = vmatpush.bf16.msrb.mxu0 %v7392_v25  ;;  %v7587_v22 = vld [vmem:[%s7833_s6 + $0x68] sm:$0xff]  }
 0x16c   : > { %v8533_v32 = vadd.f32 %v1862_v48, %v1669_v21  ;;  %v1455_v35 = vadd.f32 %v1427_v37, %v1295_v19  ;;  %2024 = vmatmul.bf16.gmra.mxu0 %v1933_v17  ;;  %v2706_v21 = vsel %vm2644_vm6, %v2696_v43, %v2705_v15  ;;  %v8575_v37 = vpack.c.b16 %v2475_v27, %v7562_v16 }
 0x16d   : > { %2587 = vmatmul.bf16.gmra.mxu1 %v2496_v46 }
 0x16e   : > { %2809 = vmatmul.bf16.gmra.mxu2 %v2697_v44  ;;  %v2708_v8 = vshrl.u32 %v8575_v37, 16  ;;  %v2711_v43 = vshll.u32 %v8575_v37, 16 }
 0x16f   : > { %2954 = vmatmul.bf16.gmra.mxu3 %v7586_v53 }
 0x170   : > { %v2710_v25 = vrot.slane %v2708_v8, 3  ;;  %v2713_v20 = vrot.slane %v2711_v43, 4  ;;  %v2076_v8 = vld [vmem:[%s9779_s3 + $0x78] sm:$0x3f] }
 0x171   : > { %v1642_v41 = vpop.f32.mrf.mxu2  ;;  %v1269_v1 = vpop.f32.mrf.mxu0 }
 0x172   : > { %v1865_v28 = vpop.f32.mrf.mxu3  ;;  %v1670_v51 = vadd.f32 %v1642_v41, %v1455_v35  ;;  %v1429_v39 = vpop.f32.mrf.mxu1  ;;  %v1296_v10 = vadd.f32 %v1269_v1, %v8260_v58  ;;  %v1934_v58 = vrot.slane %v8224_v7, 3  ;;  %v2073_v7 = vld [vmem:[%s9779_s3 + $0x60] sm:$0xff]  ;;  %v2074_v35 = vld [vmem:[%s9779_s3 + $0x68] sm:$0xff]  ;;  %v2624_v41 = vld [vmem:[%s7833_s6 + $0x7c] sm:$0x7]  ;;  %v2714_v6 = vor.u32 %v2713_v20, %v2710_v25 }
 0x173   : > { %2139 = vperm.xlu0 %7692, %v2073_v7   ;;  %2144 = vperm.xlu1 %7693, %v2074_v35   ;;  %v7423_v1 = vld [vmem:[%s9777_s1 + $0x180] sm:$0xff] }
 0x174   : > { %v8547_v52 = vadd.f32 %v1865_v28, %v1670_v51  ;;  %v1456_v4 = vadd.f32 %v1429_v39, %v1296_v10  ;;  %v1935_v38 = vsel %vm1922_vm5, %v1932_v9, %v1934_v58  ;;  %v7407_v9 = vld [vmem:[%s9777_s1 + $0x140] sm:$0xff]  ;;  %v1936_v39 = vrot.slane %v8258_v57, 3  ;;  %3694 = vmatpush.bf16.msrb.mxu3 %v7423_v1  ;;  %v2072_v57 = vld [vmem:[%s9779_s3 + $0x58] sm:$0xff] }
 0x175   : > { %3486 = vmatpush.bf16.msrb.mxu2 %v7407_v9  ;;  %v7399_v28 = vld [vmem:[%s9777_s1 + $0x100] sm:$0xff]  ;;  %v2642_v10 = vunpack.c.l.b16 %v2624_v41  ;;  %2134 = vperm.xlu2 %7694, %v2072_v57  }
 0x176   : > { %3330 = vmatpush.bf16.msrb.mxu1 %v7399_v28  ;;  %v1937_v16 = vsel %vm1922_vm5, %v1934_v58, %v1936_v39 }
 0x179   : > { %v1644_v36 = vpop.f32.mrf.mxu2  ;;  %v1272_v26 = vpop.f32.mrf.mxu0 }
 0x17a   : > { %v1867_v18 = vpop.f32.mrf.mxu3  ;;  %v1671_v60 = vadd.f32 %v1644_v36, %v1456_v4  ;;  %v1432_v31 = vpop.f32.mrf.mxu1  ;;  %v1297_v48 = vadd.f32 %v1272_v26, %v8273_v14  ;;  %v7391_v14 = vld [vmem:[%s9777_s1 + $0xc0] sm:$0xff]  ;;  %v2426_v26 = vld [vmem:[%s7833_s6 + $0x7c] sm:$0x3]  ;;  %4118 = vmatpush.bf16.msra.mxu1 %v7453_v0 }
 0x17b   : > { %3126 = vmatpush.bf16.msrb.mxu0 %v7391_v14  ;;  %2154 = vperm.xlu0 %7692, %v2076_v8  }
 0x17c   : > { %v8577_v17 = vadd.f32 %v1867_v18, %v1671_v60  ;;  %v1457_v46 = vadd.f32 %v1432_v31, %v1297_v48  ;;  %2029 = vmatmul.bf16.gmra.mxu0 %v1935_v38  ;;  %v2715_v60 = vsel %vm2644_vm6, %v2705_v15, %v2714_v6  ;;  %v2643_v31 = vpack.c.b16 %v2642_v10, %v2642_v10 }
 0x17d   : > { %2592 = vmatmul.bf16.gmra.mxu1 %v2498_v47 }
 0x17e   : > { %2814 = vmatmul.bf16.gmra.mxu2 %v2706_v21  ;;  %v2717_v7 = vshrl.u32 %v2643_v31, 16  ;;  %v2720_v48 = vshll.u32 %v2643_v31, 16 }
 0x17f   : > { %2959 = vmatmul.bf16.gmra.mxu3 %v7587_v22 }
 0x181   : > { %v1647_v50 = vpop.f32.mrf.mxu2  ;;  %v1274_v53 = vpop.f32.mrf.mxu0 }
 0x182   : > { %v1870_v19 = vpop.f32.mrf.mxu3  ;;  %v1672_v44 = vadd.f32 %v1647_v50, %v1457_v46  ;;  %v1434_v23 = vpop.f32.mrf.mxu1  ;;  %v1298_v56 = vadd.f32 %v1274_v53, %v8299_v49  ;;  %v2499_v49 = vrot.slane %v8575_v37, 3  ;;  %v2722_v50 = vrot.slane %v2720_v48, 4 }
 0x183   : > { %v1938_v53 = vrot.slane %v8297_v59, 3  ;;  %v7463_v59 = vld [vmem:[%s9777_s1 + $0x38] sm:$0xff] }
 0x184   : > { %v8591_v63 = vadd.f32 %v1870_v19, %v1672_v44  ;;  %v1458_v51 = vadd.f32 %v1434_v23, %v1298_v56  ;;  %v2500_v36 = vsel %vm1922_vm5, %v2497_v61, %v2499_v49  ;;  %v255_v61 = vld [vmem:[%s8327_s24 + $0x8] sm:$0x3]  ;;  %4602 = vmatpush.bf16.msra.mxu2 %v7463_v59  ;;  %7642 = vmatpush.bf16.msra.mxu3 %v7463_v59 }
 0x185   : > { %v256_v15 = vsel %vm8613_vm9, 0, %v255_v61  ;;  %v2075_v61 = vld [vmem:[%s9779_s3 + $0x70] sm:$0xff] }
 0x186   : > { %257 = vst [vmem:[%s8327_s24 + $0x8] sm:$0x3] %v256_v15  ;;  %2149 = vperm.xlu2 %7694, %v2075_v61  }
 0x189   : > { %v1649_v2 = vpop.f32.mrf.mxu2  ;;  %v1277_v4 = vpop.f32.mrf.mxu0 }
 0x18a   : > { %v1872_v11 = vpop.f32.mrf.mxu3  ;;  %v1673_v40 = vadd.f32 %v1649_v2, %v1458_v51  ;;  %v1437_v12 = vpop.f32.mrf.mxu1  ;;  %v1299_v18 = vadd.f32 %v1277_v4, %v8311_v13  ;;  %v2476_v13 = vunpack.c.l.b16 %v2426_v26  ;;  %v1939_v51 = vsel %vm1922_vm5, %v1936_v39, %v1938_v53  ;;  %v7445_v2 = vld [vmem:[%s9777_s1 + $0x1f8] sm:$0xff]  ;;  %v6637_v4 = vld [vmem:[%s7833_s6 + $0x50] sm:$0xe] }
 0x18b   : > { %3960 = vmatpush.bf16.msra.mxu0 %v7445_v2  ;;  %v3205_v26 = vshrl.u32 %v8422_v54, 16  ;;  %v8694_v2 = vld [vmem:[%s7833_s6 + $0x58] sm:$0xff] }
 0x18c   : > { %v8610_v38 = vadd.f32 %v1872_v11, %v1673_v40  ;;  %v1459_v47 = vadd.f32 %v1437_v12, %v1299_v18  ;;  %2034 = vmatmul.bf16.gmra.mxu0 %v1937_v16  ;;  %v2485_v14 = vpack.c.b16 %v2476_v13, %v2476_v13  ;;  %v7591_v40 = vld [vmem:[%s7833_s6 + $0x48] sm:$0xe]  ;;  %v7415_v12 = vld [vmem:[%s7833_s6 + $0x50] sm:$0xf0] }
 0x18d   : > { %2597 = vmatmul.bf16.gmra.mxu1 %v2500_v36  ;;  %v6638_v48 = vor.u32 %v7415_v12, %v6637_v4  ;;  %v3220_v12 = vshll.u32 %v8694_v2, 16 }
 0x18e   : > { %2819 = vmatmul.bf16.gmra.mxu2 %v2715_v60  ;;  %v2501_v23 = vrot.slane %v2485_v14, 3 }
 0x18f   : > { %2964 = vmatmul.bf16.gmra.mxu3 %v8550_v45  ;;  %v2719_v45 = vrot.slane %v2717_v7, 3  ;;  %v8661_v7 = vld [vmem:[%s7833_s6 + $0x58] sm:$0xff] }
 0x190   : > { %v2502_v1 = vsel %vm1922_vm5, %v2499_v49, %v2501_v23 }
 0x191   : > { %v1652_v21 = vpop.f32.mrf.mxu2  ;;  %v1279_v46 = vpop.f32.mrf.mxu0  ;;  %v2723_v35 = vor.u32 %v2722_v50, %v2719_v45  ;;  %v3617_v45 = vrot.slane %v8661_v7, 1 }
 0x192   : > { %v1875_v22 = vpop.f32.mrf.mxu3  ;;  %v1674_v37 = vadd.f32 %v1652_v21, %v1459_v47  ;;  %v1439_v9 = vpop.f32.mrf.mxu1  ;;  %v1300_v43 = vadd.f32 %v1279_v46, %v8349_v34  ;;  %v2869_v34 = vpack.c.b16 %v2642_v10, %v2475_v27  ;;  %v8648_v10 = vld [vmem:[%s7833_s6 + $0x50] sm:$0xff] }
 0x193   : > { %v2724_v39 = vsel %vm2644_vm6, %v2714_v6, %v2723_v35  ;;  %v7590_v6 = vld [vmem:[%s7833_s6 + $0x48] sm:$0xf0]  ;;  %v3212_v47 = vshll.u32 %v8648_v10, 16  ;;  %v3409_v8 = vrot.slane %v8648_v10, 1  ;;  %v3216_v4 = vshrl.u32 %v8648_v10, 16 }
 0x194   : > { %v8626_v19 = vadd.f32 %v1875_v22, %v1674_v37  ;;  %v1460_v44 = vadd.f32 %v1439_v9, %v1300_v43  ;;  %v7592_v15 = vor.u32 %v7591_v40, %v7590_v6  ;;  %v2080_v37 = vpop.permute.xlu0 %2079  ;;  %v3616_v43 = vrot.slane %v6638_v48, 1 }
 0x195   : > { %v3214_v9 = vrot.slane %v3212_v47, 1 }
 0x196   : > { %v3408_v14 = vrot.slane %v7592_v15, 1  ;;  %v2090_v15 = vpop.permute.xlu1 %2089 }
 0x197   : > { %v3218_v48 = vor.u32 %v3216_v4, %v3214_v9 }
 0x199   : > { %v1654_v56 = vpop.f32.mrf.mxu2  ;;  %v1282_v41 = vpop.f32.mrf.mxu0 }
 0x19a   : > { %v1877_v25 = vpop.f32.mrf.mxu3  ;;  %v1675_v20 = vadd.f32 %v1654_v56, %v1460_v44  ;;  %v1442_v28 = vpop.f32.mrf.mxu1  ;;  %v1301_v11 = vadd.f32 %v1282_v41, %v8371_v29  ;;  %v3207_v29 = vshll.u32 %v8422_v54, 16  ;;  %v7462_v56 = vld [vmem:[%s9777_s1 + $0x30] sm:$0xff]  ;;  %v3410_v41 = vsel %vm682_vm1, %v3408_v14, %v3409_v8 }
 0x19b   : > { %4603 = vmatpush.bf16.msra.mxu2 %v7462_v56  ;;  %7643 = vmatpush.bf16.msra.mxu3 %v7462_v56 }
 0x19c   : > { %v8644_v27 = vadd.f32 %v1877_v25, %v1675_v20  ;;  %v1461_v49 = vadd.f32 %v1442_v28, %v1301_v11  ;;  %2039 = vmatmul.bf16.gmra.mxu0 %v1939_v51  ;;  %v3209_v31 = vrot.slane %v3207_v29, 1  ;;  %v7444_v25 = vld [vmem:[%s9777_s1 + $0x1f0] sm:$0xff]  ;;  %v3618_v28 = vsel %vm682_vm1, %v3616_v43, %v3617_v45 }
 0x19d   : > { %2602 = vmatmul.bf16.gmra.mxu1 %v2502_v1  ;;  %v7452_v51 = vld [vmem:[%s9777_s1 + $0x230] sm:$0xff]  ;;  %3961 = vmatpush.bf16.msra.mxu0 %v7444_v25 }
 0x19e   : > { %2824 = vmatmul.bf16.gmra.mxu2 %v2724_v39  ;;  %v3210_v46 = vor.u32 %v3209_v31, %v3205_v26  ;;  %4119 = vmatpush.bf16.msra.mxu1 %v7452_v51  ;;  %v2085_v39 = vpop.permute.xlu0 %2084 }
 0x19f   : > { %2969 = vmatmul.bf16.gmra.mxu3 %v2869_v34 }
 0x1a0   : > { %v3215_v35 = vsel %vm476_vm0, %v3210_v46, %v3214_v9 }
 0x1a1   : > { %v1657_v16 = vpop.f32.mrf.mxu2  ;;  %v1284_v18 = vpop.f32.mrf.mxu0 }
 0x1a2   : > { %v1880_v36 = vpop.f32.mrf.mxu3  ;;  %v1676_v57 = vadd.f32 %v1657_v16, %v1461_v49  ;;  %v1444_v60 = vpop.f32.mrf.mxu1  ;;  %v1302_v13 = vadd.f32 %v1284_v18, %v8393_v33  ;;  %v8700_v18 = vld [vmem:[%s7833_s6 + $0x60] sm:$0xff] }
 0x1a3   : > { %v3619_v14 = vrot.slane %v8700_v18, 1  ;;  %v8793_v18 = vld [vmem:[%s7833_s6 + $0x68] sm:$0xff] }
 0x1a4   : > { %v8663_v21 = vadd.f32 %v1880_v36, %v1676_v57  ;;  %v1462_v22 = vadd.f32 %v1444_v60, %v1302_v13  ;;  %v2386_v13 = vld [vmem:[%s8327_s24 + $0x8] sm:$0xe] }
 0x1a9   : > { %v1659_v50 = vpop.f32.mrf.mxu2  ;;  %v2005_v53 = vpop.f32.mrf.mxu0 }
 0x1aa   : > { %v1882_v44 = vpop.f32.mrf.mxu3  ;;  %v1677_v33 = vadd.f32 %v1659_v50, %v1462_v22  ;;  %v2568_v23 = vpop.f32.mrf.mxu1  ;;  %v2045_v20 = vadd.f32 %v2005_v53, %v8407_v5  ;;  %v8690_v5 = vld [vmem:[%s9778_s2] ss:$0 sm:$0xff]  ;;  %v3222_v22 = vrot.slane %v3220_v12, 1 }
 0x1ab   : > { %v2608_v59 = vadd.f32 %v8690_v5, %v2568_v23 }
 0x1ac   : > { %v8684_v1 = vadd.f32 %v1882_v44, %v1677_v33  ;;  %v2157_v34 = vmul.f32 %v2080_v37, %v2045_v20  ;;  %3127 = vmatmul.bf16.vlgmr.msrb.gmra.mxu0 %v8422_v54  ;;  %v3411_v37 = vrot.slane %v8694_v2, 1  ;;  %v3223_v56 = vsel %vm476_vm0, %v3218_v48, %v3222_v22  ;;  %v7461_v20 = vld [vmem:[%s9777_s1 + $0x28] sm:$0xff] }
 0x1ad   : > { %3331 = vmatmul.bf16.vlgmr.msrb.gmra.mxu1 %v3215_v35  ;;  %4604 = vmatpush.bf16.msra.mxu2 %v7461_v20 }
 0x1ae   : > { %3487 = vmatmul.bf16.vlgmr.msrb.gmra.mxu2 %v3410_v41  ;;  %v2173_v11 = vmax.f32 %v2157_v34, 0.0  ;;  %v3412_v25 = vsel %vm682_vm1, %v3409_v8, %v3411_v37  ;;  %v7443_v41 = vld [vmem:[%s9777_s1 + $0x1e8] sm:$0xff]  ;;  %7644 = vmatpush.bf16.msra.mxu3 %v7461_v20 }
 0x1af   : > { %3695 = vmatmul.bf16.vlgmr.msrb.gmra.mxu3 %v3618_v28  ;;  %v7451_v8 = vld [vmem:[%s9777_s1 + $0x228] sm:$0xff]  ;;  %3962 = vmatpush.bf16.msra.mxu0 %v7443_v41 }
 0x1b0   : > { %v2189_v0 = vpack.c.bf16 %v2173_v11, %v2173_v11  ;;  %4120 = vmatpush.bf16.msra.mxu1 %v7451_v8 }
 0x1b1   : > { %v2790_v49 = vpop.f32.mrf.mxu2  ;;  %v2007_v6 = vpop.f32.mrf.mxu0 }
 0x1b2   : > { %v2935_v54 = vpop.f32.mrf.mxu3  ;;  %v2830_v29 = vadd.f32 %v2790_v49, %v2608_v59  ;;  %v2570_v40 = vpop.f32.mrf.mxu1  ;;  %v2208_v16 = vshrl.u32 %v2189_v0, 16  ;;  %v2211_v36 = vshll.u32 %v2189_v0, 16  ;;  %v2046_v57 = vadd.f32 %v2007_v6, %v8427_v55 }
 0x1b3   : > { %v2609_v43 = vadd.f32 %v8690_v5, %v2570_v40  ;;  %v3620_v59 = vsel %vm682_vm1, %v3617_v45, %v3619_v14  ;;  %v8748_v45 = vld [vmem:[%s7833_s6 + $0x60] sm:$0xff] }
 0x1b4   : > { %v8702_v60 = vadd.f32 %v2935_v54, %v2830_v29  ;;  %v2210_v26 = vrot.slane %v2208_v16, 6  ;;  %v2213_v31 = vrot.slane %v2211_v36, 7  ;;  %v2158_v47 = vmul.f32 %v2085_v39, %v2046_v57 }
 0x1b6   : > { %v2214_v55 = vor.u32 %v2213_v31, %v2210_v26  ;;  %v2174_v46 = vmax.f32 %v2158_v47, 0.0  ;;  %v3224_v31 = vshrl.u32 %v8694_v2, 16  ;;  %v3228_v47 = vshll.u32 %v8748_v45, 16 }
 0x1b8   : > { %v2387_v50 = vsel %vm8705_vm12, %v2214_v55, %v2386_v13  ;;  %v2190_v44 = vpack.c.bf16 %v2174_v46, %v2174_v46  ;;  %v2215_v54 = vrot.slane %v2214_v55, 4  ;;  %v8757_v55 = vld [vmem:[%s7833_s6 + $0x68] sm:$0xff] }
 0x1b9   : > { %v2792_v33 = vpop.f32.mrf.mxu2  ;;  %2388 = vst [vmem:[%s8327_s24 + $0x8] sm:$0xe] %v2387_v50  ;;  %v2010_v35 = vpop.f32.mrf.mxu0  ;;  %v3621_v20 = vrot.slane %v8757_v55, 1  ;;  %v8838_v55 = vld [vmem:[%s7833_s6 + $0x70] sm:$0xff] }
 0x1ba   : > { %v2937_v53 = vpop.f32.mrf.mxu3  ;;  %v2831_v23 = vadd.f32 %v2792_v33, %v2609_v43  ;;  %v2573_v9 = vpop.f32.mrf.mxu1  ;;  %v2217_v28 = vshrl.u32 %v2190_v44, 16  ;;  %v2220_v51 = vshll.u32 %v2190_v44, 16  ;;  %v2047_v34 = vadd.f32 %v2010_v35, %v8439_v24 }
 0x1bb   : > { %v2610_v7 = vadd.f32 %v8690_v5, %v2573_v9  ;;  %v2100_v33 = vpop.permute.xlu2 %2099  ;;  %v3413_v35 = vrot.slane %v8748_v45, 1 }
 0x1bc   : > { %v8737_v11 = vadd.f32 %v2937_v53, %v2831_v23  ;;  %v2219_v39 = vrot.slane %v2217_v28, 6  ;;  %v2222_v0 = vrot.slane %v2220_v51, 7  ;;  %v2159_v49 = vmul.f32 %v2090_v15, %v2047_v34  ;;  %3132 = vmatmul.bf16.gmra.mxu0 %v8648_v10  ;;  %v2095_v10 = vpop.permute.xlu1 %2094 }
 0x1bd   : > { %3336 = vmatmul.bf16.gmra.mxu1 %v3223_v56  ;;  %v3226_v53 = vor.u32 %v3224_v31, %v3222_v22  ;;  %v3230_v23 = vrot.slane %v3228_v47, 1 }
 0x1be   : > { %3492 = vmatmul.bf16.gmra.mxu2 %v3412_v25  ;;  %v2223_v29 = vor.u32 %v2222_v0, %v2219_v39  ;;  %v2175_v6 = vmax.f32 %v2159_v49, 0.0  ;;  %v3414_v0 = vsel %vm682_vm1, %v3411_v37, %v3413_v35  ;;  %v7460_v49 = vld [vmem:[%s9777_s1 + $0x20] sm:$0xff] }
 0x1bf   : > { %3700 = vmatmul.bf16.gmra.mxu3 %v3620_v59  ;;  %v3231_v39 = vsel %vm476_vm0, %v3226_v53, %v3230_v23  ;;  %v7450_v37 = vld [vmem:[%s9777_s1 + $0x220] sm:$0xff]  ;;  %4605 = vmatpush.bf16.msra.mxu2 %v7460_v49 }
 0x1c0   : > { %v2224_v40 = vsel %vm8742_vm14, %v2215_v54, %v2223_v29  ;;  %v2191_v4 = vpack.c.bf16 %v2175_v6, %v2175_v6  ;;  %v2225_v9 = vrot.slane %v2223_v29, 4  ;;  %4121 = vmatpush.bf16.msra.mxu1 %v7450_v37  ;;  %7645 = vmatpush.bf16.msra.mxu3 %v7460_v49 }
 0x1c1   : > { %v2795_v12 = vpop.f32.mrf.mxu2  ;;  %2389 = vst [vmem:[%s8327_s24 + $0xc] sm:$0xf] %v2224_v40  ;;  %v2012_v57 = vpop.f32.mrf.mxu0 }
 0x1c2   : > { %v2940_v16 = vpop.f32.mrf.mxu3  ;;  %v2832_v36 = vadd.f32 %v2795_v12, %v2610_v7  ;;  %v2575_v26 = vpop.f32.mrf.mxu1  ;;  %v2227_v13 = vshrl.u32 %v2191_v4, 16  ;;  %v2230_v15 = vshll.u32 %v2191_v4, 16  ;;  %v2048_v48 = vadd.f32 %v2012_v57, %v8460_v30  ;;  %v7442_v7 = vld [vmem:[%s9777_s1 + $0x1e0] sm:$0xff] }
 0x1c3   : > { %v2611_v30 = vadd.f32 %v8690_v5, %v2575_v26  ;;  %3963 = vmatpush.bf16.msra.mxu0 %v7442_v7  ;;  %v2105_v26 = vpop.permute.xlu2 %2104 }
 0x1c4   : > { %v8759_v46 = vadd.f32 %v2940_v16, %v2832_v36  ;;  %v2229_v43 = vrot.slane %v2227_v13, 6  ;;  %v2232_v50 = vrot.slane %v2230_v15, 7  ;;  %v2160_v44 = vmul.f32 %v2095_v10, %v2048_v48 }
 0x1c5   : > { %v3622_v10 = vsel %vm682_vm1, %v3619_v14, %v3621_v20 }
 0x1c6   : > { %v2233_v56 = vor.u32 %v2232_v50, %v2229_v43  ;;  %v2176_v25 = vmax.f32 %v2160_v44, 0.0  ;;  %v3232_v50 = vshrl.u32 %v8748_v45, 16  ;;  %v3236_v44 = vshll.u32 %v8793_v18, 16 }
 0x1c8   : > { %v2234_v41 = vsel %vm8742_vm14, %v2225_v9, %v2233_v56  ;;  %v2192_v28 = vpack.c.bf16 %v2176_v25, %v2176_v25  ;;  %v2235_v14 = vrot.slane %v2233_v56, 4  ;;  %v8802_v56 = vld [vmem:[%s7833_s6 + $0x70] sm:$0xff] }
 0x1c9   : > { %v2797_v51 = vpop.f32.mrf.mxu2  ;;  %2390 = vst [vmem:[%s8327_s24 + $0x10] sm:$0xf] %v2234_v41  ;;  %v2015_v8 = vpop.f32.mrf.mxu0 }
 0x1ca   : > { %v2942_v34 = vpop.f32.mrf.mxu3  ;;  %v2833_v59 = vadd.f32 %v2797_v51, %v2611_v30  ;;  %v2578_v22 = vpop.f32.mrf.mxu1  ;;  %v2237_v54 = vshrl.u32 %v2192_v28, 16  ;;  %v2240_v29 = vshll.u32 %v2192_v28, 16  ;;  %v2049_v6 = vadd.f32 %v2015_v8, %v8477_v42 }
 0x1cb   : > { %v2612_v42 = vadd.f32 %v8690_v5, %v2578_v22  ;;  %v3234_v51 = vor.u32 %v3232_v50, %v3230_v23 }
 0x1cc   : > { %v8788_v40 = vadd.f32 %v2942_v34, %v2833_v59  ;;  %v2239_v4 = vrot.slane %v2237_v54, 6  ;;  %v2242_v12 = vrot.slane %v2240_v29, 7  ;;  %v2161_v16 = vmul.f32 %v2100_v33, %v2049_v6  ;;  %3137 = vmatmul.bf16.gmra.mxu0 %v8694_v2 }
 0x1cd   : > { %3341 = vmatmul.bf16.gmra.mxu1 %v3231_v39  ;;  %v3238_v34 = vrot.slane %v3236_v44, 1  ;;  %v3415_v59 = vrot.slane %v8793_v18, 1 }
 0x1ce   : > { %3497 = vmatmul.bf16.gmra.mxu2 %v3414_v0  ;;  %v2243_v36 = vor.u32 %v2242_v12, %v2239_v4  ;;  %v2177_v57 = vmax.f32 %v2161_v16, 0.0  ;;  %v3623_v0 = vrot.slane %v8802_v56, 1  ;;  %v7459_v16 = vld [vmem:[%s9777_s1 + $0x18] sm:$0xff] }
 0x1cf   : > { %3705 = vmatmul.bf16.gmra.mxu3 %v3622_v10  ;;  %v3239_v4 = vsel %vm476_vm0, %v3234_v51, %v3238_v34  ;;  %v3416_v12 = vsel %vm682_vm1, %v3413_v35, %v3415_v59  ;;  %v7449_v35 = vld [vmem:[%s9777_s1 + $0x218] sm:$0xff]  ;;  %4606 = vmatpush.bf16.msra.mxu2 %v7459_v16 }
 0x1d0   : > { %v2244_v31 = vsel %vm8742_vm14, %v2235_v14, %v2243_v36  ;;  %v2193_v47 = vpack.c.bf16 %v2177_v57, %v2177_v57  ;;  %v2245_v8 = vrot.slane %v2243_v36, 4  ;;  %4122 = vmatpush.bf16.msra.mxu1 %v7449_v35  ;;  %7646 = vmatpush.bf16.msra.mxu3 %v7459_v16 }
 0x1d1   : > { %v2800_v2 = vpop.f32.mrf.mxu2  ;;  %2391 = vst [vmem:[%s8327_s24 + $0x14] sm:$0xf] %v2244_v31  ;;  %v2017_v48 = vpop.f32.mrf.mxu0 }
 0x1d2   : > { %v2945_v13 = vpop.f32.mrf.mxu3  ;;  %v2834_v15 = vadd.f32 %v2800_v2, %v2612_v42  ;;  %v2580_v43 = vpop.f32.mrf.mxu1  ;;  %v2247_v33 = vshrl.u32 %v2193_v47, 16  ;;  %v2250_v53 = vshll.u32 %v2193_v47, 16  ;;  %v2050_v9 = vadd.f32 %v2017_v48, %v8498_v3  ;;  %v7441_v42 = vld [vmem:[%s9777_s1 + $0x1d8] sm:$0xff] }
 0x1d3   : > { %v2613_v49 = vadd.f32 %v8690_v5, %v2580_v43  ;;  %v2110_v3 = vpop.permute.xlu0 %2109  ;;  %3964 = vmatpush.bf16.msra.mxu0 %v7441_v42  ;;  %v2115_v43 = vpop.permute.xlu1 %2114 }
 0x1d4   : > { %v8804_v25 = vadd.f32 %v2945_v13, %v2834_v15  ;;  %v2249_v30 = vrot.slane %v2247_v33, 6  ;;  %v2252_v41 = vrot.slane %v2250_v53, 7  ;;  %v2162_v28 = vmul.f32 %v2105_v26, %v2050_v9 }
 0x1d5   : > { %v3624_v26 = vsel %vm682_vm1, %v3621_v20, %v3623_v0 }
 0x1d6   : > { %v2253_v22 = vor.u32 %v2252_v41, %v2249_v30  ;;  %v2178_v39 = vmax.f32 %v2162_v28, 0.0  ;;  %v3240_v41 = vshrl.u32 %v8793_v18, 16  ;;  %v3244_v28 = vshll.u32 %v8838_v55, 16 }
 0x1d8   : > { %v2254_v7 = vsel %vm8742_vm14, %v2245_v8, %v2253_v22  ;;  %v2194_v54 = vpack.c.bf16 %v2178_v39, %v2178_v39  ;;  %v2255_v20 = vrot.slane %v2253_v22, 4  ;;  %v8847_v39 = vld [vmem:[%s7833_s6 + $0x78] sm:$0xff] }
 0x1d9   : > { %v2802_v29 = vpop.f32.mrf.mxu2  ;;  %2392 = vst [vmem:[%s8327_s24 + $0x18] sm:$0xf] %v2254_v7  ;;  %v2020_v23 = vpop.f32.mrf.mxu0 }
 0x1da   : > { %v2947_v6 = vpop.f32.mrf.mxu3  ;;  %v2835_v10 = vadd.f32 %v2802_v29, %v2613_v49  ;;  %v2583_v37 = vpop.f32.mrf.mxu1  ;;  %v2257_v14 = vshrl.u32 %v2194_v54, 16  ;;  %v2260_v36 = vshll.u32 %v2194_v54, 16  ;;  %v2051_v57 = vadd.f32 %v2020_v23, %v8512_v62 }
 0x1db   : > { %v2614_v62 = vadd.f32 %v8690_v5, %v2583_v37  ;;  %v3242_v29 = vor.u32 %v3240_v41, %v3238_v34  ;;  %v3248_v41 = vshrl.u32 %v8838_v55, 16 }
 0x1dc   : > { %v8833_v31 = vadd.f32 %v2947_v6, %v2835_v10  ;;  %v2259_v47 = vrot.slane %v2257_v14, 6  ;;  %v2262_v2 = vrot.slane %v2260_v36, 7  ;;  %v2163_v13 = vmul.f32 %v2110_v3, %v2051_v57  ;;  %3142 = vmatmul.bf16.gmra.mxu0 %v8748_v45 }
 0x1dd   : > { %3346 = vmatmul.bf16.gmra.mxu1 %v3239_v4  ;;  %v3246_v6 = vrot.slane %v3244_v28, 1  ;;  %v3417_v10 = vrot.slane %v8838_v55, 1 }
 0x1de   : > { %3502 = vmatmul.bf16.gmra.mxu2 %v3416_v12  ;;  %v2263_v15 = vor.u32 %v2262_v2, %v2259_v47  ;;  %v2179_v48 = vmax.f32 %v2163_v13, 0.0  ;;  %v3625_v12 = vrot.slane %v8847_v39, 1  ;;  %v7458_v13 = vld [vmem:[%s9777_s1 + $0x10] sm:$0xff] }
 0x1df   : > { %3710 = vmatmul.bf16.gmra.mxu3 %v3624_v26  ;;  %v3247_v47 = vsel %vm476_vm0, %v3242_v29, %v3246_v6  ;;  %v3418_v2 = vsel %vm682_vm1, %v3415_v59, %v3417_v10  ;;  %v7448_v59 = vld [vmem:[%s9777_s1 + $0x210] sm:$0xff]  ;;  %4607 = vmatpush.bf16.msra.mxu2 %v7458_v13 }
 0x1e0   : > { %v2264_v50 = vsel %vm8742_vm14, %v2255_v20, %v2263_v15  ;;  %v2195_v44 = vpack.c.bf16 %v2179_v48, %v2179_v48  ;;  %v2265_v23 = vrot.slane %v2263_v15, 4  ;;  %4123 = vmatpush.bf16.msra.mxu1 %v7448_v59  ;;  %7647 = vmatpush.bf16.msra.mxu3 %v7458_v13  ;;  %v8901_v13 = vld [vmem:[%s7833_s6 + $0x80] sm:$0xff]  }
 0x1e1   : > { %v2805_v45 = vpop.f32.mrf.mxu2  ;;  %2393 = vst [vmem:[%s8327_s24 + $0x1c] sm:$0xf] %v2264_v50  ;;  %v2022_v9 = vpop.f32.mrf.mxu0 }
 0x1e2   : > { %v2950_v33 = vpop.f32.mrf.mxu3  ;;  %v2836_v53 = vadd.f32 %v2805_v45, %v2614_v62  ;;  %v2585_v30 = vpop.f32.mrf.mxu1  ;;  %v2267_v51 = vshrl.u32 %v2195_v44, 16  ;;  %v2270_v8 = vshll.u32 %v2195_v44, 16  ;;  %v2052_v22 = vadd.f32 %v2022_v9, %v8533_v32  ;;  %v7440_v62 = vld [vmem:[%s9777_s1 + $0x1d0] sm:$0xff] }
 0x1e3   : > { %v2615_v16 = vadd.f32 %v8690_v5, %v2585_v30  ;;  %v2120_v32 = vpop.permute.xlu2 %2119  ;;  %3965 = vmatpush.bf16.msra.mxu0 %v7440_v62  ;;  %v2125_v30 = vpop.permute.xlu0 %2124 }
 0x1e4   : > { %v8849_v49 = vadd.f32 %v2950_v33, %v2836_v53  ;;  %v2269_v3 = vrot.slane %v2267_v51, 6  ;;  %v2272_v7 = vrot.slane %v2270_v8, 7  ;;  %v2164_v54 = vmul.f32 %v2115_v43, %v2052_v22 }
 0x1e5   : > { %v3626_v43 = vsel %vm682_vm1, %v3623_v0, %v3625_v12 }
 0x1e6   : > { %v2273_v37 = vor.u32 %v2272_v7, %v2269_v3  ;;  %v2180_v4 = vmax.f32 %v2164_v54, 0.0 }
 0x1e8   : > { %v2274_v42 = vsel %vm8742_vm14, %v2265_v23, %v2273_v37  ;;  %v2196_v14 = vpack.c.bf16 %v2180_v4, %v2180_v4  ;;  %v2275_v0 = vrot.slane %v2273_v37, 4  ;;  %v8892_v4 = vld [vmem:[%s7833_s6 + $0x80] sm:$0xff] }
 0x1e9   : > { %v2807_v36 = vpop.f32.mrf.mxu2  ;;  %2394 = vst [vmem:[%s8327_s24 + $0x20] sm:$0xf] %v2274_v42  ;;  %v2025_v34 = vpop.f32.mrf.mxu0 }
 0x1ea   : > { %v2952_v57 = vpop.f32.mrf.mxu3  ;;  %v2837_v26 = vadd.f32 %v2807_v36, %v2615_v16  ;;  %v2588_v35 = vpop.f32.mrf.mxu1  ;;  %v2277_v20 = vshrl.u32 %v2196_v14, 16  ;;  %v2280_v15 = vshll.u32 %v2196_v14, 16  ;;  %v2053_v48 = vadd.f32 %v2025_v34, %v8547_v52  ;;  %v8882_v52 = vld [vmem:[%s7833_s6 + $0x78] sm:$0xff] }
 0x1eb   : > { %v2616_v56 = vadd.f32 %v8690_v5, %v2588_v35  ;;  %v3252_v22 = vshll.u32 %v8882_v52, 16 }
 0x1ec   : > { %v8878_v50 = vadd.f32 %v2952_v57, %v2837_v26  ;;  %v2279_v44 = vrot.slane %v2277_v20, 6  ;;  %v2282_v45 = vrot.slane %v2280_v15, 7  ;;  %v2165_v33 = vmul.f32 %v2120_v32, %v2053_v48  ;;  %3147 = vmatmul.bf16.gmra.mxu0 %v8793_v18  ;;  %v7457_v20 = vld [vmem:[%s9777_s1 + $0x8] sm:$0xff] }
 0x1ed   : > { %3351 = vmatmul.bf16.gmra.mxu1 %v3247_v47  ;;  %v3250_v32 = vor.u32 %v3248_v41, %v3246_v6  ;;  %v8896_v57 = vrot.slane %v3252_v22, 1  ;;  %v3419_v26 = vrot.slane %v8882_v52, 1  ;;  %v2130_v6 = vpop.permute.xlu1 %2129  ;;  %4608 = vmatpush.bf16.msra.mxu2 %v7457_v20 }
 0x1ee   : > { %3507 = vmatmul.bf16.gmra.mxu2 %v3418_v2  ;;  %v2283_v53 = vor.u32 %v2282_v45, %v2279_v44  ;;  %v2181_v9 = vmax.f32 %v2165_v33, 0.0  ;;  %v3627_v2 = vrot.slane %v8892_v4, 1  ;;  %7648 = vmatpush.bf16.msra.mxu3 %v7457_v20  ;;  %v7469_v4 = vld [vmem:[%s9777_s1 + $0x58] sm:$0xff] }
 0x1ef   : > { %3715 = vmatmul.bf16.gmra.mxu3 %v3626_v43  ;;  %v3255_v44 = vsel %vm476_vm0, %v3250_v32, %v8896_v57 }
 0x1f0   : > { %v2284_v18 = vsel %vm8742_vm14, %v2275_v0, %v2283_v53  ;;  %v2197_v28 = vpack.c.bf16 %v2181_v9, %v2181_v9  ;;  %v2285_v34 = vrot.slane %v2283_v53, 4  ;;  %v3420_v0 = vsel %vm682_vm1, %v3417_v10, %v3419_v26  ;;  %v7439_v53 = vld [vmem:[%s9777_s1 + $0x1c8] sm:$0xff] }
 0x1f1   : > { %v2810_v51 = vpop.f32.mrf.mxu2  ;;  %2395 = vst [vmem:[%s8327_s24 + $0x24] sm:$0xf] %v2284_v18  ;;  %v2027_v7 = vpop.f32.mrf.mxu0  ;;  %v7447_v9 = vld [vmem:[%s9777_s1 + $0x208] sm:$0xff]  ;;  %v3628_v10 = vsel %vm682_vm1, %v3625_v12, %v3627_v2  ;;  %3966 = vmatpush.bf16.msra.mxu0 %v7439_v53 }
 0x1f2   : > { %v2955_v8 = vpop.f32.mrf.mxu3  ;;  %v2838_v3 = vadd.f32 %v2810_v51, %v2616_v56  ;;  %v2590_v54 = vpop.f32.mrf.mxu1  ;;  %v2287_v29 = vshrl.u32 %v2197_v28, 16  ;;  %v2290_v23 = vshll.u32 %v2197_v28, 16  ;;  %v2054_v37 = vadd.f32 %v2027_v7, %v8577_v17  ;;  %v8904_v17 = vld [vmem:[%s7833_s6 + $0x80] sm:$0xf]   ;;  %4124 = vmatpush.bf16.msra.mxu1 %v7447_v9 }
 0x1f3   : > { %v2617_v62 = vadd.f32 %v8690_v5, %v2590_v54  ;;  %v7456_v51 = vld [vmem:[%s9777_s1] sm:$0xff] }
 0x1f4   : > { %v8894_v16 = vadd.f32 %v2955_v8, %v2838_v3  ;;  %v2289_v42 = vrot.slane %v2287_v29, 6  ;;  %v2292_v14 = vrot.slane %v2290_v23, 7  ;;  %v2166_v36 = vmul.f32 %v2125_v30, %v2054_v37  ;;  %4609 = vmatpush.bf16.msra.mxu2 %v7456_v51  ;;  %7649 = vmatpush.bf16.msra.mxu3 %v7456_v51  ;;  %v2135_v29 = vpop.permute.xlu2 %2134 }
 0x1f6   : > { %v2293_v35 = vor.u32 %v2292_v14, %v2289_v42  ;;  %v2182_v47 = vmax.f32 %v2166_v36, 0.0  ;;  %v7472_v42 = vld [vmem:[%s9777_s1 + $0x70] sm:$0xff] }
 0x1f8   : > { %v2294_v15 = vsel %vm8742_vm14, %v2285_v34, %v2293_v35  ;;  %v2198_v48 = vpack.c.bf16 %v2182_v47, %v2182_v47  ;;  %v2295_v12 = vrot.slane %v2293_v35, 4  ;;  %v3256_v35 = vshrl.u32 %v8882_v52, 16 }
 0x1f9   : > { %v2812_v43 = vpop.f32.mrf.mxu2  ;;  %2396 = vst [vmem:[%s8327_s24 + $0x28] sm:$0xf] %v2294_v15  ;;  %v2030_v33 = vpop.f32.mrf.mxu0  ;;  %v3260_v47 = vshll.u32 %v8901_v13, 16  ;;  %v8952_v15 = vld [vmem:[%s7833_s6 + $0x88] sm:$0xff] }
 0x1fa   : > { %v2957_v59 = vpop.f32.mrf.mxu3  ;;  %v2839_v45 = vadd.f32 %v2812_v43, %v2617_v62  ;;  %v2593_v56 = vpop.f32.mrf.mxu1  ;;  %v2297_v30 = vshrl.u32 %v2198_v48, 16  ;;  %v2300_v41 = vshll.u32 %v2198_v48, 16  ;;  %v2055_v18 = vadd.f32 %v2030_v33, %v8591_v63  ;;  %v7473_v63 = vld [vmem:[%s9777_s1 + $0x78] sm:$0xff] }
 0x1fb   : > { %v2618_v39 = vadd.f32 %v8690_v5, %v2593_v56  ;;  %4744 = vmatpush.bf16.msrb.mxu3 %v7473_v63  ;;  %v3258_v33 = vor.u32 %v3256_v35, %v8896_v57  ;;  %v8960_v56 = vrot.slane %v3260_v47, 1  ;;  %v7470_v63 = vld [vmem:[%s9777_s1 + $0x60] sm:$0xff] }
 0x1fc   : > { %v8932_v28 = vadd.f32 %v2957_v59, %v2839_v45  ;;  %v2299_v8 = vrot.slane %v2297_v30, 6  ;;  %v2302_v22 = vrot.slane %v2300_v41, 7  ;;  %v2167_v3 = vmul.f32 %v2130_v6, %v2055_v18  ;;  %3152 = vmatmul.bf16.gmra.mxu0 %v8838_v55  ;;  %v7471_v45 = vld [vmem:[%s9777_s1 + $0x68] sm:$0xff]  ;;  %v2140_v18 = vpop.permute.xlu0 %2139 }
 0x1fd   : > { %3356 = vmatmul.bf16.gmra.mxu1 %v3255_v44  ;;  %v3629_v30 = vrot.slane %v8952_v15, 1  ;;  %v7454_v15 = vld [vmem:[%s7833_s6 + $0x7c] sm:$0xf0] }
 0x1fe   : > { %3512 = vmatmul.bf16.gmra.mxu2 %v3420_v0  ;;  %v2303_v7 = vor.u32 %v2302_v22, %v2299_v8  ;;  %v2183_v54 = vmax.f32 %v2167_v3, 0.0  ;;  %v3421_v0 = vrot.slane %v8901_v13, 1  ;;  %v7438_v22 = vld [vmem:[%s9777_s1 + $0x1c0] sm:$0xff] }
 0x1ff   : > { %3720 = vmatmul.bf16.gmra.mxu3 %v3628_v10  ;;  %v7446_v3 = vld [vmem:[%s9777_s1 + $0x200] sm:$0xff]  ;;  %3967 = vmatpush.bf16.msra.mxu0 %v7438_v22 }
 0x200   : > { %v2304_v55 = vsel %vm8742_vm14, %v2295_v12, %v2303_v7  ;;  %v2199_v23 = vpack.c.bf16 %v2183_v54, %v2183_v54  ;;  %4745 = vmatpush.bf16.msrb.mxu3 %v7472_v42  ;;  %v3263_v54 = vsel %vm476_vm0, %v3258_v33, %v8960_v56  ;;  %4125 = vmatpush.bf16.msra.mxu1 %v7446_v3  ;;  %v7480_v33 = vld [vmem:[%s9777_s1 + $0xb0] sm:$0xff] }
 0x201   : > { %v2815_v37 = vpop.f32.mrf.mxu2  ;;  %2397 = vst [vmem:[%s8327_s24 + $0x2c] sm:$0xf] %v2304_v55  ;;  %v2032_v36 = vpop.f32.mrf.mxu0 }
 0x202   : > { %v2960_v32 = vpop.f32.mrf.mxu3  ;;  %v2840_v14 = vadd.f32 %v2815_v37, %v2618_v39  ;;  %v2595_v34 = vpop.f32.mrf.mxu1  ;;  %v2307_v62 = vshrl.u32 %v2199_v23, 16  ;;  %v2310_v6 = vshll.u32 %v2199_v23, 16  ;;  %v2056_v20 = vadd.f32 %v2032_v36, %v8610_v38 }
 0x203   : > { %v2305_v38 = vrot.slane %v2303_v7, 4  ;;  %v2619_v41 = vadd.f32 %v8690_v5, %v2595_v34 }
 0x204   : > { %v8954_v48 = vadd.f32 %v2960_v32, %v2840_v14  ;;  %v2309_v43 = vrot.slane %v2307_v62, 6  ;;  %v2312_v59 = vrot.slane %v2310_v6, 7  ;;  %v2168_v44 = vmul.f32 %v2135_v29, %v2056_v20  ;;  %4746 = vmatpush.bf16.msrb.mxu3 %v7471_v45  ;;  %v9001_v62 = vld [vmem:[%s7833_s6 + $0x80] sm:$0x70]  ;;  %v3752_v6 = vld [vmem:[%s7833_s6 + $0x50] sm:$0xe] }
 0x205   : > { %v3422_v29 = vsel %vm682_vm1, %v3419_v26, %v3421_v0  ;;  %v3630_v32 = vsel %vm682_vm1, %v3627_v2, %v3629_v30  ;;  %v9007_v45 = vld [vmem:[%s7833_s6 + $0x54] sm:$0xf]  ;;  %v3802_v22 = vunpack.c.l.b16 %v3752_v6  ;;  %v7466_v6 = vld [vmem:[%s9777_s1 + $0x40] sm:$0xff] }
 0x206   : > { %v2313_v53 = vor.u32 %v2312_v59, %v2309_v43  ;;  %v2184_v9 = vmax.f32 %v2168_v44, 0.0  ;;  %v3803_v3 = vunpack.c.l.b16 %v9007_v45 }
 0x208   : > { %v2314_v10 = vsel %vm8742_vm14, %v2305_v38, %v2313_v53  ;;  %v2200_v51 = vpack.c.bf16 %v2184_v9, %v2184_v9  ;;  %4747 = vmatpush.bf16.msrb.mxu3 %v7470_v63  ;;  %v2315_v34 = vrot.slane %v2313_v53, 4  ;;  %v7468_v38 = vld [vmem:[%s9777_s1 + $0x50] sm:$0xff]  ;;  %v7522_v63 = vld [vmem:[%s9777_s1 + $0x1f8] sm:$0xff] }
 0x209   : > { %v2817_v8 = vpop.f32.mrf.mxu2  ;;  %2398 = vst [vmem:[%s8327_s24 + $0x30] sm:$0xf] %v2314_v10  ;;  %v2035_v12 = vpop.f32.mrf.mxu0  ;;  %5427 = vmatpush.bf16.msrb.mxu1 %v7522_v63 }
 0x20a   : > { %v2962_v57 = vpop.f32.mrf.mxu3  ;;  %v2841_v39 = vadd.f32 %v2817_v8, %v2619_v41  ;;  %v2598_v7 = vpop.f32.mrf.mxu1  ;;  %v2317_v55 = vshrl.u32 %v2200_v51, 16  ;;  %v2320_v23 = vshll.u32 %v2200_v51, 16  ;;  %v2057_v37 = vadd.f32 %v2035_v12, %v8626_v19  ;;  %v7481_v19 = vld [vmem:[%s9777_s1 + $0xb8] sm:$0xff] }
 0x20b   : > { %v2620_v2 = vadd.f32 %v8690_v5, %v2598_v7  ;;  %4848 = vmatpush.bf16.msrb.mxu2 %v7481_v19  ;;  %v7514_v8 = vld [vmem:[%s9777_s1 + $0x1b8] sm:$0xff] }
 0x20c   : > { %v8990_v42 = vadd.f32 %v2962_v57, %v2841_v39  ;;  %v2319_v14 = vrot.slane %v2317_v55, 6  ;;  %v2322_v36 = vrot.slane %v2320_v23, 7  ;;  %v2169_v26 = vmul.f32 %v2140_v18, %v2057_v37  ;;  %3157 = vmatmul.bf16.gmra.mxu0 %v8882_v52  ;;  %v2145_v52 = vpop.permute.xlu1 %2144  ;;  %4748 = vmatpush.bf16.msrb.mxu3 %v7469_v4 }
 0x20d   : > { %3361 = vmatmul.bf16.gmra.mxu1 %v3263_v54  ;;  %5305 = vmatpush.bf16.msrb.mxu0 %v7514_v8  ;;  %v7479_v54 = vld [vmem:[%s9777_s1 + $0xa8] sm:$0xff] }
 0x20e   : > { %3517 = vmatmul.bf16.gmra.mxu2 %v3422_v29  ;;  %v2323_v35 = vor.u32 %v2322_v36, %v2319_v14  ;;  %v2185_v47 = vmax.f32 %v2169_v26, 0.0  ;;  %v7467_v29 = vld [vmem:[%s9777_s1 + $0x48] sm:$0xff]  ;;  %v2150_v36 = vpop.permute.xlu2 %2149  ;;  %v3819_v26 = vpack.c.b16 %v3803_v3, %v3802_v22  ;;  %v7477_v22 = vld [vmem:[%s9777_s1 + $0x98] sm:$0xff] }
 0x20f   : > { %3725 = vmatmul.bf16.gmra.mxu3 %v3630_v32  ;;  %4849 = vmatpush.bf16.msrb.mxu2 %v7480_v33  ;;  %v9034_v32 = vld [vmem:[%s7833_s6 + $0x58] sm:$0xff] }
 0x210   : > { %v2324_v20 = vsel %vm8742_vm14, %v2315_v34, %v2323_v35  ;;  %v2201_v43 = vpack.c.bf16 %v2185_v47, %v2185_v47  ;;  %4749 = vmatpush.bf16.msrb.mxu3 %v7468_v38  ;;  %v2325_v55 = vrot.slane %v2323_v35, 4  ;;  %v7706_v35 = vor.u32 %v9001_v62, %v8904_v17 }
 0x211   : > { %v2820_v59 = vpop.f32.mrf.mxu2  ;;  %2399 = vst [vmem:[%s8327_s24 + $0x34] sm:$0xf] %v2324_v20  ;;  %v2037_v9 = vpop.f32.mrf.mxu0  ;;  %v3837_v17 = vshrl.u32 %v9034_v32, 16  ;;  %v3829_v62 = vshrl.u32 %v3819_v26, 16 }
 0x212   : > { %v2965_v44 = vpop.f32.mrf.mxu3  ;;  %v2842_v53 = vadd.f32 %v2820_v59, %v2620_v2  ;;  %v2600_v41 = vpop.f32.mrf.mxu1  ;;  %v2327_v18 = vshrl.u32 %v2201_v43, 16  ;;  %v2330_v10 = vshll.u32 %v2201_v43, 16  ;;  %v2058_v51 = vadd.f32 %v2037_v9, %v8644_v27 }
 0x213   : > { %v3264_v27 = vshrl.u32 %v8901_v13, 16  ;;  %4850 = vmatpush.bf16.msrb.mxu2 %v7479_v54  ;;  %v2621_v14 = vadd.f32 %v8690_v5, %v2600_v41  ;;  %v3832_v9 = vshll.u32 %v3819_v26, 16  ;;  %v3840_v41 = vshll.u32 %v9034_v32, 16  ;;  %v6825_v54 = vld [vmem:[%s7833_s6 + $0x7c] sm:$0xc] }
 0x214   : > { %v9020_v57 = vadd.f32 %v2965_v44, %v2842_v53  ;;  %v2329_v39 = vrot.slane %v2327_v18, 6  ;;  %v2332_v12 = vrot.slane %v2330_v10, 7  ;;  %v2170_v7 = vmul.f32 %v2145_v52, %v2058_v51  ;;  %4750 = vmatpush.bf16.msrb.mxu3 %v7467_v29  ;;  %v7478_v52 = vld [vmem:[%s9777_s1 + $0xa0] sm:$0xff]  ;;  %v4025_v44 = vld [vmem:[%s7833_s6 + $0x50] sm:$0xc] }
 0x215   : > { %v3266_v47 = vor.u32 %v3264_v27, %v8960_v56  ;;  %v4183_v18 = vld [vmem:[%s9779_s3 + $0x7e] sm:$0xff]  ;;  %v4516_v29 = vld [vmem:[%s7833_s6 + $0x8c] sm:$0xf]  ;;  %v3834_v13 = vrot.slane %v3832_v9, 2 }
 0x216   : > { %v2333_v23 = vor.u32 %v2332_v12, %v2329_v39  ;;  %v2186_v37 = vmax.f32 %v2170_v7, 0.0  ;;  %v7513_v39 = vld [vmem:[%s9777_s1 + $0x1b0] sm:$0xff]  ;;  %4201 = vperm.xlu1 %7693, %v4183_v18  }
 0x217   : > { %4851 = vmatpush.bf16.msrb.mxu2 %v7478_v52  ;;  %5306 = vmatpush.bf16.msrb.mxu0 %v7513_v39 }
 0x218   : > { %v2334_v19 = vsel %vm8742_vm14, %v2325_v55, %v2333_v23  ;;  %v2202_v4 = vpack.c.bf16 %v2186_v37, %v2186_v37  ;;  %4751 = vmatpush.bf16.msrb.mxu3 %v7466_v6  ;;  %v2335_v12 = vrot.slane %v2333_v23, 4  ;;  %v3831_v55 = vrot.slane %v3829_v62, 1 }
 0x219   : > { %v2822_v2 = vpop.f32.mrf.mxu2  ;;  %2400 = vst [vmem:[%s8327_s24 + $0x38] sm:$0xf] %v2334_v19  ;;  %v2040_v43 = vpop.f32.mrf.mxu0  ;;  %v3842_v37 = vrot.slane %v3840_v41, 2  ;;  %v7476_v19 = vld [vmem:[%s9777_s1 + $0x90] sm:$0xff]  ;;  %v7475_v41 = vld [vmem:[%s9777_s1 + $0x88] sm:$0xff] }
 0x21a   : > { %v2967_v34 = vpop.f32.mrf.mxu3  ;;  %v2843_v20 = vadd.f32 %v2822_v2, %v2621_v14  ;;  %v2603_v59 = vpop.f32.mrf.mxu1  ;;  %v2337_v33 = vshrl.u32 %v2202_v4, 16  ;;  %v2340_v38 = vshll.u32 %v2202_v4, 16  ;;  %v2059_v53 = vadd.f32 %v2040_v43, %v8663_v21 }
 0x21b   : > { %v4043_v21 = vunpack.c.l.b16 %v4025_v44  ;;  %v2622_v63 = vadd.f32 %v8690_v5, %v2603_v59  ;;  %4852 = vmatpush.bf16.msrb.mxu2 %v7477_v22  ;;  %v2155_v5 = vpop.permute.xlu0 %2154  ;;  %v6826_v43 = vor.u32 %v7454_v15, %v6825_v54  ;;  %v4630_v59 = vld [vmem:[%s7833_s6 + $0x7c] sm:$0xc]  ;;  %v9088_v44 = vld [vmem:[%s7833_s6 + $0x80] sm:$0xf] }
 0x21c   : > { %v9054_v56 = vadd.f32 %v2967_v34, %v2843_v20  ;;  %v2339_v10 = vrot.slane %v2337_v33, 6  ;;  %v2342_v51 = vrot.slane %v2340_v38, 7  ;;  %v2171_v8 = vmul.f32 %v2150_v36, %v2059_v53  ;;  %3162 = vmatmul.bf16.gmra.mxu0 %v7706_v35  ;;  %v9083_v35 = vld [vmem:[%s7833_s6 + $0x84] sm:$0xff]  ;;  %v7521_v53 = vld [vmem:[%s9777_s1 + $0x1f0] sm:$0xff] }
 0x21d   : > { %3366 = vmatmul.bf16.gmra.mxu1 %v3266_v47  ;;  %v4044_v26 = vpack.c.b16 %v3803_v3, %v4043_v21  ;;  %v4542_v47 = vunpack.c.l.b16 %v4516_v29  ;;  %v3835_v3 = vor.u32 %v3834_v13, %v3831_v55  ;;  %v4046_v38 = vrot.slane %v9034_v32, 2  ;;  %v9113_v13 = vld [vmem:[%s7833_s6 + $0x60] sm:$0xff]  ;;  %v4772_v32 = vld [vmem:[%s7833_s6 + $0x7c] sm:$0x8] }
 0x21e   : > { %3522 = vmatmul.bf16.gmra.mxu2 %v3421_v0  ;;  %v2343_v7 = vor.u32 %v2342_v51, %v2339_v10  ;;  %v2187_v27 = vmax.f32 %v2171_v8, 0.0  ;;  %v3839_v0 = vrot.slane %v3837_v17, 1  ;;  %v4547_v18 = vrot.slane %v9083_v35, 2  ;;  %5428 = vmatpush.bf16.msrb.mxu1 %v7521_v53  ;;  %v7465_v53 = vld [vmem:[%s7833_s6 + $0x8c] sm:$0x10] }
 0x21f   : > { %3730 = vmatmul.bf16.gmra.mxu3 %v3629_v30  ;;  %4853 = vmatpush.bf16.msrb.mxu2 %v7476_v19  ;;  %v9102_v10 = vpack.c.b16 %v4542_v47, %v4542_v47  ;;  %v4658_v51 = vunpack.c.l.b16 %v4630_v59  ;;  %v4659_v8 = vunpack.c.l.b16 %v9088_v44  ;;  %v4546_v39 = vrot.slane %v6826_v43, 2  ;;  %v7489_v47 = vld [vmem:[%s9777_s1 + $0xf8] sm:$0xff]  ;;  %v2407_v59 = vld [vmem:[%s8327_s24 + $0x48] sm:$0x1] }
 0x220   : > { %v2344_v30 = vsel %vm8742_vm14, %v2335_v12, %v2343_v7  ;;  %v2203_v23 = vpack.c.bf16 %v2187_v27, %v2187_v27  ;;  %v9092_v33 = vor.u32 %v3842_v37, %v3839_v0  ;;  %v2345_v21 = vrot.slane %v2343_v7, 4  ;;  %v7697_v12 = vld [vmem:[%s9778_s2] ss:$0 sm:$0xff]  ;;  %v7483_v44 = vld [vmem:[%s9777_s1 + $0xc8] sm:$0xff] }
 0x221   : > { %v2825_v14 = vpop.f32.mrf.mxu2  ;;  %2401 = vst [vmem:[%s8327_s24 + $0x3c] sm:$0xf] %v2344_v30  ;;  %v2042_v2 = vpop.f32.mrf.mxu0  ;;  %v7474_v0 = vld [vmem:[%s9777_s1 + $0x80] sm:$0xff] }
 0x222   : > { %v2970_v36 = vpop.f32.mrf.mxu3  ;;  %v2844_v4 = vadd.f32 %v2825_v14, %v2622_v63  ;;  %v2605_v34 = vpop.f32.mrf.mxu1  ;;  %v2347_v52 = vshrl.u32 %v2203_v23, 16  ;;  %v2350_v6 = vshll.u32 %v2203_v23, 16  ;;  %v2060_v20 = vadd.f32 %v2042_v2, %v8684_v1 }
 0x223   : > { %v4045_v1 = vrot.slane %v4044_v26, 2  ;;  %4854 = vmatpush.bf16.msrb.mxu2 %v7475_v41  ;;  %v2623_v27 = vadd.f32 %v7697_v12, %v2605_v34  ;;  %v3844_v7 = vsel %vm1105_vm2, %v3835_v3, %v9092_v33  ;;  %v4549_v14 = vrot.slane %v9102_v10, 2  ;;  %v7497_v41 = vld [vmem:[%s9777_s1 + $0x138] sm:$0xff] }
 0x224   : > { %v9090_v45 = vadd.f32 %v2970_v36, %v2844_v4  ;;  %v2349_v17 = vrot.slane %v2347_v52, 6  ;;  %v2352_v62 = vrot.slane %v2350_v6, 7  ;;  %v2172_v9 = vmul.f32 %v2155_v5, %v2060_v20  ;;  %v9124_v36 = vld [vmem:[%s7833_s6 + $0x84] sm:$0xff]  ;;  %v4185_v6 = vld [vmem:[%s9779_s3 + $0x8e] sm:$0xff] }
 0x225   : > { %v4047_v23 = vsel %vm1324_vm3, %v4045_v1, %v4046_v38  ;;  %v4664_v26 = vpack.c.b16 %v4659_v8, %v4658_v51  ;;  %v4548_v34 = vsel %vm1324_vm3, %v4546_v39, %v4547_v18  ;;  %v4676_v1 = vshrl.u32 %v9124_v36, 16  ;;  %v7512_v51 = vld [vmem:[%s9777_s1 + $0x1a8] sm:$0xff]  ;;  %4211 = vperm.xlu0 %7692, %v4185_v6   ;;  %v7496_v6 = vld [vmem:[%s9777_s1 + $0x130] sm:$0xff] }
 0x226   : > { %v2353_v22 = vor.u32 %v2352_v62, %v2349_v17  ;;  %v2188_v63 = vmax.f32 %v2172_v9, 0.0  ;;  %v3849_v17 = vshll.u32 %v9113_v13, 16  ;;  %v4679_v12 = vshll.u32 %v9124_v36, 16  ;;  %5307 = vmatpush.bf16.msrb.mxu0 %v7512_v51 }
 0x227   : > { %4855 = vmatpush.bf16.msrb.mxu2 %v7474_v0  ;;  %v4668_v62 = vshrl.u32 %v4664_v26, 16  ;;  %v4671_v9 = vshll.u32 %v4664_v26, 16 }
 0x228   : > { %v2354_v54 = vsel %vm8742_vm14, %v2345_v21, %v2353_v22  ;;  %v2204_v29 = vpack.c.bf16 %v2188_v63, %v2188_v63  ;;  %v2355_v21 = vrot.slane %v2353_v22, 4 }
 0x229   : > { %v2827_v5 = vpop.f32.mrf.mxu2  ;;  %2402 = vst [vmem:[%s8327_s24 + $0x40] sm:$0xf] %v2354_v54  ;;  %v3128_v15 = vpop.f32.mrf.mxu0  ;;  %v4673_v26 = vrot.slane %v4671_v9, 3  ;;  %v7486_v9 = vld [vmem:[%s9777_s1 + $0xe0] sm:$0xff] }
 0x22a   : > { %v2972_v55 = vpop.f32.mrf.mxu3  ;;  %v2845_v37 = vadd.f32 %v2827_v5, %v2623_v27  ;;  %v3332_v30 = vpop.f32.mrf.mxu1  ;;  %v2357_v19 = vshrl.u32 %v2204_v29, 16  ;;  %v2360_v4 = vshll.u32 %v2204_v29, 16  ;;  %v3168_v2 = vadd.f32 %v3128_v15, %v8702_v60  ;;  %v7488_v27 = vld [vmem:[%s9777_s1 + $0xf0] sm:$0xff] }
 0x22b   : > { %v3846_v60 = vshrl.u32 %v9113_v13, 16  ;;  %v3851_v15 = vrot.slane %v3849_v17, 2 }
 0x22c   : > { %v9135_v52 = vadd.f32 %v2972_v55, %v2845_v37  ;;  %v2359_v20 = vrot.slane %v2357_v19, 6  ;;  %v2362_v43 = vrot.slane %v2360_v4, 7  ;;  %v3372_v3 = vadd.f32 %v3332_v30, %v3168_v2  ;;  %3968 = vmatmul.bf16.vlgmr.msra.gmra.mxu0 %v3844_v7  ;;  %v7520_v2 = vld [vmem:[%s9777_s1 + $0x1e8] sm:$0xff] }
 0x22d   : > { %4126 = vmatmul.bf16.vlgmr.msra.gmra.mxu1 %v4047_v23  ;;  %v3848_v37 = vrot.slane %v3846_v60, 1  ;;  %v4670_v30 = vrot.slane %v4668_v62, 2  ;;  %v4678_v19 = vrot.slane %v4676_v1, 2  ;;  %v4681_v4 = vrot.slane %v4679_v12, 3  ;;  %v6885_v60 = vld [vmem:[%s7833_s6 + $0x8c] sm:$0xf] }
 0x22e   : > { %4610 = vmatmul.bf16.vlgmr.msra.gmra.mxu2 %v4548_v34  ;;  %v2363_v63 = vor.u32 %v2362_v43, %v2359_v20  ;;  %v2365_v39 = vrot.slane %v2359_v20, 4  ;;  %v4186_v34 = vld [vmem:[%s9779_s3 + $0x96] sm:$0xff]  ;;  %v4048_v43 = vrot.slane %v9113_v13, 2  ;;  %5429 = vmatpush.bf16.msrb.mxu1 %v7520_v2 }
 0x22f   : > { %4620 = vmatmul.bf16.vlgmr.msra.gmra.mxu3 %v4549_v14  ;;  %5094 = vmatpush.bf16.msra.mxu2 %v7497_v41  ;;  %v9183_v20 = vor.u32 %v3851_v15, %v3848_v37 }
 0x230   : > { %4969 = vmatpush.bf16.msra.mxu3 %v7489_v47  ;;  %v2364_v54 = vsel %vm8742_vm14, %v2355_v21, %v2363_v63  ;;  %v2408_v29 = vsel %vm9144_vm8, %v2365_v39, %v2407_v59  ;;  %4216 = vperm.xlu1 %7693, %v4186_v34   ;;  %v4674_v59 = vor.u32 %v4673_v26, %v4670_v30  ;;  %v9202_v39 = vld [vmem:[%s7833_s6 + $0x68] sm:$0xff]  ;;  %v7484_v30 = vld [vmem:[%s9777_s1 + $0xd0] sm:$0xff]  ;;  %vm5604_vm14 = vsmask.f32 7440 }
 0x231   : > { %v3488_v22 = vpop.f32.mrf.mxu2  ;;  %2403 = vst [vmem:[%s8327_s24 + $0x44] sm:$0xf] %v2364_v54  ;;  %v3130_v7 = vpop.f32.mrf.mxu0  ;;  %v3853_v21 = vsel %vm1105_vm2, %v9092_v33, %v9183_v20  ;;  %v4049_v63 = vsel %vm1324_vm3, %v4046_v38, %v4048_v43  ;;  %v9212_v33 = vor.u32 %v7465_v53, %v6885_v60  ;;  %v7495_v38 = vld [vmem:[%s9777_s1 + $0x128] sm:$0xff]  ;;  %v3855_v10 = vshrl.u32 %v9202_v39, 16  ;;  %v7519_v53 = vld [vmem:[%s9777_s1 + $0x1e0] sm:$0xff] }
 0x232   : > { %v3696_v5 = vpop.f32.mrf.mxu3  ;;  %v3528_v55 = vadd.f32 %v3488_v22, %v3372_v3  ;;  %v3334_v0 = vpop.f32.mrf.mxu1  ;;  %2409 = vst [vmem:[%s8327_s24 + $0x48] sm:$0x1] %v2408_v29  ;;  %v3169_v23 = vadd.f32 %v3130_v7, %v8737_v11  ;;  %v7487_v11 = vld [vmem:[%s9777_s1 + $0xe8] sm:$0xff]  ;;  %v9186_v3 = vor.u32 %v4681_v4, %v4678_v19  ;;  %v7511_v22 = vld [vmem:[%s9777_s1 + $0x1a0] sm:$0xff]  ;;  %v4790_v7 = vunpack.c.l.b16 %v4772_v32  ;;  %5430 = vmatpush.bf16.msrb.mxu1 %v7519_v53 }
 0x233   : > { %5095 = vmatpush.bf16.msra.mxu2 %v7496_v6  ;;  %5308 = vmatpush.bf16.msrb.mxu0 %v7511_v22  ;;  %v3857_v4 = vrot.slane %v3855_v10, 1  ;;  %v7490_v53 = vld [vmem:[%s9777_s1 + $0x100] sm:$0xff] }
 0x234   : > { %4970 = vmatpush.bf16.msra.mxu3 %v7488_v27  ;;  %v9169_v24 = vadd.f32 %v3696_v5, %v3528_v55  ;;  %v3373_v47 = vadd.f32 %v3334_v0, %v3169_v23  ;;  %v4550_v27 = vsel %vm1324_vm3, %v4547_v18, %v4549_v14  ;;  %v4683_v54 = vsel %vm1699_vm4, %v4674_v59, %v9186_v3  ;;  %v7485_v18 = vld [vmem:[%s9777_s1 + $0xd8] sm:$0xff]  ;;  %v7494_v0 = vld [vmem:[%s9777_s1 + $0x120] sm:$0xff] }
 0x235   : > { %v3858_v14 = vshll.u32 %v9202_v39, 16  ;;  %v4685_v5 = vshrl.u32 %v9212_v33, 16  ;;  %v4688_v55 = vshll.u32 %v9212_v33, 16  ;;  %v4791_v6 = vpack.c.b16 %v4659_v8, %v4790_v7  ;;  %v4188_v59 = vld [vmem:[%s9779_s3 + $0xa6] sm:$0xff] }
 0x236   : > { %4226 = vperm.xlu0 %7692, %v4188_v59  }
 0x237   : > { %5096 = vmatpush.bf16.msra.mxu2 %v7495_v38  ;;  %v3860_v2 = vrot.slane %v3858_v14, 2 }
 0x238   : > { %4971 = vmatpush.bf16.msra.mxu3 %v7487_v11  ;;  %v4690_v11 = vrot.slane %v4688_v55, 3 }
 0x239   : > { %v3490_v17 = vpop.f32.mrf.mxu2  ;;  %v3133_v41 = vpop.f32.mrf.mxu0  ;;  %v9256_v8 = vor.u32 %v3860_v2, %v3857_v4  ;;  %v7491_v2 = vld [vmem:[%s9777_s1 + $0x108] sm:$0xff] }
 0x23a   : > { %v3698_v62 = vpop.f32.mrf.mxu3  ;;  %v3529_v1 = vadd.f32 %v3490_v17, %v3373_v47  ;;  %v3337_v51 = vpop.f32.mrf.mxu1  ;;  %v3170_v12 = vadd.f32 %v3133_v41, %v8759_v46  ;;  %v4184_v46 = vld [vmem:[%s9779_s3 + $0x86] sm:$0xff]  ;;  %v4687_v47 = vrot.slane %v4685_v5, 2  ;;  %v4793_v41 = vrot.slane %v9124_v36, 3  ;;  %v7510_v5 = vld [vmem:[%s9777_s1 + $0x198] sm:$0xff] }
 0x23b   : > { %4206 = vperm.xlu2 %7694, %v4184_v46   ;;  %5097 = vmatpush.bf16.msra.mxu2 %v7494_v0  ;;  %v3862_v32 = vsel %vm1105_vm2, %v9183_v20, %v9256_v8  ;;  %v9274_v46 = vld [vmem:[%s7833_s6 + $0x70] sm:$0xff]  ;;  %v4191_v20 = vld [vmem:[%s9779_s3 + $0xbe] sm:$0xff] }
 0x23c   : > { %4972 = vmatpush.bf16.msra.mxu3 %v7486_v9  ;;  %v9214_v29 = vadd.f32 %v3698_v62, %v3529_v1  ;;  %v3374_v35 = vadd.f32 %v3337_v51, %v3170_v12  ;;  %3973 = vmatmul.bf16.gmra.mxu0 %v3853_v21  ;;  %v4050_v62 = vrot.slane %v9202_v39, 2  ;;  %v9259_v9 = vor.u32 %v4690_v11, %v4687_v47  ;;  %v4187_v47 = vld [vmem:[%s9779_s3 + $0x9e] sm:$0xff] }
 0x23d   : > { %4131 = vmatmul.bf16.gmra.mxu1 %v4049_v63  ;;  %v4792_v1 = vrot.slane %v4791_v6, 3  ;;  %v7482_v63 = vld [vmem:[%s9777_s1 + $0xc0] sm:$0xff]  ;;  %v3867_v22 = vshll.u32 %v9274_v46, 16  ;;  %5309 = vmatpush.bf16.msrb.mxu0 %v7510_v5  ;;  %v7505_v11 = vld [vmem:[%s9777_s1 + $0x178] sm:$0xff]  ;;  %v4052_v59 = vrot.slane %v9274_v46, 2 }
 0x23e   : > { %4615 = vmatmul.bf16.gmra.mxu2 %v4550_v27  ;;  %v4051_v38 = vsel %vm1324_vm3, %v4048_v43, %v4050_v62  ;;  %4241 = vperm.xlu0 %7692, %v4191_v20   ;;  %v7492_v43 = vld [vmem:[%s9777_s1 + $0x110] sm:$0xff]  ;;  %v5559_v39 = vld [vmem:[%s9779_s3 + $0xfc] sm:$0xff] }
 0x23f   : > { %4752 = vmatmul.bf16.vlgmr.msrb.gmra.mxu3 %v4683_v54  ;;  %v4794_v10 = vsel %vm1922_vm5, %v4792_v1, %v4793_v41 }
 0x240   : > { %4973 = vmatpush.bf16.msra.mxu3 %v7485_v18  ;;  %v4692_v18 = vsel %vm1699_vm4, %v9186_v3, %v9259_v9  ;;  %v3864_v3 = vshrl.u32 %v9274_v46, 16  ;;  %v5560_v46 = vld [vmem:[%s9779_s3 + $0x104] sm:$0xff] }
 0x241   : > { %v3493_v37 = vpop.f32.mrf.mxu2  ;;  %v3135_v26 = vpop.f32.mrf.mxu0 }
 0x242   : > { %v3701_v15 = vpop.f32.mrf.mxu3  ;;  %v3530_v23 = vadd.f32 %v3493_v37, %v3374_v35  ;;  %v3339_v19 = vpop.f32.mrf.mxu1  ;;  %v3171_v34 = vadd.f32 %v3135_v26, %v8788_v40  ;;  %v7493_v40 = vld [vmem:[%s9777_s1 + $0x118] sm:$0xff] }
 0x243   : > { %5098 = vmatpush.bf16.msra.mxu2 %v7493_v40  ;;  %4221 = vperm.xlu2 %7694, %v4187_v47  }
 0x244   : > { %v9245_v60 = vadd.f32 %v3701_v15, %v3530_v23  ;;  %4974 = vmatpush.bf16.msra.mxu3 %v7484_v30  ;;  %v3375_v17 = vadd.f32 %v3339_v19, %v3171_v34  ;;  %v3866_v30 = vrot.slane %v3864_v3, 1  ;;  %v3869_v23 = vrot.slane %v3867_v22, 2  ;;  %v5563_v19 = vld [vmem:[%s9779_s3 + $0x11c] sm:$0xf] }
 0x245   : > { %v7518_v34 = vld [vmem:[%s9777_s1 + $0x1d8] sm:$0xff] }
 0x246   : > { %5586 = vperm.xlu0 %7692, %v5563_v19   ;;  %v9317_v6 = vor.u32 %v3869_v23, %v3866_v30  ;;  %5431 = vmatpush.bf16.msrb.mxu1 %v7518_v34  ;;  %v7517_v23 = vld [vmem:[%s9777_s1 + $0x1d0] sm:$0xff] }
 0x247   : > { %5099 = vmatpush.bf16.msra.mxu2 %v7492_v43  ;;  %v7529_v19 = vld [vmem:[%s9777_s1 + $0x230] sm:$0xff] }
 0x248   : > { %4975 = vmatpush.bf16.msra.mxu3 %v7483_v44 }
 0x249   : > { %v3495_v51 = vpop.f32.mrf.mxu2  ;;  %v3138_v27 = vpop.f32.mrf.mxu0 }
 0x24a   : > { %v3703_v21 = vpop.f32.mrf.mxu3  ;;  %v3531_v12 = vadd.f32 %v3495_v51, %v3375_v17  ;;  %v3342_v54 = vpop.f32.mrf.mxu1  ;;  %v3172_v35 = vadd.f32 %v3138_v27, %v8804_v25  ;;  %v4189_v25 = vld [vmem:[%s9779_s3 + $0xae] sm:$0xff]  ;;  %v4795_v17 = vrot.slane %v9212_v33, 3  ;;  %v9333_v27 = vld [vmem:[%s7833_s6 + $0x78] sm:$0xff]  ;;  %5432 = vmatpush.bf16.msrb.mxu1 %v7517_v23  ;;  %v7527_v33 = vld [vmem:[%s9777_s1 + $0x220] sm:$0xff] }
 0x24b   : > { %4231 = vperm.xlu1 %7693, %v4189_v25   ;;  %5100 = vmatpush.bf16.msra.mxu2 %v7491_v2  ;;  %v3873_v36 = vshrl.u32 %v9333_v27, 16  ;;  %v4054_v34 = vrot.slane %v9333_v27, 2 }
 0x24c   : > { %v9286_v14 = vadd.f32 %v3703_v21, %v3531_v12  ;;  %4976 = vmatpush.bf16.msra.mxu3 %v7482_v63  ;;  %v3376_v13 = vadd.f32 %v3342_v54, %v3172_v35  ;;  %3978 = vmatmul.bf16.gmra.mxu0 %v3862_v32  ;;  %v3871_v63 = vsel %vm1105_vm2, %v9256_v8, %v9317_v6  ;;  %v4192_v8 = vld [vmem:[%s9779_s3 + $0xc6] sm:$0xff]  ;;  %v7530_v35 = vld [vmem:[%s9777_s1 + $0x238] sm:$0xff] }
 0x24d   : > { %4136 = vmatmul.bf16.gmra.mxu1 %v4051_v38  ;;  %v4053_v12 = vsel %vm1324_vm3, %v4050_v62, %v4052_v59  ;;  %v4796_v32 = vsel %vm1922_vm5, %v4793_v41, %v4795_v17  ;;  %v3876_v41 = vshll.u32 %v9333_v27, 16  ;;  %v7504_v38 = vld [vmem:[%s9777_s1 + $0x170] sm:$0xff]  ;;  %v3875_v22 = vrot.slane %v3873_v36, 1 }
 0x24e   : > { %4856 = vmatmul.bf16.vlgmr.msrb.gmra.mxu2 %v4794_v10  ;;  %5566 = vperm.xlu0 %7692, %v5559_v39   ;;  %v7635_v10 = vld [vmem:[%s7833_s6 + $0x84] sm:$0x8]  ;;  %v4881_v39 = vld [vmem:[%s7833_s6 + $0x98] sm:$0x1] }
 0x24f   : > { %4757 = vmatmul.bf16.gmra.mxu3 %v4692_v18  ;;  %5101 = vmatpush.bf16.msra.mxu2 %v7490_v53  ;;  %v7509_v18 = vld [vmem:[%s9777_s1 + $0x190] sm:$0xff]  ;;  %v3878_v5 = vrot.slane %v3876_v41, 2 }
 0x250   : > { %5192 = vmatpush.bf16.msrb.mxu3 %v7505_v11  ;;  %5310 = vmatpush.bf16.msrb.mxu0 %v7509_v18  ;;  %v4198_v27 = vld [vmem:[%s9779_s3 + $0xf6] sm:$0x3f] }
 0x251   : > { %v3498_v55 = vpop.f32.mrf.mxu2  ;;  %v3140_v37 = vpop.f32.mrf.mxu0  ;;  %v9386_v2 = vor.u32 %v3878_v5, %v3875_v22  ;;  %v7500_v5 = vld [vmem:[%s9777_s1 + $0x150] sm:$0xff] }
 0x252   : > { %v3706_v7 = vpop.f32.mrf.mxu3  ;;  %v3532_v0 = vadd.f32 %v3498_v55, %v3376_v13  ;;  %v3344_v15 = vpop.f32.mrf.mxu1  ;;  %v3173_v26 = vadd.f32 %v3140_v37, %v8833_v31  ;;  %v4197_v37 = vld [vmem:[%s9779_s3 + $0xee] sm:$0xff] }
 0x253   : > { %4246 = vperm.xlu1 %7693, %v4192_v8   ;;  %5531 = vmatpush.bf16.msrb.mxu2 %v7530_v35 }
 0x254   : > { %v9303_v4 = vadd.f32 %v3706_v7, %v3532_v0  ;;  %v3377_v31 = vadd.f32 %v3344_v15, %v3173_v26  ;;  %5193 = vmatpush.bf16.msrb.mxu3 %v7504_v38  ;;  %v9365_v7 = vld [vmem:[%s7833_s6 + $0x8c] sm:$0xff]   ;;  %v5562_v15 = vld [vmem:[%s9779_s3 + $0x114] sm:$0xff] }
 0x255   : > { %v7503_v26 = vld [vmem:[%s9777_s1 + $0x168] sm:$0xff]  ;;  %v7501_v38 = vld [vmem:[%s9777_s1 + $0x158] sm:$0xff] }
 0x256   : > { %5581 = vperm.xlu0 %7692, %v5562_v15  }
 0x257   : > { %5532 = vmatpush.bf16.msrb.mxu2 %v7529_v19 }
 0x258   : > { %5194 = vmatpush.bf16.msrb.mxu3 %v7503_v26 }
 0x259   : > { %v3500_v40 = vpop.f32.mrf.mxu2  ;;  %v3143_v51 = vpop.f32.mrf.mxu0 }
 0x25a   : > { %v3708_v44 = vpop.f32.mrf.mxu3  ;;  %v3533_v1 = vadd.f32 %v3500_v40, %v3377_v31  ;;  %v3347_v21 = vpop.f32.mrf.mxu1  ;;  %v3174_v54 = vadd.f32 %v3143_v51, %v8849_v49  ;;  %v4914_v31 = vrot.slane %v9365_v7, 3  ;;  %v9392_v40 = vld [vmem:[%s7833_s6 + $0x80] sm:$0xff] }
 0x25b   : > { %4271 = vperm.xlu1 %7693, %v4197_v37   ;;  %v3882_v41 = vshrl.u32 %v9392_v40, 16  ;;  %v3885_v35 = vshll.u32 %v9392_v40, 16 }
 0x25c   : > { %v9347_v62 = vadd.f32 %v3708_v44, %v3533_v1  ;;  %v3378_v49 = vadd.f32 %v3347_v21, %v3174_v54  ;;  %3983 = vmatmul.bf16.gmra.mxu0 %v3871_v63  ;;  %v7502_v44 = vld [vmem:[%s9777_s1 + $0x160] sm:$0xff]  ;;  %v3880_v63 = vsel %vm1105_vm2, %v9317_v6, %v9386_v2  ;;  %v9406_v54 = vld [vmem:[%s7833_s6 + $0x90] sm:$0xff]  }
 0x25d   : > { %4141 = vmatmul.bf16.gmra.mxu1 %v4053_v12  ;;  %v4055_v12 = vsel %vm1324_vm3, %v4052_v59, %v4054_v34  ;;  %5195 = vmatpush.bf16.msrb.mxu3 %v7502_v44  ;;  %v4190_v6 = vld [vmem:[%s9779_s3 + $0xb6] sm:$0xff]  ;;  %v4196_v59 = vld [vmem:[%s9779_s3 + $0xe6] sm:$0xff]  ;;  %v7574_v18 = vunpack.c.h.b16 %v9406_v54  ;;  %v3884_v22 = vrot.slane %v3882_v41, 1  ;;  %v3887_v15 = vrot.slane %v3885_v35, 2 }
 0x25e   : > { %4861 = vmatmul.bf16.gmra.mxu2 %v4796_v32  ;;  %4236 = vperm.xlu2 %7694, %v4190_v6   ;;  %v4194_v44 = vld [vmem:[%s9779_s3 + $0xd6] sm:$0xff]  ;;  %v7498_v41 = vld [vmem:[%s9777_s1 + $0x140] sm:$0xff] }
 0x25f   : > { %4762 = vmatmul.bf16.gmra.mxu3 %v9259_v9  ;;  %v7664_v9 = vld [vmem:[%s7833_s6 + $0x84] sm:$0xf0]   ;;  %4266 = vperm.xlu0 %7692, %v4196_v59  }
 0x260   : > { %v9367_v0 = vor.u32 %v7664_v9, %v7635_v10  ;;  %v4909_v10 = vunpack.c.l.b16 %v4881_v39 }
 0x261   : > { %v3503_v20 = vpop.f32.mrf.mxu2  ;;  %v3145_v43 = vpop.f32.mrf.mxu0  ;;  %5196 = vmatpush.bf16.msrb.mxu3 %v7501_v38 }
 0x262   : > { %v3711_v25 = vpop.f32.mrf.mxu3  ;;  %v3534_v13 = vadd.f32 %v3503_v20, %v3378_v49  ;;  %v3349_v3 = vpop.f32.mrf.mxu1  ;;  %v3175_v55 = vadd.f32 %v3145_v43, %v8878_v50  ;;  %v4913_v47 = vrot.slane %v9367_v0, 3  ;;  %v5018_v9 = vshrl.u32 %v9367_v0, 16  ;;  %v7508_v20 = vld [vmem:[%s9777_s1 + $0x188] sm:$0xff] }
 0x263   : > { %5571 = vperm.xlu1 %7693, %v5560_v46   ;;  %v5029_v43 = vshll.u32 %v9365_v7, 16  ;;  %5311 = vmatpush.bf16.msrb.mxu0 %v7508_v20  ;;  %v9448_v23 = vpack.c.b16 %v4909_v10, %v7574_v18 }
 0x264   : > { %v9375_v30 = vadd.f32 %v3711_v25, %v3534_v13  ;;  %v3379_v50 = vadd.f32 %v3349_v3, %v3175_v55  ;;  %v4915_v8 = vsel %vm1922_vm5, %v4913_v47, %v4914_v31  ;;  %v5021_v25 = vshll.u32 %v9367_v0, 16 }
 0x265   : > { %v5026_v13 = vshrl.u32 %v9365_v7, 16  ;;  %5197 = vmatpush.bf16.msrb.mxu3 %v7500_v5  ;;  %v4916_v39 = vrot.slane %v9448_v23, 3  ;;  %v7525_v7 = vld [vmem:[%s9777_s1 + $0x210] sm:$0xff] }
 0x266   : > { %v5023_v19 = vrot.slane %v5021_v25, 4  ;;  %v9489_v25 = vld [vmem:[%s7833_s6 + $0x88] sm:$0xff] }
 0x267   : > { %v5028_v47 = vrot.slane %v5026_v13, 3 }
 0x269   : > { %v3505_v11 = vpop.f32.mrf.mxu2  ;;  %v3148_v51 = vpop.f32.mrf.mxu0 }
 0x26a   : > { %v3713_v53 = vpop.f32.mrf.mxu3  ;;  %v3535_v1 = vadd.f32 %v3505_v11, %v3379_v50  ;;  %v3352_v21 = vpop.f32.mrf.mxu1  ;;  %v3176_v32 = vadd.f32 %v3148_v51, %v8894_v16  ;;  %v7528_v16 = vld [vmem:[%s9777_s1 + $0x228] sm:$0xff]  ;;  %v5020_v50 = vrot.slane %v5018_v9, 3  ;;  %v5031_v11 = vrot.slane %v5029_v43, 4  ;;  %v4997_v51 = vld [vmem:[%s7833_s6 + $0x98] sm:$0x3] }
 0x26b   : > { %5533 = vmatpush.bf16.msrb.mxu2 %v7528_v16  ;;  %4256 = vperm.xlu1 %7693, %v4194_v44   ;;  %v9475_v16 = vunpack.c.l.b16 %v4997_v51  ;;  %v4917_v43 = vsel %vm1922_vm5, %v4914_v31, %v4916_v39  ;;  %v3891_v31 = vshrl.u32 %v9489_v25, 16  ;;  %v7515_v51 = vld [vmem:[%s9777_s1 + $0x1c0] sm:$0xff]  ;;  %vm4327_vm5 = vsmask.f32 4368 }
 0x26c   : > { %v9419_v49 = vadd.f32 %v3713_v53, %v3535_v1  ;;  %v3380_v36 = vadd.f32 %v3352_v21, %v3176_v32  ;;  %3988 = vmatmul.bf16.gmra.mxu0 %v3880_v63  ;;  %v4193_v53 = vld [vmem:[%s9779_s3 + $0xce] sm:$0xff]  ;;  %v7526_v63 = vld [vmem:[%s9777_s1 + $0x218] sm:$0xff]  ;;  %v9469_v32 = vor.u32 %v3887_v15, %v3884_v22  ;;  %v5024_v6 = vor.u32 %v5023_v19, %v5020_v50 }
 0x26d   : > { %4146 = vmatmul.bf16.gmra.mxu1 %v4055_v12  ;;  %v7516_v21 = vld [vmem:[%s9777_s1 + $0x1c8] sm:$0xff]  ;;  %4251 = vperm.xlu2 %7694, %v4193_v53   ;;  %v9473_v46 = vor.u32 %v5031_v11, %v5028_v47  ;;  %v3893_v50 = vrot.slane %v3891_v31, 1 }
 0x26e   : > { %4866 = vmatmul.bf16.gmra.mxu2 %v4795_v17  ;;  %v7499_v12 = vld [vmem:[%s9777_s1 + $0x148] sm:$0xff]  ;;  %5433 = vmatpush.bf16.msrb.mxu1 %v7516_v21  ;;  %v3889_v9 = vsel %vm1105_vm2, %v9386_v2, %v9469_v32  ;;  %v5016_v2 = vpack.c.b16 %v9475_v16, %v7574_v18  ;;  %v3894_v18 = vshll.u32 %v9489_v25, 16 }
 0x26f   : > { %4977 = vmatmul.bf16.vlgmr.msra.gmra.mxu3 %v4915_v8  ;;  %5534 = vmatpush.bf16.msrb.mxu2 %v7527_v33  ;;  %v4056_v8 = vrot.slane %v9392_v40, 2  ;;  %v5033_v33 = vsel %vm2644_vm6, %v5024_v6, %v9473_v46  ;;  %v5561_v53 = vld [vmem:[%s9779_s3 + $0x10c] sm:$0xff] }
 0x270   : > { %5198 = vmatpush.bf16.msrb.mxu3 %v7499_v12  ;;  %v5038_v22 = vshll.u32 %v5016_v2, 16  ;;  %v7524_v21 = vld [vmem:[%s9777_s1 + $0x208] sm:$0xff]  ;;  %v7523_v12 = vld [vmem:[%s9777_s1 + $0x200] sm:$0xff] }
 0x271   : > { %v3508_v17 = vpop.f32.mrf.mxu2  ;;  %v3150_v0 = vpop.f32.mrf.mxu0  ;;  %v4057_v20 = vsel %vm1324_vm3, %v4054_v34, %v4056_v8 }
 0x272   : > { %v3716_v3 = vpop.f32.mrf.mxu3  ;;  %v3536_v55 = vadd.f32 %v3508_v17, %v3380_v36  ;;  %v3354_v37 = vpop.f32.mrf.mxu1  ;;  %v3177_v26 = vadd.f32 %v3150_v0, %v8932_v28  ;;  %v7507_v17 = vld [vmem:[%s9777_s1 + $0x180] sm:$0xff]  ;;  %v5040_v11 = vrot.slane %v5038_v22, 4  ;;  %5434 = vmatpush.bf16.msrb.mxu1 %v7515_v51  ;;  %v7597_v51 = vld [vmem:[%s7833_s6 + $0x90] sm:$0xe] }
 0x273   : > { %5535 = vmatpush.bf16.msrb.mxu2 %v7526_v63  ;;  %5312 = vmatpush.bf16.msrb.mxu0 %v7507_v17 }
 0x274   : > { %v9457_v1 = vadd.f32 %v3716_v3, %v3536_v55  ;;  %v3381_v28 = vadd.f32 %v3354_v37, %v3177_v26  ;;  %5199 = vmatpush.bf16.msrb.mxu3 %v7498_v41  ;;  %v5035_v3 = vshrl.u32 %v5016_v2, 16  ;;  %v3896_v26 = vrot.slane %v3894_v18, 2 }
 0x275   : > { %4276 = vperm.xlu2 %7694, %v4198_v27  }
 0x276   : > { %v5037_v47 = vrot.slane %v5035_v3, 3  ;;  %v3897_v63 = vor.u32 %v3896_v26, %v3893_v50 }
 0x277   : > { %5536 = vmatpush.bf16.msrb.mxu2 %v7525_v7 }
 0x278   : > { %v5041_v6 = vor.u32 %v5040_v11, %v5037_v47  ;;  %v5356_v47 = vshll.u32 %v9406_v54, 16  ;;  %v9556_v11 = vld [vmem:[%s7833_s6 + $0x98] sm:$0xff] }
 0x279   : > { %v3510_v59 = vpop.f32.mrf.mxu2  ;;  %v3153_v35 = vpop.f32.mrf.mxu0 }
 0x27a   : > { %v3718_v36 = vpop.f32.mrf.mxu3  ;;  %v3537_v38 = vadd.f32 %v3510_v59, %v3381_v28  ;;  %v3357_v10 = vpop.f32.mrf.mxu1  ;;  %v3178_v13 = vadd.f32 %v3153_v35, %v8954_v48  ;;  %v3768_v59 = vld [vmem:[%s7833_s6 + $0x90] sm:$0x1] }
 0x27b   : > { %5537 = vmatpush.bf16.msrb.mxu2 %v7524_v21 }
 0x27c   : > { %v9503_v34 = vadd.f32 %v3718_v36, %v3537_v38  ;;  %v3382_v48 = vadd.f32 %v3357_v10, %v3178_v13  ;;  %3993 = vmatmul.bf16.gmra.mxu0 %v3889_v9  ;;  %v3898_v9 = vsel %vm1105_vm2, %v9469_v32, %v3897_v63 }
 0x27d   : > { %4151 = vmatmul.bf16.gmra.mxu1 %v4057_v20  ;;  %5576 = vperm.xlu2 %7694, %v5561_v53   ;;  %v7596_v53 = vld [vmem:[%s7833_s6 + $0x90] sm:$0xf0] }
 0x27e   : > { %5102 = vmatmul.bf16.vlgmr.msra.gmra.mxu2 %v5033_v33  ;;  %v4195_v33 = vld [vmem:[%s9779_s3 + $0xde] sm:$0xff] }
 0x27f   : > { %4982 = vmatmul.bf16.gmra.mxu3 %v4917_v43  ;;  %5538 = vmatpush.bf16.msrb.mxu2 %v7523_v12  ;;  %v5042_v43 = vsel %vm2644_vm6, %v9473_v46, %v5041_v6  ;;  %v5354_v12 = vshrl.u32 %v9406_v54, 16 }
 0x281   : > { %v3513_v5 = vpop.f32.mrf.mxu2  ;;  %v3155_v37 = vpop.f32.mrf.mxu0 }
 0x282   : > { %v3721_v55 = vpop.f32.mrf.mxu3  ;;  %v3538_v0 = vadd.f32 %v3513_v5, %v3382_v48  ;;  %v3359_v15 = vpop.f32.mrf.mxu1  ;;  %v3179_v19 = vadd.f32 %v3155_v37, %v8990_v42  ;;  %v4058_v42 = vrot.slane %v9489_v25, 2  ;;  %v3818_v25 = vunpack.c.l.b16 %v3768_v59 }
 0x283   : > { %v5358_v59 = vrot.slane %v5356_v47, 1 }
 0x284   : > { %v9517_v44 = vadd.f32 %v3721_v55, %v3538_v0  ;;  %v3383_v28 = vadd.f32 %v3359_v15, %v3179_v19  ;;  %v4059_v20 = vsel %vm1324_vm3, %v4056_v8, %v4058_v42  ;;  %v3827_v40 = vpack.c.b16 %v3818_v25, %v3818_v25 }
 0x285   : > { %4261 = vperm.xlu2 %7694, %v4195_v33   ;;  %v5476_v25 = vrot.slane %v9556_v11, 1 }
 0x286   : > { %v3900_v7 = vshll.u32 %v3827_v40, 16  ;;  %v4060_v22 = vrot.slane %v3827_v40, 2 }
 0x288   : > { %v3902_v3 = vrot.slane %v3900_v7, 2  ;;  %v4061_v15 = vsel %vm1324_vm3, %v4058_v42, %v4060_v22  ;;  %v4202_v7 = vpop.permute.xlu1 %4201  ;;  %vm4488_vm3 = vsmask.f32 7938 }
 0x289   : > { %v3515_v36 = vpop.f32.mrf.mxu2  ;;  %v3158_v35 = vpop.f32.mrf.mxu0 }
 0x28a   : > { %v3723_v41 = vpop.f32.mrf.mxu3  ;;  %v3539_v38 = vadd.f32 %v3515_v36, %v3383_v28  ;;  %v3362_v10 = vpop.f32.mrf.mxu1  ;;  %v3180_v13 = vadd.f32 %v3158_v35, %v9020_v57  ;;  %v3903_v37 = vsel %vm1105_vm2, %v3897_v63, %v3902_v3  ;;  %v5361_v36 = vshll.u32 %v9556_v11, 16 }
 0x28b   : > { %vm4487_vm2 = vcmask 1043456  }
 0x28c   : > { %v9541_v2 = vadd.f32 %v3723_v41, %v3539_v38  ;;  %v3384_v27 = vadd.f32 %v3362_v10, %v3180_v13  ;;  %3998 = vmatmul.bf16.gmra.mxu0 %v3898_v9  ;;  %v7598_v41 = vor.u32 %v7597_v51, %v7596_v53  ;;  %v5359_v10 = vor.u32 %v5358_v59, %v5354_v12  ;;  %v5333_v13 = vld [vmem:[%s7833_s6 + $0xa0] sm:$0x7]  ;;  %vm4489_vm4 = vmand %vm4487_vm2, %vm4488_vm3  ;;  %v4490_v12 = vld [vmem:[%s8327_s24 + $0x48] sm:$0xf] }
 0x28d   : > { %4156 = vmatmul.bf16.gmra.mxu1 %v4059_v20  ;;  %v5363_v9 = vrot.slane %v5361_v36, 1 }
 0x28e   : > { %5107 = vmatmul.bf16.gmra.mxu2 %v5042_v43  ;;  %v5475_v20 = vrot.slane %v7598_v41, 1 }
 0x28f   : > { %4987 = vmatmul.bf16.gmra.mxu3 %v4916_v39 }
 0x291   : > { %v3518_v32 = vpop.f32.mrf.mxu2  ;;  %v3160_v48 = vpop.f32.mrf.mxu0 }
 0x292   : > { %v3726_v57 = vpop.f32.mrf.mxu3  ;;  %v3540_v8 = vadd.f32 %v3518_v32, %v3384_v27  ;;  %v3364_v46 = vpop.f32.mrf.mxu1  ;;  %v3181_v31 = vadd.f32 %v3160_v48, %v9054_v56  ;;  %v7593_v56 = vld [vmem:[%s7833_s6 + $0x88] sm:$0xff]   ;;  %v5477_v48 = vsel %vm682_vm1, %v5475_v20, %v5476_v25 }
 0x294   : > { %v9546_v18 = vadd.f32 %v3726_v57, %v3540_v8  ;;  %v3385_v17 = vadd.f32 %v3364_v46, %v3181_v31  ;;  %v5364_v57 = vsel %vm476_vm0, %v5359_v10, %v5363_v9  ;;  %v5351_v8 = vunpack.c.l.b16 %v5333_v13 }
 0x297   : > { %v4212_v13 = vpop.permute.xlu0 %4211 }
 0x299   : > { %v3520_v5 = vpop.f32.mrf.mxu2  ;;  %v3163_v55 = vpop.f32.mrf.mxu0 }
 0x29a   : > { %v3728_v23 = vpop.f32.mrf.mxu3  ;;  %v3541_v39 = vadd.f32 %v3520_v5, %v3385_v17  ;;  %v3367_v0 = vpop.f32.mrf.mxu1  ;;  %v3182_v50 = vadd.f32 %v3163_v55, %v9090_v45  ;;  %v9574_v17 = vpack.c.b16 %v5351_v8, %v5351_v8  ;;  %v5365_v55 = vshrl.u32 %v9556_v11, 16 }
 0x29c   : > { %v9552_v26 = vadd.f32 %v3728_v23, %v3541_v39  ;;  %v3386_v19 = vadd.f32 %v3367_v0, %v3182_v50  ;;  %4003 = vmatmul.bf16.gmra.mxu0 %v3903_v37  ;;  %v5369_v0 = vshll.u32 %v9574_v17, 16  ;;  %v4207_v50 = vpop.permute.xlu2 %4206 }
 0x29d   : > { %4161 = vmatmul.bf16.gmra.mxu1 %v4061_v15 }
 0x29e   : > { %5112 = vmatmul.bf16.gmra.mxu2 %v5041_v6  ;;  %v5371_v47 = vrot.slane %v5369_v0, 1 }
 0x29f   : > { %5200 = vmatmul.bf16.vlgmr.msrb.gmra.mxu3 %v7593_v56 }
 0x2a1   : > { %v3523_v21 = vpop.f32.mrf.mxu2  ;;  %v3165_v42 = vpop.f32.mrf.mxu0 }
 0x2a2   : > { %v3731_v28 = vpop.f32.mrf.mxu3  ;;  %v3542_v63 = vadd.f32 %v3523_v21, %v3386_v19  ;;  %v3369_v45 = vpop.f32.mrf.mxu1  ;;  %v3183_v6 = vadd.f32 %v3165_v42, %v9135_v52  ;;  %v5367_v19 = vor.u32 %v5365_v55, %v5363_v9 }
 0x2a3   : > { %v4217_v0 = vpop.permute.xlu1 %4216 }
 0x2a4   : > { %v9563_v38 = vadd.f32 %v3731_v28, %v3542_v63  ;;  %v3387_v35 = vadd.f32 %v3369_v45, %v3183_v6  ;;  %v5478_v28 = vrot.slane %v9574_v17, 1  ;;  %v5140_v6 = vpack.c.b16 %v9475_v16, %v9475_v16 }
 0x2a5   : > { %v5372_v41 = vsel %vm476_vm0, %v5367_v19, %v5371_v47  ;;  %vm9594_vm0 = vmor %vm2405_vm7, %vm4327_vm5 }
 0x2a6   : > { %v5479_v20 = vsel %vm682_vm1, %v5476_v25, %v5478_v28  ;;  %v9601_v25 = vld [vmem:[%s9778_s2] ss:$0 sm:$0xff]  ;;  %vm4507_vm1 = vsmask.f32 3328 }
 0x2a7   : > { %vm4508_vm6 = vmand %vm4487_vm2, %vm4507_vm1 }
 0x2a8   : > { %vm9737_vm15 = vmor %vm4507_vm1, %vm5604_vm14 }
 0x2a9   : > { %v3525_v43 = vpop.f32.mrf.mxu2  ;;  %v3969_v40 = vpop.f32.mrf.mxu0 }
 0x2aa   : > { %v3733_v33 = vpop.f32.mrf.mxu3  ;;  %v3543_v27 = vadd.f32 %v3525_v43, %v3387_v35  ;;  %v4127_v32 = vpop.f32.mrf.mxu1  ;;  %v4009_v52 = vadd.f32 %v3969_v40, %v9169_v24 }
 0x2ac   : > { %v9570_v46 = vadd.f32 %v3733_v33, %v3543_v27  ;;  %v4167_v31 = vadd.f32 %v4127_v32, %v4009_v52  ;;  %5313 = vmatmul.bf16.vlgmr.msrb.gmra.mxu0 %v9406_v54 }
 0x2ad   : > { %5435 = vmatmul.bf16.vlgmr.msrb.gmra.mxu1 %v5364_v57 }
 0x2ae   : > { %5539 = vmatmul.bf16.vlgmr.msrb.gmra.mxu2 %v5477_v48  ;;  %v4279_v3 = vmul.f32 %v4202_v7, %v4167_v31  ;;  %v5224_v7 = vld [vmem:[%s7833_s6 + $0xa0] sm:$0x3] }
 0x2af   : > { %5205 = vmatmul.bf16.gmra.mxu3 %v9406_v54 }
 0x2b0   : > { %v4295_v22 = vmax.f32 %v4279_v3, 0.0 }
 0x2b1   : > { %v4611_v5 = vpop.f32.mrf.mxu2  ;;  %v3971_v24 = vpop.f32.mrf.mxu0 }
 0x2b2   : > { %v9576_v23 = vpop.f32.mrf.mxu3  ;;  %v4129_v39 = vpop.f32.mrf.mxu1  ;;  %v4311_v37 = vpack.c.bf16 %v4295_v22, %v4295_v22  ;;  %v4010_v15 = vadd.f32 %v3971_v24, %v9214_v29  ;;  %v4625_v32 = vadd.f32 %v9601_v25, %v4611_v5 }
 0x2b4   : > { %v4330_v54 = vshrl.u32 %v4311_v37, 16  ;;  %v4168_v56 = vadd.f32 %v4129_v39, %v4010_v15  ;;  %v4333_v51 = vshll.u32 %v4311_v37, 16  ;;  %v5250_v37 = vunpack.c.l.b16 %v5224_v7 }
 0x2b6   : > { %v4332_v53 = vrot.slane %v4330_v54, 7  ;;  %v4280_v21 = vmul.f32 %v4207_v50, %v4168_v56  ;;  %v5373_v50 = vshrl.u32 %v9574_v17, 16 }
 0x2b8   : > { %v4335_v63 = vor.u32 %v4333_v51, %v4332_v53  ;;  %v4296_v42 = vmax.f32 %v4280_v21, 0.0  ;;  %v5253_v51 = vpack.c.b16 %v5250_v37, %v5250_v37 }
 0x2b9   : > { %v4613_v45 = vpop.f32.mrf.mxu2  ;;  %v3974_v59 = vpop.f32.mrf.mxu0 }
 0x2ba   : > { %v4623_v29 = vpop.f32.mrf.mxu3  ;;  %v4132_v36 = vpop.f32.mrf.mxu1  ;;  %v4491_v35 = vsel %vm4489_vm4, %v4335_v63, %v4490_v12  ;;  %v4312_v10 = vpack.c.bf16 %v4296_v42, %v4296_v42  ;;  %v4011_v9 = vadd.f32 %v3974_v59, %v9245_v60 }
 0x2bb   : > { %4492 = vst [vmem:[%s8327_s24 + $0x48] sm:$0xf] %v4491_v35 }
 0x2bc   : > { %v4338_v43 = vshrl.u32 %v4312_v10, 16  ;;  %v4169_v33 = vadd.f32 %v4132_v36, %v4011_v9  ;;  %5318 = vmatmul.bf16.gmra.mxu0 %v9556_v11  ;;  %v4341_v27 = vshll.u32 %v4312_v10, 16  ;;  %v4336_v11 = vrot.slane %v4332_v53, 4  ;;  %v4222_v9 = vpop.permute.xlu2 %4221 }
 0x2bd   : > { %5440 = vmatmul.bf16.gmra.mxu1 %v5372_v41  ;;  %v4626_v53 = vadd.f32 %v9601_v25, %v4613_v45 }
 0x2be   : > { %5544 = vmatmul.bf16.gmra.mxu2 %v5479_v20  ;;  %v4340_v16 = vrot.slane %v4338_v43, 7  ;;  %v4281_v40 = vmul.f32 %v4212_v13, %v4169_v33 }
 0x2bf   : > { %5210 = vmatmul.bf16.gmra.mxu3 %v5140_v6 }
 0x2c0   : > { %v4343_v57 = vor.u32 %v4341_v27, %v4340_v16  ;;  %v4297_v8 = vmax.f32 %v4281_v40, 0.0  ;;  %v4345_v21 = vrot.slane %v4340_v16, 4 }
 0x2c1   : > { %v4616_v52 = vpop.f32.mrf.mxu2  ;;  %v3976_v3 = vpop.f32.mrf.mxu0 }
 0x2c2   : > { %v4753_v48 = vpop.f32.mrf.mxu3  ;;  %v4134_v22 = vpop.f32.mrf.mxu1  ;;  %v4344_v24 = vsel %vm9594_vm0, %v4336_v11, %v4343_v57  ;;  %v4313_v39 = vpack.c.bf16 %v4297_v8, %v4297_v8  ;;  %v4012_v55 = vadd.f32 %v3976_v3, %v9286_v14  ;;  %v5375_v14 = vor.u32 %v5373_v50, %v5371_v47 }
 0x2c3   : > { %v4767_v31 = vadd.f32 %v4753_v48, %v4625_v32  ;;  %4493 = vst [vmem:[%s8327_s24 + $0x4c] sm:$0xf] %v4344_v24  ;;  %v4627_v33 = vadd.f32 %v9601_v25, %v4616_v52  ;;  %v4227_v3 = vpop.permute.xlu0 %4226 }
 0x2c4   : > { %v4347_v15 = vshrl.u32 %v4313_v39, 16  ;;  %v4170_v5 = vadd.f32 %v4134_v22, %v4012_v55  ;;  %v4350_v56 = vshll.u32 %v4313_v39, 16 }
 0x2c6   : > { %v4349_v54 = vrot.slane %v4347_v15, 7  ;;  %v4282_v19 = vmul.f32 %v4217_v0, %v4170_v5 }
 0x2c8   : > { %v4352_v63 = vor.u32 %v4350_v56, %v4349_v54  ;;  %v4298_v42 = vmax.f32 %v4282_v19, 0.0  ;;  %v4354_v16 = vrot.slane %v4349_v54, 4 }
 0x2c9   : > { %v4618_v29 = vpop.f32.mrf.mxu2  ;;  %v3979_v36 = vpop.f32.mrf.mxu0 }
 0x2ca   : > { %v4755_v12 = vpop.f32.mrf.mxu3  ;;  %v4137_v6 = vpop.f32.mrf.mxu1  ;;  %v4353_v41 = vsel %vm9594_vm0, %v4345_v21, %v4352_v63  ;;  %v4314_v35 = vpack.c.bf16 %v4298_v42, %v4298_v42  ;;  %v4013_v10 = vadd.f32 %v3979_v36, %v9303_v4  ;;  %v4628_v0 = vadd.f32 %v9601_v25, %v4618_v29 }
 0x2cb   : > { %v4768_v59 = vadd.f32 %v4755_v12, %v4626_v53  ;;  %4494 = vst [vmem:[%s8327_s24 + $0x50] sm:$0xf] %v4353_v41  ;;  %v4232_v63 = vpop.permute.xlu1 %4231 }
 0x2cc   : > { %v4356_v20 = vshrl.u32 %v4314_v35, 16  ;;  %v4171_v45 = vadd.f32 %v4137_v6, %v4013_v10  ;;  %5323 = vmatmul.bf16.gmra.mxu0 %v5253_v51  ;;  %v4359_v47 = vshll.u32 %v4314_v35, 16 }
 0x2cd   : > { %5445 = vmatmul.bf16.gmra.mxu1 %v5375_v14 }
 0x2ce   : > { %5549 = vmatmul.bf16.gmra.mxu2 %v5478_v28  ;;  %v4358_v13 = vrot.slane %v4356_v20, 7  ;;  %v4283_v43 = vmul.f32 %v4222_v9, %v4171_v45 }
 0x2d0   : > { %v4361_v27 = vor.u32 %v4359_v47, %v4358_v13  ;;  %v4299_v40 = vmax.f32 %v4283_v43, 0.0 }
 0x2d1   : > { %v4857_v4 = vpop.f32.mrf.mxu2  ;;  %v3981_v8 = vpop.f32.mrf.mxu0 }
 0x2d2   : > { %v4758_v32 = vpop.f32.mrf.mxu3  ;;  %v9618_v57 = vadd.f32 %v4857_v4, %v4767_v31  ;;  %v4139_v48 = vpop.f32.mrf.mxu1  ;;  %v4362_v17 = vsel %vm9594_vm0, %v4354_v16, %v4361_v27  ;;  %v4315_v28 = vpack.c.bf16 %v4299_v40, %v4299_v40  ;;  %v4014_v7 = vadd.f32 %v3981_v8, %v9347_v62 }
 0x2d3   : > { %v4769_v11 = vadd.f32 %v4758_v32, %v4627_v33  ;;  %4495 = vst [vmem:[%s8327_s24 + $0x54] sm:$0xf] %v4362_v17  ;;  %v4363_v31 = vrot.slane %v4358_v13, 4  ;;  %v4237_v16 = vpop.permute.xlu2 %4236  ;;  %v4247_v27 = vpop.permute.xlu1 %4246 }
 0x2d4   : > { %v4365_v22 = vshrl.u32 %v4315_v28, 16  ;;  %v4172_v52 = vadd.f32 %v4139_v48, %v4014_v7  ;;  %v4368_v39 = vshll.u32 %v4315_v28, 16 }
 0x2d6   : > { %v4367_v24 = vrot.slane %v4365_v22, 7  ;;  %v4284_v55 = vmul.f32 %v4227_v3, %v4172_v52 }
 0x2d8   : > { %v4370_v37 = vor.u32 %v4368_v39, %v4367_v24  ;;  %v4300_v15 = vmax.f32 %v4284_v55, 0.0  ;;  %v4372_v6 = vrot.slane %v4367_v24, 4  ;;  %v4242_v39 = vpop.permute.xlu0 %4241 }
 0x2d9   : > { %v4859_v50 = vpop.f32.mrf.mxu2  ;;  %v3984_v19 = vpop.f32.mrf.mxu0 }
 0x2da   : > { %v4760_v5 = vpop.f32.mrf.mxu3  ;;  %v9625_v56 = vadd.f32 %v4859_v50, %v4768_v59  ;;  %v4142_v62 = vpop.f32.mrf.mxu1  ;;  %v4371_v53 = vsel %vm9594_vm0, %v4363_v31, %v4370_v37  ;;  %v4316_v51 = vpack.c.bf16 %v4300_v15, %v4300_v15  ;;  %v4015_v21 = vadd.f32 %v3984_v19, %v9375_v30 }
 0x2db   : > { %v4770_v54 = vadd.f32 %v4760_v5, %v4628_v0  ;;  %4496 = vst [vmem:[%s8327_s24 + $0x58] sm:$0xf] %v4371_v53  ;;  %v4629_v59 = vadd.f32 %v9601_v25, %v9576_v23  ;;  %v4252_v31 = vpop.permute.xlu2 %4251  ;;  %v9645_v37 = vpop.permute.xlu1 %4271 }
 0x2dc   : > { %v4374_v42 = vshrl.u32 %v4316_v51, 16  ;;  %v4173_v29 = vadd.f32 %v4142_v62, %v4015_v21  ;;  %v4377_v14 = vshll.u32 %v4316_v51, 16 }
 0x2de   : > { %v4376_v12 = vrot.slane %v4374_v42, 7  ;;  %v4285_v36 = vmul.f32 %v4232_v63, %v4173_v29 }
 0x2e0   : > { %v4379_v41 = vor.u32 %v4377_v14, %v4376_v12  ;;  %v4301_v35 = vmax.f32 %v4285_v36, 0.0  ;;  %v4381_v8 = vrot.slane %v4376_v12, 4 }
 0x2e1   : > { %v4862_v9 = vpop.f32.mrf.mxu2  ;;  %v3986_v30 = vpop.f32.mrf.mxu0 }
 0x2e2   : > { %v4763_v10 = vpop.f32.mrf.mxu3  ;;  %v9633_v45 = vadd.f32 %v4862_v9, %v4769_v11  ;;  %v4144_v13 = vpop.f32.mrf.mxu1  ;;  %v4380_v47 = vsel %vm9594_vm0, %v4372_v6, %v4379_v41  ;;  %v4317_v43 = vpack.c.bf16 %v4301_v35, %v4301_v35  ;;  %v4016_v33 = vadd.f32 %v3986_v30, %v9419_v49 }
 0x2e3   : > { %v4771_v20 = vadd.f32 %v4763_v10, %v4629_v59  ;;  %4497 = vst [vmem:[%s8327_s24 + $0x5c] sm:$0xf] %v4380_v47  ;;  %v9655_v59 = vpop.permute.xlu0 %5586  ;;  %v9657_v10 = vpop.permute.xlu2 %4276 }
 0x2e4   : > { %v4383_v23 = vshrl.u32 %v4317_v43, 16  ;;  %v4174_v25 = vadd.f32 %v4144_v13, %v4016_v33  ;;  %v4386_v32 = vshll.u32 %v4317_v43, 16  ;;  %v9659_v9 = vpop.permute.xlu1 %5571 }
 0x2e6   : > { %v4385_v40 = vrot.slane %v4383_v23, 7  ;;  %v4286_v4 = vmul.f32 %v4237_v16, %v4174_v25 }
 0x2e8   : > { %v4388_v11 = vor.u32 %v4386_v32, %v4385_v40  ;;  %v4302_v48 = vmax.f32 %v4286_v4, 0.0 }
 0x2e9   : > { %v4864_v28 = vpop.f32.mrf.mxu2  ;;  %v3989_v3 = vpop.f32.mrf.mxu0 }
 0x2ea   : > { %v4765_v17 = vpop.f32.mrf.mxu3  ;;  %v9639_v7 = vadd.f32 %v4864_v28, %v4770_v54  ;;  %v4147_v22 = vpop.f32.mrf.mxu1  ;;  %v4389_v49 = vsel %vm9594_vm0, %v4381_v8, %v4388_v11  ;;  %v4318_v52 = vpack.c.bf16 %v4302_v48, %v4302_v48  ;;  %v4017_v24 = vadd.f32 %v3989_v3, %v9457_v1 }
 0x2eb   : > { %4498 = vst [vmem:[%s8327_s24 + $0x60] sm:$0xf] %v4389_v49  ;;  %v4390_v54 = vrot.slane %v4385_v40, 4  ;;  %v9667_v11 = vpop.permute.xlu0 %5566 }
 0x2ec   : > { %v4392_v55 = vshrl.u32 %v4318_v52, 16  ;;  %v4175_v0 = vadd.f32 %v4147_v22, %v4017_v24  ;;  %v4395_v5 = vshll.u32 %v4318_v52, 16 }
 0x2ee   : > { %v4394_v15 = vrot.slane %v4392_v55, 7  ;;  %v4287_v50 = vmul.f32 %v4242_v39, %v4175_v0  ;;  %v9677_v55 = vpop.permute.xlu2 %5576  ;;  %v4257_v0 = vpop.permute.xlu1 %4256 }
 0x2f0   : > { %v4397_v19 = vor.u32 %v4395_v5, %v4394_v15  ;;  %v4303_v62 = vmax.f32 %v4287_v50, 0.0 }
 0x2f1   : > { %v4867_v53 = vpop.f32.mrf.mxu2  ;;  %v3991_v1 = vpop.f32.mrf.mxu0 }
 0x2f2   : > { %v9647_v51 = vpop.f32.mrf.mxu3  ;;  %v9649_v21 = vadd.f32 %v4867_v53, %v4771_v20  ;;  %v4149_v63 = vpop.f32.mrf.mxu1  ;;  %v4398_v42 = vsel %vm9594_vm0, %v4390_v54, %v4397_v19  ;;  %v4319_v29 = vpack.c.bf16 %v4303_v62, %v4303_v62  ;;  %v4018_v12 = vadd.f32 %v3991_v1, %v9503_v34 }
 0x2f3   : > { %4499 = vst [vmem:[%s8327_s24 + $0x64] sm:$0xf] %v4398_v42  ;;  %v4399_v20 = vrot.slane %v4394_v15, 4 }
 0x2f4   : > { %v4401_v14 = vshrl.u32 %v4319_v29, 16  ;;  %v4176_v36 = vadd.f32 %v4149_v63, %v4018_v12  ;;  %v4404_v41 = vshll.u32 %v4319_v29, 16 }
 0x2f6   : > { %v4403_v6 = vrot.slane %v4401_v14, 7  ;;  %v4288_v35 = vmul.f32 %v4247_v27, %v4176_v36  ;;  %v9686_v36 = vpop.permute.xlu0 %5581 }
 0x2f8   : > { %v4406_v30 = vor.u32 %v4404_v41, %v4403_v6  ;;  %v4304_v13 = vmax.f32 %v4288_v35, 0.0  ;;  %v4408_v48 = vrot.slane %v4403_v6, 4  ;;  %v4262_v35 = vpop.permute.xlu2 %4261 }
 0x2f9   : > { %v4869_v47 = vpop.f32.mrf.mxu2  ;;  %v3994_v34 = vpop.f32.mrf.mxu0 }
 0x2fa   : > { %v9661_v43 = vpop.f32.mrf.mxu3  ;;  %v4152_v33 = vpop.f32.mrf.mxu1  ;;  %v4407_v16 = vsel %vm9594_vm0, %v4399_v20, %v4406_v30  ;;  %v4320_v23 = vpack.c.bf16 %v4304_v13, %v4304_v13  ;;  %v4019_v25 = vadd.f32 %v3994_v34, %v9517_v44 }
 0x2fb   : > { %4500 = vst [vmem:[%s8327_s24 + $0x68] sm:$0xf] %v4407_v16 }
 0x2fc   : > { %v4410_v27 = vshrl.u32 %v4320_v23, 16  ;;  %v4177_v40 = vadd.f32 %v4152_v33, %v4019_v25  ;;  %v4413_v4 = vshll.u32 %v4320_v23, 16 }
 0x2fe   : > { %v4412_v32 = vrot.slane %v4410_v27, 7  ;;  %v4289_v8 = vmul.f32 %v4252_v31, %v4177_v40 }
 0x300   : > { %v4415_v17 = vor.u32 %v4413_v4, %v4412_v32  ;;  %v4305_v28 = vmax.f32 %v4289_v8, 0.0  ;;  %v4417_v19 = vrot.slane %v4412_v32, 4 }
 0x301   : > { %v9671_v22 = vpop.f32.mrf.mxu2  ;;  %v3996_v49 = vpop.f32.mrf.mxu0 }
 0x302   : > { %v9669_v3 = vpop.f32.mrf.mxu3  ;;  %v4154_v52 = vpop.f32.mrf.mxu1  ;;  %v4416_v44 = vsel %vm9594_vm0, %v4408_v48, %v4415_v17  ;;  %v4321_v24 = vpack.c.bf16 %v4305_v28, %v4305_v28  ;;  %v4020_v39 = vadd.f32 %v3996_v49, %v9541_v2 }
 0x303   : > { %4501 = vst [vmem:[%s8327_s24 + $0x6c] sm:$0xf] %v4416_v44  ;;  %v4267_v48 = vpop.permute.xlu0 %4266 }
 0x304   : > { %v4419_v31 = vshrl.u32 %v4321_v24, 16  ;;  %v4178_v15 = vadd.f32 %v4154_v52, %v4020_v39  ;;  %v4422_v50 = vshll.u32 %v4321_v24, 16 }
 0x306   : > { %v4421_v5 = vrot.slane %v4419_v31, 7  ;;  %v4290_v54 = vmul.f32 %v4257_v0, %v4178_v15 }
 0x308   : > { %v4424_v62 = vor.u32 %v4422_v50, %v4421_v5  ;;  %v4306_v53 = vmax.f32 %v4290_v54, 0.0  ;;  %v4426_v47 = vrot.slane %v4421_v5, 4 }
 0x309   : > { %v9681_v63 = vpop.f32.mrf.mxu2  ;;  %v3999_v42 = vpop.f32.mrf.mxu0 }
 0x30a   : > { %v9679_v1 = vpop.f32.mrf.mxu3  ;;  %v4157_v29 = vpop.f32.mrf.mxu1  ;;  %v4425_v2 = vsel %vm9594_vm0, %v4417_v19, %v4424_v62  ;;  %v4322_v12 = vpack.c.bf16 %v4306_v53, %v4306_v53  ;;  %v4021_v14 = vadd.f32 %v3999_v42, %v9546_v18 }
 0x30b   : > { %4502 = vst [vmem:[%s8327_s24 + $0x70] sm:$0xf] %v4425_v2 }
 0x30c   : > { %v4428_v6 = vshrl.u32 %v4322_v12, 16  ;;  %v4179_v41 = vadd.f32 %v4157_v29, %v4021_v14  ;;  %v4431_v30 = vshll.u32 %v4322_v12, 16 }
 0x30e   : > { %v4430_v20 = vrot.slane %v4428_v6, 7  ;;  %v4291_v13 = vmul.f32 %v4262_v35, %v4179_v41 }
 0x310   : > { %v4433_v34 = vor.u32 %v4431_v30, %v4430_v20  ;;  %v4307_v33 = vmax.f32 %v4291_v13, 0.0  ;;  %v4435_v52 = vrot.slane %v4430_v20, 4 }
 0x311   : > { %v9691_v23 = vpop.f32.mrf.mxu2  ;;  %v4001_v25 = vpop.f32.mrf.mxu0 }
 0x312   : > { %v9689_v16 = vpop.f32.mrf.mxu3  ;;  %v4159_v27 = vpop.f32.mrf.mxu1  ;;  %v4434_v18 = vsel %vm9594_vm0, %v4426_v47, %v4433_v34  ;;  %v4323_v40 = vpack.c.bf16 %v4307_v33, %v4307_v33  ;;  %v4022_v32 = vadd.f32 %v4001_v25, %v9552_v26 }
 0x313   : > { %4503 = vst [vmem:[%s8327_s24 + $0x74] sm:$0xf] %v4434_v18 }
 0x314   : > { %v4437_v4 = vshrl.u32 %v4323_v40, 16  ;;  %v4180_v8 = vadd.f32 %v4159_v27, %v4022_v32  ;;  %v4440_v28 = vshll.u32 %v4323_v40, 16 }
 0x316   : > { %v4439_v17 = vrot.slane %v4437_v4, 7  ;;  %v4292_v49 = vmul.f32 %v4267_v48, %v4180_v8 }
 0x318   : > { %v4442_v44 = vor.u32 %v4440_v28, %v4439_v17  ;;  %v4308_v24 = vmax.f32 %v4292_v49, 0.0  ;;  %v4444_v29 = vrot.slane %v4439_v17, 4 }
 0x319   : > { %v9697_v0 = vpop.f32.mrf.mxu2  ;;  %v4004_v31 = vpop.f32.mrf.mxu0 }
 0x31a   : > { %v4990_v39 = vpop.f32.mrf.mxu3  ;;  %v4162_v15 = vpop.f32.mrf.mxu1  ;;  %v4443_v5 = vsel %vm9594_vm0, %v4435_v52, %v4442_v44  ;;  %v4324_v26 = vpack.c.bf16 %v4308_v24, %v4308_v24  ;;  %v4023_v50 = vadd.f32 %v4004_v31, %v9563_v38 }
 0x31b   : > { %4504 = vst [vmem:[%s8327_s24 + $0x78] sm:$0xf] %v4443_v5 }
 0x31c   : > { %v4446_v54 = vshrl.u32 %v4324_v26, 16  ;;  %v4181_v19 = vadd.f32 %v4162_v15, %v4023_v50  ;;  %v4449_v53 = vshll.u32 %v4324_v26, 16  ;;  %v4509_v15 = vld [vmem:[%s8327_s24 + $0x84] sm:$0xf] }
 0x31e   : > { %v4448_v62 = vrot.slane %v4446_v54, 7  ;;  %v4293_v42 = vmul.f32 %v9645_v37, %v4181_v19  ;;  %v4992_v37 = vadd.f32 %v9647_v51, %v9618_v57 }
 0x320   : > { %v4451_v2 = vor.u32 %v4449_v53, %v4448_v62  ;;  %v4309_v12 = vmax.f32 %v4293_v42, 0.0  ;;  %v5117_v27 = vadd.f32 %v9671_v22, %v4992_v37  ;;  %v4453_v18 = vrot.slane %v4448_v62, 4 }
 0x321   : > { %v9704_v14 = vpop.f32.mrf.mxu2  ;;  %v4006_v41 = vpop.f32.mrf.mxu0  ;;  %v4994_v42 = vadd.f32 %v9669_v3, %v9633_v45 }
 0x322   : > { %v5201_v6 = vpop.f32.mrf.mxu3  ;;  %v4164_v35 = vpop.f32.mrf.mxu1  ;;  %v4452_v20 = vsel %vm9594_vm0, %v4444_v29, %v4451_v2  ;;  %v4325_v38 = vpack.c.bf16 %v4309_v12, %v4309_v12  ;;  %v4024_v30 = vadd.f32 %v4006_v41, %v9570_v46 }
 0x323   : > { %4505 = vst [vmem:[%s8327_s24 + $0x7c] sm:$0xf] %v4452_v20  ;;  %v5215_v48 = vadd.f32 %v5201_v6, %v5117_v27  ;;  %v5119_v2 = vadd.f32 %v9691_v23, %v4994_v42 }
 0x324   : > { %v4455_v13 = vshrl.u32 %v4325_v38, 16  ;;  %v4182_v47 = vadd.f32 %v4164_v35, %v4024_v30  ;;  %v4458_v33 = vshll.u32 %v4325_v38, 16 }
 0x326   : > { %v4457_v34 = vrot.slane %v4455_v13, 7  ;;  %v4294_v25 = vmul.f32 %v9657_v10, %v4182_v47  ;;  %v4993_v10 = vadd.f32 %v9661_v43, %v9625_v56 }
 0x328   : > { %v4460_v40 = vor.u32 %v4458_v33, %v4457_v34  ;;  %v4310_v32 = vmax.f32 %v4294_v25, 0.0  ;;  %v5118_v44 = vadd.f32 %v9681_v63, %v4993_v10  ;;  %v4462_v39 = vrot.slane %v4457_v34, 4 }
 0x329   : > { %v5115_v4 = vpop.f32.mrf.mxu2  ;;  %v5314_v46 = vpop.f32.mrf.mxu0  ;;  %v4995_v34 = vadd.f32 %v9679_v1, %v9639_v7 }
 0x32a   : > { %v5203_v8 = vpop.f32.mrf.mxu3  ;;  %v5436_v17 = vpop.f32.mrf.mxu1  ;;  %v4461_v28 = vsel %vm9594_vm0, %v4453_v18, %v4460_v40  ;;  %v4326_v49 = vpack.c.bf16 %v4310_v32, %v4310_v32  ;;  %v5328_v57 = vadd.f32 %v5314_v46, %v5215_v48 }
 0x32b   : > { %4506 = vst [vmem:[%s8327_s24 + $0x80] sm:$0xf] %v4461_v28  ;;  %v5216_v50 = vadd.f32 %v5203_v8, %v5118_v44  ;;  %v5120_v18 = vadd.f32 %v9697_v0, %v4995_v34 }
 0x32c   : > { %v4464_v51 = vshrl.u32 %v4326_v49, 16  ;;  %v4467_v52 = vshll.u32 %v4326_v49, 16  ;;  %v5450_v24 = vadd.f32 %v5436_v17, %v5328_v57 }
 0x32e   : > { %v4466_v22 = vrot.slane %v4464_v51, 7 }
 0x330   : > { %v4469_v31 = vor.u32 %v4467_v52, %v4466_v22  ;;  %v4996_v22 = vadd.f32 %v9689_v16, %v9649_v21 }
 0x331   : > { %v5540_v26 = vpop.f32.mrf.mxu2  ;;  %v5316_v19 = vpop.f32.mrf.mxu0 }
 0x332   : > { %v5206_v5 = vpop.f32.mrf.mxu3  ;;  %v5554_v54 = vadd.f32 %v5540_v26, %v5450_v24  ;;  %v5438_v62 = vpop.f32.mrf.mxu1  ;;  %v4470_v56 = vsel %vm9594_vm0, %v4462_v39, %v4469_v31  ;;  %v5329_v53 = vadd.f32 %v5316_v19, %v5216_v50  ;;  %v5121_v39 = vadd.f32 %v9704_v14, %v4996_v22 }
 0x333   : > { %v4510_v43 = vsel %vm4508_vm6, %v4470_v56, %v4509_v15  ;;  %v5217_v60 = vadd.f32 %v5206_v5, %v5119_v2 }
 0x334   : > { %v5589_v63 = vmul.f32 %v9667_v11, %v5554_v54  ;;  %4511 = vst [vmem:[%s8327_s24 + $0x84] sm:$0xf] %v4510_v43  ;;  %v5451_v6 = vadd.f32 %v5438_v62, %v5329_v53 }
 0x336   : > { %v5594_v29 = vmax.f32 %v5589_v63, 0.0 }
 0x338   : > { %v5599_v12 = vpack.c.bf16 %v5594_v29, %v5594_v29 }
 0x339   : > { %v5542_v35 = vpop.f32.mrf.mxu2  ;;  %v5319_v30 = vpop.f32.mrf.mxu0 }
 0x33a   : > { %v5208_v41 = vpop.f32.mrf.mxu3  ;;  %v5607_v20 = vshll.u32 %v5599_v12, 16  ;;  %v5610_v38 = vshrl.u32 %v5599_v12, 16  ;;  %v5555_v11 = vadd.f32 %v5542_v35, %v5451_v6  ;;  %v5441_v13 = vpop.f32.mrf.mxu1  ;;  %v5330_v37 = vadd.f32 %v5319_v30, %v5217_v60 }
 0x33b   : > { %v5664_v47 = vld [vmem:[%s8327_s24 + $0x84] sm:$0x8]  ;;  %v5218_v48 = vadd.f32 %v5208_v41, %v5120_v18 }
 0x33c   : > { %v5609_v45 = vrot.slane %v5607_v20, 5  ;;  %v5612_v3 = vrot.slane %v5610_v38, 4  ;;  %v5590_v23 = vmul.f32 %v9659_v9, %v5555_v11  ;;  %v5452_v32 = vadd.f32 %v5441_v13, %v5330_v37 }
 0x33e   : > { %v5665_v33 = vsel %vm5663_vm13, %v5609_v45, %v5664_v47  ;;  %v5595_v25 = vmax.f32 %v5590_v23, 0.0  ;;  %v5613_v27 = vor.u32 %v5612_v3, %v5609_v45 }
 0x33f   : > { %5666 = vst [vmem:[%s8327_s24 + $0x84] sm:$0x8] %v5665_v33 }
 0x340   : > { %v5600_v40 = vpack.c.bf16 %v5595_v25, %v5595_v25  ;;  %v5614_v57 = vrot.slane %v5613_v27, 4 }
 0x341   : > { %v5545_v8 = vpop.f32.mrf.mxu2  ;;  %v5321_v28 = vpop.f32.mrf.mxu0 }
 0x342   : > { %v5211_v4 = vpop.f32.mrf.mxu3  ;;  %v5616_v46 = vshll.u32 %v5600_v40, 16  ;;  %v5620_v17 = vshrl.u32 %v5600_v40, 16  ;;  %v5556_v9 = vadd.f32 %v5545_v8, %v5452_v32  ;;  %v5443_v49 = vpop.f32.mrf.mxu1  ;;  %v5331_v10 = vadd.f32 %v5321_v28, %v5218_v48  ;;  %v5671_v32 = vld [vmem:[%s8327_s24 + $0x98] sm:$0x3] }
 0x343   : > { %v5219_v50 = vadd.f32 %v5211_v4, %v5121_v39 }
 0x344   : > { %v5618_v1 = vrot.slane %v5616_v46, 5  ;;  %v5622_v0 = vrot.slane %v5620_v17, 4  ;;  %v5591_v51 = vmul.f32 %v9677_v55, %v5556_v9  ;;  %v5453_v15 = vadd.f32 %v5443_v49, %v5331_v10 }
 0x346   : > { %v5619_v52 = vsel %vm9737_vm15, %v5614_v57, %v5618_v1  ;;  %v5596_v44 = vmax.f32 %v5591_v51, 0.0  ;;  %v5623_v24 = vor.u32 %v5622_v0, %v5618_v1 }
 0x347   : > { %5667 = vst [vmem:[%s8327_s24 + $0x88] sm:$0xf] %v5619_v52 }
 0x348   : > { %v5601_v31 = vpack.c.bf16 %v5596_v44, %v5596_v44  ;;  %v5624_v21 = vrot.slane %v5623_v24, 4 }
 0x349   : > { %v5547_v5 = vpop.f32.mrf.mxu2  ;;  %v5324_v62 = vpop.f32.mrf.mxu0 }
 0x34a   : > { %v5213_v26 = vpop.f32.mrf.mxu3  ;;  %v5626_v54 = vshll.u32 %v5601_v31, 16  ;;  %v5630_v55 = vshrl.u32 %v5601_v31, 16  ;;  %v5557_v19 = vadd.f32 %v5547_v5, %v5453_v15  ;;  %v5446_v56 = vpop.f32.mrf.mxu1  ;;  %v5332_v53 = vadd.f32 %v5324_v62, %v5219_v50 }
 0x34c   : > { %v5628_v16 = vrot.slane %v5626_v54, 5  ;;  %v5632_v43 = vrot.slane %v5630_v55, 4  ;;  %v5592_v63 = vmul.f32 %v9686_v36, %v5557_v19  ;;  %v5454_v12 = vadd.f32 %v5446_v56, %v5332_v53 }
 0x34e   : > { %v5629_v14 = vsel %vm9737_vm15, %v5624_v21, %v5628_v16  ;;  %v5597_v42 = vmax.f32 %v5592_v63, 0.0  ;;  %v5633_v29 = vor.u32 %v5632_v43, %v5628_v16 }
 0x34f   : > { %5668 = vst [vmem:[%s8327_s24 + $0x8c] sm:$0xf] %v5629_v14 }
 0x350   : > { %v5602_v2 = vpack.c.bf16 %v5597_v42, %v5597_v42  ;;  %v5634_v11 = vrot.slane %v5633_v29, 4 }
 0x351   : > { %v5550_v6 = vpop.f32.mrf.mxu2  ;;  %v5326_v20 = vpop.f32.mrf.mxu0 }
 0x352   : > { %v5636_v41 = vshll.u32 %v5602_v2, 16  ;;  %v5640_v35 = vshrl.u32 %v5602_v2, 16  ;;  %v5558_v60 = vadd.f32 %v5550_v6, %v5454_v12  ;;  %v5448_v38 = vpop.f32.mrf.mxu1 }
 0x354   : > { %v5638_v30 = vrot.slane %v5636_v41, 5  ;;  %v5642_v36 = vrot.slane %v5640_v35, 4  ;;  %v5593_v13 = vmul.f32 %v9655_v59, %v5558_v60 }
 0x356   : > { %v5639_v45 = vsel %vm9737_vm15, %v5634_v11, %v5638_v30  ;;  %v5598_v3 = vmax.f32 %v5593_v13, 0.0  ;;  %v5643_v47 = vor.u32 %v5642_v36, %v5638_v30 }
 0x357   : > { %5669 = vst [vmem:[%s8327_s24 + $0x90] sm:$0xf] %v5639_v45 }
 0x358   : > { %v5603_v23 = vpack.c.bf16 %v5598_v3, %v5598_v3  ;;  %v5644_v25 = vrot.slane %v5643_v47, 4 }
 0x359   : > { %v5552_v37 = vpop.f32.mrf.mxu2 }
 0x35a   : > { %v5646_v34 = vshll.u32 %v5603_v23, 16  ;;  %v5650_v33 = vshrl.u32 %v5603_v23, 16 }
 0x35c   : > { %v5648_v27 = vrot.slane %v5646_v34, 5  ;;  %v5652_v18 = vrot.slane %v5650_v33, 4 }
 0x35e   : > { %v5649_v40 = vsel %vm9737_vm15, %v5644_v25, %v5648_v27  ;;  %v5653_v59 = vor.u32 %v5652_v18, %v5648_v27 }
 0x35f   : > { %5670 = vst [vmem:[%s8327_s24 + $0x94] sm:$0xf] %v5649_v40 }
 0x360   : > { %v5654_v4 = vrot.slane %v5653_v59, 4 }
 0x362   : > { %v5672_v8 = vsel %vm8613_vm9, %v5654_v4, %v5671_v32 }
 0x363   : > { %5673 = vst [vmem:[%s8327_s24 + $0x98] sm:$0x3] %v5672_v8 }
 0x36a   : > { %v5674_v48 = vld [vmem:[%s8327_s24 + $0x98] sm:$0xe] }
 0x36b   : > { %v5675_v46 = vsel %vm8705_vm12, 0, %v5674_v48 }
 0x36c   : > { %5676 = vst [vmem:[%s8327_s24 + $0x98] sm:$0xe] %v5675_v46 }
 0x36d PF: > { %s14_s17 = sadd.s32 1, %s7731_s17   ;;  %s9793_s15 = smov %s7727_s16 }
 0x36e   : > { %p11_p5 = scmp.ge.s32.totalorder %s14_s17, 4   ;;  %s9794_s16 = smov %s9796_s18 }
 0x370   :  { %13 = sbr.rel (!%p11_p5) target bundleno = 2 (0x2), region = 80 }

</bundles_post_ra>
